<compile_context>
chip_gen: v7x
topology: tpu7x:2x2x1
jax: 0.10.0
libtpu: 0.0.40
codegen_flags: <defaults>
</compile_context>

<pallas_src>
import functools

import numpy as np
import jax
import jax.numpy as jnp
from jax.experimental import pallas as pl
from jax.experimental.pallas import tpu as pltpu

_BIG_NUMBER = 10.0 ** 6.0

# ----------------------- hyper parameters (small) -----------------------
HPS = dict(batch_size=2, sent_hdim=32, sent_edim=32, pos_edim=16,
           role_edim=16, vword=50, vbio=10, vpos=8, vdep=12, vframe=9,
           rec_layers=1, svdep=5)
T_SEQ = 8           # sentence length
N_ROLES = 6         # roles per sentence (local_roles_voc width)

B = HPS['batch_size']
H = HPS['sent_hdim']
E = HPS['sent_edim']
P = HPS['pos_edim']
DEP_IN = 2 * E + P + 1        # 81
SRL_IN = 3 * E + P + 1        # 113


# ----------------------------- kernel helpers -----------------------------
def _run_bilstm_stack(x_val, w_refs, *, n_layers, T, Hd, Bb):
    """Multi-layer bidirectional LSTM, everything held as values (vregs).

    x_val : (B, T, D_in) float32 value.
    w_refs: flat tuple of refs, 3 per layer:
            wih (D_l, 8H) fwd||bwd input weights (transposed, concatenated),
            bias (1, 8H)  b_ih + b_hh per direction, concatenated,
            whh (2H, 8H)  block-diagonal recurrent weights (fwd | bwd).
    Returns the top-layer bidirectional hidden sequence, (B, T, 2H).
    """
    H4, H8 = 4 * Hd, 8 * Hd
    cur = x_val
    for l in range(n_layers):
        wih = w_refs[3 * l][...]
        bias = w_refs[3 * l + 1][...]
        whh = w_refs[3 * l + 2][...]
        D_l = cur.shape[-1]

        # One flattened gate-input projection for both directions and the
        # whole sequence: (B*T, D) @ (D, 8H).  T == 8 => the leading-dim
        # collapse is sublane-aligned (no data movement).  Bias added once.
        gates = (jnp.dot(cur.reshape(Bb * T, D_l), wih,
                         preferred_element_type=jnp.float32) + bias)
        gates = gates.reshape(Bb, T, H8)

        h2 = jnp.zeros((Bb, 2 * Hd), jnp.float32)    # [h_fwd || h_bwd] in lanes
        c2 = jnp.zeros((2 * Bb, Hd), jnp.float32)    # [c_fwd ; c_bwd] in sublanes
        fwd_hs, bwd_hs = [], []

        # Static time loop (T=8): fwd walks t=s, bwd walks t=T-1-s.
        for s in range(T):
            tf, tb = s, T - 1 - s
            rec = jnp.dot(h2, whh, preferred_element_type=jnp.float32)   # (B, 8H)
            g_f = gates[:, tf, 0:H4] + rec[:, 0:H4]
            g_b = gates[:, tb, H4:H8] + rec[:, H4:H8]
            g = jnp.concatenate([g_f, g_b], axis=0)                      # (2B, 4H)
            # PyTorch gate order i, f, g, o; one EUP chain for both directions.
            i_g = jax.nn.sigmoid(g[:, 0:Hd])
            f_g = jax.nn.sigmoid(g[:, Hd:2 * Hd])
            g_g = jnp.tanh(g[:, 2 * Hd:3 * Hd])
            o_g = jax.nn.sigmoid(g[:, 3 * Hd:4 * Hd])
            c2 = f_g * c2 + i_g * g_g
            h_all = o_g * jnp.tanh(c2)                                   # (2B, H)
            h_f, h_b = h_all[:Bb], h_all[Bb:]
            h2 = jnp.concatenate([h_f, h_b], axis=1)                     # (B, 2H)
            fwd_hs.append(h_f)
            bwd_hs.append(h_b)

        # Assemble the layer output once (no per-step masked stores):
        # time t gets fwd step t and bwd step T-1-t.
        rows = [jnp.concatenate([fwd_hs[t], bwd_hs[T - 1 - t]], axis=1)
                for t in range(T)]
        cur = jnp.stack(rows, axis=1)                                    # (B, T, 2H)
    return cur


def _predicate_features(cur, tgt_ref, b, T, Hd):
    """concat(hs_b, broadcast(hs_b[target_idx_b])) for one batch row: (T, 4H)."""
    idx = tgt_ref[b]                                          # scalar from SMEM
    hs_b = cur[b]                                             # (T, 2H)
    t_iota = jax.lax.broadcasted_iota(jnp.int32, (T, 1), 0)
    sel = (t_iota == idx).astype(jnp.float32)                 # one-hot over time
    pred = jnp.sum(hs_b * sel, axis=0, keepdims=True)         # (1, 2H)
    return jnp.concatenate(
        [hs_b, jnp.broadcast_to(pred, (T, 2 * Hd))], axis=1)  # (T, 4H)


# ----------------------------- fused kernels ------------------------------
def _dep_fused_kernel(*args, n_layers, T, Hd, Bb):
    """BiLSTM_0 + BiLSTM_1 + predicate concat + hidden2tag/tanh/MLP + softmax."""
    tgt_ref, x_ref = args[0], args[1]
    w_refs = args[2:2 + 3 * n_layers]
    w1_ref, b1_ref, w2_ref, b2_ref = args[2 + 3 * n_layers:6 + 3 * n_layers]
    dep_ref, prob_ref = args[6 + 3 * n_layers:8 + 3 * n_layers]

    cur = _run_bilstm_stack(x_ref[...], w_refs,
                            n_layers=n_layers, T=T, Hd=Hd, Bb=Bb)     # (B,T,2H)

    # Label features in b-major (b*T + t) row order, matching .view(B*T, -1).
    lf = jnp.concatenate(
        [_predicate_features(cur, tgt_ref, b, T, Hd) for b in range(Bb)],
        axis=0)                                                       # (B*T, 4H)

    h = jnp.tanh(jnp.dot(lf, w1_ref[...],
                         preferred_element_type=jnp.float32) + b1_ref[...])
    dep = jnp.dot(h, w2_ref[...],
                  preferred_element_type=jnp.float32) + b2_ref[...]   # (B*T, vdep)
    dep_ref[...] = dep

    m = jnp.max(dep, axis=-1, keepdims=True)
    e = jnp.exp(dep - m)
    prob_ref[...] = e / jnp.sum(e, axis=-1, keepdims=True)            # exact softmax


def _srl_fused_kernel(*args, n_layers, T, Hd, Bb, Rn):
    """4-layer BiLSTM_SRL + predicate concat + role_map/relu + scores + mask
    + softmax."""
    tgt_ref, x_ref = args[0], args[1]
    w_refs = args[2:2 + 3 * n_layers]
    rc_ref, rw_ref, rb_ref, sub_ref = args[2 + 3 * n_layers:6 + 3 * n_layers]
    tag_ref, prob_ref = args[6 + 3 * n_layers:8 + 3 * n_layers]

    cur = _run_bilstm_stack(x_ref[...], w_refs,
                            n_layers=n_layers, T=T, Hd=Hd, Bb=Bb)     # (B,T,2H)

    # role_map + relu for all (batch, role) rows in one matmul: (B*R, 4H).
    mapped = jnp.maximum(
        jnp.dot(rc_ref[...], rw_ref[...],
                preferred_element_type=jnp.float32) + rb_ref[...], 0.0)

    for b in range(Bb):
        lf_b = _predicate_features(cur, tgt_ref, b, T, Hd)            # (T, 4H)
        mapped_b = mapped[b * Rn:(b + 1) * Rn]                        # (R, 4H)
        scores = jax.lax.dot_general(
            lf_b, mapped_b, (((1,), (1,)), ((), ())),
            preferred_element_type=jnp.float32)                       # (T, R)
        scores = scores + sub_ref[b]                                  # (1, R) bcast
        tag_ref[b * T:(b + 1) * T, :] = scores
        m = jnp.max(scores, axis=-1, keepdims=True)
        e = jnp.exp(scores - m)
        prob_ref[b * T:(b + 1) * T, :] = e / jnp.sum(e, axis=-1, keepdims=True)


# ------------------------------ call wrappers ------------------------------
def _full_spec(shape):
    zeros = (0,) * len(shape)
    return pl.BlockSpec(shape, lambda i, *_: zeros)   # grid=(1,), full-array block


def pallas_dep_branch(x, packed_layers, tgt_idx, w1, b1, w2, b2):
    """x:(B,T,DEP_IN) -> (dep_tag_space (B*T, vdep), TagProbs (B*T, vdep))."""
    Bb, T, _ = x.shape
    n = len(packed_layers)
    Hd = packed_layers[0][2].shape[0] // 2
    vdep = w2.shape[1]

    operands, in_specs = [x], [_full_spec(x.shape)]
    for wih, bias, whh in packed_layers:
        operands += [wih, bias, whh]
        in_specs += [_full_spec(wih.shape), _full_spec(bias.shape),
                     _full_spec(whh.shape)]
    b1_2d, b2_2d = b1.reshape(1, -1), b2.reshape(1, -1)
    operands += [w1, b1_2d, w2, b2_2d]
    in_specs += [_full_spec(w1.shape), _full_spec(b1_2d.shape),
                 _full_spec(w2.shape), _full_spec(b2_2d.shape)]

    out_sds = jax.ShapeDtypeStruct((Bb * T, vdep), jnp.float32)
    return pl.pallas_call(
        functools.partial(_dep_fused_kernel, n_layers=n, T=T, Hd=Hd, Bb=Bb),
        out_shape=(out_sds, out_sds),
        grid_spec=pltpu.PrefetchScalarGridSpec(
            num_scalar_prefetch=1, grid=(1,),
            in_specs=in_specs,
            out_specs=(_full_spec((Bb * T, vdep)), _full_spec((Bb * T, vdep)))),
        compiler_params=pltpu.CompilerParams(
            dimension_semantics=("arbitrary",)),
    )(tgt_idx, *operands)


def pallas_srl_branch(x, packed_layers, tgt_idx, role_cat_flat, rw, rb, sub):
    """x:(B,T,SRL_IN), role_cat_flat:(B*R, 2*role_edim), sub:(B,1,R)
    -> (tag_space (B*T, R), SRLprobs (B*T, R))."""
    Bb, T, _ = x.shape
    n = len(packed_layers)
    Hd = packed_layers[0][2].shape[0] // 2
    Rn = sub.shape[2]

    operands, in_specs = [x], [_full_spec(x.shape)]
    for wih, bias, whh in packed_layers:
        operands += [wih, bias, whh]
        in_specs += [_full_spec(wih.shape), _full_spec(bias.shape),
                     _full_spec(whh.shape)]
    rb_2d = rb.reshape(1, -1)
    operands += [role_cat_flat, rw, rb_2d, sub]
    in_specs += [_full_spec(role_cat_flat.shape), _full_spec(rw.shape),
                 _full_spec(rb_2d.shape), _full_spec(sub.shape)]

    out_sds = jax.ShapeDtypeStruct((Bb * T, Rn), jnp.float32)
    return pl.pallas_call(
        functools.partial(_srl_fused_kernel, n_layers=n, T=T, Hd=Hd, Bb=Bb, Rn=Rn),
        out_shape=(out_sds, out_sds),
        grid_spec=pltpu.PrefetchScalarGridSpec(
            num_scalar_prefetch=1, grid=(1,),
            in_specs=in_specs,
            out_specs=(_full_spec((Bb * T, Rn)), _full_spec((Bb * T, Rn)))),
        compiler_params=pltpu.CompilerParams(
            dimension_semantics=("arbitrary",)),
    )(tgt_idx, *operands)


# -------------------------- loss (glue, XLA) --------------------------
def cross_entropy_ignore_index0(logits, targets):
    """nn.CrossEntropyLoss(ignore_index=0), mean over non-ignored targets."""
    logp = logits - jax.nn.logsumexp(logits, axis=-1, keepdims=True)
    nll = -jnp.take_along_axis(logp, targets[:, None], axis=1)[:, 0]
    mask = (targets != 0).astype(jnp.float32)
    return jnp.sum(nll * mask) / jnp.maximum(jnp.sum(mask), 1.0)


# ------------------------------- parameters -------------------------------
class ParamGen:
    def __init__(self, seed=0):
        self.key = jax.random.PRNGKey(seed)

    def __call__(self, shape, scale=0.1):
        self.key, sub = jax.random.split(self.key)
        return scale * jax.random.normal(sub, shape, dtype=jnp.float32)


def _lstm_dir_params(gen, d_in, h):
    return (gen((4 * h, d_in)),   # W_ih   (PyTorch layout)
            gen((4 * h, h)),      # W_hh
            gen((4 * h,)),        # b_ih
            gen((4 * h,)))        # b_hh


def _pack_bilstm_layer(fwd, bwd):
    """Pack PyTorch-layout per-direction weights into the fused-kernel layout."""
    wih_f, whh_f, bih_f, bhh_f = fwd
    wih_b, whh_b, bih_b, bhh_b = bwd
    Hd = whh_f.shape[1]
    wih_cat = jnp.concatenate([wih_f.T, wih_b.T], axis=1)                  # (D, 8H)
    bias_cat = jnp.concatenate([bih_f + bhh_f, bih_b + bhh_b])[None, :]    # (1, 8H)
    whh_bd = jnp.zeros((2 * Hd, 8 * Hd), jnp.float32)
    whh_bd = whh_bd.at[:Hd, :4 * Hd].set(whh_f.T)
    whh_bd = whh_bd.at[Hd:, 4 * Hd:].set(whh_b.T)
    return wih_cat, bias_cat, whh_bd


def _packed_bilstm_layer(gen, d_in, h):
    return _pack_bilstm_layer(_lstm_dir_params(gen, d_in, h),
                              _lstm_dir_params(gen, d_in, h))


def init_params():
    gen = ParamGen(0)
    return dict(
        word_emb_SRL=gen((HPS['vword'], E)),
        word_emb_DEP=gen((HPS['vword'], E)),
        pos_emb=gen((HPS['vpos'], P)),
        pos_emb_DEP=gen((HPS['vpos'], P)),
        p_lemma_emb=gen((HPS['vframe'], E)),
        word_fixed=gen((HPS['vword'], E)),        # stands in for hps['word_embeddings']
        role_emb=gen((HPS['vbio'], HPS['role_edim'])),
        frame_emb=gen((HPS['vframe'], HPS['role_edim'])),
        hidden2tag_w=gen((4 * H, 2 * H)), hidden2tag_b=gen((2 * H,)),
        mlp_w=gen((2 * H, HPS['vdep'])), mlp_b=gen((HPS['vdep'],)),
        role_map_w=gen((2 * HPS['role_edim'], 4 * H)), role_map_b=gen((4 * H,)),
        # DEP stack = BiLSTM_0 + BiLSTM_1 (each a 1-layer bi-LSTM, zero init state).
        dep_stack=[_packed_bilstm_layer(gen, DEP_IN, H),
                   _packed_bilstm_layer(gen, 2 * H, H)],
        # SRL stack = 4-layer BiLSTM_SRL.
        srl_stack=[_packed_bilstm_layer(gen, SRL_IN if l == 0 else 2 * H, H)
                   for l in range(4)],
        # tag2hidden params omitted: its output is wrapped in zeros_like and unused.
    )


# --------------------------------- forward ---------------------------------
def forward(params, sentence, p_sentence, pos_tags, lengths, target_idx_in,
            region_marks, local_roles_voc, frames, local_roles_mask,
            sent_pred_lemmas_idx, dep_tags, targets):
    Bb, T = sentence.shape
    tgt_idx = target_idx_in.astype(jnp.int32)

    # ----- embedding lookups (XLA gathers; no clean Pallas equivalent) -----
    embeds_DEP = params['word_emb_DEP'][sentence]
    pos_embeds = params['pos_emb'][pos_tags]
    pos_embeds_DEP = params['pos_emb_DEP'][pos_tags]
    region = region_marks.reshape(Bb, T, 1).astype(jnp.float32)
    fixed_embeds_DEP = params['word_fixed'][p_sentence]
    embeds_forDEP = jnp.concatenate(
        [embeds_DEP, fixed_embeds_DEP, pos_embeds_DEP, region], axis=2)
    # DEP_input_dropout / label_dropout: eval mode => identity.
    # Equal lengths => sort_batch / pack_padded_sequence are identities.

    # ----- DEP branch: one fused pallas_call (BiLSTM_0+1 + dep head + softmax) -----
    dep_tag_space, TagProbs_flat = pallas_dep_branch(
        embeds_forDEP, params['dep_stack'], tgt_idx,
        params['hidden2tag_w'], params['hidden2tag_b'],
        params['mlp_w'], params['mlp_b'])                       # (B*T, vdep) x2
    TagProbs_use = TagProbs_flat.reshape(Bb, T, -1)
    # h1 = zeros_like(relu(tag2hidden(TagProbs))) in the reference -> zeros, unused.

    # ----- SRL branch inputs (XLA glue: gathers + concats only) -----
    fixed_embeds = params['word_fixed'][p_sentence]
    lemma_embeds = params['p_lemma_emb'][sent_pred_lemmas_idx]
    embeds_SRL = params['word_emb_SRL'][sentence]
    srl_in = jnp.concatenate(
        [embeds_SRL, fixed_embeds, lemma_embeds, pos_embeds, region], axis=2)
    # SRL_input_dropout / hidden_state_dropout: eval mode => identity.

    role_e = params['role_emb'][local_roles_voc]
    frame_e = params['frame_emb'][frames]
    Rn = local_roles_voc.shape[1]
    role_cat_flat = jnp.concatenate([role_e, frame_e], axis=2).reshape(Bb * Rn, -1)
    sub = ((local_roles_mask.astype(jnp.float32) - 1.0) * _BIG_NUMBER
           ).reshape(Bb, 1, Rn)

    # TODO(synk): on v7x the independent DEP and SRL branches could run
    # concurrently on the two TensorCores via pl.core_map; kept single-core
    # for portability to v5e/v6e.
    tag_space, SRLprobs = pallas_srl_branch(
        srl_in, params['srl_stack'], tgt_idx, role_cat_flat,
        params['role_map_w'], params['role_map_b'], sub)        # (B*T, R) x2

    SRLloss = cross_entropy_ignore_index0(tag_space, targets.reshape(-1))
    DEPloss = cross_entropy_ignore_index0(dep_tag_space, dep_tags.reshape(-1))
    loss = SRLloss + DEPloss
    return SRLloss, DEPloss, loss, SRLprobs, dep_tag_space, TagProbs_use


# ----------------------------------- main -----------------------------------
if __name__ == "__main__":
    params = init_params()

    key = jax.random.PRNGKey(0)
    ks = jax.random.split(key, 10)
    sentence = jax.random.randint(ks[0], (B, T_SEQ), 0, HPS['vword'])
    p_sentence = jax.random.randint(ks[1], (B, T_SEQ), 0, HPS['vword'])
    pos_tags = jax.random.randint(ks[2], (B, T_SEQ), 0, HPS['vpos'])
    lengths = jnp.full((B,), T_SEQ, dtype=jnp.int32)
    target_idx_in = jax.random.randint(ks[3], (B,), 0, T_SEQ)
    region_marks = jax.random.bernoulli(ks[4], 0.3, (B, T_SEQ)).astype(jnp.float32)
    local_roles_voc = jax.random.randint(ks[5], (B, N_ROLES), 0, HPS['vbio'])
    frames = jax.random.randint(ks[6], (B, N_ROLES), 0, HPS['vframe'])
    local_roles_mask = jnp.concatenate(
        [jnp.ones((B, 4), jnp.float32), jnp.zeros((B, N_ROLES - 4), jnp.float32)],
        axis=1)
    sent_pred_lemmas_idx = jax.random.randint(ks[7], (B, T_SEQ), 0, HPS['vframe'])
    dep_tags = jax.random.randint(ks[8], (B, T_SEQ), 0, HPS['vdep'])
    targets = jax.random.randint(ks[9], (B, T_SEQ), 0, 4)

    fwd = jax.jit(forward)
    outs = fwd(params, sentence, p_sentence, pos_tags, lengths, target_idx_in,
               region_marks, local_roles_voc, frames, local_roles_mask,
               sent_pred_lemmas_idx, dep_tags, targets)
    outs = jax.block_until_ready(outs)
    SRLloss, DEPloss, loss, SRLprobs, dep_tag_space, _ = outs

    # Host-side label statistics, matching the reference's python counting loop.
    # TODO(synk): the `lerrs` margin-loss list is omitted — the reference adds
    # the same SRLloss + DEPloss regardless, so it does not affect any output.
    dep_np = np.asarray(dep_tag_space)
    gold = np.asarray(dep_tags).reshape(-1)
    dep_labels = np.argmax(dep_np, axis=1)
    wrong_l_nums = all_l_nums = 0.0
    right_noNull_predict = noNull_predict = noNull_truth = 0.0
    for predict_l, gold_l in zip(dep_labels, gold):
        if predict_l > 1:
            noNull_predict += 1
        if gold_l != 0:
            all_l_nums += 1
            if gold_l != 1:
                noNull_truth += 1
                if gold_l == predict_l:
                    right_noNull_predict += 1
        if predict_l != gold_l and gold_l != 0:
            wrong_l_nums += 1

    assert np.isfinite(float(SRLloss)) and np.isfinite(float(DEPloss))
    assert np.isfinite(float(loss))
    assert SRLprobs.shape == (B * T_SEQ, N_ROLES)
    assert dep_tag_space.shape == (B * T_SEQ, HPS['vdep'])
    print("KERNEL_OK")
</pallas_src>

<mosaic_0001>
module attributes {stable_mosaic.version = 11 : i64} {
  func.func @_dep_fused_kernel(%arg0: i32, %arg1: memref<2xi32, #tpu.memory_space<smem>>, %arg2: memref<2x8x81xf32, #tpu.memory_space<vmem>>, %arg3: memref<81x256xf32, #tpu.memory_space<vmem>>, %arg4: memref<1x256xf32, #tpu.memory_space<vmem>>, %arg5: memref<64x256xf32, #tpu.memory_space<vmem>>, %arg6: memref<64x256xf32, #tpu.memory_space<vmem>>, %arg7: memref<1x256xf32, #tpu.memory_space<vmem>>, %arg8: memref<64x256xf32, #tpu.memory_space<vmem>>, %arg9: memref<128x64xf32, #tpu.memory_space<vmem>>, %arg10: memref<1x64xf32, #tpu.memory_space<vmem>>, %arg11: memref<64x12xf32, #tpu.memory_space<vmem>>, %arg12: memref<1x12xf32, #tpu.memory_space<vmem>>, %arg13: memref<16x12xf32, #tpu.memory_space<vmem>>, %arg14: memref<16x12xf32, #tpu.memory_space<vmem>>) attributes {dimension_semantics = [#tpu.dimension_semantics<arbitrary>], iteration_bounds = array<i64: 1>, scalar_prefetch = 1 : i64, scratch_operands = 0 : i64, tpu.core_type = #tpu.core_type<tc>, window_params = [{pipeline_mode = #tpu.pipeline_mode<synchronous>, transform_indices = @transform_0, window_bounds = array<i64: 2, 8, 81>}, {pipeline_mode = #tpu.pipeline_mode<synchronous>, transform_indices = @transform_1, window_bounds = array<i64: 81, 256>}, {pipeline_mode = #tpu.pipeline_mode<synchronous>, transform_indices = @transform_2, window_bounds = array<i64: 1, 256>}, {pipeline_mode = #tpu.pipeline_mode<synchronous>, transform_indices = @transform_3, window_bounds = array<i64: 64, 256>}, {pipeline_mode = #tpu.pipeline_mode<synchronous>, transform_indices = @transform_4, window_bounds = array<i64: 64, 256>}, {pipeline_mode = #tpu.pipeline_mode<synchronous>, transform_indices = @transform_5, window_bounds = array<i64: 1, 256>}, {pipeline_mode = #tpu.pipeline_mode<synchronous>, transform_indices = @transform_6, window_bounds = array<i64: 64, 256>}, {pipeline_mode = #tpu.pipeline_mode<synchronous>, transform_indices = @transform_7, window_bounds = array<i64: 128, 64>}, {pipeline_mode = #tpu.pipeline_mode<synchronous>, transform_indices = @transform_8, window_bounds = array<i64: 1, 64>}, {pipeline_mode = #tpu.pipeline_mode<synchronous>, transform_indices = @transform_9, window_bounds = array<i64: 64, 12>}, {pipeline_mode = #tpu.pipeline_mode<synchronous>, transform_indices = @transform_10, window_bounds = array<i64: 1, 12>}, {pipeline_mode = #tpu.pipeline_mode<synchronous>, transform_indices = @transform_11, window_bounds = array<i64: 16, 12>}, {pipeline_mode = #tpu.pipeline_mode<synchronous>, transform_indices = @transform_12, window_bounds = array<i64: 16, 12>}]} {
    %c0 = arith.constant 0 : index
    %c0_0 = arith.constant 0 : index
    %c0_1 = arith.constant 0 : index
    %0 = vector.load %arg2[%c0, %c0_0, %c0_1] : memref<2x8x81xf32, #tpu.memory_space<vmem>>, vector<2x8x81xf32>
    %c0_2 = arith.constant 0 : index
    %c0_3 = arith.constant 0 : index
    %1 = vector.load %arg3[%c0_2, %c0_3] : memref<81x256xf32, #tpu.memory_space<vmem>>, vector<81x256xf32>
    %c0_4 = arith.constant 0 : index
    %c0_5 = arith.constant 0 : index
    %2 = vector.load %arg4[%c0_4, %c0_5] : memref<1x256xf32, #tpu.memory_space<vmem>>, vector<1x256xf32>
    %c0_6 = arith.constant 0 : index
    %c0_7 = arith.constant 0 : index
    %3 = vector.load %arg5[%c0_6, %c0_7] : memref<64x256xf32, #tpu.memory_space<vmem>>, vector<64x256xf32>
    %4 = vector.shape_cast %0 : vector<2x8x81xf32> to vector<16x81xf32>
    %cst = arith.constant dense<0.000000e+00> : vector<16x256xf32>
    %5 = tpu.matmul %4, %1, %cst {dimension_numbers = #tpu.dot_dimension_numbers<[1], [0], [0], [1], [0, 0, 1, 1], [], []>} : vector<16x81xf32>, vector<81x256xf32>, vector<16x256xf32> -> vector<16x256xf32>
    %6 = vector.broadcast %2 : vector<1x256xf32> to vector<16x256xf32>
    %7 = arith.addf %5, %6 : vector<16x256xf32>
    %8 = vector.shape_cast %7 : vector<16x256xf32> to vector<2x8x256xf32>
    %cst_8 = arith.constant 0.000000e+00 : f32
    %9 = vector.broadcast %cst_8 : f32 to vector<2x64xf32>
    %cst_9 = arith.constant 0.000000e+00 : f32
    %10 = vector.broadcast %cst_9 : f32 to vector<4x32xf32>
    %cst_10 = arith.constant dense<0.000000e+00> : vector<2x256xf32>
    %11 = tpu.matmul %9, %3, %cst_10 {dimension_numbers = #tpu.dot_dimension_numbers<[1], [0], [0], [1], [0, 0, 1, 1], [], []>} : vector<2x64xf32>, vector<64x256xf32>, vector<2x256xf32> -> vector<2x256xf32>
    %12 = vector.extract_strided_slice %8 {offsets = [0, 0, 0], sizes = [2, 1, 128], strides = [1, 1, 1]} : vector<2x8x256xf32> to vector<2x1x128xf32>
    %13 = vector.shape_cast %12 : vector<2x1x128xf32> to vector<2x128xf32>
    %14 = vector.extract_strided_slice %11 {offsets = [0, 0], sizes = [2, 128], strides = [1, 1]} : vector<2x256xf32> to vector<2x128xf32>
    %15 = arith.addf %13, %14 : vector<2x128xf32>
    %16 = vector.extract_strided_slice %8 {offsets = [0, 7, 128], sizes = [2, 1, 128], strides = [1, 1, 1]} : vector<2x8x256xf32> to vector<2x1x128xf32>
    %17 = vector.shape_cast %16 : vector<2x1x128xf32> to vector<2x128xf32>
    %18 = vector.extract_strided_slice %11 {offsets = [0, 128], sizes = [2, 128], strides = [1, 1]} : vector<2x256xf32> to vector<2x128xf32>
    %19 = arith.addf %17, %18 : vector<2x128xf32>
    %20 = tpu.concatenate %15, %19 in 0 : vector<2x128xf32>, vector<2x128xf32> -> vector<4x128xf32>
    %21 = vector.extract_strided_slice %20 {offsets = [0, 0], sizes = [4, 32], strides = [1, 1]} : vector<4x128xf32> to vector<4x32xf32>
    %22 = arith.negf %21 : vector<4x32xf32>
    %23 = math.exp %22 : vector<4x32xf32>
    %cst_11 = arith.constant 1.000000e+00 : f32
    %24 = vector.broadcast %cst_11 : f32 to vector<4x32xf32>
    %25 = arith.addf %24, %23 : vector<4x32xf32>
    %26 = arith.divf %24, %25 : vector<4x32xf32>
    %27 = vector.extract_strided_slice %20 {offsets = [0, 32], sizes = [4, 32], strides = [1, 1]} : vector<4x128xf32> to vector<4x32xf32>
    %28 = arith.negf %27 : vector<4x32xf32>
    %29 = math.exp %28 : vector<4x32xf32>
    %cst_12 = arith.constant 1.000000e+00 : f32
    %30 = vector.broadcast %cst_12 : f32 to vector<4x32xf32>
    %31 = arith.addf %30, %29 : vector<4x32xf32>
    %32 = arith.divf %30, %31 : vector<4x32xf32>
    %33 = vector.extract_strided_slice %20 {offsets = [0, 64], sizes = [4, 32], strides = [1, 1]} : vector<4x128xf32> to vector<4x32xf32>
    %34 = math.tanh %33 : vector<4x32xf32>
    %35 = vector.extract_strided_slice %20 {offsets = [0, 96], sizes = [4, 32], strides = [1, 1]} : vector<4x128xf32> to vector<4x32xf32>
    %36 = arith.negf %35 : vector<4x32xf32>
    %37 = math.exp %36 : vector<4x32xf32>
    %cst_13 = arith.constant 1.000000e+00 : f32
    %38 = vector.broadcast %cst_13 : f32 to vector<4x32xf32>
    %39 = arith.addf %38, %37 : vector<4x32xf32>
    %40 = arith.divf %38, %39 : vector<4x32xf32>
    %41 = arith.mulf %32, %10 : vector<4x32xf32>
    %42 = arith.mulf %26, %34 : vector<4x32xf32>
    %43 = arith.addf %41, %42 : vector<4x32xf32>
    %44 = math.tanh %43 : vector<4x32xf32>
    %45 = arith.mulf %40, %44 : vector<4x32xf32>
    %46 = vector.extract_strided_slice %45 {offsets = [0, 0], sizes = [2, 32], strides = [1, 1]} : vector<4x32xf32> to vector<2x32xf32>
    %47 = vector.extract_strided_slice %45 {offsets = [2, 0], sizes = [2, 32], strides = [1, 1]} : vector<4x32xf32> to vector<2x32xf32>
    %48 = tpu.concatenate %46, %47 in 1 : vector<2x32xf32>, vector<2x32xf32> -> vector<2x64xf32>
    %cst_14 = arith.constant dense<0.000000e+00> : vector<2x256xf32>
    %49 = tpu.matmul %48, %3, %cst_14 {dimension_numbers = #tpu.dot_dimension_numbers<[1], [0], [0], [1], [0, 0, 1, 1], [], []>} : vector<2x64xf32>, vector<64x256xf32>, vector<2x256xf32> -> vector<2x256xf32>
    %50 = vector.extract_strided_slice %8 {offsets = [0, 1, 0], sizes = [2, 1, 128], strides = [1, 1, 1]} : vector<2x8x256xf32> to vector<2x1x128xf32>
    %51 = vector.shape_cast %50 : vector<2x1x128xf32> to vector<2x128xf32>
    %52 = vector.extract_strided_slice %49 {offsets = [0, 0], sizes = [2, 128], strides = [1, 1]} : vector<2x256xf32> to vector<2x128xf32>
    %53 = arith.addf %51, %52 : vector<2x128xf32>
    %54 = vector.extract_strided_slice %8 {offsets = [0, 6, 128], sizes = [2, 1, 128], strides = [1, 1, 1]} : vector<2x8x256xf32> to vector<2x1x128xf32>
    %55 = vector.shape_cast %54 : vector<2x1x128xf32> to vector<2x128xf32>
    %56 = vector.extract_strided_slice %49 {offsets = [0, 128], sizes = [2, 128], strides = [1, 1]} : vector<2x256xf32> to vector<2x128xf32>
    %57 = arith.addf %55, %56 : vector<2x128xf32>
    %58 = tpu.concatenate %53, %57 in 0 : vector<2x128xf32>, vector<2x128xf32> -> vector<4x128xf32>
    %59 = vector.extract_strided_slice %58 {offsets = [0, 0], sizes = [4, 32], strides = [1, 1]} : vector<4x128xf32> to vector<4x32xf32>
    %60 = arith.negf %59 : vector<4x32xf32>
    %61 = math.exp %60 : vector<4x32xf32>
    %cst_15 = arith.constant 1.000000e+00 : f32
    %62 = vector.broadcast %cst_15 : f32 to vector<4x32xf32>
    %63 = arith.addf %62, %61 : vector<4x32xf32>
    %64 = arith.divf %62, %63 : vector<4x32xf32>
    %65 = vector.extract_strided_slice %58 {offsets = [0, 32], sizes = [4, 32], strides = [1, 1]} : vector<4x128xf32> to vector<4x32xf32>
    %66 = arith.negf %65 : vector<4x32xf32>
    %67 = math.exp %66 : vector<4x32xf32>
    %cst_16 = arith.constant 1.000000e+00 : f32
    %68 = vector.broadcast %cst_16 : f32 to vector<4x32xf32>
    %69 = arith.addf %68, %67 : vector<4x32xf32>
    %70 = arith.divf %68, %69 : vector<4x32xf32>
    %71 = vector.extract_strided_slice %58 {offsets = [0, 64], sizes = [4, 32], strides = [1, 1]} : vector<4x128xf32> to vector<4x32xf32>
    %72 = math.tanh %71 : vector<4x32xf32>
    %73 = vector.extract_strided_slice %58 {offsets = [0, 96], sizes = [4, 32], strides = [1, 1]} : vector<4x128xf32> to vector<4x32xf32>
    %74 = arith.negf %73 : vector<4x32xf32>
    %75 = math.exp %74 : vector<4x32xf32>
    %cst_17 = arith.constant 1.000000e+00 : f32
    %76 = vector.broadcast %cst_17 : f32 to vector<4x32xf32>
    %77 = arith.addf %76, %75 : vector<4x32xf32>
    %78 = arith.divf %76, %77 : vector<4x32xf32>
    %79 = arith.mulf %70, %43 : vector<4x32xf32>
    %80 = arith.mulf %64, %72 : vector<4x32xf32>
    %81 = arith.addf %79, %80 : vector<4x32xf32>
    %82 = math.tanh %81 : vector<4x32xf32>
    %83 = arith.mulf %78, %82 : vector<4x32xf32>
    %84 = vector.extract_strided_slice %83 {offsets = [0, 0], sizes = [2, 32], strides = [1, 1]} : vector<4x32xf32> to vector<2x32xf32>
    %85 = vector.extract_strided_slice %83 {offsets = [2, 0], sizes = [2, 32], strides = [1, 1]} : vector<4x32xf32> to vector<2x32xf32>
    %86 = tpu.concatenate %84, %85 in 1 : vector<2x32xf32>, vector<2x32xf32> -> vector<2x64xf32>
    %cst_18 = arith.constant dense<0.000000e+00> : vector<2x256xf32>
    %87 = tpu.matmul %86, %3, %cst_18 {dimension_numbers = #tpu.dot_dimension_numbers<[1], [0], [0], [1], [0, 0, 1, 1], [], []>} : vector<2x64xf32>, vector<64x256xf32>, vector<2x256xf32> -> vector<2x256xf32>
    %88 = vector.extract_strided_slice %8 {offsets = [0, 2, 0], sizes = [2, 1, 128], strides = [1, 1, 1]} : vector<2x8x256xf32> to vector<2x1x128xf32>
    %89 = vector.shape_cast %88 : vector<2x1x128xf32> to vector<2x128xf32>
    %90 = vector.extract_strided_slice %87 {offsets = [0, 0], sizes = [2, 128], strides = [1, 1]} : vector<2x256xf32> to vector<2x128xf32>
    %91 = arith.addf %89, %90 : vector<2x128xf32>
    %92 = vector.extract_strided_slice %8 {offsets = [0, 5, 128], sizes = [2, 1, 128], strides = [1, 1, 1]} : vector<2x8x256xf32> to vector<2x1x128xf32>
    %93 = vector.shape_cast %92 : vector<2x1x128xf32> to vector<2x128xf32>
    %94 = vector.extract_strided_slice %87 {offsets = [0, 128], sizes = [2, 128], strides = [1, 1]} : vector<2x256xf32> to vector<2x128xf32>
    %95 = arith.addf %93, %94 : vector<2x128xf32>
    %96 = tpu.concatenate %91, %95 in 0 : vector<2x128xf32>, vector<2x128xf32> -> vector<4x128xf32>
    %97 = vector.extract_strided_slice %96 {offsets = [0, 0], sizes = [4, 32], strides = [1, 1]} : vector<4x128xf32> to vector<4x32xf32>
    %98 = arith.negf %97 : vector<4x32xf32>
    %99 = math.exp %98 : vector<4x32xf32>
    %cst_19 = arith.constant 1.000000e+00 : f32
    %100 = vector.broadcast %cst_19 : f32 to vector<4x32xf32>
    %101 = arith.addf %100, %99 : vector<4x32xf32>
    %102 = arith.divf %100, %101 : vector<4x32xf32>
    %103 = vector.extract_strided_slice %96 {offsets = [0, 32], sizes = [4, 32], strides = [1, 1]} : vector<4x128xf32> to vector<4x32xf32>
    %104 = arith.negf %103 : vector<4x32xf32>
    %105 = math.exp %104 : vector<4x32xf32>
    %cst_20 = arith.constant 1.000000e+00 : f32
    %106 = vector.broadcast %cst_20 : f32 to vector<4x32xf32>
    %107 = arith.addf %106, %105 : vector<4x32xf32>
    %108 = arith.divf %106, %107 : vector<4x32xf32>
    %109 = vector.extract_strided_slice %96 {offsets = [0, 64], sizes = [4, 32], strides = [1, 1]} : vector<4x128xf32> to vector<4x32xf32>
    %110 = math.tanh %109 : vector<4x32xf32>
    %111 = vector.extract_strided_slice %96 {offsets = [0, 96], sizes = [4, 32], strides = [1, 1]} : vector<4x128xf32> to vector<4x32xf32>
    %112 = arith.negf %111 : vector<4x32xf32>
    %113 = math.exp %112 : vector<4x32xf32>
    %cst_21 = arith.constant 1.000000e+00 : f32
    %114 = vector.broadcast %cst_21 : f32 to vector<4x32xf32>
    %115 = arith.addf %114, %113 : vector<4x32xf32>
    %116 = arith.divf %114, %115 : vector<4x32xf32>
    %117 = arith.mulf %108, %81 : vector<4x32xf32>
    %118 = arith.mulf %102, %110 : vector<4x32xf32>
    %119 = arith.addf %117, %118 : vector<4x32xf32>
    %120 = math.tanh %119 : vector<4x32xf32>
    %121 = arith.mulf %116, %120 : vector<4x32xf32>
    %122 = vector.extract_strided_slice %121 {offsets = [0, 0], sizes = [2, 32], strides = [1, 1]} : vector<4x32xf32> to vector<2x32xf32>
    %123 = vector.extract_strided_slice %121 {offsets = [2, 0], sizes = [2, 32], strides = [1, 1]} : vector<4x32xf32> to vector<2x32xf32>
    %124 = tpu.concatenate %122, %123 in 1 : vector<2x32xf32>, vector<2x32xf32> -> vector<2x64xf32>
    %cst_22 = arith.constant dense<0.000000e+00> : vector<2x256xf32>
    %125 = tpu.matmul %124, %3, %cst_22 {dimension_numbers = #tpu.dot_dimension_numbers<[1], [0], [0], [1], [0, 0, 1, 1], [], []>} : vector<2x64xf32>, vector<64x256xf32>, vector<2x256xf32> -> vector<2x256xf32>
    %126 = vector.extract_strided_slice %8 {offsets = [0, 3, 0], sizes = [2, 1, 128], strides = [1, 1, 1]} : vector<2x8x256xf32> to vector<2x1x128xf32>
    %127 = vector.shape_cast %126 : vector<2x1x128xf32> to vector<2x128xf32>
    %128 = vector.extract_strided_slice %125 {offsets = [0, 0], sizes = [2, 128], strides = [1, 1]} : vector<2x256xf32> to vector<2x128xf32>
    %129 = arith.addf %127, %128 : vector<2x128xf32>
    %130 = vector.extract_strided_slice %8 {offsets = [0, 4, 128], sizes = [2, 1, 128], strides = [1, 1, 1]} : vector<2x8x256xf32> to vector<2x1x128xf32>
    %131 = vector.shape_cast %130 : vector<2x1x128xf32> to vector<2x128xf32>
    %132 = vector.extract_strided_slice %125 {offsets = [0, 128], sizes = [2, 128], strides = [1, 1]} : vector<2x256xf32> to vector<2x128xf32>
    %133 = arith.addf %131, %132 : vector<2x128xf32>
    %134 = tpu.concatenate %129, %133 in 0 : vector<2x128xf32>, vector<2x128xf32> -> vector<4x128xf32>
    %135 = vector.extract_strided_slice %134 {offsets = [0, 0], sizes = [4, 32], strides = [1, 1]} : vector<4x128xf32> to vector<4x32xf32>
    %136 = arith.negf %135 : vector<4x32xf32>
    %137 = math.exp %136 : vector<4x32xf32>
    %cst_23 = arith.constant 1.000000e+00 : f32
    %138 = vector.broadcast %cst_23 : f32 to vector<4x32xf32>
    %139 = arith.addf %138, %137 : vector<4x32xf32>
    %140 = arith.divf %138, %139 : vector<4x32xf32>
    %141 = vector.extract_strided_slice %134 {offsets = [0, 32], sizes = [4, 32], strides = [1, 1]} : vector<4x128xf32> to vector<4x32xf32>
    %142 = arith.negf %141 : vector<4x32xf32>
    %143 = math.exp %142 : vector<4x32xf32>
    %cst_24 = arith.constant 1.000000e+00 : f32
    %144 = vector.broadcast %cst_24 : f32 to vector<4x32xf32>
    %145 = arith.addf %144, %143 : vector<4x32xf32>
    %146 = arith.divf %144, %145 : vector<4x32xf32>
    %147 = vector.extract_strided_slice %134 {offsets = [0, 64], sizes = [4, 32], strides = [1, 1]} : vector<4x128xf32> to vector<4x32xf32>
    %148 = math.tanh %147 : vector<4x32xf32>
    %149 = vector.extract_strided_slice %134 {offsets = [0, 96], sizes = [4, 32], strides = [1, 1]} : vector<4x128xf32> to vector<4x32xf32>
    %150 = arith.negf %149 : vector<4x32xf32>
    %151 = math.exp %150 : vector<4x32xf32>
    %cst_25 = arith.constant 1.000000e+00 : f32
    %152 = vector.broadcast %cst_25 : f32 to vector<4x32xf32>
    %153 = arith.addf %152, %151 : vector<4x32xf32>
    %154 = arith.divf %152, %153 : vector<4x32xf32>
    %155 = arith.mulf %146, %119 : vector<4x32xf32>
    %156 = arith.mulf %140, %148 : vector<4x32xf32>
    %157 = arith.addf %155, %156 : vector<4x32xf32>
    %158 = math.tanh %157 : vector<4x32xf32>
    %159 = arith.mulf %154, %158 : vector<4x32xf32>
    %160 = vector.extract_strided_slice %159 {offsets = [0, 0], sizes = [2, 32], strides = [1, 1]} : vector<4x32xf32> to vector<2x32xf32>
    %161 = vector.extract_strided_slice %159 {offsets = [2, 0], sizes = [2, 32], strides = [1, 1]} : vector<4x32xf32> to vector<2x32xf32>
    %162 = tpu.concatenate %160, %161 in 1 : vector<2x32xf32>, vector<2x32xf32> -> vector<2x64xf32>
    %cst_26 = arith.constant dense<0.000000e+00> : vector<2x256xf32>
    %163 = tpu.matmul %162, %3, %cst_26 {dimension_numbers = #tpu.dot_dimension_numbers<[1], [0], [0], [1], [0, 0, 1, 1], [], []>} : vector<2x64xf32>, vector<64x256xf32>, vector<2x256xf32> -> vector<2x256xf32>
    %164 = vector.extract_strided_slice %8 {offsets = [0, 4, 0], sizes = [2, 1, 128], strides = [1, 1, 1]} : vector<2x8x256xf32> to vector<2x1x128xf32>
    %165 = vector.shape_cast %164 : vector<2x1x128xf32> to vector<2x128xf32>
    %166 = vector.extract_strided_slice %163 {offsets = [0, 0], sizes = [2, 128], strides = [1, 1]} : vector<2x256xf32> to vector<2x128xf32>
    %167 = arith.addf %165, %166 : vector<2x128xf32>
    %168 = vector.extract_strided_slice %8 {offsets = [0, 3, 128], sizes = [2, 1, 128], strides = [1, 1, 1]} : vector<2x8x256xf32> to vector<2x1x128xf32>
    %169 = vector.shape_cast %168 : vector<2x1x128xf32> to vector<2x128xf32>
    %170 = vector.extract_strided_slice %163 {offsets = [0, 128], sizes = [2, 128], strides = [1, 1]} : vector<2x256xf32> to vector<2x128xf32>
    %171 = arith.addf %169, %170 : vector<2x128xf32>
    %172 = tpu.concatenate %167, %171 in 0 : vector<2x128xf32>, vector<2x128xf32> -> vector<4x128xf32>
    %173 = vector.extract_strided_slice %172 {offsets = [0, 0], sizes = [4, 32], strides = [1, 1]} : vector<4x128xf32> to vector<4x32xf32>
    %174 = arith.negf %173 : vector<4x32xf32>
    %175 = math.exp %174 : vector<4x32xf32>
    %cst_27 = arith.constant 1.000000e+00 : f32
    %176 = vector.broadcast %cst_27 : f32 to vector<4x32xf32>
    %177 = arith.addf %176, %175 : vector<4x32xf32>
    %178 = arith.divf %176, %177 : vector<4x32xf32>
    %179 = vector.extract_strided_slice %172 {offsets = [0, 32], sizes = [4, 32], strides = [1, 1]} : vector<4x128xf32> to vector<4x32xf32>
    %180 = arith.negf %179 : vector<4x32xf32>
    %181 = math.exp %180 : vector<4x32xf32>
    %cst_28 = arith.constant 1.000000e+00 : f32
    %182 = vector.broadcast %cst_28 : f32 to vector<4x32xf32>
    %183 = arith.addf %182, %181 : vector<4x32xf32>
    %184 = arith.divf %182, %183 : vector<4x32xf32>
    %185 = vector.extract_strided_slice %172 {offsets = [0, 64], sizes = [4, 32], strides = [1, 1]} : vector<4x128xf32> to vector<4x32xf32>
    %186 = math.tanh %185 : vector<4x32xf32>
    %187 = vector.extract_strided_slice %172 {offsets = [0, 96], sizes = [4, 32], strides = [1, 1]} : vector<4x128xf32> to vector<4x32xf32>
    %188 = arith.negf %187 : vector<4x32xf32>
    %189 = math.exp %188 : vector<4x32xf32>
    %cst_29 = arith.constant 1.000000e+00 : f32
    %190 = vector.broadcast %cst_29 : f32 to vector<4x32xf32>
    %191 = arith.addf %190, %189 : vector<4x32xf32>
    %192 = arith.divf %190, %191 : vector<4x32xf32>
    %193 = arith.mulf %184, %157 : vector<4x32xf32>
    %194 = arith.mulf %178, %186 : vector<4x32xf32>
    %195 = arith.addf %193, %194 : vector<4x32xf32>
    %196 = math.tanh %195 : vector<4x32xf32>
    %197 = arith.mulf %192, %196 : vector<4x32xf32>
    %198 = vector.extract_strided_slice %197 {offsets = [0, 0], sizes = [2, 32], strides = [1, 1]} : vector<4x32xf32> to vector<2x32xf32>
    %199 = vector.extract_strided_slice %197 {offsets = [2, 0], sizes = [2, 32], strides = [1, 1]} : vector<4x32xf32> to vector<2x32xf32>
    %200 = tpu.concatenate %198, %199 in 1 : vector<2x32xf32>, vector<2x32xf32> -> vector<2x64xf32>
    %cst_30 = arith.constant dense<0.000000e+00> : vector<2x256xf32>
    %201 = tpu.matmul %200, %3, %cst_30 {dimension_numbers = #tpu.dot_dimension_numbers<[1], [0], [0], [1], [0, 0, 1, 1], [], []>} : vector<2x64xf32>, vector<64x256xf32>, vector<2x256xf32> -> vector<2x256xf32>
    %202 = vector.extract_strided_slice %8 {offsets = [0, 5, 0], sizes = [2, 1, 128], strides = [1, 1, 1]} : vector<2x8x256xf32> to vector<2x1x128xf32>
    %203 = vector.shape_cast %202 : vector<2x1x128xf32> to vector<2x128xf32>
    %204 = vector.extract_strided_slice %201 {offsets = [0, 0], sizes = [2, 128], strides = [1, 1]} : vector<2x256xf32> to vector<2x128xf32>
    %205 = arith.addf %203, %204 : vector<2x128xf32>
    %206 = vector.extract_strided_slice %8 {offsets = [0, 2, 128], sizes = [2, 1, 128], strides = [1, 1, 1]} : vector<2x8x256xf32> to vector<2x1x128xf32>
    %207 = vector.shape_cast %206 : vector<2x1x128xf32> to vector<2x128xf32>
    %208 = vector.extract_strided_slice %201 {offsets = [0, 128], sizes = [2, 128], strides = [1, 1]} : vector<2x256xf32> to vector<2x128xf32>
    %209 = arith.addf %207, %208 : vector<2x128xf32>
    %210 = tpu.concatenate %205, %209 in 0 : vector<2x128xf32>, vector<2x128xf32> -> vector<4x128xf32>
    %211 = vector.extract_strided_slice %210 {offsets = [0, 0], sizes = [4, 32], strides = [1, 1]} : vector<4x128xf32> to vector<4x32xf32>
    %212 = arith.negf %211 : vector<4x32xf32>
    %213 = math.exp %212 : vector<4x32xf32>
    %cst_31 = arith.constant 1.000000e+00 : f32
    %214 = vector.broadcast %cst_31 : f32 to vector<4x32xf32>
    %215 = arith.addf %214, %213 : vector<4x32xf32>
    %216 = arith.divf %214, %215 : vector<4x32xf32>
    %217 = vector.extract_strided_slice %210 {offsets = [0, 32], sizes = [4, 32], strides = [1, 1]} : vector<4x128xf32> to vector<4x32xf32>
    %218 = arith.negf %217 : vector<4x32xf32>
    %219 = math.exp %218 : vector<4x32xf32>
    %cst_32 = arith.constant 1.000000e+00 : f32
    %220 = vector.broadcast %cst_32 : f32 to vector<4x32xf32>
    %221 = arith.addf %220, %219 : vector<4x32xf32>
    %222 = arith.divf %220, %221 : vector<4x32xf32>
    %223 = vector.extract_strided_slice %210 {offsets = [0, 64], sizes = [4, 32], strides = [1, 1]} : vector<4x128xf32> to vector<4x32xf32>
    %224 = math.tanh %223 : vector<4x32xf32>
    %225 = vector.extract_strided_slice %210 {offsets = [0, 96], sizes = [4, 32], strides = [1, 1]} : vector<4x128xf32> to vector<4x32xf32>
    %226 = arith.negf %225 : vector<4x32xf32>
    %227 = math.exp %226 : vector<4x32xf32>
    %cst_33 = arith.constant 1.000000e+00 : f32
    %228 = vector.broadcast %cst_33 : f32 to vector<4x32xf32>
    %229 = arith.addf %228, %227 : vector<4x32xf32>
    %230 = arith.divf %228, %229 : vector<4x32xf32>
    %231 = arith.mulf %222, %195 : vector<4x32xf32>
    %232 = arith.mulf %216, %224 : vector<4x32xf32>
    %233 = arith.addf %231, %232 : vector<4x32xf32>
    %234 = math.tanh %233 : vector<4x32xf32>
    %235 = arith.mulf %230, %234 : vector<4x32xf32>
    %236 = vector.extract_strided_slice %235 {offsets = [0, 0], sizes = [2, 32], strides = [1, 1]} : vector<4x32xf32> to vector<2x32xf32>
    %237 = vector.extract_strided_slice %235 {offsets = [2, 0], sizes = [2, 32], strides = [1, 1]} : vector<4x32xf32> to vector<2x32xf32>
    %238 = tpu.concatenate %236, %237 in 1 : vector<2x32xf32>, vector<2x32xf32> -> vector<2x64xf32>
    %cst_34 = arith.constant dense<0.000000e+00> : vector<2x256xf32>
    %239 = tpu.matmul %238, %3, %cst_34 {dimension_numbers = #tpu.dot_dimension_numbers<[1], [0], [0], [1], [0, 0, 1, 1], [], []>} : vector<2x64xf32>, vector<64x256xf32>, vector<2x256xf32> -> vector<2x256xf32>
    %240 = vector.extract_strided_slice %8 {offsets = [0, 6, 0], sizes = [2, 1, 128], strides = [1, 1, 1]} : vector<2x8x256xf32> to vector<2x1x128xf32>
    %241 = vector.shape_cast %240 : vector<2x1x128xf32> to vector<2x128xf32>
    %242 = vector.extract_strided_slice %239 {offsets = [0, 0], sizes = [2, 128], strides = [1, 1]} : vector<2x256xf32> to vector<2x128xf32>
    %243 = arith.addf %241, %242 : vector<2x128xf32>
    %244 = vector.extract_strided_slice %8 {offsets = [0, 1, 128], sizes = [2, 1, 128], strides = [1, 1, 1]} : vector<2x8x256xf32> to vector<2x1x128xf32>
    %245 = vector.shape_cast %244 : vector<2x1x128xf32> to vector<2x128xf32>
    %246 = vector.extract_strided_slice %239 {offsets = [0, 128], sizes = [2, 128], strides = [1, 1]} : vector<2x256xf32> to vector<2x128xf32>
    %247 = arith.addf %245, %246 : vector<2x128xf32>
    %248 = tpu.concatenate %243, %247 in 0 : vector<2x128xf32>, vector<2x128xf32> -> vector<4x128xf32>
    %249 = vector.extract_strided_slice %248 {offsets = [0, 0], sizes = [4, 32], strides = [1, 1]} : vector<4x128xf32> to vector<4x32xf32>
    %250 = arith.negf %249 : vector<4x32xf32>
    %251 = math.exp %250 : vector<4x32xf32>
    %cst_35 = arith.constant 1.000000e+00 : f32
    %252 = vector.broadcast %cst_35 : f32 to vector<4x32xf32>
    %253 = arith.addf %252, %251 : vector<4x32xf32>
    %254 = arith.divf %252, %253 : vector<4x32xf32>
    %255 = vector.extract_strided_slice %248 {offsets = [0, 32], sizes = [4, 32], strides = [1, 1]} : vector<4x128xf32> to vector<4x32xf32>
    %256 = arith.negf %255 : vector<4x32xf32>
    %257 = math.exp %256 : vector<4x32xf32>
    %cst_36 = arith.constant 1.000000e+00 : f32
    %258 = vector.broadcast %cst_36 : f32 to vector<4x32xf32>
    %259 = arith.addf %258, %257 : vector<4x32xf32>
    %260 = arith.divf %258, %259 : vector<4x32xf32>
    %261 = vector.extract_strided_slice %248 {offsets = [0, 64], sizes = [4, 32], strides = [1, 1]} : vector<4x128xf32> to vector<4x32xf32>
    %262 = math.tanh %261 : vector<4x32xf32>
    %263 = vector.extract_strided_slice %248 {offsets = [0, 96], sizes = [4, 32], strides = [1, 1]} : vector<4x128xf32> to vector<4x32xf32>
    %264 = arith.negf %263 : vector<4x32xf32>
    %265 = math.exp %264 : vector<4x32xf32>
    %cst_37 = arith.constant 1.000000e+00 : f32
    %266 = vector.broadcast %cst_37 : f32 to vector<4x32xf32>
    %267 = arith.addf %266, %265 : vector<4x32xf32>
    %268 = arith.divf %266, %267 : vector<4x32xf32>
    %269 = arith.mulf %260, %233 : vector<4x32xf32>
    %270 = arith.mulf %254, %262 : vector<4x32xf32>
    %271 = arith.addf %269, %270 : vector<4x32xf32>
    %272 = math.tanh %271 : vector<4x32xf32>
    %273 = arith.mulf %268, %272 : vector<4x32xf32>
    %274 = vector.extract_strided_slice %273 {offsets = [0, 0], sizes = [2, 32], strides = [1, 1]} : vector<4x32xf32> to vector<2x32xf32>
    %275 = vector.extract_strided_slice %273 {offsets = [2, 0], sizes = [2, 32], strides = [1, 1]} : vector<4x32xf32> to vector<2x32xf32>
    %276 = tpu.concatenate %274, %275 in 1 : vector<2x32xf32>, vector<2x32xf32> -> vector<2x64xf32>
    %cst_38 = arith.constant dense<0.000000e+00> : vector<2x256xf32>
    %277 = tpu.matmul %276, %3, %cst_38 {dimension_numbers = #tpu.dot_dimension_numbers<[1], [0], [0], [1], [0, 0, 1, 1], [], []>} : vector<2x64xf32>, vector<64x256xf32>, vector<2x256xf32> -> vector<2x256xf32>
    %278 = vector.extract_strided_slice %8 {offsets = [0, 7, 0], sizes = [2, 1, 128], strides = [1, 1, 1]} : vector<2x8x256xf32> to vector<2x1x128xf32>
    %279 = vector.shape_cast %278 : vector<2x1x128xf32> to vector<2x128xf32>
    %280 = vector.extract_strided_slice %277 {offsets = [0, 0], sizes = [2, 128], strides = [1, 1]} : vector<2x256xf32> to vector<2x128xf32>
    %281 = arith.addf %279, %280 : vector<2x128xf32>
    %282 = vector.extract_strided_slice %8 {offsets = [0, 0, 128], sizes = [2, 1, 128], strides = [1, 1, 1]} : vector<2x8x256xf32> to vector<2x1x128xf32>
    %283 = vector.shape_cast %282 : vector<2x1x128xf32> to vector<2x128xf32>
    %284 = vector.extract_strided_slice %277 {offsets = [0, 128], sizes = [2, 128], strides = [1, 1]} : vector<2x256xf32> to vector<2x128xf32>
    %285 = arith.addf %283, %284 : vector<2x128xf32>
    %286 = tpu.concatenate %281, %285 in 0 : vector<2x128xf32>, vector<2x128xf32> -> vector<4x128xf32>
    %287 = vector.extract_strided_slice %286 {offsets = [0, 0], sizes = [4, 32], strides = [1, 1]} : vector<4x128xf32> to vector<4x32xf32>
    %288 = arith.negf %287 : vector<4x32xf32>
    %289 = math.exp %288 : vector<4x32xf32>
    %cst_39 = arith.constant 1.000000e+00 : f32
    %290 = vector.broadcast %cst_39 : f32 to vector<4x32xf32>
    %291 = arith.addf %290, %289 : vector<4x32xf32>
    %292 = arith.divf %290, %291 : vector<4x32xf32>
    %293 = vector.extract_strided_slice %286 {offsets = [0, 32], sizes = [4, 32], strides = [1, 1]} : vector<4x128xf32> to vector<4x32xf32>
    %294 = arith.negf %293 : vector<4x32xf32>
    %295 = math.exp %294 : vector<4x32xf32>
    %cst_40 = arith.constant 1.000000e+00 : f32
    %296 = vector.broadcast %cst_40 : f32 to vector<4x32xf32>
    %297 = arith.addf %296, %295 : vector<4x32xf32>
    %298 = arith.divf %296, %297 : vector<4x32xf32>
    %299 = vector.extract_strided_slice %286 {offsets = [0, 64], sizes = [4, 32], strides = [1, 1]} : vector<4x128xf32> to vector<4x32xf32>
    %300 = math.tanh %299 : vector<4x32xf32>
    %301 = vector.extract_strided_slice %286 {offsets = [0, 96], sizes = [4, 32], strides = [1, 1]} : vector<4x128xf32> to vector<4x32xf32>
    %302 = arith.negf %301 : vector<4x32xf32>
    %303 = math.exp %302 : vector<4x32xf32>
    %cst_41 = arith.constant 1.000000e+00 : f32
    %304 = vector.broadcast %cst_41 : f32 to vector<4x32xf32>
    %305 = arith.addf %304, %303 : vector<4x32xf32>
    %306 = arith.divf %304, %305 : vector<4x32xf32>
    %307 = arith.mulf %298, %271 : vector<4x32xf32>
    %308 = arith.mulf %292, %300 : vector<4x32xf32>
    %309 = arith.addf %307, %308 : vector<4x32xf32>
    %310 = math.tanh %309 : vector<4x32xf32>
    %311 = arith.mulf %306, %310 : vector<4x32xf32>
    %312 = vector.extract_strided_slice %311 {offsets = [0, 0], sizes = [2, 32], strides = [1, 1]} : vector<4x32xf32> to vector<2x32xf32>
    %313 = vector.extract_strided_slice %311 {offsets = [2, 0], sizes = [2, 32], strides = [1, 1]} : vector<4x32xf32> to vector<2x32xf32>
    %314 = tpu.concatenate %46, %313 in 1 : vector<2x32xf32>, vector<2x32xf32> -> vector<2x64xf32>
    %315 = tpu.concatenate %84, %275 in 1 : vector<2x32xf32>, vector<2x32xf32> -> vector<2x64xf32>
    %316 = tpu.concatenate %122, %237 in 1 : vector<2x32xf32>, vector<2x32xf32> -> vector<2x64xf32>
    %317 = tpu.concatenate %160, %199 in 1 : vector<2x32xf32>, vector<2x32xf32> -> vector<2x64xf32>
    %318 = tpu.concatenate %198, %161 in 1 : vector<2x32xf32>, vector<2x32xf32> -> vector<2x64xf32>
    %319 = tpu.concatenate %236, %123 in 1 : vector<2x32xf32>, vector<2x32xf32> -> vector<2x64xf32>
    %320 = tpu.concatenate %274, %85 in 1 : vector<2x32xf32>, vector<2x32xf32> -> vector<2x64xf32>
    %321 = tpu.concatenate %312, %47 in 1 : vector<2x32xf32>, vector<2x32xf32> -> vector<2x64xf32>
    %322 = vector.shape_cast %314 : vector<2x64xf32> to vector<2x1x64xf32>
    %323 = vector.shape_cast %315 : vector<2x64xf32> to vector<2x1x64xf32>
    %324 = vector.shape_cast %316 : vector<2x64xf32> to vector<2x1x64xf32>
    %325 = vector.shape_cast %317 : vector<2x64xf32> to vector<2x1x64xf32>
    %326 = vector.shape_cast %318 : vector<2x64xf32> to vector<2x1x64xf32>
    %327 = vector.shape_cast %319 : vector<2x64xf32> to vector<2x1x64xf32>
    %328 = vector.shape_cast %320 : vector<2x64xf32> to vector<2x1x64xf32>
    %329 = vector.shape_cast %321 : vector<2x64xf32> to vector<2x1x64xf32>
    %330 = tpu.concatenate %322, %323, %324, %325, %326, %327, %328, %329 in 1 : vector<2x1x64xf32>, vector<2x1x64xf32>, vector<2x1x64xf32>, vector<2x1x64xf32>, vector<2x1x64xf32>, vector<2x1x64xf32>, vector<2x1x64xf32>, vector<2x1x64xf32> -> vector<2x8x64xf32>
    %c0_42 = arith.constant 0 : index
    %c0_43 = arith.constant 0 : index
    %331 = vector.load %arg6[%c0_42, %c0_43] : memref<64x256xf32, #tpu.memory_space<vmem>>, vector<64x256xf32>
    %c0_44 = arith.constant 0 : index
    %c0_45 = arith.constant 0 : index
    %332 = vector.load %arg7[%c0_44, %c0_45] : memref<1x256xf32, #tpu.memory_space<vmem>>, vector<1x256xf32>
    %c0_46 = arith.constant 0 : index
    %c0_47 = arith.constant 0 : index
    %333 = vector.load %arg8[%c0_46, %c0_47] : memref<64x256xf32, #tpu.memory_space<vmem>>, vector<64x256xf32>
    %334 = vector.shape_cast %330 : vector<2x8x64xf32> to vector<16x64xf32>
    %cst_48 = arith.constant dense<0.000000e+00> : vector<16x256xf32>
    %335 = tpu.matmul %334, %331, %cst_48 {dimension_numbers = #tpu.dot_dimension_numbers<[1], [0], [0], [1], [0, 0, 1, 1], [], []>} : vector<16x64xf32>, vector<64x256xf32>, vector<16x256xf32> -> vector<16x256xf32>
    %336 = vector.broadcast %332 : vector<1x256xf32> to vector<16x256xf32>
    %337 = arith.addf %335, %336 : vector<16x256xf32>
    %338 = vector.shape_cast %337 : vector<16x256xf32> to vector<2x8x256xf32>
    %cst_49 = arith.constant 0.000000e+00 : f32
    %339 = vector.broadcast %cst_49 : f32 to vector<2x64xf32>
    %cst_50 = arith.constant 0.000000e+00 : f32
    %340 = vector.broadcast %cst_50 : f32 to vector<4x32xf32>
    %cst_51 = arith.constant dense<0.000000e+00> : vector<2x256xf32>
    %341 = tpu.matmul %339, %333, %cst_51 {dimension_numbers = #tpu.dot_dimension_numbers<[1], [0], [0], [1], [0, 0, 1, 1], [], []>} : vector<2x64xf32>, vector<64x256xf32>, vector<2x256xf32> -> vector<2x256xf32>
    %342 = vector.extract_strided_slice %338 {offsets = [0, 0, 0], sizes = [2, 1, 128], strides = [1, 1, 1]} : vector<2x8x256xf32> to vector<2x1x128xf32>
    %343 = vector.shape_cast %342 : vector<2x1x128xf32> to vector<2x128xf32>
    %344 = vector.extract_strided_slice %341 {offsets = [0, 0], sizes = [2, 128], strides = [1, 1]} : vector<2x256xf32> to vector<2x128xf32>
    %345 = arith.addf %343, %344 : vector<2x128xf32>
    %346 = vector.extract_strided_slice %338 {offsets = [0, 7, 128], sizes = [2, 1, 128], strides = [1, 1, 1]} : vector<2x8x256xf32> to vector<2x1x128xf32>
    %347 = vector.shape_cast %346 : vector<2x1x128xf32> to vector<2x128xf32>
    %348 = vector.extract_strided_slice %341 {offsets = [0, 128], sizes = [2, 128], strides = [1, 1]} : vector<2x256xf32> to vector<2x128xf32>
    %349 = arith.addf %347, %348 : vector<2x128xf32>
    %350 = tpu.concatenate %345, %349 in 0 : vector<2x128xf32>, vector<2x128xf32> -> vector<4x128xf32>
    %351 = vector.extract_strided_slice %350 {offsets = [0, 0], sizes = [4, 32], strides = [1, 1]} : vector<4x128xf32> to vector<4x32xf32>
    %352 = arith.negf %351 : vector<4x32xf32>
    %353 = math.exp %352 : vector<4x32xf32>
    %cst_52 = arith.constant 1.000000e+00 : f32
    %354 = vector.broadcast %cst_52 : f32 to vector<4x32xf32>
    %355 = arith.addf %354, %353 : vector<4x32xf32>
    %356 = arith.divf %354, %355 : vector<4x32xf32>
    %357 = vector.extract_strided_slice %350 {offsets = [0, 32], sizes = [4, 32], strides = [1, 1]} : vector<4x128xf32> to vector<4x32xf32>
    %358 = arith.negf %357 : vector<4x32xf32>
    %359 = math.exp %358 : vector<4x32xf32>
    %cst_53 = arith.constant 1.000000e+00 : f32
    %360 = vector.broadcast %cst_53 : f32 to vector<4x32xf32>
    %361 = arith.addf %360, %359 : vector<4x32xf32>
    %362 = arith.divf %360, %361 : vector<4x32xf32>
    %363 = vector.extract_strided_slice %350 {offsets = [0, 64], sizes = [4, 32], strides = [1, 1]} : vector<4x128xf32> to vector<4x32xf32>
    %364 = math.tanh %363 : vector<4x32xf32>
    %365 = vector.extract_strided_slice %350 {offsets = [0, 96], sizes = [4, 32], strides = [1, 1]} : vector<4x128xf32> to vector<4x32xf32>
    %366 = arith.negf %365 : vector<4x32xf32>
    %367 = math.exp %366 : vector<4x32xf32>
    %cst_54 = arith.constant 1.000000e+00 : f32
    %368 = vector.broadcast %cst_54 : f32 to vector<4x32xf32>
    %369 = arith.addf %368, %367 : vector<4x32xf32>
    %370 = arith.divf %368, %369 : vector<4x32xf32>
    %371 = arith.mulf %362, %340 : vector<4x32xf32>
    %372 = arith.mulf %356, %364 : vector<4x32xf32>
    %373 = arith.addf %371, %372 : vector<4x32xf32>
    %374 = math.tanh %373 : vector<4x32xf32>
    %375 = arith.mulf %370, %374 : vector<4x32xf32>
    %376 = vector.extract_strided_slice %375 {offsets = [0, 0], sizes = [2, 32], strides = [1, 1]} : vector<4x32xf32> to vector<2x32xf32>
    %377 = vector.extract_strided_slice %375 {offsets = [2, 0], sizes = [2, 32], strides = [1, 1]} : vector<4x32xf32> to vector<2x32xf32>
    %378 = tpu.concatenate %376, %377 in 1 : vector<2x32xf32>, vector<2x32xf32> -> vector<2x64xf32>
    %cst_55 = arith.constant dense<0.000000e+00> : vector<2x256xf32>
    %379 = tpu.matmul %378, %333, %cst_55 {dimension_numbers = #tpu.dot_dimension_numbers<[1], [0], [0], [1], [0, 0, 1, 1], [], []>} : vector<2x64xf32>, vector<64x256xf32>, vector<2x256xf32> -> vector<2x256xf32>
    %380 = vector.extract_strided_slice %338 {offsets = [0, 1, 0], sizes = [2, 1, 128], strides = [1, 1, 1]} : vector<2x8x256xf32> to vector<2x1x128xf32>
    %381 = vector.shape_cast %380 : vector<2x1x128xf32> to vector<2x128xf32>
    %382 = vector.extract_strided_slice %379 {offsets = [0, 0], sizes = [2, 128], strides = [1, 1]} : vector<2x256xf32> to vector<2x128xf32>
    %383 = arith.addf %381, %382 : vector<2x128xf32>
    %384 = vector.extract_strided_slice %338 {offsets = [0, 6, 128], sizes = [2, 1, 128], strides = [1, 1, 1]} : vector<2x8x256xf32> to vector<2x1x128xf32>
    %385 = vector.shape_cast %384 : vector<2x1x128xf32> to vector<2x128xf32>
    %386 = vector.extract_strided_slice %379 {offsets = [0, 128], sizes = [2, 128], strides = [1, 1]} : vector<2x256xf32> to vector<2x128xf32>
    %387 = arith.addf %385, %386 : vector<2x128xf32>
    %388 = tpu.concatenate %383, %387 in 0 : vector<2x128xf32>, vector<2x128xf32> -> vector<4x128xf32>
    %389 = vector.extract_strided_slice %388 {offsets = [0, 0], sizes = [4, 32], strides = [1, 1]} : vector<4x128xf32> to vector<4x32xf32>
    %390 = arith.negf %389 : vector<4x32xf32>
    %391 = math.exp %390 : vector<4x32xf32>
    %cst_56 = arith.constant 1.000000e+00 : f32
    %392 = vector.broadcast %cst_56 : f32 to vector<4x32xf32>
    %393 = arith.addf %392, %391 : vector<4x32xf32>
    %394 = arith.divf %392, %393 : vector<4x32xf32>
    %395 = vector.extract_strided_slice %388 {offsets = [0, 32], sizes = [4, 32], strides = [1, 1]} : vector<4x128xf32> to vector<4x32xf32>
    %396 = arith.negf %395 : vector<4x32xf32>
    %397 = math.exp %396 : vector<4x32xf32>
    %cst_57 = arith.constant 1.000000e+00 : f32
    %398 = vector.broadcast %cst_57 : f32 to vector<4x32xf32>
    %399 = arith.addf %398, %397 : vector<4x32xf32>
    %400 = arith.divf %398, %399 : vector<4x32xf32>
    %401 = vector.extract_strided_slice %388 {offsets = [0, 64], sizes = [4, 32], strides = [1, 1]} : vector<4x128xf32> to vector<4x32xf32>
    %402 = math.tanh %401 : vector<4x32xf32>
    %403 = vector.extract_strided_slice %388 {offsets = [0, 96], sizes = [4, 32], strides = [1, 1]} : vector<4x128xf32> to vector<4x32xf32>
    %404 = arith.negf %403 : vector<4x32xf32>
    %405 = math.exp %404 : vector<4x32xf32>
    %cst_58 = arith.constant 1.000000e+00 : f32
    %406 = vector.broadcast %cst_58 : f32 to vector<4x32xf32>
    %407 = arith.addf %406, %405 : vector<4x32xf32>
    %408 = arith.divf %406, %407 : vector<4x32xf32>
    %409 = arith.mulf %400, %373 : vector<4x32xf32>
    %410 = arith.mulf %394, %402 : vector<4x32xf32>
    %411 = arith.addf %409, %410 : vector<4x32xf32>
    %412 = math.tanh %411 : vector<4x32xf32>
    %413 = arith.mulf %408, %412 : vector<4x32xf32>
    %414 = vector.extract_strided_slice %413 {offsets = [0, 0], sizes = [2, 32], strides = [1, 1]} : vector<4x32xf32> to vector<2x32xf32>
    %415 = vector.extract_strided_slice %413 {offsets = [2, 0], sizes = [2, 32], strides = [1, 1]} : vector<4x32xf32> to vector<2x32xf32>
    %416 = tpu.concatenate %414, %415 in 1 : vector<2x32xf32>, vector<2x32xf32> -> vector<2x64xf32>
    %cst_59 = arith.constant dense<0.000000e+00> : vector<2x256xf32>
    %417 = tpu.matmul %416, %333, %cst_59 {dimension_numbers = #tpu.dot_dimension_numbers<[1], [0], [0], [1], [0, 0, 1, 1], [], []>} : vector<2x64xf32>, vector<64x256xf32>, vector<2x256xf32> -> vector<2x256xf32>
    %418 = vector.extract_strided_slice %338 {offsets = [0, 2, 0], sizes = [2, 1, 128], strides = [1, 1, 1]} : vector<2x8x256xf32> to vector<2x1x128xf32>
    %419 = vector.shape_cast %418 : vector<2x1x128xf32> to vector<2x128xf32>
    %420 = vector.extract_strided_slice %417 {offsets = [0, 0], sizes = [2, 128], strides = [1, 1]} : vector<2x256xf32> to vector<2x128xf32>
    %421 = arith.addf %419, %420 : vector<2x128xf32>
    %422 = vector.extract_strided_slice %338 {offsets = [0, 5, 128], sizes = [2, 1, 128], strides = [1, 1, 1]} : vector<2x8x256xf32> to vector<2x1x128xf32>
    %423 = vector.shape_cast %422 : vector<2x1x128xf32> to vector<2x128xf32>
    %424 = vector.extract_strided_slice %417 {offsets = [0, 128], sizes = [2, 128], strides = [1, 1]} : vector<2x256xf32> to vector<2x128xf32>
    %425 = arith.addf %423, %424 : vector<2x128xf32>
    %426 = tpu.concatenate %421, %425 in 0 : vector<2x128xf32>, vector<2x128xf32> -> vector<4x128xf32>
    %427 = vector.extract_strided_slice %426 {offsets = [0, 0], sizes = [4, 32], strides = [1, 1]} : vector<4x128xf32> to vector<4x32xf32>
    %428 = arith.negf %427 : vector<4x32xf32>
    %429 = math.exp %428 : vector<4x32xf32>
    %cst_60 = arith.constant 1.000000e+00 : f32
    %430 = vector.broadcast %cst_60 : f32 to vector<4x32xf32>
    %431 = arith.addf %430, %429 : vector<4x32xf32>
    %432 = arith.divf %430, %431 : vector<4x32xf32>
    %433 = vector.extract_strided_slice %426 {offsets = [0, 32], sizes = [4, 32], strides = [1, 1]} : vector<4x128xf32> to vector<4x32xf32>
    %434 = arith.negf %433 : vector<4x32xf32>
    %435 = math.exp %434 : vector<4x32xf32>
    %cst_61 = arith.constant 1.000000e+00 : f32
    %436 = vector.broadcast %cst_61 : f32 to vector<4x32xf32>
    %437 = arith.addf %436, %435 : vector<4x32xf32>
    %438 = arith.divf %436, %437 : vector<4x32xf32>
    %439 = vector.extract_strided_slice %426 {offsets = [0, 64], sizes = [4, 32], strides = [1, 1]} : vector<4x128xf32> to vector<4x32xf32>
    %440 = math.tanh %439 : vector<4x32xf32>
    %441 = vector.extract_strided_slice %426 {offsets = [0, 96], sizes = [4, 32], strides = [1, 1]} : vector<4x128xf32> to vector<4x32xf32>
    %442 = arith.negf %441 : vector<4x32xf32>
    %443 = math.exp %442 : vector<4x32xf32>
    %cst_62 = arith.constant 1.000000e+00 : f32
    %444 = vector.broadcast %cst_62 : f32 to vector<4x32xf32>
    %445 = arith.addf %444, %443 : vector<4x32xf32>
    %446 = arith.divf %444, %445 : vector<4x32xf32>
    %447 = arith.mulf %438, %411 : vector<4x32xf32>
    %448 = arith.mulf %432, %440 : vector<4x32xf32>
    %449 = arith.addf %447, %448 : vector<4x32xf32>
    %450 = math.tanh %449 : vector<4x32xf32>
    %451 = arith.mulf %446, %450 : vector<4x32xf32>
    %452 = vector.extract_strided_slice %451 {offsets = [0, 0], sizes = [2, 32], strides = [1, 1]} : vector<4x32xf32> to vector<2x32xf32>
    %453 = vector.extract_strided_slice %451 {offsets = [2, 0], sizes = [2, 32], strides = [1, 1]} : vector<4x32xf32> to vector<2x32xf32>
    %454 = tpu.concatenate %452, %453 in 1 : vector<2x32xf32>, vector<2x32xf32> -> vector<2x64xf32>
    %cst_63 = arith.constant dense<0.000000e+00> : vector<2x256xf32>
    %455 = tpu.matmul %454, %333, %cst_63 {dimension_numbers = #tpu.dot_dimension_numbers<[1], [0], [0], [1], [0, 0, 1, 1], [], []>} : vector<2x64xf32>, vector<64x256xf32>, vector<2x256xf32> -> vector<2x256xf32>
    %456 = vector.extract_strided_slice %338 {offsets = [0, 3, 0], sizes = [2, 1, 128], strides = [1, 1, 1]} : vector<2x8x256xf32> to vector<2x1x128xf32>
    %457 = vector.shape_cast %456 : vector<2x1x128xf32> to vector<2x128xf32>
    %458 = vector.extract_strided_slice %455 {offsets = [0, 0], sizes = [2, 128], strides = [1, 1]} : vector<2x256xf32> to vector<2x128xf32>
    %459 = arith.addf %457, %458 : vector<2x128xf32>
    %460 = vector.extract_strided_slice %338 {offsets = [0, 4, 128], sizes = [2, 1, 128], strides = [1, 1, 1]} : vector<2x8x256xf32> to vector<2x1x128xf32>
    %461 = vector.shape_cast %460 : vector<2x1x128xf32> to vector<2x128xf32>
    %462 = vector.extract_strided_slice %455 {offsets = [0, 128], sizes = [2, 128], strides = [1, 1]} : vector<2x256xf32> to vector<2x128xf32>
    %463 = arith.addf %461, %462 : vector<2x128xf32>
    %464 = tpu.concatenate %459, %463 in 0 : vector<2x128xf32>, vector<2x128xf32> -> vector<4x128xf32>
    %465 = vector.extract_strided_slice %464 {offsets = [0, 0], sizes = [4, 32], strides = [1, 1]} : vector<4x128xf32> to vector<4x32xf32>
    %466 = arith.negf %465 : vector<4x32xf32>
    %467 = math.exp %466 : vector<4x32xf32>
    %cst_64 = arith.constant 1.000000e+00 : f32
    %468 = vector.broadcast %cst_64 : f32 to vector<4x32xf32>
    %469 = arith.addf %468, %467 : vector<4x32xf32>
    %470 = arith.divf %468, %469 : vector<4x32xf32>
    %471 = vector.extract_strided_slice %464 {offsets = [0, 32], sizes = [4, 32], strides = [1, 1]} : vector<4x128xf32> to vector<4x32xf32>
    %472 = arith.negf %471 : vector<4x32xf32>
    %473 = math.exp %472 : vector<4x32xf32>
    %cst_65 = arith.constant 1.000000e+00 : f32
    %474 = vector.broadcast %cst_65 : f32 to vector<4x32xf32>
    %475 = arith.addf %474, %473 : vector<4x32xf32>
    %476 = arith.divf %474, %475 : vector<4x32xf32>
    %477 = vector.extract_strided_slice %464 {offsets = [0, 64], sizes = [4, 32], strides = [1, 1]} : vector<4x128xf32> to vector<4x32xf32>
    %478 = math.tanh %477 : vector<4x32xf32>
    %479 = vector.extract_strided_slice %464 {offsets = [0, 96], sizes = [4, 32], strides = [1, 1]} : vector<4x128xf32> to vector<4x32xf32>
    %480 = arith.negf %479 : vector<4x32xf32>
    %481 = math.exp %480 : vector<4x32xf32>
    %cst_66 = arith.constant 1.000000e+00 : f32
    %482 = vector.broadcast %cst_66 : f32 to vector<4x32xf32>
    %483 = arith.addf %482, %481 : vector<4x32xf32>
    %484 = arith.divf %482, %483 : vector<4x32xf32>
    %485 = arith.mulf %476, %449 : vector<4x32xf32>
    %486 = arith.mulf %470, %478 : vector<4x32xf32>
    %487 = arith.addf %485, %486 : vector<4x32xf32>
    %488 = math.tanh %487 : vector<4x32xf32>
    %489 = arith.mulf %484, %488 : vector<4x32xf32>
    %490 = vector.extract_strided_slice %489 {offsets = [0, 0], sizes = [2, 32], strides = [1, 1]} : vector<4x32xf32> to vector<2x32xf32>
    %491 = vector.extract_strided_slice %489 {offsets = [2, 0], sizes = [2, 32], strides = [1, 1]} : vector<4x32xf32> to vector<2x32xf32>
    %492 = tpu.concatenate %490, %491 in 1 : vector<2x32xf32>, vector<2x32xf32> -> vector<2x64xf32>
    %cst_67 = arith.constant dense<0.000000e+00> : vector<2x256xf32>
    %493 = tpu.matmul %492, %333, %cst_67 {dimension_numbers = #tpu.dot_dimension_numbers<[1], [0], [0], [1], [0, 0, 1, 1], [], []>} : vector<2x64xf32>, vector<64x256xf32>, vector<2x256xf32> -> vector<2x256xf32>
    %494 = vector.extract_strided_slice %338 {offsets = [0, 4, 0], sizes = [2, 1, 128], strides = [1, 1, 1]} : vector<2x8x256xf32> to vector<2x1x128xf32>
    %495 = vector.shape_cast %494 : vector<2x1x128xf32> to vector<2x128xf32>
    %496 = vector.extract_strided_slice %493 {offsets = [0, 0], sizes = [2, 128], strides = [1, 1]} : vector<2x256xf32> to vector<2x128xf32>
    %497 = arith.addf %495, %496 : vector<2x128xf32>
    %498 = vector.extract_strided_slice %338 {offsets = [0, 3, 128], sizes = [2, 1, 128], strides = [1, 1, 1]} : vector<2x8x256xf32> to vector<2x1x128xf32>
    %499 = vector.shape_cast %498 : vector<2x1x128xf32> to vector<2x128xf32>
    %500 = vector.extract_strided_slice %493 {offsets = [0, 128], sizes = [2, 128], strides = [1, 1]} : vector<2x256xf32> to vector<2x128xf32>
    %501 = arith.addf %499, %500 : vector<2x128xf32>
    %502 = tpu.concatenate %497, %501 in 0 : vector<2x128xf32>, vector<2x128xf32> -> vector<4x128xf32>
    %503 = vector.extract_strided_slice %502 {offsets = [0, 0], sizes = [4, 32], strides = [1, 1]} : vector<4x128xf32> to vector<4x32xf32>
    %504 = arith.negf %503 : vector<4x32xf32>
    %505 = math.exp %504 : vector<4x32xf32>
    %cst_68 = arith.constant 1.000000e+00 : f32
    %506 = vector.broadcast %cst_68 : f32 to vector<4x32xf32>
    %507 = arith.addf %506, %505 : vector<4x32xf32>
    %508 = arith.divf %506, %507 : vector<4x32xf32>
    %509 = vector.extract_strided_slice %502 {offsets = [0, 32], sizes = [4, 32], strides = [1, 1]} : vector<4x128xf32> to vector<4x32xf32>
    %510 = arith.negf %509 : vector<4x32xf32>
    %511 = math.exp %510 : vector<4x32xf32>
    %cst_69 = arith.constant 1.000000e+00 : f32
    %512 = vector.broadcast %cst_69 : f32 to vector<4x32xf32>
    %513 = arith.addf %512, %511 : vector<4x32xf32>
    %514 = arith.divf %512, %513 : vector<4x32xf32>
    %515 = vector.extract_strided_slice %502 {offsets = [0, 64], sizes = [4, 32], strides = [1, 1]} : vector<4x128xf32> to vector<4x32xf32>
    %516 = math.tanh %515 : vector<4x32xf32>
    %517 = vector.extract_strided_slice %502 {offsets = [0, 96], sizes = [4, 32], strides = [1, 1]} : vector<4x128xf32> to vector<4x32xf32>
    %518 = arith.negf %517 : vector<4x32xf32>
    %519 = math.exp %518 : vector<4x32xf32>
    %cst_70 = arith.constant 1.000000e+00 : f32
    %520 = vector.broadcast %cst_70 : f32 to vector<4x32xf32>
    %521 = arith.addf %520, %519 : vector<4x32xf32>
    %522 = arith.divf %520, %521 : vector<4x32xf32>
    %523 = arith.mulf %514, %487 : vector<4x32xf32>
    %524 = arith.mulf %508, %516 : vector<4x32xf32>
    %525 = arith.addf %523, %524 : vector<4x32xf32>
    %526 = math.tanh %525 : vector<4x32xf32>
    %527 = arith.mulf %522, %526 : vector<4x32xf32>
    %528 = vector.extract_strided_slice %527 {offsets = [0, 0], sizes = [2, 32], strides = [1, 1]} : vector<4x32xf32> to vector<2x32xf32>
    %529 = vector.extract_strided_slice %527 {offsets = [2, 0], sizes = [2, 32], strides = [1, 1]} : vector<4x32xf32> to vector<2x32xf32>
    %530 = tpu.concatenate %528, %529 in 1 : vector<2x32xf32>, vector<2x32xf32> -> vector<2x64xf32>
    %cst_71 = arith.constant dense<0.000000e+00> : vector<2x256xf32>
    %531 = tpu.matmul %530, %333, %cst_71 {dimension_numbers = #tpu.dot_dimension_numbers<[1], [0], [0], [1], [0, 0, 1, 1], [], []>} : vector<2x64xf32>, vector<64x256xf32>, vector<2x256xf32> -> vector<2x256xf32>
    %532 = vector.extract_strided_slice %338 {offsets = [0, 5, 0], sizes = [2, 1, 128], strides = [1, 1, 1]} : vector<2x8x256xf32> to vector<2x1x128xf32>
    %533 = vector.shape_cast %532 : vector<2x1x128xf32> to vector<2x128xf32>
    %534 = vector.extract_strided_slice %531 {offsets = [0, 0], sizes = [2, 128], strides = [1, 1]} : vector<2x256xf32> to vector<2x128xf32>
    %535 = arith.addf %533, %534 : vector<2x128xf32>
    %536 = vector.extract_strided_slice %338 {offsets = [0, 2, 128], sizes = [2, 1, 128], strides = [1, 1, 1]} : vector<2x8x256xf32> to vector<2x1x128xf32>
    %537 = vector.shape_cast %536 : vector<2x1x128xf32> to vector<2x128xf32>
    %538 = vector.extract_strided_slice %531 {offsets = [0, 128], sizes = [2, 128], strides = [1, 1]} : vector<2x256xf32> to vector<2x128xf32>
    %539 = arith.addf %537, %538 : vector<2x128xf32>
    %540 = tpu.concatenate %535, %539 in 0 : vector<2x128xf32>, vector<2x128xf32> -> vector<4x128xf32>
    %541 = vector.extract_strided_slice %540 {offsets = [0, 0], sizes = [4, 32], strides = [1, 1]} : vector<4x128xf32> to vector<4x32xf32>
    %542 = arith.negf %541 : vector<4x32xf32>
    %543 = math.exp %542 : vector<4x32xf32>
    %cst_72 = arith.constant 1.000000e+00 : f32
    %544 = vector.broadcast %cst_72 : f32 to vector<4x32xf32>
    %545 = arith.addf %544, %543 : vector<4x32xf32>
    %546 = arith.divf %544, %545 : vector<4x32xf32>
    %547 = vector.extract_strided_slice %540 {offsets = [0, 32], sizes = [4, 32], strides = [1, 1]} : vector<4x128xf32> to vector<4x32xf32>
    %548 = arith.negf %547 : vector<4x32xf32>
    %549 = math.exp %548 : vector<4x32xf32>
    %cst_73 = arith.constant 1.000000e+00 : f32
    %550 = vector.broadcast %cst_73 : f32 to vector<4x32xf32>
    %551 = arith.addf %550, %549 : vector<4x32xf32>
    %552 = arith.divf %550, %551 : vector<4x32xf32>
    %553 = vector.extract_strided_slice %540 {offsets = [0, 64], sizes = [4, 32], strides = [1, 1]} : vector<4x128xf32> to vector<4x32xf32>
    %554 = math.tanh %553 : vector<4x32xf32>
    %555 = vector.extract_strided_slice %540 {offsets = [0, 96], sizes = [4, 32], strides = [1, 1]} : vector<4x128xf32> to vector<4x32xf32>
    %556 = arith.negf %555 : vector<4x32xf32>
    %557 = math.exp %556 : vector<4x32xf32>
    %cst_74 = arith.constant 1.000000e+00 : f32
    %558 = vector.broadcast %cst_74 : f32 to vector<4x32xf32>
    %559 = arith.addf %558, %557 : vector<4x32xf32>
    %560 = arith.divf %558, %559 : vector<4x32xf32>
    %561 = arith.mulf %552, %525 : vector<4x32xf32>
    %562 = arith.mulf %546, %554 : vector<4x32xf32>
    %563 = arith.addf %561, %562 : vector<4x32xf32>
    %564 = math.tanh %563 : vector<4x32xf32>
    %565 = arith.mulf %560, %564 : vector<4x32xf32>
    %566 = vector.extract_strided_slice %565 {offsets = [0, 0], sizes = [2, 32], strides = [1, 1]} : vector<4x32xf32> to vector<2x32xf32>
    %567 = vector.extract_strided_slice %565 {offsets = [2, 0], sizes = [2, 32], strides = [1, 1]} : vector<4x32xf32> to vector<2x32xf32>
    %568 = tpu.concatenate %566, %567 in 1 : vector<2x32xf32>, vector<2x32xf32> -> vector<2x64xf32>
    %cst_75 = arith.constant dense<0.000000e+00> : vector<2x256xf32>
    %569 = tpu.matmul %568, %333, %cst_75 {dimension_numbers = #tpu.dot_dimension_numbers<[1], [0], [0], [1], [0, 0, 1, 1], [], []>} : vector<2x64xf32>, vector<64x256xf32>, vector<2x256xf32> -> vector<2x256xf32>
    %570 = vector.extract_strided_slice %338 {offsets = [0, 6, 0], sizes = [2, 1, 128], strides = [1, 1, 1]} : vector<2x8x256xf32> to vector<2x1x128xf32>
    %571 = vector.shape_cast %570 : vector<2x1x128xf32> to vector<2x128xf32>
    %572 = vector.extract_strided_slice %569 {offsets = [0, 0], sizes = [2, 128], strides = [1, 1]} : vector<2x256xf32> to vector<2x128xf32>
    %573 = arith.addf %571, %572 : vector<2x128xf32>
    %574 = vector.extract_strided_slice %338 {offsets = [0, 1, 128], sizes = [2, 1, 128], strides = [1, 1, 1]} : vector<2x8x256xf32> to vector<2x1x128xf32>
    %575 = vector.shape_cast %574 : vector<2x1x128xf32> to vector<2x128xf32>
    %576 = vector.extract_strided_slice %569 {offsets = [0, 128], sizes = [2, 128], strides = [1, 1]} : vector<2x256xf32> to vector<2x128xf32>
    %577 = arith.addf %575, %576 : vector<2x128xf32>
    %578 = tpu.concatenate %573, %577 in 0 : vector<2x128xf32>, vector<2x128xf32> -> vector<4x128xf32>
    %579 = vector.extract_strided_slice %578 {offsets = [0, 0], sizes = [4, 32], strides = [1, 1]} : vector<4x128xf32> to vector<4x32xf32>
    %580 = arith.negf %579 : vector<4x32xf32>
    %581 = math.exp %580 : vector<4x32xf32>
    %cst_76 = arith.constant 1.000000e+00 : f32
    %582 = vector.broadcast %cst_76 : f32 to vector<4x32xf32>
    %583 = arith.addf %582, %581 : vector<4x32xf32>
    %584 = arith.divf %582, %583 : vector<4x32xf32>
    %585 = vector.extract_strided_slice %578 {offsets = [0, 32], sizes = [4, 32], strides = [1, 1]} : vector<4x128xf32> to vector<4x32xf32>
    %586 = arith.negf %585 : vector<4x32xf32>
    %587 = math.exp %586 : vector<4x32xf32>
    %cst_77 = arith.constant 1.000000e+00 : f32
    %588 = vector.broadcast %cst_77 : f32 to vector<4x32xf32>
    %589 = arith.addf %588, %587 : vector<4x32xf32>
    %590 = arith.divf %588, %589 : vector<4x32xf32>
    %591 = vector.extract_strided_slice %578 {offsets = [0, 64], sizes = [4, 32], strides = [1, 1]} : vector<4x128xf32> to vector<4x32xf32>
    %592 = math.tanh %591 : vector<4x32xf32>
    %593 = vector.extract_strided_slice %578 {offsets = [0, 96], sizes = [4, 32], strides = [1, 1]} : vector<4x128xf32> to vector<4x32xf32>
    %594 = arith.negf %593 : vector<4x32xf32>
    %595 = math.exp %594 : vector<4x32xf32>
    %cst_78 = arith.constant 1.000000e+00 : f32
    %596 = vector.broadcast %cst_78 : f32 to vector<4x32xf32>
    %597 = arith.addf %596, %595 : vector<4x32xf32>
    %598 = arith.divf %596, %597 : vector<4x32xf32>
    %599 = arith.mulf %590, %563 : vector<4x32xf32>
    %600 = arith.mulf %584, %592 : vector<4x32xf32>
    %601 = arith.addf %599, %600 : vector<4x32xf32>
    %602 = math.tanh %601 : vector<4x32xf32>
    %603 = arith.mulf %598, %602 : vector<4x32xf32>
    %604 = vector.extract_strided_slice %603 {offsets = [0, 0], sizes = [2, 32], strides = [1, 1]} : vector<4x32xf32> to vector<2x32xf32>
    %605 = vector.extract_strided_slice %603 {offsets = [2, 0], sizes = [2, 32], strides = [1, 1]} : vector<4x32xf32> to vector<2x32xf32>
    %606 = tpu.concatenate %604, %605 in 1 : vector<2x32xf32>, vector<2x32xf32> -> vector<2x64xf32>
    %cst_79 = arith.constant dense<0.000000e+00> : vector<2x256xf32>
    %607 = tpu.matmul %606, %333, %cst_79 {dimension_numbers = #tpu.dot_dimension_numbers<[1], [0], [0], [1], [0, 0, 1, 1], [], []>} : vector<2x64xf32>, vector<64x256xf32>, vector<2x256xf32> -> vector<2x256xf32>
    %608 = vector.extract_strided_slice %338 {offsets = [0, 7, 0], sizes = [2, 1, 128], strides = [1, 1, 1]} : vector<2x8x256xf32> to vector<2x1x128xf32>
    %609 = vector.shape_cast %608 : vector<2x1x128xf32> to vector<2x128xf32>
    %610 = vector.extract_strided_slice %607 {offsets = [0, 0], sizes = [2, 128], strides = [1, 1]} : vector<2x256xf32> to vector<2x128xf32>
    %611 = arith.addf %609, %610 : vector<2x128xf32>
    %612 = vector.extract_strided_slice %338 {offsets = [0, 0, 128], sizes = [2, 1, 128], strides = [1, 1, 1]} : vector<2x8x256xf32> to vector<2x1x128xf32>
    %613 = vector.shape_cast %612 : vector<2x1x128xf32> to vector<2x128xf32>
    %614 = vector.extract_strided_slice %607 {offsets = [0, 128], sizes = [2, 128], strides = [1, 1]} : vector<2x256xf32> to vector<2x128xf32>
    %615 = arith.addf %613, %614 : vector<2x128xf32>
    %616 = tpu.concatenate %611, %615 in 0 : vector<2x128xf32>, vector<2x128xf32> -> vector<4x128xf32>
    %617 = vector.extract_strided_slice %616 {offsets = [0, 0], sizes = [4, 32], strides = [1, 1]} : vector<4x128xf32> to vector<4x32xf32>
    %618 = arith.negf %617 : vector<4x32xf32>
    %619 = math.exp %618 : vector<4x32xf32>
    %cst_80 = arith.constant 1.000000e+00 : f32
    %620 = vector.broadcast %cst_80 : f32 to vector<4x32xf32>
    %621 = arith.addf %620, %619 : vector<4x32xf32>
    %622 = arith.divf %620, %621 : vector<4x32xf32>
    %623 = vector.extract_strided_slice %616 {offsets = [0, 32], sizes = [4, 32], strides = [1, 1]} : vector<4x128xf32> to vector<4x32xf32>
    %624 = arith.negf %623 : vector<4x32xf32>
    %625 = math.exp %624 : vector<4x32xf32>
    %cst_81 = arith.constant 1.000000e+00 : f32
    %626 = vector.broadcast %cst_81 : f32 to vector<4x32xf32>
    %627 = arith.addf %626, %625 : vector<4x32xf32>
    %628 = arith.divf %626, %627 : vector<4x32xf32>
    %629 = vector.extract_strided_slice %616 {offsets = [0, 64], sizes = [4, 32], strides = [1, 1]} : vector<4x128xf32> to vector<4x32xf32>
    %630 = math.tanh %629 : vector<4x32xf32>
    %631 = vector.extract_strided_slice %616 {offsets = [0, 96], sizes = [4, 32], strides = [1, 1]} : vector<4x128xf32> to vector<4x32xf32>
    %632 = arith.negf %631 : vector<4x32xf32>
    %633 = math.exp %632 : vector<4x32xf32>
    %cst_82 = arith.constant 1.000000e+00 : f32
    %634 = vector.broadcast %cst_82 : f32 to vector<4x32xf32>
    %635 = arith.addf %634, %633 : vector<4x32xf32>
    %636 = arith.divf %634, %635 : vector<4x32xf32>
    %637 = arith.mulf %628, %601 : vector<4x32xf32>
    %638 = arith.mulf %622, %630 : vector<4x32xf32>
    %639 = arith.addf %637, %638 : vector<4x32xf32>
    %640 = math.tanh %639 : vector<4x32xf32>
    %641 = arith.mulf %636, %640 : vector<4x32xf32>
    %642 = vector.extract_strided_slice %641 {offsets = [0, 0], sizes = [2, 32], strides = [1, 1]} : vector<4x32xf32> to vector<2x32xf32>
    %643 = vector.extract_strided_slice %641 {offsets = [2, 0], sizes = [2, 32], strides = [1, 1]} : vector<4x32xf32> to vector<2x32xf32>
    %644 = tpu.concatenate %376, %643 in 1 : vector<2x32xf32>, vector<2x32xf32> -> vector<2x64xf32>
    %645 = tpu.concatenate %414, %605 in 1 : vector<2x32xf32>, vector<2x32xf32> -> vector<2x64xf32>
    %646 = tpu.concatenate %452, %567 in 1 : vector<2x32xf32>, vector<2x32xf32> -> vector<2x64xf32>
    %647 = tpu.concatenate %490, %529 in 1 : vector<2x32xf32>, vector<2x32xf32> -> vector<2x64xf32>
    %648 = tpu.concatenate %528, %491 in 1 : vector<2x32xf32>, vector<2x32xf32> -> vector<2x64xf32>
    %649 = tpu.concatenate %566, %453 in 1 : vector<2x32xf32>, vector<2x32xf32> -> vector<2x64xf32>
    %650 = tpu.concatenate %604, %415 in 1 : vector<2x32xf32>, vector<2x32xf32> -> vector<2x64xf32>
    %651 = tpu.concatenate %642, %377 in 1 : vector<2x32xf32>, vector<2x32xf32> -> vector<2x64xf32>
    %652 = vector.shape_cast %644 : vector<2x64xf32> to vector<2x1x64xf32>
    %653 = vector.shape_cast %645 : vector<2x64xf32> to vector<2x1x64xf32>
    %654 = vector.shape_cast %646 : vector<2x64xf32> to vector<2x1x64xf32>
    %655 = vector.shape_cast %647 : vector<2x64xf32> to vector<2x1x64xf32>
    %656 = vector.shape_cast %648 : vector<2x64xf32> to vector<2x1x64xf32>
    %657 = vector.shape_cast %649 : vector<2x64xf32> to vector<2x1x64xf32>
    %658 = vector.shape_cast %650 : vector<2x64xf32> to vector<2x1x64xf32>
    %659 = vector.shape_cast %651 : vector<2x64xf32> to vector<2x1x64xf32>
    %660 = tpu.concatenate %652, %653, %654, %655, %656, %657, %658, %659 in 1 : vector<2x1x64xf32>, vector<2x1x64xf32>, vector<2x1x64xf32>, vector<2x1x64xf32>, vector<2x1x64xf32>, vector<2x1x64xf32>, vector<2x1x64xf32>, vector<2x1x64xf32> -> vector<2x8x64xf32>
    %c0_83 = arith.constant 0 : index
    %661 = memref.load %arg1[%c0_83] : memref<2xi32, #tpu.memory_space<smem>>
    %662 = vector.extract_strided_slice %660 {offsets = [0, 0, 0], sizes = [1, 8, 64], strides = [1, 1, 1]} : vector<2x8x64xf32> to vector<1x8x64xf32>
    %663 = vector.shape_cast %662 : vector<1x8x64xf32> to vector<8x64xf32>
    %664 = tpu.iota {dimensions = array<i32: 0>} : vector<8x1xi32>
    %665 = vector.broadcast %661 : i32 to vector<8x1xi32>
    %666 = arith.cmpi eq, %664, %665 : vector<8x1xi32>
    %667 = arith.extui %666 : vector<8x1xi1> to vector<8x1xi32>
    %668 = arith.sitofp %667 : vector<8x1xi32> to vector<8x1xf32>
    %669 = vector.broadcast %668 : vector<8x1xf32> to vector<8x64xf32>
    %670 = arith.mulf %663, %669 : vector<8x64xf32>
    %cst_84 = arith.constant dense<0.000000e+00> : vector<64xf32>
    %671 = vector.multi_reduction <add>, %670, %cst_84 [0] : vector<8x64xf32> to vector<64xf32>
    %672 = vector.shape_cast %671 : vector<64xf32> to vector<1x64xf32>
    %673 = vector.shape_cast %672 : vector<1x64xf32> to vector<1x64xf32>
    %674 = vector.broadcast %673 : vector<1x64xf32> to vector<8x64xf32>
    %675 = tpu.concatenate %663, %674 in 1 : vector<8x64xf32>, vector<8x64xf32> -> vector<8x128xf32>
    %c1 = arith.constant 1 : index
    %676 = memref.load %arg1[%c1] : memref<2xi32, #tpu.memory_space<smem>>
    %677 = vector.extract_strided_slice %660 {offsets = [1, 0, 0], sizes = [1, 8, 64], strides = [1, 1, 1]} : vector<2x8x64xf32> to vector<1x8x64xf32>
    %678 = vector.shape_cast %677 : vector<1x8x64xf32> to vector<8x64xf32>
    %679 = tpu.iota {dimensions = array<i32: 0>} : vector<8x1xi32>
    %680 = vector.broadcast %676 : i32 to vector<8x1xi32>
    %681 = arith.cmpi eq, %679, %680 : vector<8x1xi32>
    %682 = arith.extui %681 : vector<8x1xi1> to vector<8x1xi32>
    %683 = arith.sitofp %682 : vector<8x1xi32> to vector<8x1xf32>
    %684 = vector.broadcast %683 : vector<8x1xf32> to vector<8x64xf32>
    %685 = arith.mulf %678, %684 : vector<8x64xf32>
    %cst_85 = arith.constant dense<0.000000e+00> : vector<64xf32>
    %686 = vector.multi_reduction <add>, %685, %cst_85 [0] : vector<8x64xf32> to vector<64xf32>
    %687 = vector.shape_cast %686 : vector<64xf32> to vector<1x64xf32>
    %688 = vector.shape_cast %687 : vector<1x64xf32> to vector<1x64xf32>
    %689 = vector.broadcast %688 : vector<1x64xf32> to vector<8x64xf32>
    %690 = tpu.concatenate %678, %689 in 1 : vector<8x64xf32>, vector<8x64xf32> -> vector<8x128xf32>
    %691 = tpu.concatenate %675, %690 in 0 : vector<8x128xf32>, vector<8x128xf32> -> vector<16x128xf32>
    %c0_86 = arith.constant 0 : index
    %c0_87 = arith.constant 0 : index
    %692 = vector.load %arg9[%c0_86, %c0_87] : memref<128x64xf32, #tpu.memory_space<vmem>>, vector<128x64xf32>
    %cst_88 = arith.constant dense<0.000000e+00> : vector<16x64xf32>
    %693 = tpu.matmul %691, %692, %cst_88 {dimension_numbers = #tpu.dot_dimension_numbers<[1], [0], [0], [1], [0, 0, 1, 1], [], []>} : vector<16x128xf32>, vector<128x64xf32>, vector<16x64xf32> -> vector<16x64xf32>
    %c0_89 = arith.constant 0 : index
    %c0_90 = arith.constant 0 : index
    %694 = vector.load %arg10[%c0_89, %c0_90] : memref<1x64xf32, #tpu.memory_space<vmem>>, vector<1x64xf32>
    %695 = vector.broadcast %694 : vector<1x64xf32> to vector<16x64xf32>
    %696 = arith.addf %693, %695 : vector<16x64xf32>
    %697 = math.tanh %696 : vector<16x64xf32>
    %c0_91 = arith.constant 0 : index
    %c0_92 = arith.constant 0 : index
    %698 = vector.load %arg11[%c0_91, %c0_92] : memref<64x12xf32, #tpu.memory_space<vmem>>, vector<64x12xf32>
    %cst_93 = arith.constant dense<0.000000e+00> : vector<16x12xf32>
    %699 = tpu.matmul %697, %698, %cst_93 {dimension_numbers = #tpu.dot_dimension_numbers<[1], [0], [0], [1], [0, 0, 1, 1], [], []>} : vector<16x64xf32>, vector<64x12xf32>, vector<16x12xf32> -> vector<16x12xf32>
    %c0_94 = arith.constant 0 : index
    %c0_95 = arith.constant 0 : index
    %700 = vector.load %arg12[%c0_94, %c0_95] : memref<1x12xf32, #tpu.memory_space<vmem>>, vector<1x12xf32>
    %701 = vector.broadcast %700 : vector<1x12xf32> to vector<16x12xf32>
    %702 = arith.addf %699, %701 : vector<16x12xf32>
    %c0_96 = arith.constant 0 : index
    %c0_97 = arith.constant 0 : index
    %703 = vector.load %arg13[%c0_96, %c0_97] : memref<16x12xf32, #tpu.memory_space<vmem>>, vector<16x12xf32>
    tpu.vector_store %arg13[%c0_96, %c0_97], %702 {strides = array<i32>} : memref<16x12xf32, #tpu.memory_space<vmem>>, vector<16x12xf32>,
    %cst_98 = arith.constant dense<0xFF800000> : vector<16xf32>
    %704 = vector.multi_reduction <maximumf>, %702, %cst_98 [1] : vector<16x12xf32> to vector<16xf32>
    %705 = vector.shape_cast %704 : vector<16xf32> to vector<16x1xf32>
    %706 = vector.broadcast %705 : vector<16x1xf32> to vector<16x12xf32>
    %707 = arith.subf %702, %706 : vector<16x12xf32>
    %708 = math.exp %707 : vector<16x12xf32>
    %cst_99 = arith.constant dense<0.000000e+00> : vector<16xf32>
    %709 = vector.multi_reduction <add>, %708, %cst_99 [1] : vector<16x12xf32> to vector<16xf32>
    %710 = vector.shape_cast %709 : vector<16xf32> to vector<16x1xf32>
    %711 = vector.broadcast %710 : vector<16x1xf32> to vector<16x12xf32>
    %712 = arith.divf %708, %711 : vector<16x12xf32>
    %c0_100 = arith.constant 0 : index
    %c0_101 = arith.constant 0 : index
    %713 = vector.load %arg14[%c0_100, %c0_101] : memref<16x12xf32, #tpu.memory_space<vmem>>, vector<16x12xf32>
    tpu.vector_store %arg14[%c0_100, %c0_101], %712 {strides = array<i32>} : memref<16x12xf32, #tpu.memory_space<vmem>>, vector<16x12xf32>,
    return
  }
  func.func @transform_0(%arg0: i32, %arg1: memref<2xi32, #tpu.memory_space<smem>>) -> (i32, i32, i32) {
    %c0_i32 = arith.constant 0 : i32
    %c0_i32_0 = arith.constant 0 : i32
    %c0_i32_1 = arith.constant 0 : i32
    %c0_i32_2 = arith.constant 0 : i32
    return %c0_i32, %c0_i32_0, %c0_i32_1 : i32, i32, i32
  }
  func.func @transform_1(%arg0: i32, %arg1: memref<2xi32, #tpu.memory_space<smem>>) -> (i32, i32) {
    %c0_i32 = arith.constant 0 : i32
    %c0_i32_0 = arith.constant 0 : i32
    %c0_i32_1 = arith.constant 0 : i32
    return %c0_i32, %c0_i32_0 : i32, i32
  }
  func.func @transform_2(%arg0: i32, %arg1: memref<2xi32, #tpu.memory_space<smem>>) -> (i32, i32) {
    %c0_i32 = arith.constant 0 : i32
    %c0_i32_0 = arith.constant 0 : i32
    %c0_i32_1 = arith.constant 0 : i32
    return %c0_i32, %c0_i32_0 : i32, i32
  }
  func.func @transform_3(%arg0: i32, %arg1: memref<2xi32, #tpu.memory_space<smem>>) -> (i32, i32) {
    %c0_i32 = arith.constant 0 : i32
    %c0_i32_0 = arith.constant 0 : i32
    %c0_i32_1 = arith.constant 0 : i32
    return %c0_i32, %c0_i32_0 : i32, i32
  }
  func.func @transform_4(%arg0: i32, %arg1: memref<2xi32, #tpu.memory_space<smem>>) -> (i32, i32) {
    %c0_i32 = arith.constant 0 : i32
    %c0_i32_0 = arith.constant 0 : i32
    %c0_i32_1 = arith.constant 0 : i32
    return %c0_i32, %c0_i32_0 : i32, i32
  }
  func.func @transform_5(%arg0: i32, %arg1: memref<2xi32, #tpu.memory_space<smem>>) -> (i32, i32) {
    %c0_i32 = arith.constant 0 : i32
    %c0_i32_0 = arith.constant 0 : i32
    %c0_i32_1 = arith.constant 0 : i32
    return %c0_i32, %c0_i32_0 : i32, i32
  }
  func.func @transform_6(%arg0: i32, %arg1: memref<2xi32, #tpu.memory_space<smem>>) -> (i32, i32) {
    %c0_i32 = arith.constant 0 : i32
    %c0_i32_0 = arith.constant 0 : i32
    %c0_i32_1 = arith.constant 0 : i32
    return %c0_i32, %c0_i32_0 : i32, i32
  }
  func.func @transform_7(%arg0: i32, %arg1: memref<2xi32, #tpu.memory_space<smem>>) -> (i32, i32) {
    %c0_i32 = arith.constant 0 : i32
    %c0_i32_0 = arith.constant 0 : i32
    %c0_i32_1 = arith.constant 0 : i32
    return %c0_i32, %c0_i32_0 : i32, i32
  }
  func.func @transform_8(%arg0: i32, %arg1: memref<2xi32, #tpu.memory_space<smem>>) -> (i32, i32) {
    %c0_i32 = arith.constant 0 : i32
    %c0_i32_0 = arith.constant 0 : i32
    %c0_i32_1 = arith.constant 0 : i32
    return %c0_i32, %c0_i32_0 : i32, i32
  }
  func.func @transform_9(%arg0: i32, %arg1: memref<2xi32, #tpu.memory_space<smem>>) -> (i32, i32) {
    %c0_i32 = arith.constant 0 : i32
    %c0_i32_0 = arith.constant 0 : i32
    %c0_i32_1 = arith.constant 0 : i32
    return %c0_i32, %c0_i32_0 : i32, i32
  }
  func.func @transform_10(%arg0: i32, %arg1: memref<2xi32, #tpu.memory_space<smem>>) -> (i32, i32) {
    %c0_i32 = arith.constant 0 : i32
    %c0_i32_0 = arith.constant 0 : i32
    %c0_i32_1 = arith.constant 0 : i32
    return %c0_i32, %c0_i32_0 : i32, i32
  }
  func.func @transform_11(%arg0: i32, %arg1: memref<2xi32, #tpu.memory_space<smem>>) -> (i32, i32) {
    %c0_i32 = arith.constant 0 : i32
    %c0_i32_0 = arith.constant 0 : i32
    %c0_i32_1 = arith.constant 0 : i32
    return %c0_i32, %c0_i32_0 : i32, i32
  }
  func.func @transform_12(%arg0: i32, %arg1: memref<2xi32, #tpu.memory_space<smem>>) -> (i32, i32) {
    %c0_i32 = arith.constant 0 : i32
    %c0_i32_0 = arith.constant 0 : i32
    %c0_i32_1 = arith.constant 0 : i32
    return %c0_i32, %c0_i32_0 : i32, i32
  }
}

module attributes {stable_mosaic.version = 11 : i64} {
  func.func @_srl_fused_kernel(%arg0: i32, %arg1: memref<2xi32, #tpu.memory_space<smem>>, %arg2: memref<2x8x113xf32, #tpu.memory_space<vmem>>, %arg3: memref<113x256xf32, #tpu.memory_space<vmem>>, %arg4: memref<1x256xf32, #tpu.memory_space<vmem>>, %arg5: memref<64x256xf32, #tpu.memory_space<vmem>>, %arg6: memref<64x256xf32, #tpu.memory_space<vmem>>, %arg7: memref<1x256xf32, #tpu.memory_space<vmem>>, %arg8: memref<64x256xf32, #tpu.memory_space<vmem>>, %arg9: memref<64x256xf32, #tpu.memory_space<vmem>>, %arg10: memref<1x256xf32, #tpu.memory_space<vmem>>, %arg11: memref<64x256xf32, #tpu.memory_space<vmem>>, %arg12: memref<64x256xf32, #tpu.memory_space<vmem>>, %arg13: memref<1x256xf32, #tpu.memory_space<vmem>>, %arg14: memref<64x256xf32, #tpu.memory_space<vmem>>, %arg15: memref<12x32xf32, #tpu.memory_space<vmem>>, %arg16: memref<32x128xf32, #tpu.memory_space<vmem>>, %arg17: memref<1x128xf32, #tpu.memory_space<vmem>>, %arg18: memref<2x1x6xf32, #tpu.memory_space<vmem>>, %arg19: memref<16x6xf32, #tpu.memory_space<vmem>>, %arg20: memref<16x6xf32, #tpu.memory_space<vmem>>) attributes {dimension_semantics = [#tpu.dimension_semantics<arbitrary>], iteration_bounds = array<i64: 1>, scalar_prefetch = 1 : i64, scratch_operands = 0 : i64, tpu.core_type = #tpu.core_type<tc>, window_params = [{pipeline_mode = #tpu.pipeline_mode<synchronous>, transform_indices = @transform_0, window_bounds = array<i64: 2, 8, 113>}, {pipeline_mode = #tpu.pipeline_mode<synchronous>, transform_indices = @transform_1, window_bounds = array<i64: 113, 256>}, {pipeline_mode = #tpu.pipeline_mode<synchronous>, transform_indices = @transform_2, window_bounds = array<i64: 1, 256>}, {pipeline_mode = #tpu.pipeline_mode<synchronous>, transform_indices = @transform_3, window_bounds = array<i64: 64, 256>}, {pipeline_mode = #tpu.pipeline_mode<synchronous>, transform_indices = @transform_4, window_bounds = array<i64: 64, 256>}, {pipeline_mode = #tpu.pipeline_mode<synchronous>, transform_indices = @transform_5, window_bounds = array<i64: 1, 256>}, {pipeline_mode = #tpu.pipeline_mode<synchronous>, transform_indices = @transform_6, window_bounds = array<i64: 64, 256>}, {pipeline_mode = #tpu.pipeline_mode<synchronous>, transform_indices = @transform_7, window_bounds = array<i64: 64, 256>}, {pipeline_mode = #tpu.pipeline_mode<synchronous>, transform_indices = @transform_8, window_bounds = array<i64: 1, 256>}, {pipeline_mode = #tpu.pipeline_mode<synchronous>, transform_indices = @transform_9, window_bounds = array<i64: 64, 256>}, {pipeline_mode = #tpu.pipeline_mode<synchronous>, transform_indices = @transform_10, window_bounds = array<i64: 64, 256>}, {pipeline_mode = #tpu.pipeline_mode<synchronous>, transform_indices = @transform_11, window_bounds = array<i64: 1, 256>}, {pipeline_mode = #tpu.pipeline_mode<synchronous>, transform_indices = @transform_12, window_bounds = array<i64: 64, 256>}, {pipeline_mode = #tpu.pipeline_mode<synchronous>, transform_indices = @transform_13, window_bounds = array<i64: 12, 32>}, {pipeline_mode = #tpu.pipeline_mode<synchronous>, transform_indices = @transform_14, window_bounds = array<i64: 32, 128>}, {pipeline_mode = #tpu.pipeline_mode<synchronous>, transform_indices = @transform_15, window_bounds = array<i64: 1, 128>}, {pipeline_mode = #tpu.pipeline_mode<synchronous>, transform_indices = @transform_16, window_bounds = array<i64: 2, 1, 6>}, {pipeline_mode = #tpu.pipeline_mode<synchronous>, transform_indices = @transform_17, window_bounds = array<i64: 16, 6>}, {pipeline_mode = #tpu.pipeline_mode<synchronous>, transform_indices = @transform_18, window_bounds = array<i64: 16, 6>}]} {
    %c0 = arith.constant 0 : index
    %c0_0 = arith.constant 0 : index
    %c0_1 = arith.constant 0 : index
    %0 = vector.load %arg2[%c0, %c0_0, %c0_1] : memref<2x8x113xf32, #tpu.memory_space<vmem>>, vector<2x8x113xf32>
    %c0_2 = arith.constant 0 : index
    %c0_3 = arith.constant 0 : index
    %1 = vector.load %arg3[%c0_2, %c0_3] : memref<113x256xf32, #tpu.memory_space<vmem>>, vector<113x256xf32>
    %c0_4 = arith.constant 0 : index
    %c0_5 = arith.constant 0 : index
    %2 = vector.load %arg4[%c0_4, %c0_5] : memref<1x256xf32, #tpu.memory_space<vmem>>, vector<1x256xf32>
    %c0_6 = arith.constant 0 : index
    %c0_7 = arith.constant 0 : index
    %3 = vector.load %arg5[%c0_6, %c0_7] : memref<64x256xf32, #tpu.memory_space<vmem>>, vector<64x256xf32>
    %4 = vector.shape_cast %0 : vector<2x8x113xf32> to vector<16x113xf32>
    %cst = arith.constant dense<0.000000e+00> : vector<16x256xf32>
    %5 = tpu.matmul %4, %1, %cst {dimension_numbers = #tpu.dot_dimension_numbers<[1], [0], [0], [1], [0, 0, 1, 1], [], []>} : vector<16x113xf32>, vector<113x256xf32>, vector<16x256xf32> -> vector<16x256xf32>
    %6 = vector.broadcast %2 : vector<1x256xf32> to vector<16x256xf32>
    %7 = arith.addf %5, %6 : vector<16x256xf32>
    %8 = vector.shape_cast %7 : vector<16x256xf32> to vector<2x8x256xf32>
    %cst_8 = arith.constant 0.000000e+00 : f32
    %9 = vector.broadcast %cst_8 : f32 to vector<2x64xf32>
    %cst_9 = arith.constant 0.000000e+00 : f32
    %10 = vector.broadcast %cst_9 : f32 to vector<4x32xf32>
    %cst_10 = arith.constant dense<0.000000e+00> : vector<2x256xf32>
    %11 = tpu.matmul %9, %3, %cst_10 {dimension_numbers = #tpu.dot_dimension_numbers<[1], [0], [0], [1], [0, 0, 1, 1], [], []>} : vector<2x64xf32>, vector<64x256xf32>, vector<2x256xf32> -> vector<2x256xf32>
    %12 = vector.extract_strided_slice %8 {offsets = [0, 0, 0], sizes = [2, 1, 128], strides = [1, 1, 1]} : vector<2x8x256xf32> to vector<2x1x128xf32>
    %13 = vector.shape_cast %12 : vector<2x1x128xf32> to vector<2x128xf32>
    %14 = vector.extract_strided_slice %11 {offsets = [0, 0], sizes = [2, 128], strides = [1, 1]} : vector<2x256xf32> to vector<2x128xf32>
    %15 = arith.addf %13, %14 : vector<2x128xf32>
    %16 = vector.extract_strided_slice %8 {offsets = [0, 7, 128], sizes = [2, 1, 128], strides = [1, 1, 1]} : vector<2x8x256xf32> to vector<2x1x128xf32>
    %17 = vector.shape_cast %16 : vector<2x1x128xf32> to vector<2x128xf32>
    %18 = vector.extract_strided_slice %11 {offsets = [0, 128], sizes = [2, 128], strides = [1, 1]} : vector<2x256xf32> to vector<2x128xf32>
    %19 = arith.addf %17, %18 : vector<2x128xf32>
    %20 = tpu.concatenate %15, %19 in 0 : vector<2x128xf32>, vector<2x128xf32> -> vector<4x128xf32>
    %21 = vector.extract_strided_slice %20 {offsets = [0, 0], sizes = [4, 32], strides = [1, 1]} : vector<4x128xf32> to vector<4x32xf32>
    %22 = arith.negf %21 : vector<4x32xf32>
    %23 = math.exp %22 : vector<4x32xf32>
    %cst_11 = arith.constant 1.000000e+00 : f32
    %24 = vector.broadcast %cst_11 : f32 to vector<4x32xf32>
    %25 = arith.addf %24, %23 : vector<4x32xf32>
    %26 = arith.divf %24, %25 : vector<4x32xf32>
    %27 = vector.extract_strided_slice %20 {offsets = [0, 32], sizes = [4, 32], strides = [1, 1]} : vector<4x128xf32> to vector<4x32xf32>
    %28 = arith.negf %27 : vector<4x32xf32>
    %29 = math.exp %28 : vector<4x32xf32>
    %cst_12 = arith.constant 1.000000e+00 : f32
    %30 = vector.broadcast %cst_12 : f32 to vector<4x32xf32>
    %31 = arith.addf %30, %29 : vector<4x32xf32>
    %32 = arith.divf %30, %31 : vector<4x32xf32>
    %33 = vector.extract_strided_slice %20 {offsets = [0, 64], sizes = [4, 32], strides = [1, 1]} : vector<4x128xf32> to vector<4x32xf32>
    %34 = math.tanh %33 : vector<4x32xf32>
    %35 = vector.extract_strided_slice %20 {offsets = [0, 96], sizes = [4, 32], strides = [1, 1]} : vector<4x128xf32> to vector<4x32xf32>
    %36 = arith.negf %35 : vector<4x32xf32>
    %37 = math.exp %36 : vector<4x32xf32>
    %cst_13 = arith.constant 1.000000e+00 : f32
    %38 = vector.broadcast %cst_13 : f32 to vector<4x32xf32>
    %39 = arith.addf %38, %37 : vector<4x32xf32>
    %40 = arith.divf %38, %39 : vector<4x32xf32>
    %41 = arith.mulf %32, %10 : vector<4x32xf32>
    %42 = arith.mulf %26, %34 : vector<4x32xf32>
    %43 = arith.addf %41, %42 : vector<4x32xf32>
    %44 = math.tanh %43 : vector<4x32xf32>
    %45 = arith.mulf %40, %44 : vector<4x32xf32>
    %46 = vector.extract_strided_slice %45 {offsets = [0, 0], sizes = [2, 32], strides = [1, 1]} : vector<4x32xf32> to vector<2x32xf32>
    %47 = vector.extract_strided_slice %45 {offsets = [2, 0], sizes = [2, 32], strides = [1, 1]} : vector<4x32xf32> to vector<2x32xf32>
    %48 = tpu.concatenate %46, %47 in 1 : vector<2x32xf32>, vector<2x32xf32> -> vector<2x64xf32>
    %cst_14 = arith.constant dense<0.000000e+00> : vector<2x256xf32>
    %49 = tpu.matmul %48, %3, %cst_14 {dimension_numbers = #tpu.dot_dimension_numbers<[1], [0], [0], [1], [0, 0, 1, 1], [], []>} : vector<2x64xf32>, vector<64x256xf32>, vector<2x256xf32> -> vector<2x256xf32>
    %50 = vector.extract_strided_slice %8 {offsets = [0, 1, 0], sizes = [2, 1, 128], strides = [1, 1, 1]} : vector<2x8x256xf32> to vector<2x1x128xf32>
    %51 = vector.shape_cast %50 : vector<2x1x128xf32> to vector<2x128xf32>
    %52 = vector.extract_strided_slice %49 {offsets = [0, 0], sizes = [2, 128], strides = [1, 1]} : vector<2x256xf32> to vector<2x128xf32>
    %53 = arith.addf %51, %52 : vector<2x128xf32>
    %54 = vector.extract_strided_slice %8 {offsets = [0, 6, 128], sizes = [2, 1, 128], strides = [1, 1, 1]} : vector<2x8x256xf32> to vector<2x1x128xf32>
    %55 = vector.shape_cast %54 : vector<2x1x128xf32> to vector<2x128xf32>
    %56 = vector.extract_strided_slice %49 {offsets = [0, 128], sizes = [2, 128], strides = [1, 1]} : vector<2x256xf32> to vector<2x128xf32>
    %57 = arith.addf %55, %56 : vector<2x128xf32>
    %58 = tpu.concatenate %53, %57 in 0 : vector<2x128xf32>, vector<2x128xf32> -> vector<4x128xf32>
    %59 = vector.extract_strided_slice %58 {offsets = [0, 0], sizes = [4, 32], strides = [1, 1]} : vector<4x128xf32> to vector<4x32xf32>
    %60 = arith.negf %59 : vector<4x32xf32>
    %61 = math.exp %60 : vector<4x32xf32>
    %cst_15 = arith.constant 1.000000e+00 : f32
    %62 = vector.broadcast %cst_15 : f32 to vector<4x32xf32>
    %63 = arith.addf %62, %61 : vector<4x32xf32>
    %64 = arith.divf %62, %63 : vector<4x32xf32>
    %65 = vector.extract_strided_slice %58 {offsets = [0, 32], sizes = [4, 32], strides = [1, 1]} : vector<4x128xf32> to vector<4x32xf32>
    %66 = arith.negf %65 : vector<4x32xf32>
    %67 = math.exp %66 : vector<4x32xf32>
    %cst_16 = arith.constant 1.000000e+00 : f32
    %68 = vector.broadcast %cst_16 : f32 to vector<4x32xf32>
    %69 = arith.addf %68, %67 : vector<4x32xf32>
    %70 = arith.divf %68, %69 : vector<4x32xf32>
    %71 = vector.extract_strided_slice %58 {offsets = [0, 64], sizes = [4, 32], strides = [1, 1]} : vector<4x128xf32> to vector<4x32xf32>
    %72 = math.tanh %71 : vector<4x32xf32>
    %73 = vector.extract_strided_slice %58 {offsets = [0, 96], sizes = [4, 32], strides = [1, 1]} : vector<4x128xf32> to vector<4x32xf32>
    %74 = arith.negf %73 : vector<4x32xf32>
    %75 = math.exp %74 : vector<4x32xf32>
    %cst_17 = arith.constant 1.000000e+00 : f32
    %76 = vector.broadcast %cst_17 : f32 to vector<4x32xf32>
    %77 = arith.addf %76, %75 : vector<4x32xf32>
    %78 = arith.divf %76, %77 : vector<4x32xf32>
    %79 = arith.mulf %70, %43 : vector<4x32xf32>
    %80 = arith.mulf %64, %72 : vector<4x32xf32>
    %81 = arith.addf %79, %80 : vector<4x32xf32>
    %82 = math.tanh %81 : vector<4x32xf32>
    %83 = arith.mulf %78, %82 : vector<4x32xf32>
    %84 = vector.extract_strided_slice %83 {offsets = [0, 0], sizes = [2, 32], strides = [1, 1]} : vector<4x32xf32> to vector<2x32xf32>
    %85 = vector.extract_strided_slice %83 {offsets = [2, 0], sizes = [2, 32], strides = [1, 1]} : vector<4x32xf32> to vector<2x32xf32>
    %86 = tpu.concatenate %84, %85 in 1 : vector<2x32xf32>, vector<2x32xf32> -> vector<2x64xf32>
    %cst_18 = arith.constant dense<0.000000e+00> : vector<2x256xf32>
    %87 = tpu.matmul %86, %3, %cst_18 {dimension_numbers = #tpu.dot_dimension_numbers<[1], [0], [0], [1], [0, 0, 1, 1], [], []>} : vector<2x64xf32>, vector<64x256xf32>, vector<2x256xf32> -> vector<2x256xf32>
    %88 = vector.extract_strided_slice %8 {offsets = [0, 2, 0], sizes = [2, 1, 128], strides = [1, 1, 1]} : vector<2x8x256xf32> to vector<2x1x128xf32>
    %89 = vector.shape_cast %88 : vector<2x1x128xf32> to vector<2x128xf32>
    %90 = vector.extract_strided_slice %87 {offsets = [0, 0], sizes = [2, 128], strides = [1, 1]} : vector<2x256xf32> to vector<2x128xf32>
    %91 = arith.addf %89, %90 : vector<2x128xf32>
    %92 = vector.extract_strided_slice %8 {offsets = [0, 5, 128], sizes = [2, 1, 128], strides = [1, 1, 1]} : vector<2x8x256xf32> to vector<2x1x128xf32>
    %93 = vector.shape_cast %92 : vector<2x1x128xf32> to vector<2x128xf32>
    %94 = vector.extract_strided_slice %87 {offsets = [0, 128], sizes = [2, 128], strides = [1, 1]} : vector<2x256xf32> to vector<2x128xf32>
    %95 = arith.addf %93, %94 : vector<2x128xf32>
    %96 = tpu.concatenate %91, %95 in 0 : vector<2x128xf32>, vector<2x128xf32> -> vector<4x128xf32>
    %97 = vector.extract_strided_slice %96 {offsets = [0, 0], sizes = [4, 32], strides = [1, 1]} : vector<4x128xf32> to vector<4x32xf32>
    %98 = arith.negf %97 : vector<4x32xf32>
    %99 = math.exp %98 : vector<4x32xf32>
    %cst_19 = arith.constant 1.000000e+00 : f32
    %100 = vector.broadcast %cst_19 : f32 to vector<4x32xf32>
    %101 = arith.addf %100, %99 : vector<4x32xf32>
    %102 = arith.divf %100, %101 : vector<4x32xf32>
    %103 = vector.extract_strided_slice %96 {offsets = [0, 32], sizes = [4, 32], strides = [1, 1]} : vector<4x128xf32> to vector<4x32xf32>
    %104 = arith.negf %103 : vector<4x32xf32>
    %105 = math.exp %104 : vector<4x32xf32>
    %cst_20 = arith.constant 1.000000e+00 : f32
    %106 = vector.broadcast %cst_20 : f32 to vector<4x32xf32>
    %107 = arith.addf %106, %105 : vector<4x32xf32>
    %108 = arith.divf %106, %107 : vector<4x32xf32>
    %109 = vector.extract_strided_slice %96 {offsets = [0, 64], sizes = [4, 32], strides = [1, 1]} : vector<4x128xf32> to vector<4x32xf32>
    %110 = math.tanh %109 : vector<4x32xf32>
    %111 = vector.extract_strided_slice %96 {offsets = [0, 96], sizes = [4, 32], strides = [1, 1]} : vector<4x128xf32> to vector<4x32xf32>
    %112 = arith.negf %111 : vector<4x32xf32>
    %113 = math.exp %112 : vector<4x32xf32>
    %cst_21 = arith.constant 1.000000e+00 : f32
    %114 = vector.broadcast %cst_21 : f32 to vector<4x32xf32>
    %115 = arith.addf %114, %113 : vector<4x32xf32>
    %116 = arith.divf %114, %115 : vector<4x32xf32>
    %117 = arith.mulf %108, %81 : vector<4x32xf32>
    %118 = arith.mulf %102, %110 : vector<4x32xf32>
    %119 = arith.addf %117, %118 : vector<4x32xf32>
    %120 = math.tanh %119 : vector<4x32xf32>
    %121 = arith.mulf %116, %120 : vector<4x32xf32>
    %122 = vector.extract_strided_slice %121 {offsets = [0, 0], sizes = [2, 32], strides = [1, 1]} : vector<4x32xf32> to vector<2x32xf32>
    %123 = vector.extract_strided_slice %121 {offsets = [2, 0], sizes = [2, 32], strides = [1, 1]} : vector<4x32xf32> to vector<2x32xf32>
    %124 = tpu.concatenate %122, %123 in 1 : vector<2x32xf32>, vector<2x32xf32> -> vector<2x64xf32>
    %cst_22 = arith.constant dense<0.000000e+00> : vector<2x256xf32>
    %125 = tpu.matmul %124, %3, %cst_22 {dimension_numbers = #tpu.dot_dimension_numbers<[1], [0], [0], [1], [0, 0, 1, 1], [], []>} : vector<2x64xf32>, vector<64x256xf32>, vector<2x256xf32> -> vector<2x256xf32>
    %126 = vector.extract_strided_slice %8 {offsets = [0, 3, 0], sizes = [2, 1, 128], strides = [1, 1, 1]} : vector<2x8x256xf32> to vector<2x1x128xf32>
    %127 = vector.shape_cast %126 : vector<2x1x128xf32> to vector<2x128xf32>
    %128 = vector.extract_strided_slice %125 {offsets = [0, 0], sizes = [2, 128], strides = [1, 1]} : vector<2x256xf32> to vector<2x128xf32>
    %129 = arith.addf %127, %128 : vector<2x128xf32>
    %130 = vector.extract_strided_slice %8 {offsets = [0, 4, 128], sizes = [2, 1, 128], strides = [1, 1, 1]} : vector<2x8x256xf32> to vector<2x1x128xf32>
    %131 = vector.shape_cast %130 : vector<2x1x128xf32> to vector<2x128xf32>
    %132 = vector.extract_strided_slice %125 {offsets = [0, 128], sizes = [2, 128], strides = [1, 1]} : vector<2x256xf32> to vector<2x128xf32>
    %133 = arith.addf %131, %132 : vector<2x128xf32>
    %134 = tpu.concatenate %129, %133 in 0 : vector<2x128xf32>, vector<2x128xf32> -> vector<4x128xf32>
    %135 = vector.extract_strided_slice %134 {offsets = [0, 0], sizes = [4, 32], strides = [1, 1]} : vector<4x128xf32> to vector<4x32xf32>
    %136 = arith.negf %135 : vector<4x32xf32>
    %137 = math.exp %136 : vector<4x32xf32>
    %cst_23 = arith.constant 1.000000e+00 : f32
    %138 = vector.broadcast %cst_23 : f32 to vector<4x32xf32>
    %139 = arith.addf %138, %137 : vector<4x32xf32>
    %140 = arith.divf %138, %139 : vector<4x32xf32>
    %141 = vector.extract_strided_slice %134 {offsets = [0, 32], sizes = [4, 32], strides = [1, 1]} : vector<4x128xf32> to vector<4x32xf32>
    %142 = arith.negf %141 : vector<4x32xf32>
    %143 = math.exp %142 : vector<4x32xf32>
    %cst_24 = arith.constant 1.000000e+00 : f32
    %144 = vector.broadcast %cst_24 : f32 to vector<4x32xf32>
    %145 = arith.addf %144, %143 : vector<4x32xf32>
    %146 = arith.divf %144, %145 : vector<4x32xf32>
    %147 = vector.extract_strided_slice %134 {offsets = [0, 64], sizes = [4, 32], strides = [1, 1]} : vector<4x128xf32> to vector<4x32xf32>
    %148 = math.tanh %147 : vector<4x32xf32>
    %149 = vector.extract_strided_slice %134 {offsets = [0, 96], sizes = [4, 32], strides = [1, 1]} : vector<4x128xf32> to vector<4x32xf32>
    %150 = arith.negf %149 : vector<4x32xf32>
    %151 = math.exp %150 : vector<4x32xf32>
    %cst_25 = arith.constant 1.000000e+00 : f32
    %152 = vector.broadcast %cst_25 : f32 to vector<4x32xf32>
    %153 = arith.addf %152, %151 : vector<4x32xf32>
    %154 = arith.divf %152, %153 : vector<4x32xf32>
    %155 = arith.mulf %146, %119 : vector<4x32xf32>
    %156 = arith.mulf %140, %148 : vector<4x32xf32>
    %157 = arith.addf %155, %156 : vector<4x32xf32>
    %158 = math.tanh %157 : vector<4x32xf32>
    %159 = arith.mulf %154, %158 : vector<4x32xf32>
    %160 = vector.extract_strided_slice %159 {offsets = [0, 0], sizes = [2, 32], strides = [1, 1]} : vector<4x32xf32> to vector<2x32xf32>
    %161 = vector.extract_strided_slice %159 {offsets = [2, 0], sizes = [2, 32], strides = [1, 1]} : vector<4x32xf32> to vector<2x32xf32>
    %162 = tpu.concatenate %160, %161 in 1 : vector<2x32xf32>, vector<2x32xf32> -> vector<2x64xf32>
    %cst_26 = arith.constant dense<0.000000e+00> : vector<2x256xf32>
    %163 = tpu.matmul %162, %3, %cst_26 {dimension_numbers = #tpu.dot_dimension_numbers<[1], [0], [0], [1], [0, 0, 1, 1], [], []>} : vector<2x64xf32>, vector<64x256xf32>, vector<2x256xf32> -> vector<2x256xf32>
    %164 = vector.extract_strided_slice %8 {offsets = [0, 4, 0], sizes = [2, 1, 128], strides = [1, 1, 1]} : vector<2x8x256xf32> to vector<2x1x128xf32>
    %165 = vector.shape_cast %164 : vector<2x1x128xf32> to vector<2x128xf32>
    %166 = vector.extract_strided_slice %163 {offsets = [0, 0], sizes = [2, 128], strides = [1, 1]} : vector<2x256xf32> to vector<2x128xf32>
    %167 = arith.addf %165, %166 : vector<2x128xf32>
    %168 = vector.extract_strided_slice %8 {offsets = [0, 3, 128], sizes = [2, 1, 128], strides = [1, 1, 1]} : vector<2x8x256xf32> to vector<2x1x128xf32>
    %169 = vector.shape_cast %168 : vector<2x1x128xf32> to vector<2x128xf32>
    %170 = vector.extract_strided_slice %163 {offsets = [0, 128], sizes = [2, 128], strides = [1, 1]} : vector<2x256xf32> to vector<2x128xf32>
    %171 = arith.addf %169, %170 : vector<2x128xf32>
    %172 = tpu.concatenate %167, %171 in 0 : vector<2x128xf32>, vector<2x128xf32> -> vector<4x128xf32>
    %173 = vector.extract_strided_slice %172 {offsets = [0, 0], sizes = [4, 32], strides = [1, 1]} : vector<4x128xf32> to vector<4x32xf32>
    %174 = arith.negf %173 : vector<4x32xf32>
    %175 = math.exp %174 : vector<4x32xf32>
    %cst_27 = arith.constant 1.000000e+00 : f32
    %176 = vector.broadcast %cst_27 : f32 to vector<4x32xf32>
    %177 = arith.addf %176, %175 : vector<4x32xf32>
    %178 = arith.divf %176, %177 : vector<4x32xf32>
    %179 = vector.extract_strided_slice %172 {offsets = [0, 32], sizes = [4, 32], strides = [1, 1]} : vector<4x128xf32> to vector<4x32xf32>
    %180 = arith.negf %179 : vector<4x32xf32>
    %181 = math.exp %180 : vector<4x32xf32>
    %cst_28 = arith.constant 1.000000e+00 : f32
    %182 = vector.broadcast %cst_28 : f32 to vector<4x32xf32>
    %183 = arith.addf %182, %181 : vector<4x32xf32>
    %184 = arith.divf %182, %183 : vector<4x32xf32>
    %185 = vector.extract_strided_slice %172 {offsets = [0, 64], sizes = [4, 32], strides = [1, 1]} : vector<4x128xf32> to vector<4x32xf32>
    %186 = math.tanh %185 : vector<4x32xf32>
    %187 = vector.extract_strided_slice %172 {offsets = [0, 96], sizes = [4, 32], strides = [1, 1]} : vector<4x128xf32> to vector<4x32xf32>
    %188 = arith.negf %187 : vector<4x32xf32>
    %189 = math.exp %188 : vector<4x32xf32>
    %cst_29 = arith.constant 1.000000e+00 : f32
    %190 = vector.broadcast %cst_29 : f32 to vector<4x32xf32>
    %191 = arith.addf %190, %189 : vector<4x32xf32>
    %192 = arith.divf %190, %191 : vector<4x32xf32>
    %193 = arith.mulf %184, %157 : vector<4x32xf32>
    %194 = arith.mulf %178, %186 : vector<4x32xf32>
    %195 = arith.addf %193, %194 : vector<4x32xf32>
    %196 = math.tanh %195 : vector<4x32xf32>
    %197 = arith.mulf %192, %196 : vector<4x32xf32>
    %198 = vector.extract_strided_slice %197 {offsets = [0, 0], sizes = [2, 32], strides = [1, 1]} : vector<4x32xf32> to vector<2x32xf32>
    %199 = vector.extract_strided_slice %197 {offsets = [2, 0], sizes = [2, 32], strides = [1, 1]} : vector<4x32xf32> to vector<2x32xf32>
    %200 = tpu.concatenate %198, %199 in 1 : vector<2x32xf32>, vector<2x32xf32> -> vector<2x64xf32>
    %cst_30 = arith.constant dense<0.000000e+00> : vector<2x256xf32>
    %201 = tpu.matmul %200, %3, %cst_30 {dimension_numbers = #tpu.dot_dimension_numbers<[1], [0], [0], [1], [0, 0, 1, 1], [], []>} : vector<2x64xf32>, vector<64x256xf32>, vector<2x256xf32> -> vector<2x256xf32>
    %202 = vector.extract_strided_slice %8 {offsets = [0, 5, 0], sizes = [2, 1, 128], strides = [1, 1, 1]} : vector<2x8x256xf32> to vector<2x1x128xf32>
    %203 = vector.shape_cast %202 : vector<2x1x128xf32> to vector<2x128xf32>
    %204 = vector.extract_strided_slice %201 {offsets = [0, 0], sizes = [2, 128], strides = [1, 1]} : vector<2x256xf32> to vector<2x128xf32>
    %205 = arith.addf %203, %204 : vector<2x128xf32>
    %206 = vector.extract_strided_slice %8 {offsets = [0, 2, 128], sizes = [2, 1, 128], strides = [1, 1, 1]} : vector<2x8x256xf32> to vector<2x1x128xf32>
    %207 = vector.shape_cast %206 : vector<2x1x128xf32> to vector<2x128xf32>
    %208 = vector.extract_strided_slice %201 {offsets = [0, 128], sizes = [2, 128], strides = [1, 1]} : vector<2x256xf32> to vector<2x128xf32>
    %209 = arith.addf %207, %208 : vector<2x128xf32>
    %210 = tpu.concatenate %205, %209 in 0 : vector<2x128xf32>, vector<2x128xf32> -> vector<4x128xf32>
    %211 = vector.extract_strided_slice %210 {offsets = [0, 0], sizes = [4, 32], strides = [1, 1]} : vector<4x128xf32> to vector<4x32xf32>
    %212 = arith.negf %211 : vector<4x32xf32>
    %213 = math.exp %212 : vector<4x32xf32>
    %cst_31 = arith.constant 1.000000e+00 : f32
    %214 = vector.broadcast %cst_31 : f32 to vector<4x32xf32>
    %215 = arith.addf %214, %213 : vector<4x32xf32>
    %216 = arith.divf %214, %215 : vector<4x32xf32>
    %217 = vector.extract_strided_slice %210 {offsets = [0, 32], sizes = [4, 32], strides = [1, 1]} : vector<4x128xf32> to vector<4x32xf32>
    %218 = arith.negf %217 : vector<4x32xf32>
    %219 = math.exp %218 : vector<4x32xf32>
    %cst_32 = arith.constant 1.000000e+00 : f32
    %220 = vector.broadcast %cst_32 : f32 to vector<4x32xf32>
    %221 = arith.addf %220, %219 : vector<4x32xf32>
    %222 = arith.divf %220, %221 : vector<4x32xf32>
    %223 = vector.extract_strided_slice %210 {offsets = [0, 64], sizes = [4, 32], strides = [1, 1]} : vector<4x128xf32> to vector<4x32xf32>
    %224 = math.tanh %223 : vector<4x32xf32>
    %225 = vector.extract_strided_slice %210 {offsets = [0, 96], sizes = [4, 32], strides = [1, 1]} : vector<4x128xf32> to vector<4x32xf32>
    %226 = arith.negf %225 : vector<4x32xf32>
    %227 = math.exp %226 : vector<4x32xf32>
    %cst_33 = arith.constant 1.000000e+00 : f32
    %228 = vector.broadcast %cst_33 : f32 to vector<4x32xf32>
    %229 = arith.addf %228, %227 : vector<4x32xf32>
    %230 = arith.divf %228, %229 : vector<4x32xf32>
    %231 = arith.mulf %222, %195 : vector<4x32xf32>
    %232 = arith.mulf %216, %224 : vector<4x32xf32>
    %233 = arith.addf %231, %232 : vector<4x32xf32>
    %234 = math.tanh %233 : vector<4x32xf32>
    %235 = arith.mulf %230, %234 : vector<4x32xf32>
    %236 = vector.extract_strided_slice %235 {offsets = [0, 0], sizes = [2, 32], strides = [1, 1]} : vector<4x32xf32> to vector<2x32xf32>
    %237 = vector.extract_strided_slice %235 {offsets = [2, 0], sizes = [2, 32], strides = [1, 1]} : vector<4x32xf32> to vector<2x32xf32>
    %238 = tpu.concatenate %236, %237 in 1 : vector<2x32xf32>, vector<2x32xf32> -> vector<2x64xf32>
    %cst_34 = arith.constant dense<0.000000e+00> : vector<2x256xf32>
    %239 = tpu.matmul %238, %3, %cst_34 {dimension_numbers = #tpu.dot_dimension_numbers<[1], [0], [0], [1], [0, 0, 1, 1], [], []>} : vector<2x64xf32>, vector<64x256xf32>, vector<2x256xf32> -> vector<2x256xf32>
    %240 = vector.extract_strided_slice %8 {offsets = [0, 6, 0], sizes = [2, 1, 128], strides = [1, 1, 1]} : vector<2x8x256xf32> to vector<2x1x128xf32>
    %241 = vector.shape_cast %240 : vector<2x1x128xf32> to vector<2x128xf32>
    %242 = vector.extract_strided_slice %239 {offsets = [0, 0], sizes = [2, 128], strides = [1, 1]} : vector<2x256xf32> to vector<2x128xf32>
    %243 = arith.addf %241, %242 : vector<2x128xf32>
    %244 = vector.extract_strided_slice %8 {offsets = [0, 1, 128], sizes = [2, 1, 128], strides = [1, 1, 1]} : vector<2x8x256xf32> to vector<2x1x128xf32>
    %245 = vector.shape_cast %244 : vector<2x1x128xf32> to vector<2x128xf32>
    %246 = vector.extract_strided_slice %239 {offsets = [0, 128], sizes = [2, 128], strides = [1, 1]} : vector<2x256xf32> to vector<2x128xf32>
    %247 = arith.addf %245, %246 : vector<2x128xf32>
    %248 = tpu.concatenate %243, %247 in 0 : vector<2x128xf32>, vector<2x128xf32> -> vector<4x128xf32>
    %249 = vector.extract_strided_slice %248 {offsets = [0, 0], sizes = [4, 32], strides = [1, 1]} : vector<4x128xf32> to vector<4x32xf32>
    %250 = arith.negf %249 : vector<4x32xf32>
    %251 = math.exp %250 : vector<4x32xf32>
    %cst_35 = arith.constant 1.000000e+00 : f32
    %252 = vector.broadcast %cst_35 : f32 to vector<4x32xf32>
    %253 = arith.addf %252, %251 : vector<4x32xf32>
    %254 = arith.divf %252, %253 : vector<4x32xf32>
    %255 = vector.extract_strided_slice %248 {offsets = [0, 32], sizes = [4, 32], strides = [1, 1]} : vector<4x128xf32> to vector<4x32xf32>
    %256 = arith.negf %255 : vector<4x32xf32>
    %257 = math.exp %256 : vector<4x32xf32>
    %cst_36 = arith.constant 1.000000e+00 : f32
    %258 = vector.broadcast %cst_36 : f32 to vector<4x32xf32>
    %259 = arith.addf %258, %257 : vector<4x32xf32>
    %260 = arith.divf %258, %259 : vector<4x32xf32>
    %261 = vector.extract_strided_slice %248 {offsets = [0, 64], sizes = [4, 32], strides = [1, 1]} : vector<4x128xf32> to vector<4x32xf32>
    %262 = math.tanh %261 : vector<4x32xf32>
    %263 = vector.extract_strided_slice %248 {offsets = [0, 96], sizes = [4, 32], strides = [1, 1]} : vector<4x128xf32> to vector<4x32xf32>
    %264 = arith.negf %263 : vector<4x32xf32>
    %265 = math.exp %264 : vector<4x32xf32>
    %cst_37 = arith.constant 1.000000e+00 : f32
    %266 = vector.broadcast %cst_37 : f32 to vector<4x32xf32>
    %267 = arith.addf %266, %265 : vector<4x32xf32>
    %268 = arith.divf %266, %267 : vector<4x32xf32>
    %269 = arith.mulf %260, %233 : vector<4x32xf32>
    %270 = arith.mulf %254, %262 : vector<4x32xf32>
    %271 = arith.addf %269, %270 : vector<4x32xf32>
    %272 = math.tanh %271 : vector<4x32xf32>
    %273 = arith.mulf %268, %272 : vector<4x32xf32>
    %274 = vector.extract_strided_slice %273 {offsets = [0, 0], sizes = [2, 32], strides = [1, 1]} : vector<4x32xf32> to vector<2x32xf32>
    %275 = vector.extract_strided_slice %273 {offsets = [2, 0], sizes = [2, 32], strides = [1, 1]} : vector<4x32xf32> to vector<2x32xf32>
    %276 = tpu.concatenate %274, %275 in 1 : vector<2x32xf32>, vector<2x32xf32> -> vector<2x64xf32>
    %cst_38 = arith.constant dense<0.000000e+00> : vector<2x256xf32>
    %277 = tpu.matmul %276, %3, %cst_38 {dimension_numbers = #tpu.dot_dimension_numbers<[1], [0], [0], [1], [0, 0, 1, 1], [], []>} : vector<2x64xf32>, vector<64x256xf32>, vector<2x256xf32> -> vector<2x256xf32>
    %278 = vector.extract_strided_slice %8 {offsets = [0, 7, 0], sizes = [2, 1, 128], strides = [1, 1, 1]} : vector<2x8x256xf32> to vector<2x1x128xf32>
    %279 = vector.shape_cast %278 : vector<2x1x128xf32> to vector<2x128xf32>
    %280 = vector.extract_strided_slice %277 {offsets = [0, 0], sizes = [2, 128], strides = [1, 1]} : vector<2x256xf32> to vector<2x128xf32>
    %281 = arith.addf %279, %280 : vector<2x128xf32>
    %282 = vector.extract_strided_slice %8 {offsets = [0, 0, 128], sizes = [2, 1, 128], strides = [1, 1, 1]} : vector<2x8x256xf32> to vector<2x1x128xf32>
    %283 = vector.shape_cast %282 : vector<2x1x128xf32> to vector<2x128xf32>
    %284 = vector.extract_strided_slice %277 {offsets = [0, 128], sizes = [2, 128], strides = [1, 1]} : vector<2x256xf32> to vector<2x128xf32>
    %285 = arith.addf %283, %284 : vector<2x128xf32>
    %286 = tpu.concatenate %281, %285 in 0 : vector<2x128xf32>, vector<2x128xf32> -> vector<4x128xf32>
    %287 = vector.extract_strided_slice %286 {offsets = [0, 0], sizes = [4, 32], strides = [1, 1]} : vector<4x128xf32> to vector<4x32xf32>
    %288 = arith.negf %287 : vector<4x32xf32>
    %289 = math.exp %288 : vector<4x32xf32>
    %cst_39 = arith.constant 1.000000e+00 : f32
    %290 = vector.broadcast %cst_39 : f32 to vector<4x32xf32>
    %291 = arith.addf %290, %289 : vector<4x32xf32>
    %292 = arith.divf %290, %291 : vector<4x32xf32>
    %293 = vector.extract_strided_slice %286 {offsets = [0, 32], sizes = [4, 32], strides = [1, 1]} : vector<4x128xf32> to vector<4x32xf32>
    %294 = arith.negf %293 : vector<4x32xf32>
    %295 = math.exp %294 : vector<4x32xf32>
    %cst_40 = arith.constant 1.000000e+00 : f32
    %296 = vector.broadcast %cst_40 : f32 to vector<4x32xf32>
    %297 = arith.addf %296, %295 : vector<4x32xf32>
    %298 = arith.divf %296, %297 : vector<4x32xf32>
    %299 = vector.extract_strided_slice %286 {offsets = [0, 64], sizes = [4, 32], strides = [1, 1]} : vector<4x128xf32> to vector<4x32xf32>
    %300 = math.tanh %299 : vector<4x32xf32>
    %301 = vector.extract_strided_slice %286 {offsets = [0, 96], sizes = [4, 32], strides = [1, 1]} : vector<4x128xf32> to vector<4x32xf32>
    %302 = arith.negf %301 : vector<4x32xf32>
    %303 = math.exp %302 : vector<4x32xf32>
    %cst_41 = arith.constant 1.000000e+00 : f32
    %304 = vector.broadcast %cst_41 : f32 to vector<4x32xf32>
    %305 = arith.addf %304, %303 : vector<4x32xf32>
    %306 = arith.divf %304, %305 : vector<4x32xf32>
    %307 = arith.mulf %298, %271 : vector<4x32xf32>
    %308 = arith.mulf %292, %300 : vector<4x32xf32>
    %309 = arith.addf %307, %308 : vector<4x32xf32>
    %310 = math.tanh %309 : vector<4x32xf32>
    %311 = arith.mulf %306, %310 : vector<4x32xf32>
    %312 = vector.extract_strided_slice %311 {offsets = [0, 0], sizes = [2, 32], strides = [1, 1]} : vector<4x32xf32> to vector<2x32xf32>
    %313 = vector.extract_strided_slice %311 {offsets = [2, 0], sizes = [2, 32], strides = [1, 1]} : vector<4x32xf32> to vector<2x32xf32>
    %314 = tpu.concatenate %46, %313 in 1 : vector<2x32xf32>, vector<2x32xf32> -> vector<2x64xf32>
    %315 = tpu.concatenate %84, %275 in 1 : vector<2x32xf32>, vector<2x32xf32> -> vector<2x64xf32>
    %316 = tpu.concatenate %122, %237 in 1 : vector<2x32xf32>, vector<2x32xf32> -> vector<2x64xf32>
    %317 = tpu.concatenate %160, %199 in 1 : vector<2x32xf32>, vector<2x32xf32> -> vector<2x64xf32>
    %318 = tpu.concatenate %198, %161 in 1 : vector<2x32xf32>, vector<2x32xf32> -> vector<2x64xf32>
    %319 = tpu.concatenate %236, %123 in 1 : vector<2x32xf32>, vector<2x32xf32> -> vector<2x64xf32>
    %320 = tpu.concatenate %274, %85 in 1 : vector<2x32xf32>, vector<2x32xf32> -> vector<2x64xf32>
    %321 = tpu.concatenate %312, %47 in 1 : vector<2x32xf32>, vector<2x32xf32> -> vector<2x64xf32>
    %322 = vector.shape_cast %314 : vector<2x64xf32> to vector<2x1x64xf32>
    %323 = vector.shape_cast %315 : vector<2x64xf32> to vector<2x1x64xf32>
    %324 = vector.shape_cast %316 : vector<2x64xf32> to vector<2x1x64xf32>
    %325 = vector.shape_cast %317 : vector<2x64xf32> to vector<2x1x64xf32>
    %326 = vector.shape_cast %318 : vector<2x64xf32> to vector<2x1x64xf32>
    %327 = vector.shape_cast %319 : vector<2x64xf32> to vector<2x1x64xf32>
    %328 = vector.shape_cast %320 : vector<2x64xf32> to vector<2x1x64xf32>
    %329 = vector.shape_cast %321 : vector<2x64xf32> to vector<2x1x64xf32>
    %330 = tpu.concatenate %322, %323, %324, %325, %326, %327, %328, %329 in 1 : vector<2x1x64xf32>, vector<2x1x64xf32>, vector<2x1x64xf32>, vector<2x1x64xf32>, vector<2x1x64xf32>, vector<2x1x64xf32>, vector<2x1x64xf32>, vector<2x1x64xf32> -> vector<2x8x64xf32>
    %c0_42 = arith.constant 0 : index
    %c0_43 = arith.constant 0 : index
    %331 = vector.load %arg6[%c0_42, %c0_43] : memref<64x256xf32, #tpu.memory_space<vmem>>, vector<64x256xf32>
    %c0_44 = arith.constant 0 : index
    %c0_45 = arith.constant 0 : index
    %332 = vector.load %arg7[%c0_44, %c0_45] : memref<1x256xf32, #tpu.memory_space<vmem>>, vector<1x256xf32>
    %c0_46 = arith.constant 0 : index
    %c0_47 = arith.constant 0 : index
    %333 = vector.load %arg8[%c0_46, %c0_47] : memref<64x256xf32, #tpu.memory_space<vmem>>, vector<64x256xf32>
    %334 = vector.shape_cast %330 : vector<2x8x64xf32> to vector<16x64xf32>
    %cst_48 = arith.constant dense<0.000000e+00> : vector<16x256xf32>
    %335 = tpu.matmul %334, %331, %cst_48 {dimension_numbers = #tpu.dot_dimension_numbers<[1], [0], [0], [1], [0, 0, 1, 1], [], []>} : vector<16x64xf32>, vector<64x256xf32>, vector<16x256xf32> -> vector<16x256xf32>
    %336 = vector.broadcast %332 : vector<1x256xf32> to vector<16x256xf32>
    %337 = arith.addf %335, %336 : vector<16x256xf32>
    %338 = vector.shape_cast %337 : vector<16x256xf32> to vector<2x8x256xf32>
    %cst_49 = arith.constant 0.000000e+00 : f32
    %339 = vector.broadcast %cst_49 : f32 to vector<2x64xf32>
    %cst_50 = arith.constant 0.000000e+00 : f32
    %340 = vector.broadcast %cst_50 : f32 to vector<4x32xf32>
    %cst_51 = arith.constant dense<0.000000e+00> : vector<2x256xf32>
    %341 = tpu.matmul %339, %333, %cst_51 {dimension_numbers = #tpu.dot_dimension_numbers<[1], [0], [0], [1], [0, 0, 1, 1], [], []>} : vector<2x64xf32>, vector<64x256xf32>, vector<2x256xf32> -> vector<2x256xf32>
    %342 = vector.extract_strided_slice %338 {offsets = [0, 0, 0], sizes = [2, 1, 128], strides = [1, 1, 1]} : vector<2x8x256xf32> to vector<2x1x128xf32>
    %343 = vector.shape_cast %342 : vector<2x1x128xf32> to vector<2x128xf32>
    %344 = vector.extract_strided_slice %341 {offsets = [0, 0], sizes = [2, 128], strides = [1, 1]} : vector<2x256xf32> to vector<2x128xf32>
    %345 = arith.addf %343, %344 : vector<2x128xf32>
    %346 = vector.extract_strided_slice %338 {offsets = [0, 7, 128], sizes = [2, 1, 128], strides = [1, 1, 1]} : vector<2x8x256xf32> to vector<2x1x128xf32>
    %347 = vector.shape_cast %346 : vector<2x1x128xf32> to vector<2x128xf32>
    %348 = vector.extract_strided_slice %341 {offsets = [0, 128], sizes = [2, 128], strides = [1, 1]} : vector<2x256xf32> to vector<2x128xf32>
    %349 = arith.addf %347, %348 : vector<2x128xf32>
    %350 = tpu.concatenate %345, %349 in 0 : vector<2x128xf32>, vector<2x128xf32> -> vector<4x128xf32>
    %351 = vector.extract_strided_slice %350 {offsets = [0, 0], sizes = [4, 32], strides = [1, 1]} : vector<4x128xf32> to vector<4x32xf32>
    %352 = arith.negf %351 : vector<4x32xf32>
    %353 = math.exp %352 : vector<4x32xf32>
    %cst_52 = arith.constant 1.000000e+00 : f32
    %354 = vector.broadcast %cst_52 : f32 to vector<4x32xf32>
    %355 = arith.addf %354, %353 : vector<4x32xf32>
    %356 = arith.divf %354, %355 : vector<4x32xf32>
    %357 = vector.extract_strided_slice %350 {offsets = [0, 32], sizes = [4, 32], strides = [1, 1]} : vector<4x128xf32> to vector<4x32xf32>
    %358 = arith.negf %357 : vector<4x32xf32>
    %359 = math.exp %358 : vector<4x32xf32>
    %cst_53 = arith.constant 1.000000e+00 : f32
    %360 = vector.broadcast %cst_53 : f32 to vector<4x32xf32>
    %361 = arith.addf %360, %359 : vector<4x32xf32>
    %362 = arith.divf %360, %361 : vector<4x32xf32>
    %363 = vector.extract_strided_slice %350 {offsets = [0, 64], sizes = [4, 32], strides = [1, 1]} : vector<4x128xf32> to vector<4x32xf32>
    %364 = math.tanh %363 : vector<4x32xf32>
    %365 = vector.extract_strided_slice %350 {offsets = [0, 96], sizes = [4, 32], strides = [1, 1]} : vector<4x128xf32> to vector<4x32xf32>
    %366 = arith.negf %365 : vector<4x32xf32>
    %367 = math.exp %366 : vector<4x32xf32>
    %cst_54 = arith.constant 1.000000e+00 : f32
    %368 = vector.broadcast %cst_54 : f32 to vector<4x32xf32>
    %369 = arith.addf %368, %367 : vector<4x32xf32>
    %370 = arith.divf %368, %369 : vector<4x32xf32>
    %371 = arith.mulf %362, %340 : vector<4x32xf32>
    %372 = arith.mulf %356, %364 : vector<4x32xf32>
    %373 = arith.addf %371, %372 : vector<4x32xf32>
    %374 = math.tanh %373 : vector<4x32xf32>
    %375 = arith.mulf %370, %374 : vector<4x32xf32>
    %376 = vector.extract_strided_slice %375 {offsets = [0, 0], sizes = [2, 32], strides = [1, 1]} : vector<4x32xf32> to vector<2x32xf32>
    %377 = vector.extract_strided_slice %375 {offsets = [2, 0], sizes = [2, 32], strides = [1, 1]} : vector<4x32xf32> to vector<2x32xf32>
    %378 = tpu.concatenate %376, %377 in 1 : vector<2x32xf32>, vector<2x32xf32> -> vector<2x64xf32>
    %cst_55 = arith.constant dense<0.000000e+00> : vector<2x256xf32>
    %379 = tpu.matmul %378, %333, %cst_55 {dimension_numbers = #tpu.dot_dimension_numbers<[1], [0], [0], [1], [0, 0, 1, 1], [], []>} : vector<2x64xf32>, vector<64x256xf32>, vector<2x256xf32> -> vector<2x256xf32>
    %380 = vector.extract_strided_slice %338 {offsets = [0, 1, 0], sizes = [2, 1, 128], strides = [1, 1, 1]} : vector<2x8x256xf32> to vector<2x1x128xf32>
    %381 = vector.shape_cast %380 : vector<2x1x128xf32> to vector<2x128xf32>
    %382 = vector.extract_strided_slice %379 {offsets = [0, 0], sizes = [2, 128], strides = [1, 1]} : vector<2x256xf32> to vector<2x128xf32>
    %383 = arith.addf %381, %382 : vector<2x128xf32>
    %384 = vector.extract_strided_slice %338 {offsets = [0, 6, 128], sizes = [2, 1, 128], strides = [1, 1, 1]} : vector<2x8x256xf32> to vector<2x1x128xf32>
    %385 = vector.shape_cast %384 : vector<2x1x128xf32> to vector<2x128xf32>
    %386 = vector.extract_strided_slice %379 {offsets = [0, 128], sizes = [2, 128], strides = [1, 1]} : vector<2x256xf32> to vector<2x128xf32>
    %387 = arith.addf %385, %386 : vector<2x128xf32>
    %388 = tpu.concatenate %383, %387 in 0 : vector<2x128xf32>, vector<2x128xf32> -> vector<4x128xf32>
    %389 = vector.extract_strided_slice %388 {offsets = [0, 0], sizes = [4, 32], strides = [1, 1]} : vector<4x128xf32> to vector<4x32xf32>
    %390 = arith.negf %389 : vector<4x32xf32>
    %391 = math.exp %390 : vector<4x32xf32>
    %cst_56 = arith.constant 1.000000e+00 : f32
    %392 = vector.broadcast %cst_56 : f32 to vector<4x32xf32>
    %393 = arith.addf %392, %391 : vector<4x32xf32>
    %394 = arith.divf %392, %393 : vector<4x32xf32>
    %395 = vector.extract_strided_slice %388 {offsets = [0, 32], sizes = [4, 32], strides = [1, 1]} : vector<4x128xf32> to vector<4x32xf32>
    %396 = arith.negf %395 : vector<4x32xf32>
    %397 = math.exp %396 : vector<4x32xf32>
    %cst_57 = arith.constant 1.000000e+00 : f32
    %398 = vector.broadcast %cst_57 : f32 to vector<4x32xf32>
    %399 = arith.addf %398, %397 : vector<4x32xf32>
    %400 = arith.divf %398, %399 : vector<4x32xf32>
    %401 = vector.extract_strided_slice %388 {offsets = [0, 64], sizes = [4, 32], strides = [1, 1]} : vector<4x128xf32> to vector<4x32xf32>
    %402 = math.tanh %401 : vector<4x32xf32>
    %403 = vector.extract_strided_slice %388 {offsets = [0, 96], sizes = [4, 32], strides = [1, 1]} : vector<4x128xf32> to vector<4x32xf32>
    %404 = arith.negf %403 : vector<4x32xf32>
    %405 = math.exp %404 : vector<4x32xf32>
    %cst_58 = arith.constant 1.000000e+00 : f32
    %406 = vector.broadcast %cst_58 : f32 to vector<4x32xf32>
    %407 = arith.addf %406, %405 : vector<4x32xf32>
    %408 = arith.divf %406, %407 : vector<4x32xf32>
    %409 = arith.mulf %400, %373 : vector<4x32xf32>
    %410 = arith.mulf %394, %402 : vector<4x32xf32>
    %411 = arith.addf %409, %410 : vector<4x32xf32>
    %412 = math.tanh %411 : vector<4x32xf32>
    %413 = arith.mulf %408, %412 : vector<4x32xf32>
    %414 = vector.extract_strided_slice %413 {offsets = [0, 0], sizes = [2, 32], strides = [1, 1]} : vector<4x32xf32> to vector<2x32xf32>
    %415 = vector.extract_strided_slice %413 {offsets = [2, 0], sizes = [2, 32], strides = [1, 1]} : vector<4x32xf32> to vector<2x32xf32>
    %416 = tpu.concatenate %414, %415 in 1 : vector<2x32xf32>, vector<2x32xf32> -> vector<2x64xf32>
    %cst_59 = arith.constant dense<0.000000e+00> : vector<2x256xf32>
    %417 = tpu.matmul %416, %333, %cst_59 {dimension_numbers = #tpu.dot_dimension_numbers<[1], [0], [0], [1], [0, 0, 1, 1], [], []>} : vector<2x64xf32>, vector<64x256xf32>, vector<2x256xf32> -> vector<2x256xf32>
    %418 = vector.extract_strided_slice %338 {offsets = [0, 2, 0], sizes = [2, 1, 128], strides = [1, 1, 1]} : vector<2x8x256xf32> to vector<2x1x128xf32>
    %419 = vector.shape_cast %418 : vector<2x1x128xf32> to vector<2x128xf32>
    %420 = vector.extract_strided_slice %417 {offsets = [0, 0], sizes = [2, 128], strides = [1, 1]} : vector<2x256xf32> to vector<2x128xf32>
    %421 = arith.addf %419, %420 : vector<2x128xf32>
    %422 = vector.extract_strided_slice %338 {offsets = [0, 5, 128], sizes = [2, 1, 128], strides = [1, 1, 1]} : vector<2x8x256xf32> to vector<2x1x128xf32>
    %423 = vector.shape_cast %422 : vector<2x1x128xf32> to vector<2x128xf32>
    %424 = vector.extract_strided_slice %417 {offsets = [0, 128], sizes = [2, 128], strides = [1, 1]} : vector<2x256xf32> to vector<2x128xf32>
    %425 = arith.addf %423, %424 : vector<2x128xf32>
    %426 = tpu.concatenate %421, %425 in 0 : vector<2x128xf32>, vector<2x128xf32> -> vector<4x128xf32>
    %427 = vector.extract_strided_slice %426 {offsets = [0, 0], sizes = [4, 32], strides = [1, 1]} : vector<4x128xf32> to vector<4x32xf32>
    %428 = arith.negf %427 : vector<4x32xf32>
    %429 = math.exp %428 : vector<4x32xf32>
    %cst_60 = arith.constant 1.000000e+00 : f32
    %430 = vector.broadcast %cst_60 : f32 to vector<4x32xf32>
    %431 = arith.addf %430, %429 : vector<4x32xf32>
    %432 = arith.divf %430, %431 : vector<4x32xf32>
    %433 = vector.extract_strided_slice %426 {offsets = [0, 32], sizes = [4, 32], strides = [1, 1]} : vector<4x128xf32> to vector<4x32xf32>
    %434 = arith.negf %433 : vector<4x32xf32>
    %435 = math.exp %434 : vector<4x32xf32>
    %cst_61 = arith.constant 1.000000e+00 : f32
    %436 = vector.broadcast %cst_61 : f32 to vector<4x32xf32>
    %437 = arith.addf %436, %435 : vector<4x32xf32>
    %438 = arith.divf %436, %437 : vector<4x32xf32>
    %439 = vector.extract_strided_slice %426 {offsets = [0, 64], sizes = [4, 32], strides = [1, 1]} : vector<4x128xf32> to vector<4x32xf32>
    %440 = math.tanh %439 : vector<4x32xf32>
    %441 = vector.extract_strided_slice %426 {offsets = [0, 96], sizes = [4, 32], strides = [1, 1]} : vector<4x128xf32> to vector<4x32xf32>
    %442 = arith.negf %441 : vector<4x32xf32>
    %443 = math.exp %442 : vector<4x32xf32>
    %cst_62 = arith.constant 1.000000e+00 : f32
    %444 = vector.broadcast %cst_62 : f32 to vector<4x32xf32>
    %445 = arith.addf %444, %443 : vector<4x32xf32>
    %446 = arith.divf %444, %445 : vector<4x32xf32>
    %447 = arith.mulf %438, %411 : vector<4x32xf32>
    %448 = arith.mulf %432, %440 : vector<4x32xf32>
    %449 = arith.addf %447, %448 : vector<4x32xf32>
    %450 = math.tanh %449 : vector<4x32xf32>
    %451 = arith.mulf %446, %450 : vector<4x32xf32>
    %452 = vector.extract_strided_slice %451 {offsets = [0, 0], sizes = [2, 32], strides = [1, 1]} : vector<4x32xf32> to vector<2x32xf32>
    %453 = vector.extract_strided_slice %451 {offsets = [2, 0], sizes = [2, 32], strides = [1, 1]} : vector<4x32xf32> to vector<2x32xf32>
    %454 = tpu.concatenate %452, %453 in 1 : vector<2x32xf32>, vector<2x32xf32> -> vector<2x64xf32>
    %cst_63 = arith.constant dense<0.000000e+00> : vector<2x256xf32>
    %455 = tpu.matmul %454, %333, %cst_63 {dimension_numbers = #tpu.dot_dimension_numbers<[1], [0], [0], [1], [0, 0, 1, 1], [], []>} : vector<2x64xf32>, vector<64x256xf32>, vector<2x256xf32> -> vector<2x256xf32>
    %456 = vector.extract_strided_slice %338 {offsets = [0, 3, 0], sizes = [2, 1, 128], strides = [1, 1, 1]} : vector<2x8x256xf32> to vector<2x1x128xf32>
    %457 = vector.shape_cast %456 : vector<2x1x128xf32> to vector<2x128xf32>
    %458 = vector.extract_strided_slice %455 {offsets = [0, 0], sizes = [2, 128], strides = [1, 1]} : vector<2x256xf32> to vector<2x128xf32>
    %459 = arith.addf %457, %458 : vector<2x128xf32>
    %460 = vector.extract_strided_slice %338 {offsets = [0, 4, 128], sizes = [2, 1, 128], strides = [1, 1, 1]} : vector<2x8x256xf32> to vector<2x1x128xf32>
    %461 = vector.shape_cast %460 : vector<2x1x128xf32> to vector<2x128xf32>
    %462 = vector.extract_strided_slice %455 {offsets = [0, 128], sizes = [2, 128], strides = [1, 1]} : vector<2x256xf32> to vector<2x128xf32>
    %463 = arith.addf %461, %462 : vector<2x128xf32>
    %464 = tpu.concatenate %459, %463 in 0 : vector<2x128xf32>, vector<2x128xf32> -> vector<4x128xf32>
    %465 = vector.extract_strided_slice %464 {offsets = [0, 0], sizes = [4, 32], strides = [1, 1]} : vector<4x128xf32> to vector<4x32xf32>
    %466 = arith.negf %465 : vector<4x32xf32>
    %467 = math.exp %466 : vector<4x32xf32>
    %cst_64 = arith.constant 1.000000e+00 : f32
    %468 = vector.broadcast %cst_64 : f32 to vector<4x32xf32>
    %469 = arith.addf %468, %467 : vector<4x32xf32>
    %470 = arith.divf %468, %469 : vector<4x32xf32>
    %471 = vector.extract_strided_slice %464 {offsets = [0, 32], sizes = [4, 32], strides = [1, 1]} : vector<4x128xf32> to vector<4x32xf32>
    %472 = arith.negf %471 : vector<4x32xf32>
    %473 = math.exp %472 : vector<4x32xf32>
    %cst_65 = arith.constant 1.000000e+00 : f32
    %474 = vector.broadcast %cst_65 : f32 to vector<4x32xf32>
    %475 = arith.addf %474, %473 : vector<4x32xf32>
    %476 = arith.divf %474, %475 : vector<4x32xf32>
    %477 = vector.extract_strided_slice %464 {offsets = [0, 64], sizes = [4, 32], strides = [1, 1]} : vector<4x128xf32> to vector<4x32xf32>
    %478 = math.tanh %477 : vector<4x32xf32>
    %479 = vector.extract_strided_slice %464 {offsets = [0, 96], sizes = [4, 32], strides = [1, 1]} : vector<4x128xf32> to vector<4x32xf32>
    %480 = arith.negf %479 : vector<4x32xf32>
    %481 = math.exp %480 : vector<4x32xf32>
    %cst_66 = arith.constant 1.000000e+00 : f32
    %482 = vector.broadcast %cst_66 : f32 to vector<4x32xf32>
    %483 = arith.addf %482, %481 : vector<4x32xf32>
    %484 = arith.divf %482, %483 : vector<4x32xf32>
    %485 = arith.mulf %476, %449 : vector<4x32xf32>
    %486 = arith.mulf %470, %478 : vector<4x32xf32>
    %487 = arith.addf %485, %486 : vector<4x32xf32>
    %488 = math.tanh %487 : vector<4x32xf32>
    %489 = arith.mulf %484, %488 : vector<4x32xf32>
    %490 = vector.extract_strided_slice %489 {offsets = [0, 0], sizes = [2, 32], strides = [1, 1]} : vector<4x32xf32> to vector<2x32xf32>
    %491 = vector.extract_strided_slice %489 {offsets = [2, 0], sizes = [2, 32], strides = [1, 1]} : vector<4x32xf32> to vector<2x32xf32>
    %492 = tpu.concatenate %490, %491 in 1 : vector<2x32xf32>, vector<2x32xf32> -> vector<2x64xf32>
    %cst_67 = arith.constant dense<0.000000e+00> : vector<2x256xf32>
    %493 = tpu.matmul %492, %333, %cst_67 {dimension_numbers = #tpu.dot_dimension_numbers<[1], [0], [0], [1], [0, 0, 1, 1], [], []>} : vector<2x64xf32>, vector<64x256xf32>, vector<2x256xf32> -> vector<2x256xf32>
    %494 = vector.extract_strided_slice %338 {offsets = [0, 4, 0], sizes = [2, 1, 128], strides = [1, 1, 1]} : vector<2x8x256xf32> to vector<2x1x128xf32>
    %495 = vector.shape_cast %494 : vector<2x1x128xf32> to vector<2x128xf32>
    %496 = vector.extract_strided_slice %493 {offsets = [0, 0], sizes = [2, 128], strides = [1, 1]} : vector<2x256xf32> to vector<2x128xf32>
    %497 = arith.addf %495, %496 : vector<2x128xf32>
    %498 = vector.extract_strided_slice %338 {offsets = [0, 3, 128], sizes = [2, 1, 128], strides = [1, 1, 1]} : vector<2x8x256xf32> to vector<2x1x128xf32>
    %499 = vector.shape_cast %498 : vector<2x1x128xf32> to vector<2x128xf32>
    %500 = vector.extract_strided_slice %493 {offsets = [0, 128], sizes = [2, 128], strides = [1, 1]} : vector<2x256xf32> to vector<2x128xf32>
    %501 = arith.addf %499, %500 : vector<2x128xf32>
    %502 = tpu.concatenate %497, %501 in 0 : vector<2x128xf32>, vector<2x128xf32> -> vector<4x128xf32>
    %503 = vector.extract_strided_slice %502 {offsets = [0, 0], sizes = [4, 32], strides = [1, 1]} : vector<4x128xf32> to vector<4x32xf32>
    %504 = arith.negf %503 : vector<4x32xf32>
    %505 = math.exp %504 : vector<4x32xf32>
    %cst_68 = arith.constant 1.000000e+00 : f32
    %506 = vector.broadcast %cst_68 : f32 to vector<4x32xf32>
    %507 = arith.addf %506, %505 : vector<4x32xf32>
    %508 = arith.divf %506, %507 : vector<4x32xf32>
    %509 = vector.extract_strided_slice %502 {offsets = [0, 32], sizes = [4, 32], strides = [1, 1]} : vector<4x128xf32> to vector<4x32xf32>
    %510 = arith.negf %509 : vector<4x32xf32>
    %511 = math.exp %510 : vector<4x32xf32>
    %cst_69 = arith.constant 1.000000e+00 : f32
    %512 = vector.broadcast %cst_69 : f32 to vector<4x32xf32>
    %513 = arith.addf %512, %511 : vector<4x32xf32>
    %514 = arith.divf %512, %513 : vector<4x32xf32>
    %515 = vector.extract_strided_slice %502 {offsets = [0, 64], sizes = [4, 32], strides = [1, 1]} : vector<4x128xf32> to vector<4x32xf32>
    %516 = math.tanh %515 : vector<4x32xf32>
    %517 = vector.extract_strided_slice %502 {offsets = [0, 96], sizes = [4, 32], strides = [1, 1]} : vector<4x128xf32> to vector<4x32xf32>
    %518 = arith.negf %517 : vector<4x32xf32>
    %519 = math.exp %518 : vector<4x32xf32>
    %cst_70 = arith.constant 1.000000e+00 : f32
    %520 = vector.broadcast %cst_70 : f32 to vector<4x32xf32>
    %521 = arith.addf %520, %519 : vector<4x32xf32>
    %522 = arith.divf %520, %521 : vector<4x32xf32>
    %523 = arith.mulf %514, %487 : vector<4x32xf32>
    %524 = arith.mulf %508, %516 : vector<4x32xf32>
    %525 = arith.addf %523, %524 : vector<4x32xf32>
    %526 = math.tanh %525 : vector<4x32xf32>
    %527 = arith.mulf %522, %526 : vector<4x32xf32>
    %528 = vector.extract_strided_slice %527 {offsets = [0, 0], sizes = [2, 32], strides = [1, 1]} : vector<4x32xf32> to vector<2x32xf32>
    %529 = vector.extract_strided_slice %527 {offsets = [2, 0], sizes = [2, 32], strides = [1, 1]} : vector<4x32xf32> to vector<2x32xf32>
    %530 = tpu.concatenate %528, %529 in 1 : vector<2x32xf32>, vector<2x32xf32> -> vector<2x64xf32>
    %cst_71 = arith.constant dense<0.000000e+00> : vector<2x256xf32>
    %531 = tpu.matmul %530, %333, %cst_71 {dimension_numbers = #tpu.dot_dimension_numbers<[1], [0], [0], [1], [0, 0, 1, 1], [], []>} : vector<2x64xf32>, vector<64x256xf32>, vector<2x256xf32> -> vector<2x256xf32>
    %532 = vector.extract_strided_slice %338 {offsets = [0, 5, 0], sizes = [2, 1, 128], strides = [1, 1, 1]} : vector<2x8x256xf32> to vector<2x1x128xf32>
    %533 = vector.shape_cast %532 : vector<2x1x128xf32> to vector<2x128xf32>
    %534 = vector.extract_strided_slice %531 {offsets = [0, 0], sizes = [2, 128], strides = [1, 1]} : vector<2x256xf32> to vector<2x128xf32>
    %535 = arith.addf %533, %534 : vector<2x128xf32>
    %536 = vector.extract_strided_slice %338 {offsets = [0, 2, 128], sizes = [2, 1, 128], strides = [1, 1, 1]} : vector<2x8x256xf32> to vector<2x1x128xf32>
    %537 = vector.shape_cast %536 : vector<2x1x128xf32> to vector<2x128xf32>
    %538 = vector.extract_strided_slice %531 {offsets = [0, 128], sizes = [2, 128], strides = [1, 1]} : vector<2x256xf32> to vector<2x128xf32>
    %539 = arith.addf %537, %538 : vector<2x128xf32>
    %540 = tpu.concatenate %535, %539 in 0 : vector<2x128xf32>, vector<2x128xf32> -> vector<4x128xf32>
    %541 = vector.extract_strided_slice %540 {offsets = [0, 0], sizes = [4, 32], strides = [1, 1]} : vector<4x128xf32> to vector<4x32xf32>
    %542 = arith.negf %541 : vector<4x32xf32>
    %543 = math.exp %542 : vector<4x32xf32>
    %cst_72 = arith.constant 1.000000e+00 : f32
    %544 = vector.broadcast %cst_72 : f32 to vector<4x32xf32>
    %545 = arith.addf %544, %543 : vector<4x32xf32>
    %546 = arith.divf %544, %545 : vector<4x32xf32>
    %547 = vector.extract_strided_slice %540 {offsets = [0, 32], sizes = [4, 32], strides = [1, 1]} : vector<4x128xf32> to vector<4x32xf32>
    %548 = arith.negf %547 : vector<4x32xf32>
    %549 = math.exp %548 : vector<4x32xf32>
    %cst_73 = arith.constant 1.000000e+00 : f32
    %550 = vector.broadcast %cst_73 : f32 to vector<4x32xf32>
    %551 = arith.addf %550, %549 : vector<4x32xf32>
    %552 = arith.divf %550, %551 : vector<4x32xf32>
    %553 = vector.extract_strided_slice %540 {offsets = [0, 64], sizes = [4, 32], strides = [1, 1]} : vector<4x128xf32> to vector<4x32xf32>
    %554 = math.tanh %553 : vector<4x32xf32>
    %555 = vector.extract_strided_slice %540 {offsets = [0, 96], sizes = [4, 32], strides = [1, 1]} : vector<4x128xf32> to vector<4x32xf32>
    %556 = arith.negf %555 : vector<4x32xf32>
    %557 = math.exp %556 : vector<4x32xf32>
    %cst_74 = arith.constant 1.000000e+00 : f32
    %558 = vector.broadcast %cst_74 : f32 to vector<4x32xf32>
    %559 = arith.addf %558, %557 : vector<4x32xf32>
    %560 = arith.divf %558, %559 : vector<4x32xf32>
    %561 = arith.mulf %552, %525 : vector<4x32xf32>
    %562 = arith.mulf %546, %554 : vector<4x32xf32>
    %563 = arith.addf %561, %562 : vector<4x32xf32>
    %564 = math.tanh %563 : vector<4x32xf32>
    %565 = arith.mulf %560, %564 : vector<4x32xf32>
    %566 = vector.extract_strided_slice %565 {offsets = [0, 0], sizes = [2, 32], strides = [1, 1]} : vector<4x32xf32> to vector<2x32xf32>
    %567 = vector.extract_strided_slice %565 {offsets = [2, 0], sizes = [2, 32], strides = [1, 1]} : vector<4x32xf32> to vector<2x32xf32>
    %568 = tpu.concatenate %566, %567 in 1 : vector<2x32xf32>, vector<2x32xf32> -> vector<2x64xf32>
    %cst_75 = arith.constant dense<0.000000e+00> : vector<2x256xf32>
    %569 = tpu.matmul %568, %333, %cst_75 {dimension_numbers = #tpu.dot_dimension_numbers<[1], [0], [0], [1], [0, 0, 1, 1], [], []>} : vector<2x64xf32>, vector<64x256xf32>, vector<2x256xf32> -> vector<2x256xf32>
    %570 = vector.extract_strided_slice %338 {offsets = [0, 6, 0], sizes = [2, 1, 128], strides = [1, 1, 1]} : vector<2x8x256xf32> to vector<2x1x128xf32>
    %571 = vector.shape_cast %570 : vector<2x1x128xf32> to vector<2x128xf32>
    %572 = vector.extract_strided_slice %569 {offsets = [0, 0], sizes = [2, 128], strides = [1, 1]} : vector<2x256xf32> to vector<2x128xf32>
    %573 = arith.addf %571, %572 : vector<2x128xf32>
    %574 = vector.extract_strided_slice %338 {offsets = [0, 1, 128], sizes = [2, 1, 128], strides = [1, 1, 1]} : vector<2x8x256xf32> to vector<2x1x128xf32>
    %575 = vector.shape_cast %574 : vector<2x1x128xf32> to vector<2x128xf32>
    %576 = vector.extract_strided_slice %569 {offsets = [0, 128], sizes = [2, 128], strides = [1, 1]} : vector<2x256xf32> to vector<2x128xf32>
    %577 = arith.addf %575, %576 : vector<2x128xf32>
    %578 = tpu.concatenate %573, %577 in 0 : vector<2x128xf32>, vector<2x128xf32> -> vector<4x128xf32>
    %579 = vector.extract_strided_slice %578 {offsets = [0, 0], sizes = [4, 32], strides = [1, 1]} : vector<4x128xf32> to vector<4x32xf32>
    %580 = arith.negf %579 : vector<4x32xf32>
    %581 = math.exp %580 : vector<4x32xf32>
    %cst_76 = arith.constant 1.000000e+00 : f32
    %582 = vector.broadcast %cst_76 : f32 to vector<4x32xf32>
    %583 = arith.addf %582, %581 : vector<4x32xf32>
    %584 = arith.divf %582, %583 : vector<4x32xf32>
    %585 = vector.extract_strided_slice %578 {offsets = [0, 32], sizes = [4, 32], strides = [1, 1]} : vector<4x128xf32> to vector<4x32xf32>
    %586 = arith.negf %585 : vector<4x32xf32>
    %587 = math.exp %586 : vector<4x32xf32>
    %cst_77 = arith.constant 1.000000e+00 : f32
    %588 = vector.broadcast %cst_77 : f32 to vector<4x32xf32>
    %589 = arith.addf %588, %587 : vector<4x32xf32>
    %590 = arith.divf %588, %589 : vector<4x32xf32>
    %591 = vector.extract_strided_slice %578 {offsets = [0, 64], sizes = [4, 32], strides = [1, 1]} : vector<4x128xf32> to vector<4x32xf32>
    %592 = math.tanh %591 : vector<4x32xf32>
    %593 = vector.extract_strided_slice %578 {offsets = [0, 96], sizes = [4, 32], strides = [1, 1]} : vector<4x128xf32> to vector<4x32xf32>
    %594 = arith.negf %593 : vector<4x32xf32>
    %595 = math.exp %594 : vector<4x32xf32>
    %cst_78 = arith.constant 1.000000e+00 : f32
    %596 = vector.broadcast %cst_78 : f32 to vector<4x32xf32>
    %597 = arith.addf %596, %595 : vector<4x32xf32>
    %598 = arith.divf %596, %597 : vector<4x32xf32>
    %599 = arith.mulf %590, %563 : vector<4x32xf32>
    %600 = arith.mulf %584, %592 : vector<4x32xf32>
    %601 = arith.addf %599, %600 : vector<4x32xf32>
    %602 = math.tanh %601 : vector<4x32xf32>
    %603 = arith.mulf %598, %602 : vector<4x32xf32>
    %604 = vector.extract_strided_slice %603 {offsets = [0, 0], sizes = [2, 32], strides = [1, 1]} : vector<4x32xf32> to vector<2x32xf32>
    %605 = vector.extract_strided_slice %603 {offsets = [2, 0], sizes = [2, 32], strides = [1, 1]} : vector<4x32xf32> to vector<2x32xf32>
    %606 = tpu.concatenate %604, %605 in 1 : vector<2x32xf32>, vector<2x32xf32> -> vector<2x64xf32>
    %cst_79 = arith.constant dense<0.000000e+00> : vector<2x256xf32>
    %607 = tpu.matmul %606, %333, %cst_79 {dimension_numbers = #tpu.dot_dimension_numbers<[1], [0], [0], [1], [0, 0, 1, 1], [], []>} : vector<2x64xf32>, vector<64x256xf32>, vector<2x256xf32> -> vector<2x256xf32>
    %608 = vector.extract_strided_slice %338 {offsets = [0, 7, 0], sizes = [2, 1, 128], strides = [1, 1, 1]} : vector<2x8x256xf32> to vector<2x1x128xf32>
    %609 = vector.shape_cast %608 : vector<2x1x128xf32> to vector<2x128xf32>
    %610 = vector.extract_strided_slice %607 {offsets = [0, 0], sizes = [2, 128], strides = [1, 1]} : vector<2x256xf32> to vector<2x128xf32>
    %611 = arith.addf %609, %610 : vector<2x128xf32>
    %612 = vector.extract_strided_slice %338 {offsets = [0, 0, 128], sizes = [2, 1, 128], strides = [1, 1, 1]} : vector<2x8x256xf32> to vector<2x1x128xf32>
    %613 = vector.shape_cast %612 : vector<2x1x128xf32> to vector<2x128xf32>
    %614 = vector.extract_strided_slice %607 {offsets = [0, 128], sizes = [2, 128], strides = [1, 1]} : vector<2x256xf32> to vector<2x128xf32>
    %615 = arith.addf %613, %614 : vector<2x128xf32>
    %616 = tpu.concatenate %611, %615 in 0 : vector<2x128xf32>, vector<2x128xf32> -> vector<4x128xf32>
    %617 = vector.extract_strided_slice %616 {offsets = [0, 0], sizes = [4, 32], strides = [1, 1]} : vector<4x128xf32> to vector<4x32xf32>
    %618 = arith.negf %617 : vector<4x32xf32>
    %619 = math.exp %618 : vector<4x32xf32>
    %cst_80 = arith.constant 1.000000e+00 : f32
    %620 = vector.broadcast %cst_80 : f32 to vector<4x32xf32>
    %621 = arith.addf %620, %619 : vector<4x32xf32>
    %622 = arith.divf %620, %621 : vector<4x32xf32>
    %623 = vector.extract_strided_slice %616 {offsets = [0, 32], sizes = [4, 32], strides = [1, 1]} : vector<4x128xf32> to vector<4x32xf32>
    %624 = arith.negf %623 : vector<4x32xf32>
    %625 = math.exp %624 : vector<4x32xf32>
    %cst_81 = arith.constant 1.000000e+00 : f32
    %626 = vector.broadcast %cst_81 : f32 to vector<4x32xf32>
    %627 = arith.addf %626, %625 : vector<4x32xf32>
    %628 = arith.divf %626, %627 : vector<4x32xf32>
    %629 = vector.extract_strided_slice %616 {offsets = [0, 64], sizes = [4, 32], strides = [1, 1]} : vector<4x128xf32> to vector<4x32xf32>
    %630 = math.tanh %629 : vector<4x32xf32>
    %631 = vector.extract_strided_slice %616 {offsets = [0, 96], sizes = [4, 32], strides = [1, 1]} : vector<4x128xf32> to vector<4x32xf32>
    %632 = arith.negf %631 : vector<4x32xf32>
    %633 = math.exp %632 : vector<4x32xf32>
    %cst_82 = arith.constant 1.000000e+00 : f32
    %634 = vector.broadcast %cst_82 : f32 to vector<4x32xf32>
    %635 = arith.addf %634, %633 : vector<4x32xf32>
    %636 = arith.divf %634, %635 : vector<4x32xf32>
    %637 = arith.mulf %628, %601 : vector<4x32xf32>
    %638 = arith.mulf %622, %630 : vector<4x32xf32>
    %639 = arith.addf %637, %638 : vector<4x32xf32>
    %640 = math.tanh %639 : vector<4x32xf32>
    %641 = arith.mulf %636, %640 : vector<4x32xf32>
    %642 = vector.extract_strided_slice %641 {offsets = [0, 0], sizes = [2, 32], strides = [1, 1]} : vector<4x32xf32> to vector<2x32xf32>
    %643 = vector.extract_strided_slice %641 {offsets = [2, 0], sizes = [2, 32], strides = [1, 1]} : vector<4x32xf32> to vector<2x32xf32>
    %644 = tpu.concatenate %376, %643 in 1 : vector<2x32xf32>, vector<2x32xf32> -> vector<2x64xf32>
    %645 = tpu.concatenate %414, %605 in 1 : vector<2x32xf32>, vector<2x32xf32> -> vector<2x64xf32>
    %646 = tpu.concatenate %452, %567 in 1 : vector<2x32xf32>, vector<2x32xf32> -> vector<2x64xf32>
    %647 = tpu.concatenate %490, %529 in 1 : vector<2x32xf32>, vector<2x32xf32> -> vector<2x64xf32>
    %648 = tpu.concatenate %528, %491 in 1 : vector<2x32xf32>, vector<2x32xf32> -> vector<2x64xf32>
    %649 = tpu.concatenate %566, %453 in 1 : vector<2x32xf32>, vector<2x32xf32> -> vector<2x64xf32>
    %650 = tpu.concatenate %604, %415 in 1 : vector<2x32xf32>, vector<2x32xf32> -> vector<2x64xf32>
    %651 = tpu.concatenate %642, %377 in 1 : vector<2x32xf32>, vector<2x32xf32> -> vector<2x64xf32>
    %652 = vector.shape_cast %644 : vector<2x64xf32> to vector<2x1x64xf32>
    %653 = vector.shape_cast %645 : vector<2x64xf32> to vector<2x1x64xf32>
    %654 = vector.shape_cast %646 : vector<2x64xf32> to vector<2x1x64xf32>
    %655 = vector.shape_cast %647 : vector<2x64xf32> to vector<2x1x64xf32>
    %656 = vector.shape_cast %648 : vector<2x64xf32> to vector<2x1x64xf32>
    %657 = vector.shape_cast %649 : vector<2x64xf32> to vector<2x1x64xf32>
    %658 = vector.shape_cast %650 : vector<2x64xf32> to vector<2x1x64xf32>
    %659 = vector.shape_cast %651 : vector<2x64xf32> to vector<2x1x64xf32>
    %660 = tpu.concatenate %652, %653, %654, %655, %656, %657, %658, %659 in 1 : vector<2x1x64xf32>, vector<2x1x64xf32>, vector<2x1x64xf32>, vector<2x1x64xf32>, vector<2x1x64xf32>, vector<2x1x64xf32>, vector<2x1x64xf32>, vector<2x1x64xf32> -> vector<2x8x64xf32>
    %c0_83 = arith.constant 0 : index
    %c0_84 = arith.constant 0 : index
    %661 = vector.load %arg9[%c0_83, %c0_84] : memref<64x256xf32, #tpu.memory_space<vmem>>, vector<64x256xf32>
    %c0_85 = arith.constant 0 : index
    %c0_86 = arith.constant 0 : index
    %662 = vector.load %arg10[%c0_85, %c0_86] : memref<1x256xf32, #tpu.memory_space<vmem>>, vector<1x256xf32>
    %c0_87 = arith.constant 0 : index
    %c0_88 = arith.constant 0 : index
    %663 = vector.load %arg11[%c0_87, %c0_88] : memref<64x256xf32, #tpu.memory_space<vmem>>, vector<64x256xf32>
    %664 = vector.shape_cast %660 : vector<2x8x64xf32> to vector<16x64xf32>
    %cst_89 = arith.constant dense<0.000000e+00> : vector<16x256xf32>
    %665 = tpu.matmul %664, %661, %cst_89 {dimension_numbers = #tpu.dot_dimension_numbers<[1], [0], [0], [1], [0, 0, 1, 1], [], []>} : vector<16x64xf32>, vector<64x256xf32>, vector<16x256xf32> -> vector<16x256xf32>
    %666 = vector.broadcast %662 : vector<1x256xf32> to vector<16x256xf32>
    %667 = arith.addf %665, %666 : vector<16x256xf32>
    %668 = vector.shape_cast %667 : vector<16x256xf32> to vector<2x8x256xf32>
    %cst_90 = arith.constant 0.000000e+00 : f32
    %669 = vector.broadcast %cst_90 : f32 to vector<2x64xf32>
    %cst_91 = arith.constant 0.000000e+00 : f32
    %670 = vector.broadcast %cst_91 : f32 to vector<4x32xf32>
    %cst_92 = arith.constant dense<0.000000e+00> : vector<2x256xf32>
    %671 = tpu.matmul %669, %663, %cst_92 {dimension_numbers = #tpu.dot_dimension_numbers<[1], [0], [0], [1], [0, 0, 1, 1], [], []>} : vector<2x64xf32>, vector<64x256xf32>, vector<2x256xf32> -> vector<2x256xf32>
    %672 = vector.extract_strided_slice %668 {offsets = [0, 0, 0], sizes = [2, 1, 128], strides = [1, 1, 1]} : vector<2x8x256xf32> to vector<2x1x128xf32>
    %673 = vector.shape_cast %672 : vector<2x1x128xf32> to vector<2x128xf32>
    %674 = vector.extract_strided_slice %671 {offsets = [0, 0], sizes = [2, 128], strides = [1, 1]} : vector<2x256xf32> to vector<2x128xf32>
    %675 = arith.addf %673, %674 : vector<2x128xf32>
    %676 = vector.extract_strided_slice %668 {offsets = [0, 7, 128], sizes = [2, 1, 128], strides = [1, 1, 1]} : vector<2x8x256xf32> to vector<2x1x128xf32>
    %677 = vector.shape_cast %676 : vector<2x1x128xf32> to vector<2x128xf32>
    %678 = vector.extract_strided_slice %671 {offsets = [0, 128], sizes = [2, 128], strides = [1, 1]} : vector<2x256xf32> to vector<2x128xf32>
    %679 = arith.addf %677, %678 : vector<2x128xf32>
    %680 = tpu.concatenate %675, %679 in 0 : vector<2x128xf32>, vector<2x128xf32> -> vector<4x128xf32>
    %681 = vector.extract_strided_slice %680 {offsets = [0, 0], sizes = [4, 32], strides = [1, 1]} : vector<4x128xf32> to vector<4x32xf32>
    %682 = arith.negf %681 : vector<4x32xf32>
    %683 = math.exp %682 : vector<4x32xf32>
    %cst_93 = arith.constant 1.000000e+00 : f32
    %684 = vector.broadcast %cst_93 : f32 to vector<4x32xf32>
    %685 = arith.addf %684, %683 : vector<4x32xf32>
    %686 = arith.divf %684, %685 : vector<4x32xf32>
    %687 = vector.extract_strided_slice %680 {offsets = [0, 32], sizes = [4, 32], strides = [1, 1]} : vector<4x128xf32> to vector<4x32xf32>
    %688 = arith.negf %687 : vector<4x32xf32>
    %689 = math.exp %688 : vector<4x32xf32>
    %cst_94 = arith.constant 1.000000e+00 : f32
    %690 = vector.broadcast %cst_94 : f32 to vector<4x32xf32>
    %691 = arith.addf %690, %689 : vector<4x32xf32>
    %692 = arith.divf %690, %691 : vector<4x32xf32>
    %693 = vector.extract_strided_slice %680 {offsets = [0, 64], sizes = [4, 32], strides = [1, 1]} : vector<4x128xf32> to vector<4x32xf32>
    %694 = math.tanh %693 : vector<4x32xf32>
    %695 = vector.extract_strided_slice %680 {offsets = [0, 96], sizes = [4, 32], strides = [1, 1]} : vector<4x128xf32> to vector<4x32xf32>
    %696 = arith.negf %695 : vector<4x32xf32>
    %697 = math.exp %696 : vector<4x32xf32>
    %cst_95 = arith.constant 1.000000e+00 : f32
    %698 = vector.broadcast %cst_95 : f32 to vector<4x32xf32>
    %699 = arith.addf %698, %697 : vector<4x32xf32>
    %700 = arith.divf %698, %699 : vector<4x32xf32>
    %701 = arith.mulf %692, %670 : vector<4x32xf32>
    %702 = arith.mulf %686, %694 : vector<4x32xf32>
    %703 = arith.addf %701, %702 : vector<4x32xf32>
    %704 = math.tanh %703 : vector<4x32xf32>
    %705 = arith.mulf %700, %704 : vector<4x32xf32>
    %706 = vector.extract_strided_slice %705 {offsets = [0, 0], sizes = [2, 32], strides = [1, 1]} : vector<4x32xf32> to vector<2x32xf32>
    %707 = vector.extract_strided_slice %705 {offsets = [2, 0], sizes = [2, 32], strides = [1, 1]} : vector<4x32xf32> to vector<2x32xf32>
    %708 = tpu.concatenate %706, %707 in 1 : vector<2x32xf32>, vector<2x32xf32> -> vector<2x64xf32>
    %cst_96 = arith.constant dense<0.000000e+00> : vector<2x256xf32>
    %709 = tpu.matmul %708, %663, %cst_96 {dimension_numbers = #tpu.dot_dimension_numbers<[1], [0], [0], [1], [0, 0, 1, 1], [], []>} : vector<2x64xf32>, vector<64x256xf32>, vector<2x256xf32> -> vector<2x256xf32>
    %710 = vector.extract_strided_slice %668 {offsets = [0, 1, 0], sizes = [2, 1, 128], strides = [1, 1, 1]} : vector<2x8x256xf32> to vector<2x1x128xf32>
    %711 = vector.shape_cast %710 : vector<2x1x128xf32> to vector<2x128xf32>
    %712 = vector.extract_strided_slice %709 {offsets = [0, 0], sizes = [2, 128], strides = [1, 1]} : vector<2x256xf32> to vector<2x128xf32>
    %713 = arith.addf %711, %712 : vector<2x128xf32>
    %714 = vector.extract_strided_slice %668 {offsets = [0, 6, 128], sizes = [2, 1, 128], strides = [1, 1, 1]} : vector<2x8x256xf32> to vector<2x1x128xf32>
    %715 = vector.shape_cast %714 : vector<2x1x128xf32> to vector<2x128xf32>
    %716 = vector.extract_strided_slice %709 {offsets = [0, 128], sizes = [2, 128], strides = [1, 1]} : vector<2x256xf32> to vector<2x128xf32>
    %717 = arith.addf %715, %716 : vector<2x128xf32>
    %718 = tpu.concatenate %713, %717 in 0 : vector<2x128xf32>, vector<2x128xf32> -> vector<4x128xf32>
    %719 = vector.extract_strided_slice %718 {offsets = [0, 0], sizes = [4, 32], strides = [1, 1]} : vector<4x128xf32> to vector<4x32xf32>
    %720 = arith.negf %719 : vector<4x32xf32>
    %721 = math.exp %720 : vector<4x32xf32>
    %cst_97 = arith.constant 1.000000e+00 : f32
    %722 = vector.broadcast %cst_97 : f32 to vector<4x32xf32>
    %723 = arith.addf %722, %721 : vector<4x32xf32>
    %724 = arith.divf %722, %723 : vector<4x32xf32>
    %725 = vector.extract_strided_slice %718 {offsets = [0, 32], sizes = [4, 32], strides = [1, 1]} : vector<4x128xf32> to vector<4x32xf32>
    %726 = arith.negf %725 : vector<4x32xf32>
    %727 = math.exp %726 : vector<4x32xf32>
    %cst_98 = arith.constant 1.000000e+00 : f32
    %728 = vector.broadcast %cst_98 : f32 to vector<4x32xf32>
    %729 = arith.addf %728, %727 : vector<4x32xf32>
    %730 = arith.divf %728, %729 : vector<4x32xf32>
    %731 = vector.extract_strided_slice %718 {offsets = [0, 64], sizes = [4, 32], strides = [1, 1]} : vector<4x128xf32> to vector<4x32xf32>
    %732 = math.tanh %731 : vector<4x32xf32>
    %733 = vector.extract_strided_slice %718 {offsets = [0, 96], sizes = [4, 32], strides = [1, 1]} : vector<4x128xf32> to vector<4x32xf32>
    %734 = arith.negf %733 : vector<4x32xf32>
    %735 = math.exp %734 : vector<4x32xf32>
    %cst_99 = arith.constant 1.000000e+00 : f32
    %736 = vector.broadcast %cst_99 : f32 to vector<4x32xf32>
    %737 = arith.addf %736, %735 : vector<4x32xf32>
    %738 = arith.divf %736, %737 : vector<4x32xf32>
    %739 = arith.mulf %730, %703 : vector<4x32xf32>
    %740 = arith.mulf %724, %732 : vector<4x32xf32>
    %741 = arith.addf %739, %740 : vector<4x32xf32>
    %742 = math.tanh %741 : vector<4x32xf32>
    %743 = arith.mulf %738, %742 : vector<4x32xf32>
    %744 = vector.extract_strided_slice %743 {offsets = [0, 0], sizes = [2, 32], strides = [1, 1]} : vector<4x32xf32> to vector<2x32xf32>
    %745 = vector.extract_strided_slice %743 {offsets = [2, 0], sizes = [2, 32], strides = [1, 1]} : vector<4x32xf32> to vector<2x32xf32>
    %746 = tpu.concatenate %744, %745 in 1 : vector<2x32xf32>, vector<2x32xf32> -> vector<2x64xf32>
    %cst_100 = arith.constant dense<0.000000e+00> : vector<2x256xf32>
    %747 = tpu.matmul %746, %663, %cst_100 {dimension_numbers = #tpu.dot_dimension_numbers<[1], [0], [0], [1], [0, 0, 1, 1], [], []>} : vector<2x64xf32>, vector<64x256xf32>, vector<2x256xf32> -> vector<2x256xf32>
    %748 = vector.extract_strided_slice %668 {offsets = [0, 2, 0], sizes = [2, 1, 128], strides = [1, 1, 1]} : vector<2x8x256xf32> to vector<2x1x128xf32>
    %749 = vector.shape_cast %748 : vector<2x1x128xf32> to vector<2x128xf32>
    %750 = vector.extract_strided_slice %747 {offsets = [0, 0], sizes = [2, 128], strides = [1, 1]} : vector<2x256xf32> to vector<2x128xf32>
    %751 = arith.addf %749, %750 : vector<2x128xf32>
    %752 = vector.extract_strided_slice %668 {offsets = [0, 5, 128], sizes = [2, 1, 128], strides = [1, 1, 1]} : vector<2x8x256xf32> to vector<2x1x128xf32>
    %753 = vector.shape_cast %752 : vector<2x1x128xf32> to vector<2x128xf32>
    %754 = vector.extract_strided_slice %747 {offsets = [0, 128], sizes = [2, 128], strides = [1, 1]} : vector<2x256xf32> to vector<2x128xf32>
    %755 = arith.addf %753, %754 : vector<2x128xf32>
    %756 = tpu.concatenate %751, %755 in 0 : vector<2x128xf32>, vector<2x128xf32> -> vector<4x128xf32>
    %757 = vector.extract_strided_slice %756 {offsets = [0, 0], sizes = [4, 32], strides = [1, 1]} : vector<4x128xf32> to vector<4x32xf32>
    %758 = arith.negf %757 : vector<4x32xf32>
    %759 = math.exp %758 : vector<4x32xf32>
    %cst_101 = arith.constant 1.000000e+00 : f32
    %760 = vector.broadcast %cst_101 : f32 to vector<4x32xf32>
    %761 = arith.addf %760, %759 : vector<4x32xf32>
    %762 = arith.divf %760, %761 : vector<4x32xf32>
    %763 = vector.extract_strided_slice %756 {offsets = [0, 32], sizes = [4, 32], strides = [1, 1]} : vector<4x128xf32> to vector<4x32xf32>
    %764 = arith.negf %763 : vector<4x32xf32>
    %765 = math.exp %764 : vector<4x32xf32>
    %cst_102 = arith.constant 1.000000e+00 : f32
    %766 = vector.broadcast %cst_102 : f32 to vector<4x32xf32>
    %767 = arith.addf %766, %765 : vector<4x32xf32>
    %768 = arith.divf %766, %767 : vector<4x32xf32>
    %769 = vector.extract_strided_slice %756 {offsets = [0, 64], sizes = [4, 32], strides = [1, 1]} : vector<4x128xf32> to vector<4x32xf32>
    %770 = math.tanh %769 : vector<4x32xf32>
    %771 = vector.extract_strided_slice %756 {offsets = [0, 96], sizes = [4, 32], strides = [1, 1]} : vector<4x128xf32> to vector<4x32xf32>
    %772 = arith.negf %771 : vector<4x32xf32>
    %773 = math.exp %772 : vector<4x32xf32>
    %cst_103 = arith.constant 1.000000e+00 : f32
    %774 = vector.broadcast %cst_103 : f32 to vector<4x32xf32>
    %775 = arith.addf %774, %773 : vector<4x32xf32>
    %776 = arith.divf %774, %775 : vector<4x32xf32>
    %777 = arith.mulf %768, %741 : vector<4x32xf32>
    %778 = arith.mulf %762, %770 : vector<4x32xf32>
    %779 = arith.addf %777, %778 : vector<4x32xf32>
    %780 = math.tanh %779 : vector<4x32xf32>
    %781 = arith.mulf %776, %780 : vector<4x32xf32>
    %782 = vector.extract_strided_slice %781 {offsets = [0, 0], sizes = [2, 32], strides = [1, 1]} : vector<4x32xf32> to vector<2x32xf32>
    %783 = vector.extract_strided_slice %781 {offsets = [2, 0], sizes = [2, 32], strides = [1, 1]} : vector<4x32xf32> to vector<2x32xf32>
    %784 = tpu.concatenate %782, %783 in 1 : vector<2x32xf32>, vector<2x32xf32> -> vector<2x64xf32>
    %cst_104 = arith.constant dense<0.000000e+00> : vector<2x256xf32>
    %785 = tpu.matmul %784, %663, %cst_104 {dimension_numbers = #tpu.dot_dimension_numbers<[1], [0], [0], [1], [0, 0, 1, 1], [], []>} : vector<2x64xf32>, vector<64x256xf32>, vector<2x256xf32> -> vector<2x256xf32>
    %786 = vector.extract_strided_slice %668 {offsets = [0, 3, 0], sizes = [2, 1, 128], strides = [1, 1, 1]} : vector<2x8x256xf32> to vector<2x1x128xf32>
    %787 = vector.shape_cast %786 : vector<2x1x128xf32> to vector<2x128xf32>
    %788 = vector.extract_strided_slice %785 {offsets = [0, 0], sizes = [2, 128], strides = [1, 1]} : vector<2x256xf32> to vector<2x128xf32>
    %789 = arith.addf %787, %788 : vector<2x128xf32>
    %790 = vector.extract_strided_slice %668 {offsets = [0, 4, 128], sizes = [2, 1, 128], strides = [1, 1, 1]} : vector<2x8x256xf32> to vector<2x1x128xf32>
    %791 = vector.shape_cast %790 : vector<2x1x128xf32> to vector<2x128xf32>
    %792 = vector.extract_strided_slice %785 {offsets = [0, 128], sizes = [2, 128], strides = [1, 1]} : vector<2x256xf32> to vector<2x128xf32>
    %793 = arith.addf %791, %792 : vector<2x128xf32>
    %794 = tpu.concatenate %789, %793 in 0 : vector<2x128xf32>, vector<2x128xf32> -> vector<4x128xf32>
    %795 = vector.extract_strided_slice %794 {offsets = [0, 0], sizes = [4, 32], strides = [1, 1]} : vector<4x128xf32> to vector<4x32xf32>
    %796 = arith.negf %795 : vector<4x32xf32>
    %797 = math.exp %796 : vector<4x32xf32>
    %cst_105 = arith.constant 1.000000e+00 : f32
    %798 = vector.broadcast %cst_105 : f32 to vector<4x32xf32>
    %799 = arith.addf %798, %797 : vector<4x32xf32>
    %800 = arith.divf %798, %799 : vector<4x32xf32>
    %801 = vector.extract_strided_slice %794 {offsets = [0, 32], sizes = [4, 32], strides = [1, 1]} : vector<4x128xf32> to vector<4x32xf32>
    %802 = arith.negf %801 : vector<4x32xf32>
    %803 = math.exp %802 : vector<4x32xf32>
    %cst_106 = arith.constant 1.000000e+00 : f32
    %804 = vector.broadcast %cst_106 : f32 to vector<4x32xf32>
    %805 = arith.addf %804, %803 : vector<4x32xf32>
    %806 = arith.divf %804, %805 : vector<4x32xf32>
    %807 = vector.extract_strided_slice %794 {offsets = [0, 64], sizes = [4, 32], strides = [1, 1]} : vector<4x128xf32> to vector<4x32xf32>
    %808 = math.tanh %807 : vector<4x32xf32>
    %809 = vector.extract_strided_slice %794 {offsets = [0, 96], sizes = [4, 32], strides = [1, 1]} : vector<4x128xf32> to vector<4x32xf32>
    %810 = arith.negf %809 : vector<4x32xf32>
    %811 = math.exp %810 : vector<4x32xf32>
    %cst_107 = arith.constant 1.000000e+00 : f32
    %812 = vector.broadcast %cst_107 : f32 to vector<4x32xf32>
    %813 = arith.addf %812, %811 : vector<4x32xf32>
    %814 = arith.divf %812, %813 : vector<4x32xf32>
    %815 = arith.mulf %806, %779 : vector<4x32xf32>
    %816 = arith.mulf %800, %808 : vector<4x32xf32>
    %817 = arith.addf %815, %816 : vector<4x32xf32>
    %818 = math.tanh %817 : vector<4x32xf32>
    %819 = arith.mulf %814, %818 : vector<4x32xf32>
    %820 = vector.extract_strided_slice %819 {offsets = [0, 0], sizes = [2, 32], strides = [1, 1]} : vector<4x32xf32> to vector<2x32xf32>
    %821 = vector.extract_strided_slice %819 {offsets = [2, 0], sizes = [2, 32], strides = [1, 1]} : vector<4x32xf32> to vector<2x32xf32>
    %822 = tpu.concatenate %820, %821 in 1 : vector<2x32xf32>, vector<2x32xf32> -> vector<2x64xf32>
    %cst_108 = arith.constant dense<0.000000e+00> : vector<2x256xf32>
    %823 = tpu.matmul %822, %663, %cst_108 {dimension_numbers = #tpu.dot_dimension_numbers<[1], [0], [0], [1], [0, 0, 1, 1], [], []>} : vector<2x64xf32>, vector<64x256xf32>, vector<2x256xf32> -> vector<2x256xf32>
    %824 = vector.extract_strided_slice %668 {offsets = [0, 4, 0], sizes = [2, 1, 128], strides = [1, 1, 1]} : vector<2x8x256xf32> to vector<2x1x128xf32>
    %825 = vector.shape_cast %824 : vector<2x1x128xf32> to vector<2x128xf32>
    %826 = vector.extract_strided_slice %823 {offsets = [0, 0], sizes = [2, 128], strides = [1, 1]} : vector<2x256xf32> to vector<2x128xf32>
    %827 = arith.addf %825, %826 : vector<2x128xf32>
    %828 = vector.extract_strided_slice %668 {offsets = [0, 3, 128], sizes = [2, 1, 128], strides = [1, 1, 1]} : vector<2x8x256xf32> to vector<2x1x128xf32>
    %829 = vector.shape_cast %828 : vector<2x1x128xf32> to vector<2x128xf32>
    %830 = vector.extract_strided_slice %823 {offsets = [0, 128], sizes = [2, 128], strides = [1, 1]} : vector<2x256xf32> to vector<2x128xf32>
    %831 = arith.addf %829, %830 : vector<2x128xf32>
    %832 = tpu.concatenate %827, %831 in 0 : vector<2x128xf32>, vector<2x128xf32> -> vector<4x128xf32>
    %833 = vector.extract_strided_slice %832 {offsets = [0, 0], sizes = [4, 32], strides = [1, 1]} : vector<4x128xf32> to vector<4x32xf32>
    %834 = arith.negf %833 : vector<4x32xf32>
    %835 = math.exp %834 : vector<4x32xf32>
    %cst_109 = arith.constant 1.000000e+00 : f32
    %836 = vector.broadcast %cst_109 : f32 to vector<4x32xf32>
    %837 = arith.addf %836, %835 : vector<4x32xf32>
    %838 = arith.divf %836, %837 : vector<4x32xf32>
    %839 = vector.extract_strided_slice %832 {offsets = [0, 32], sizes = [4, 32], strides = [1, 1]} : vector<4x128xf32> to vector<4x32xf32>
    %840 = arith.negf %839 : vector<4x32xf32>
    %841 = math.exp %840 : vector<4x32xf32>
    %cst_110 = arith.constant 1.000000e+00 : f32
    %842 = vector.broadcast %cst_110 : f32 to vector<4x32xf32>
    %843 = arith.addf %842, %841 : vector<4x32xf32>
    %844 = arith.divf %842, %843 : vector<4x32xf32>
    %845 = vector.extract_strided_slice %832 {offsets = [0, 64], sizes = [4, 32], strides = [1, 1]} : vector<4x128xf32> to vector<4x32xf32>
    %846 = math.tanh %845 : vector<4x32xf32>
    %847 = vector.extract_strided_slice %832 {offsets = [0, 96], sizes = [4, 32], strides = [1, 1]} : vector<4x128xf32> to vector<4x32xf32>
    %848 = arith.negf %847 : vector<4x32xf32>
    %849 = math.exp %848 : vector<4x32xf32>
    %cst_111 = arith.constant 1.000000e+00 : f32
    %850 = vector.broadcast %cst_111 : f32 to vector<4x32xf32>
    %851 = arith.addf %850, %849 : vector<4x32xf32>
    %852 = arith.divf %850, %851 : vector<4x32xf32>
    %853 = arith.mulf %844, %817 : vector<4x32xf32>
    %854 = arith.mulf %838, %846 : vector<4x32xf32>
    %855 = arith.addf %853, %854 : vector<4x32xf32>
    %856 = math.tanh %855 : vector<4x32xf32>
    %857 = arith.mulf %852, %856 : vector<4x32xf32>
    %858 = vector.extract_strided_slice %857 {offsets = [0, 0], sizes = [2, 32], strides = [1, 1]} : vector<4x32xf32> to vector<2x32xf32>
    %859 = vector.extract_strided_slice %857 {offsets = [2, 0], sizes = [2, 32], strides = [1, 1]} : vector<4x32xf32> to vector<2x32xf32>
    %860 = tpu.concatenate %858, %859 in 1 : vector<2x32xf32>, vector<2x32xf32> -> vector<2x64xf32>
    %cst_112 = arith.constant dense<0.000000e+00> : vector<2x256xf32>
    %861 = tpu.matmul %860, %663, %cst_112 {dimension_numbers = #tpu.dot_dimension_numbers<[1], [0], [0], [1], [0, 0, 1, 1], [], []>} : vector<2x64xf32>, vector<64x256xf32>, vector<2x256xf32> -> vector<2x256xf32>
    %862 = vector.extract_strided_slice %668 {offsets = [0, 5, 0], sizes = [2, 1, 128], strides = [1, 1, 1]} : vector<2x8x256xf32> to vector<2x1x128xf32>
    %863 = vector.shape_cast %862 : vector<2x1x128xf32> to vector<2x128xf32>
    %864 = vector.extract_strided_slice %861 {offsets = [0, 0], sizes = [2, 128], strides = [1, 1]} : vector<2x256xf32> to vector<2x128xf32>
    %865 = arith.addf %863, %864 : vector<2x128xf32>
    %866 = vector.extract_strided_slice %668 {offsets = [0, 2, 128], sizes = [2, 1, 128], strides = [1, 1, 1]} : vector<2x8x256xf32> to vector<2x1x128xf32>
    %867 = vector.shape_cast %866 : vector<2x1x128xf32> to vector<2x128xf32>
    %868 = vector.extract_strided_slice %861 {offsets = [0, 128], sizes = [2, 128], strides = [1, 1]} : vector<2x256xf32> to vector<2x128xf32>
    %869 = arith.addf %867, %868 : vector<2x128xf32>
    %870 = tpu.concatenate %865, %869 in 0 : vector<2x128xf32>, vector<2x128xf32> -> vector<4x128xf32>
    %871 = vector.extract_strided_slice %870 {offsets = [0, 0], sizes = [4, 32], strides = [1, 1]} : vector<4x128xf32> to vector<4x32xf32>
    %872 = arith.negf %871 : vector<4x32xf32>
    %873 = math.exp %872 : vector<4x32xf32>
    %cst_113 = arith.constant 1.000000e+00 : f32
    %874 = vector.broadcast %cst_113 : f32 to vector<4x32xf32>
    %875 = arith.addf %874, %873 : vector<4x32xf32>
    %876 = arith.divf %874, %875 : vector<4x32xf32>
    %877 = vector.extract_strided_slice %870 {offsets = [0, 32], sizes = [4, 32], strides = [1, 1]} : vector<4x128xf32> to vector<4x32xf32>
    %878 = arith.negf %877 : vector<4x32xf32>
    %879 = math.exp %878 : vector<4x32xf32>
    %cst_114 = arith.constant 1.000000e+00 : f32
    %880 = vector.broadcast %cst_114 : f32 to vector<4x32xf32>
    %881 = arith.addf %880, %879 : vector<4x32xf32>
    %882 = arith.divf %880, %881 : vector<4x32xf32>
    %883 = vector.extract_strided_slice %870 {offsets = [0, 64], sizes = [4, 32], strides = [1, 1]} : vector<4x128xf32> to vector<4x32xf32>
    %884 = math.tanh %883 : vector<4x32xf32>
    %885 = vector.extract_strided_slice %870 {offsets = [0, 96], sizes = [4, 32], strides = [1, 1]} : vector<4x128xf32> to vector<4x32xf32>
    %886 = arith.negf %885 : vector<4x32xf32>
    %887 = math.exp %886 : vector<4x32xf32>
    %cst_115 = arith.constant 1.000000e+00 : f32
    %888 = vector.broadcast %cst_115 : f32 to vector<4x32xf32>
    %889 = arith.addf %888, %887 : vector<4x32xf32>
    %890 = arith.divf %888, %889 : vector<4x32xf32>
    %891 = arith.mulf %882, %855 : vector<4x32xf32>
    %892 = arith.mulf %876, %884 : vector<4x32xf32>
    %893 = arith.addf %891, %892 : vector<4x32xf32>
    %894 = math.tanh %893 : vector<4x32xf32>
    %895 = arith.mulf %890, %894 : vector<4x32xf32>
    %896 = vector.extract_strided_slice %895 {offsets = [0, 0], sizes = [2, 32], strides = [1, 1]} : vector<4x32xf32> to vector<2x32xf32>
    %897 = vector.extract_strided_slice %895 {offsets = [2, 0], sizes = [2, 32], strides = [1, 1]} : vector<4x32xf32> to vector<2x32xf32>
    %898 = tpu.concatenate %896, %897 in 1 : vector<2x32xf32>, vector<2x32xf32> -> vector<2x64xf32>
    %cst_116 = arith.constant dense<0.000000e+00> : vector<2x256xf32>
    %899 = tpu.matmul %898, %663, %cst_116 {dimension_numbers = #tpu.dot_dimension_numbers<[1], [0], [0], [1], [0, 0, 1, 1], [], []>} : vector<2x64xf32>, vector<64x256xf32>, vector<2x256xf32> -> vector<2x256xf32>
    %900 = vector.extract_strided_slice %668 {offsets = [0, 6, 0], sizes = [2, 1, 128], strides = [1, 1, 1]} : vector<2x8x256xf32> to vector<2x1x128xf32>
    %901 = vector.shape_cast %900 : vector<2x1x128xf32> to vector<2x128xf32>
    %902 = vector.extract_strided_slice %899 {offsets = [0, 0], sizes = [2, 128], strides = [1, 1]} : vector<2x256xf32> to vector<2x128xf32>
    %903 = arith.addf %901, %902 : vector<2x128xf32>
    %904 = vector.extract_strided_slice %668 {offsets = [0, 1, 128], sizes = [2, 1, 128], strides = [1, 1, 1]} : vector<2x8x256xf32> to vector<2x1x128xf32>
    %905 = vector.shape_cast %904 : vector<2x1x128xf32> to vector<2x128xf32>
    %906 = vector.extract_strided_slice %899 {offsets = [0, 128], sizes = [2, 128], strides = [1, 1]} : vector<2x256xf32> to vector<2x128xf32>
    %907 = arith.addf %905, %906 : vector<2x128xf32>
    %908 = tpu.concatenate %903, %907 in 0 : vector<2x128xf32>, vector<2x128xf32> -> vector<4x128xf32>
    %909 = vector.extract_strided_slice %908 {offsets = [0, 0], sizes = [4, 32], strides = [1, 1]} : vector<4x128xf32> to vector<4x32xf32>
    %910 = arith.negf %909 : vector<4x32xf32>
    %911 = math.exp %910 : vector<4x32xf32>
    %cst_117 = arith.constant 1.000000e+00 : f32
    %912 = vector.broadcast %cst_117 : f32 to vector<4x32xf32>
    %913 = arith.addf %912, %911 : vector<4x32xf32>
    %914 = arith.divf %912, %913 : vector<4x32xf32>
    %915 = vector.extract_strided_slice %908 {offsets = [0, 32], sizes = [4, 32], strides = [1, 1]} : vector<4x128xf32> to vector<4x32xf32>
    %916 = arith.negf %915 : vector<4x32xf32>
    %917 = math.exp %916 : vector<4x32xf32>
    %cst_118 = arith.constant 1.000000e+00 : f32
    %918 = vector.broadcast %cst_118 : f32 to vector<4x32xf32>
    %919 = arith.addf %918, %917 : vector<4x32xf32>
    %920 = arith.divf %918, %919 : vector<4x32xf32>
    %921 = vector.extract_strided_slice %908 {offsets = [0, 64], sizes = [4, 32], strides = [1, 1]} : vector<4x128xf32> to vector<4x32xf32>
    %922 = math.tanh %921 : vector<4x32xf32>
    %923 = vector.extract_strided_slice %908 {offsets = [0, 96], sizes = [4, 32], strides = [1, 1]} : vector<4x128xf32> to vector<4x32xf32>
    %924 = arith.negf %923 : vector<4x32xf32>
    %925 = math.exp %924 : vector<4x32xf32>
    %cst_119 = arith.constant 1.000000e+00 : f32
    %926 = vector.broadcast %cst_119 : f32 to vector<4x32xf32>
    %927 = arith.addf %926, %925 : vector<4x32xf32>
    %928 = arith.divf %926, %927 : vector<4x32xf32>
    %929 = arith.mulf %920, %893 : vector<4x32xf32>
    %930 = arith.mulf %914, %922 : vector<4x32xf32>
    %931 = arith.addf %929, %930 : vector<4x32xf32>
    %932 = math.tanh %931 : vector<4x32xf32>
    %933 = arith.mulf %928, %932 : vector<4x32xf32>
    %934 = vector.extract_strided_slice %933 {offsets = [0, 0], sizes = [2, 32], strides = [1, 1]} : vector<4x32xf32> to vector<2x32xf32>
    %935 = vector.extract_strided_slice %933 {offsets = [2, 0], sizes = [2, 32], strides = [1, 1]} : vector<4x32xf32> to vector<2x32xf32>
    %936 = tpu.concatenate %934, %935 in 1 : vector<2x32xf32>, vector<2x32xf32> -> vector<2x64xf32>
    %cst_120 = arith.constant dense<0.000000e+00> : vector<2x256xf32>
    %937 = tpu.matmul %936, %663, %cst_120 {dimension_numbers = #tpu.dot_dimension_numbers<[1], [0], [0], [1], [0, 0, 1, 1], [], []>} : vector<2x64xf32>, vector<64x256xf32>, vector<2x256xf32> -> vector<2x256xf32>
    %938 = vector.extract_strided_slice %668 {offsets = [0, 7, 0], sizes = [2, 1, 128], strides = [1, 1, 1]} : vector<2x8x256xf32> to vector<2x1x128xf32>
    %939 = vector.shape_cast %938 : vector<2x1x128xf32> to vector<2x128xf32>
    %940 = vector.extract_strided_slice %937 {offsets = [0, 0], sizes = [2, 128], strides = [1, 1]} : vector<2x256xf32> to vector<2x128xf32>
    %941 = arith.addf %939, %940 : vector<2x128xf32>
    %942 = vector.extract_strided_slice %668 {offsets = [0, 0, 128], sizes = [2, 1, 128], strides = [1, 1, 1]} : vector<2x8x256xf32> to vector<2x1x128xf32>
    %943 = vector.shape_cast %942 : vector<2x1x128xf32> to vector<2x128xf32>
    %944 = vector.extract_strided_slice %937 {offsets = [0, 128], sizes = [2, 128], strides = [1, 1]} : vector<2x256xf32> to vector<2x128xf32>
    %945 = arith.addf %943, %944 : vector<2x128xf32>
    %946 = tpu.concatenate %941, %945 in 0 : vector<2x128xf32>, vector<2x128xf32> -> vector<4x128xf32>
    %947 = vector.extract_strided_slice %946 {offsets = [0, 0], sizes = [4, 32], strides = [1, 1]} : vector<4x128xf32> to vector<4x32xf32>
    %948 = arith.negf %947 : vector<4x32xf32>
    %949 = math.exp %948 : vector<4x32xf32>
    %cst_121 = arith.constant 1.000000e+00 : f32
    %950 = vector.broadcast %cst_121 : f32 to vector<4x32xf32>
    %951 = arith.addf %950, %949 : vector<4x32xf32>
    %952 = arith.divf %950, %951 : vector<4x32xf32>
    %953 = vector.extract_strided_slice %946 {offsets = [0, 32], sizes = [4, 32], strides = [1, 1]} : vector<4x128xf32> to vector<4x32xf32>
    %954 = arith.negf %953 : vector<4x32xf32>
    %955 = math.exp %954 : vector<4x32xf32>
    %cst_122 = arith.constant 1.000000e+00 : f32
    %956 = vector.broadcast %cst_122 : f32 to vector<4x32xf32>
    %957 = arith.addf %956, %955 : vector<4x32xf32>
    %958 = arith.divf %956, %957 : vector<4x32xf32>
    %959 = vector.extract_strided_slice %946 {offsets = [0, 64], sizes = [4, 32], strides = [1, 1]} : vector<4x128xf32> to vector<4x32xf32>
    %960 = math.tanh %959 : vector<4x32xf32>
    %961 = vector.extract_strided_slice %946 {offsets = [0, 96], sizes = [4, 32], strides = [1, 1]} : vector<4x128xf32> to vector<4x32xf32>
    %962 = arith.negf %961 : vector<4x32xf32>
    %963 = math.exp %962 : vector<4x32xf32>
    %cst_123 = arith.constant 1.000000e+00 : f32
    %964 = vector.broadcast %cst_123 : f32 to vector<4x32xf32>
    %965 = arith.addf %964, %963 : vector<4x32xf32>
    %966 = arith.divf %964, %965 : vector<4x32xf32>
    %967 = arith.mulf %958, %931 : vector<4x32xf32>
    %968 = arith.mulf %952, %960 : vector<4x32xf32>
    %969 = arith.addf %967, %968 : vector<4x32xf32>
    %970 = math.tanh %969 : vector<4x32xf32>
    %971 = arith.mulf %966, %970 : vector<4x32xf32>
    %972 = vector.extract_strided_slice %971 {offsets = [0, 0], sizes = [2, 32], strides = [1, 1]} : vector<4x32xf32> to vector<2x32xf32>
    %973 = vector.extract_strided_slice %971 {offsets = [2, 0], sizes = [2, 32], strides = [1, 1]} : vector<4x32xf32> to vector<2x32xf32>
    %974 = tpu.concatenate %706, %973 in 1 : vector<2x32xf32>, vector<2x32xf32> -> vector<2x64xf32>
    %975 = tpu.concatenate %744, %935 in 1 : vector<2x32xf32>, vector<2x32xf32> -> vector<2x64xf32>
    %976 = tpu.concatenate %782, %897 in 1 : vector<2x32xf32>, vector<2x32xf32> -> vector<2x64xf32>
    %977 = tpu.concatenate %820, %859 in 1 : vector<2x32xf32>, vector<2x32xf32> -> vector<2x64xf32>
    %978 = tpu.concatenate %858, %821 in 1 : vector<2x32xf32>, vector<2x32xf32> -> vector<2x64xf32>
    %979 = tpu.concatenate %896, %783 in 1 : vector<2x32xf32>, vector<2x32xf32> -> vector<2x64xf32>
    %980 = tpu.concatenate %934, %745 in 1 : vector<2x32xf32>, vector<2x32xf32> -> vector<2x64xf32>
    %981 = tpu.concatenate %972, %707 in 1 : vector<2x32xf32>, vector<2x32xf32> -> vector<2x64xf32>
    %982 = vector.shape_cast %974 : vector<2x64xf32> to vector<2x1x64xf32>
    %983 = vector.shape_cast %975 : vector<2x64xf32> to vector<2x1x64xf32>
    %984 = vector.shape_cast %976 : vector<2x64xf32> to vector<2x1x64xf32>
    %985 = vector.shape_cast %977 : vector<2x64xf32> to vector<2x1x64xf32>
    %986 = vector.shape_cast %978 : vector<2x64xf32> to vector<2x1x64xf32>
    %987 = vector.shape_cast %979 : vector<2x64xf32> to vector<2x1x64xf32>
    %988 = vector.shape_cast %980 : vector<2x64xf32> to vector<2x1x64xf32>
    %989 = vector.shape_cast %981 : vector<2x64xf32> to vector<2x1x64xf32>
    %990 = tpu.concatenate %982, %983, %984, %985, %986, %987, %988, %989 in 1 : vector<2x1x64xf32>, vector<2x1x64xf32>, vector<2x1x64xf32>, vector<2x1x64xf32>, vector<2x1x64xf32>, vector<2x1x64xf32>, vector<2x1x64xf32>, vector<2x1x64xf32> -> vector<2x8x64xf32>
    %c0_124 = arith.constant 0 : index
    %c0_125 = arith.constant 0 : index
    %991 = vector.load %arg12[%c0_124, %c0_125] : memref<64x256xf32, #tpu.memory_space<vmem>>, vector<64x256xf32>
    %c0_126 = arith.constant 0 : index
    %c0_127 = arith.constant 0 : index
    %992 = vector.load %arg13[%c0_126, %c0_127] : memref<1x256xf32, #tpu.memory_space<vmem>>, vector<1x256xf32>
    %c0_128 = arith.constant 0 : index
    %c0_129 = arith.constant 0 : index
    %993 = vector.load %arg14[%c0_128, %c0_129] : memref<64x256xf32, #tpu.memory_space<vmem>>, vector<64x256xf32>
    %994 = vector.shape_cast %990 : vector<2x8x64xf32> to vector<16x64xf32>
    %cst_130 = arith.constant dense<0.000000e+00> : vector<16x256xf32>
    %995 = tpu.matmul %994, %991, %cst_130 {dimension_numbers = #tpu.dot_dimension_numbers<[1], [0], [0], [1], [0, 0, 1, 1], [], []>} : vector<16x64xf32>, vector<64x256xf32>, vector<16x256xf32> -> vector<16x256xf32>
    %996 = vector.broadcast %992 : vector<1x256xf32> to vector<16x256xf32>
    %997 = arith.addf %995, %996 : vector<16x256xf32>
    %998 = vector.shape_cast %997 : vector<16x256xf32> to vector<2x8x256xf32>
    %cst_131 = arith.constant 0.000000e+00 : f32
    %999 = vector.broadcast %cst_131 : f32 to vector<2x64xf32>
    %cst_132 = arith.constant 0.000000e+00 : f32
    %1000 = vector.broadcast %cst_132 : f32 to vector<4x32xf32>
    %cst_133 = arith.constant dense<0.000000e+00> : vector<2x256xf32>
    %1001 = tpu.matmul %999, %993, %cst_133 {dimension_numbers = #tpu.dot_dimension_numbers<[1], [0], [0], [1], [0, 0, 1, 1], [], []>} : vector<2x64xf32>, vector<64x256xf32>, vector<2x256xf32> -> vector<2x256xf32>
    %1002 = vector.extract_strided_slice %998 {offsets = [0, 0, 0], sizes = [2, 1, 128], strides = [1, 1, 1]} : vector<2x8x256xf32> to vector<2x1x128xf32>
    %1003 = vector.shape_cast %1002 : vector<2x1x128xf32> to vector<2x128xf32>
    %1004 = vector.extract_strided_slice %1001 {offsets = [0, 0], sizes = [2, 128], strides = [1, 1]} : vector<2x256xf32> to vector<2x128xf32>
    %1005 = arith.addf %1003, %1004 : vector<2x128xf32>
    %1006 = vector.extract_strided_slice %998 {offsets = [0, 7, 128], sizes = [2, 1, 128], strides = [1, 1, 1]} : vector<2x8x256xf32> to vector<2x1x128xf32>
    %1007 = vector.shape_cast %1006 : vector<2x1x128xf32> to vector<2x128xf32>
    %1008 = vector.extract_strided_slice %1001 {offsets = [0, 128], sizes = [2, 128], strides = [1, 1]} : vector<2x256xf32> to vector<2x128xf32>
    %1009 = arith.addf %1007, %1008 : vector<2x128xf32>
    %1010 = tpu.concatenate %1005, %1009 in 0 : vector<2x128xf32>, vector<2x128xf32> -> vector<4x128xf32>
    %1011 = vector.extract_strided_slice %1010 {offsets = [0, 0], sizes = [4, 32], strides = [1, 1]} : vector<4x128xf32> to vector<4x32xf32>
    %1012 = arith.negf %1011 : vector<4x32xf32>
    %1013 = math.exp %1012 : vector<4x32xf32>
    %cst_134 = arith.constant 1.000000e+00 : f32
    %1014 = vector.broadcast %cst_134 : f32 to vector<4x32xf32>
    %1015 = arith.addf %1014, %1013 : vector<4x32xf32>
    %1016 = arith.divf %1014, %1015 : vector<4x32xf32>
    %1017 = vector.extract_strided_slice %1010 {offsets = [0, 32], sizes = [4, 32], strides = [1, 1]} : vector<4x128xf32> to vector<4x32xf32>
    %1018 = arith.negf %1017 : vector<4x32xf32>
    %1019 = math.exp %1018 : vector<4x32xf32>
    %cst_135 = arith.constant 1.000000e+00 : f32
    %1020 = vector.broadcast %cst_135 : f32 to vector<4x32xf32>
    %1021 = arith.addf %1020, %1019 : vector<4x32xf32>
    %1022 = arith.divf %1020, %1021 : vector<4x32xf32>
    %1023 = vector.extract_strided_slice %1010 {offsets = [0, 64], sizes = [4, 32], strides = [1, 1]} : vector<4x128xf32> to vector<4x32xf32>
    %1024 = math.tanh %1023 : vector<4x32xf32>
    %1025 = vector.extract_strided_slice %1010 {offsets = [0, 96], sizes = [4, 32], strides = [1, 1]} : vector<4x128xf32> to vector<4x32xf32>
    %1026 = arith.negf %1025 : vector<4x32xf32>
    %1027 = math.exp %1026 : vector<4x32xf32>
    %cst_136 = arith.constant 1.000000e+00 : f32
    %1028 = vector.broadcast %cst_136 : f32 to vector<4x32xf32>
    %1029 = arith.addf %1028, %1027 : vector<4x32xf32>
    %1030 = arith.divf %1028, %1029 : vector<4x32xf32>
    %1031 = arith.mulf %1022, %1000 : vector<4x32xf32>
    %1032 = arith.mulf %1016, %1024 : vector<4x32xf32>
    %1033 = arith.addf %1031, %1032 : vector<4x32xf32>
    %1034 = math.tanh %1033 : vector<4x32xf32>
    %1035 = arith.mulf %1030, %1034 : vector<4x32xf32>
    %1036 = vector.extract_strided_slice %1035 {offsets = [0, 0], sizes = [2, 32], strides = [1, 1]} : vector<4x32xf32> to vector<2x32xf32>
    %1037 = vector.extract_strided_slice %1035 {offsets = [2, 0], sizes = [2, 32], strides = [1, 1]} : vector<4x32xf32> to vector<2x32xf32>
    %1038 = tpu.concatenate %1036, %1037 in 1 : vector<2x32xf32>, vector<2x32xf32> -> vector<2x64xf32>
    %cst_137 = arith.constant dense<0.000000e+00> : vector<2x256xf32>
    %1039 = tpu.matmul %1038, %993, %cst_137 {dimension_numbers = #tpu.dot_dimension_numbers<[1], [0], [0], [1], [0, 0, 1, 1], [], []>} : vector<2x64xf32>, vector<64x256xf32>, vector<2x256xf32> -> vector<2x256xf32>
    %1040 = vector.extract_strided_slice %998 {offsets = [0, 1, 0], sizes = [2, 1, 128], strides = [1, 1, 1]} : vector<2x8x256xf32> to vector<2x1x128xf32>
    %1041 = vector.shape_cast %1040 : vector<2x1x128xf32> to vector<2x128xf32>
    %1042 = vector.extract_strided_slice %1039 {offsets = [0, 0], sizes = [2, 128], strides = [1, 1]} : vector<2x256xf32> to vector<2x128xf32>
    %1043 = arith.addf %1041, %1042 : vector<2x128xf32>
    %1044 = vector.extract_strided_slice %998 {offsets = [0, 6, 128], sizes = [2, 1, 128], strides = [1, 1, 1]} : vector<2x8x256xf32> to vector<2x1x128xf32>
    %1045 = vector.shape_cast %1044 : vector<2x1x128xf32> to vector<2x128xf32>
    %1046 = vector.extract_strided_slice %1039 {offsets = [0, 128], sizes = [2, 128], strides = [1, 1]} : vector<2x256xf32> to vector<2x128xf32>
    %1047 = arith.addf %1045, %1046 : vector<2x128xf32>
    %1048 = tpu.concatenate %1043, %1047 in 0 : vector<2x128xf32>, vector<2x128xf32> -> vector<4x128xf32>
    %1049 = vector.extract_strided_slice %1048 {offsets = [0, 0], sizes = [4, 32], strides = [1, 1]} : vector<4x128xf32> to vector<4x32xf32>
    %1050 = arith.negf %1049 : vector<4x32xf32>
    %1051 = math.exp %1050 : vector<4x32xf32>
    %cst_138 = arith.constant 1.000000e+00 : f32
    %1052 = vector.broadcast %cst_138 : f32 to vector<4x32xf32>
    %1053 = arith.addf %1052, %1051 : vector<4x32xf32>
    %1054 = arith.divf %1052, %1053 : vector<4x32xf32>
    %1055 = vector.extract_strided_slice %1048 {offsets = [0, 32], sizes = [4, 32], strides = [1, 1]} : vector<4x128xf32> to vector<4x32xf32>
    %1056 = arith.negf %1055 : vector<4x32xf32>
    %1057 = math.exp %1056 : vector<4x32xf32>
    %cst_139 = arith.constant 1.000000e+00 : f32
    %1058 = vector.broadcast %cst_139 : f32 to vector<4x32xf32>
    %1059 = arith.addf %1058, %1057 : vector<4x32xf32>
    %1060 = arith.divf %1058, %1059 : vector<4x32xf32>
    %1061 = vector.extract_strided_slice %1048 {offsets = [0, 64], sizes = [4, 32], strides = [1, 1]} : vector<4x128xf32> to vector<4x32xf32>
    %1062 = math.tanh %1061 : vector<4x32xf32>
    %1063 = vector.extract_strided_slice %1048 {offsets = [0, 96], sizes = [4, 32], strides = [1, 1]} : vector<4x128xf32> to vector<4x32xf32>
    %1064 = arith.negf %1063 : vector<4x32xf32>
    %1065 = math.exp %1064 : vector<4x32xf32>
    %cst_140 = arith.constant 1.000000e+00 : f32
    %1066 = vector.broadcast %cst_140 : f32 to vector<4x32xf32>
    %1067 = arith.addf %1066, %1065 : vector<4x32xf32>
    %1068 = arith.divf %1066, %1067 : vector<4x32xf32>
    %1069 = arith.mulf %1060, %1033 : vector<4x32xf32>
    %1070 = arith.mulf %1054, %1062 : vector<4x32xf32>
    %1071 = arith.addf %1069, %1070 : vector<4x32xf32>
    %1072 = math.tanh %1071 : vector<4x32xf32>
    %1073 = arith.mulf %1068, %1072 : vector<4x32xf32>
    %1074 = vector.extract_strided_slice %1073 {offsets = [0, 0], sizes = [2, 32], strides = [1, 1]} : vector<4x32xf32> to vector<2x32xf32>
    %1075 = vector.extract_strided_slice %1073 {offsets = [2, 0], sizes = [2, 32], strides = [1, 1]} : vector<4x32xf32> to vector<2x32xf32>
    %1076 = tpu.concatenate %1074, %1075 in 1 : vector<2x32xf32>, vector<2x32xf32> -> vector<2x64xf32>
    %cst_141 = arith.constant dense<0.000000e+00> : vector<2x256xf32>
    %1077 = tpu.matmul %1076, %993, %cst_141 {dimension_numbers = #tpu.dot_dimension_numbers<[1], [0], [0], [1], [0, 0, 1, 1], [], []>} : vector<2x64xf32>, vector<64x256xf32>, vector<2x256xf32> -> vector<2x256xf32>
    %1078 = vector.extract_strided_slice %998 {offsets = [0, 2, 0], sizes = [2, 1, 128], strides = [1, 1, 1]} : vector<2x8x256xf32> to vector<2x1x128xf32>
    %1079 = vector.shape_cast %1078 : vector<2x1x128xf32> to vector<2x128xf32>
    %1080 = vector.extract_strided_slice %1077 {offsets = [0, 0], sizes = [2, 128], strides = [1, 1]} : vector<2x256xf32> to vector<2x128xf32>
    %1081 = arith.addf %1079, %1080 : vector<2x128xf32>
    %1082 = vector.extract_strided_slice %998 {offsets = [0, 5, 128], sizes = [2, 1, 128], strides = [1, 1, 1]} : vector<2x8x256xf32> to vector<2x1x128xf32>
    %1083 = vector.shape_cast %1082 : vector<2x1x128xf32> to vector<2x128xf32>
    %1084 = vector.extract_strided_slice %1077 {offsets = [0, 128], sizes = [2, 128], strides = [1, 1]} : vector<2x256xf32> to vector<2x128xf32>
    %1085 = arith.addf %1083, %1084 : vector<2x128xf32>
    %1086 = tpu.concatenate %1081, %1085 in 0 : vector<2x128xf32>, vector<2x128xf32> -> vector<4x128xf32>
    %1087 = vector.extract_strided_slice %1086 {offsets = [0, 0], sizes = [4, 32], strides = [1, 1]} : vector<4x128xf32> to vector<4x32xf32>
    %1088 = arith.negf %1087 : vector<4x32xf32>
    %1089 = math.exp %1088 : vector<4x32xf32>
    %cst_142 = arith.constant 1.000000e+00 : f32
    %1090 = vector.broadcast %cst_142 : f32 to vector<4x32xf32>
    %1091 = arith.addf %1090, %1089 : vector<4x32xf32>
    %1092 = arith.divf %1090, %1091 : vector<4x32xf32>
    %1093 = vector.extract_strided_slice %1086 {offsets = [0, 32], sizes = [4, 32], strides = [1, 1]} : vector<4x128xf32> to vector<4x32xf32>
    %1094 = arith.negf %1093 : vector<4x32xf32>
    %1095 = math.exp %1094 : vector<4x32xf32>
    %cst_143 = arith.constant 1.000000e+00 : f32
    %1096 = vector.broadcast %cst_143 : f32 to vector<4x32xf32>
    %1097 = arith.addf %1096, %1095 : vector<4x32xf32>
    %1098 = arith.divf %1096, %1097 : vector<4x32xf32>
    %1099 = vector.extract_strided_slice %1086 {offsets = [0, 64], sizes = [4, 32], strides = [1, 1]} : vector<4x128xf32> to vector<4x32xf32>
    %1100 = math.tanh %1099 : vector<4x32xf32>
    %1101 = vector.extract_strided_slice %1086 {offsets = [0, 96], sizes = [4, 32], strides = [1, 1]} : vector<4x128xf32> to vector<4x32xf32>
    %1102 = arith.negf %1101 : vector<4x32xf32>
    %1103 = math.exp %1102 : vector<4x32xf32>
    %cst_144 = arith.constant 1.000000e+00 : f32
    %1104 = vector.broadcast %cst_144 : f32 to vector<4x32xf32>
    %1105 = arith.addf %1104, %1103 : vector<4x32xf32>
    %1106 = arith.divf %1104, %1105 : vector<4x32xf32>
    %1107 = arith.mulf %1098, %1071 : vector<4x32xf32>
    %1108 = arith.mulf %1092, %1100 : vector<4x32xf32>
    %1109 = arith.addf %1107, %1108 : vector<4x32xf32>
    %1110 = math.tanh %1109 : vector<4x32xf32>
    %1111 = arith.mulf %1106, %1110 : vector<4x32xf32>
    %1112 = vector.extract_strided_slice %1111 {offsets = [0, 0], sizes = [2, 32], strides = [1, 1]} : vector<4x32xf32> to vector<2x32xf32>
    %1113 = vector.extract_strided_slice %1111 {offsets = [2, 0], sizes = [2, 32], strides = [1, 1]} : vector<4x32xf32> to vector<2x32xf32>
    %1114 = tpu.concatenate %1112, %1113 in 1 : vector<2x32xf32>, vector<2x32xf32> -> vector<2x64xf32>
    %cst_145 = arith.constant dense<0.000000e+00> : vector<2x256xf32>
    %1115 = tpu.matmul %1114, %993, %cst_145 {dimension_numbers = #tpu.dot_dimension_numbers<[1], [0], [0], [1], [0, 0, 1, 1], [], []>} : vector<2x64xf32>, vector<64x256xf32>, vector<2x256xf32> -> vector<2x256xf32>
    %1116 = vector.extract_strided_slice %998 {offsets = [0, 3, 0], sizes = [2, 1, 128], strides = [1, 1, 1]} : vector<2x8x256xf32> to vector<2x1x128xf32>
    %1117 = vector.shape_cast %1116 : vector<2x1x128xf32> to vector<2x128xf32>
    %1118 = vector.extract_strided_slice %1115 {offsets = [0, 0], sizes = [2, 128], strides = [1, 1]} : vector<2x256xf32> to vector<2x128xf32>
    %1119 = arith.addf %1117, %1118 : vector<2x128xf32>
    %1120 = vector.extract_strided_slice %998 {offsets = [0, 4, 128], sizes = [2, 1, 128], strides = [1, 1, 1]} : vector<2x8x256xf32> to vector<2x1x128xf32>
    %1121 = vector.shape_cast %1120 : vector<2x1x128xf32> to vector<2x128xf32>
    %1122 = vector.extract_strided_slice %1115 {offsets = [0, 128], sizes = [2, 128], strides = [1, 1]} : vector<2x256xf32> to vector<2x128xf32>
    %1123 = arith.addf %1121, %1122 : vector<2x128xf32>
    %1124 = tpu.concatenate %1119, %1123 in 0 : vector<2x128xf32>, vector<2x128xf32> -> vector<4x128xf32>
    %1125 = vector.extract_strided_slice %1124 {offsets = [0, 0], sizes = [4, 32], strides = [1, 1]} : vector<4x128xf32> to vector<4x32xf32>
    %1126 = arith.negf %1125 : vector<4x32xf32>
    %1127 = math.exp %1126 : vector<4x32xf32>
    %cst_146 = arith.constant 1.000000e+00 : f32
    %1128 = vector.broadcast %cst_146 : f32 to vector<4x32xf32>
    %1129 = arith.addf %1128, %1127 : vector<4x32xf32>
    %1130 = arith.divf %1128, %1129 : vector<4x32xf32>
    %1131 = vector.extract_strided_slice %1124 {offsets = [0, 32], sizes = [4, 32], strides = [1, 1]} : vector<4x128xf32> to vector<4x32xf32>
    %1132 = arith.negf %1131 : vector<4x32xf32>
    %1133 = math.exp %1132 : vector<4x32xf32>
    %cst_147 = arith.constant 1.000000e+00 : f32
    %1134 = vector.broadcast %cst_147 : f32 to vector<4x32xf32>
    %1135 = arith.addf %1134, %1133 : vector<4x32xf32>
    %1136 = arith.divf %1134, %1135 : vector<4x32xf32>
    %1137 = vector.extract_strided_slice %1124 {offsets = [0, 64], sizes = [4, 32], strides = [1, 1]} : vector<4x128xf32> to vector<4x32xf32>
    %1138 = math.tanh %1137 : vector<4x32xf32>
    %1139 = vector.extract_strided_slice %1124 {offsets = [0, 96], sizes = [4, 32], strides = [1, 1]} : vector<4x128xf32> to vector<4x32xf32>
    %1140 = arith.negf %1139 : vector<4x32xf32>
    %1141 = math.exp %1140 : vector<4x32xf32>
    %cst_148 = arith.constant 1.000000e+00 : f32
    %1142 = vector.broadcast %cst_148 : f32 to vector<4x32xf32>
    %1143 = arith.addf %1142, %1141 : vector<4x32xf32>
    %1144 = arith.divf %1142, %1143 : vector<4x32xf32>
    %1145 = arith.mulf %1136, %1109 : vector<4x32xf32>
    %1146 = arith.mulf %1130, %1138 : vector<4x32xf32>
    %1147 = arith.addf %1145, %1146 : vector<4x32xf32>
    %1148 = math.tanh %1147 : vector<4x32xf32>
    %1149 = arith.mulf %1144, %1148 : vector<4x32xf32>
    %1150 = vector.extract_strided_slice %1149 {offsets = [0, 0], sizes = [2, 32], strides = [1, 1]} : vector<4x32xf32> to vector<2x32xf32>
    %1151 = vector.extract_strided_slice %1149 {offsets = [2, 0], sizes = [2, 32], strides = [1, 1]} : vector<4x32xf32> to vector<2x32xf32>
    %1152 = tpu.concatenate %1150, %1151 in 1 : vector<2x32xf32>, vector<2x32xf32> -> vector<2x64xf32>
    %cst_149 = arith.constant dense<0.000000e+00> : vector<2x256xf32>
    %1153 = tpu.matmul %1152, %993, %cst_149 {dimension_numbers = #tpu.dot_dimension_numbers<[1], [0], [0], [1], [0, 0, 1, 1], [], []>} : vector<2x64xf32>, vector<64x256xf32>, vector<2x256xf32> -> vector<2x256xf32>
    %1154 = vector.extract_strided_slice %998 {offsets = [0, 4, 0], sizes = [2, 1, 128], strides = [1, 1, 1]} : vector<2x8x256xf32> to vector<2x1x128xf32>
    %1155 = vector.shape_cast %1154 : vector<2x1x128xf32> to vector<2x128xf32>
    %1156 = vector.extract_strided_slice %1153 {offsets = [0, 0], sizes = [2, 128], strides = [1, 1]} : vector<2x256xf32> to vector<2x128xf32>
    %1157 = arith.addf %1155, %1156 : vector<2x128xf32>
    %1158 = vector.extract_strided_slice %998 {offsets = [0, 3, 128], sizes = [2, 1, 128], strides = [1, 1, 1]} : vector<2x8x256xf32> to vector<2x1x128xf32>
    %1159 = vector.shape_cast %1158 : vector<2x1x128xf32> to vector<2x128xf32>
    %1160 = vector.extract_strided_slice %1153 {offsets = [0, 128], sizes = [2, 128], strides = [1, 1]} : vector<2x256xf32> to vector<2x128xf32>
    %1161 = arith.addf %1159, %1160 : vector<2x128xf32>
    %1162 = tpu.concatenate %1157, %1161 in 0 : vector<2x128xf32>, vector<2x128xf32> -> vector<4x128xf32>
    %1163 = vector.extract_strided_slice %1162 {offsets = [0, 0], sizes = [4, 32], strides = [1, 1]} : vector<4x128xf32> to vector<4x32xf32>
    %1164 = arith.negf %1163 : vector<4x32xf32>
    %1165 = math.exp %1164 : vector<4x32xf32>
    %cst_150 = arith.constant 1.000000e+00 : f32
    %1166 = vector.broadcast %cst_150 : f32 to vector<4x32xf32>
    %1167 = arith.addf %1166, %1165 : vector<4x32xf32>
    %1168 = arith.divf %1166, %1167 : vector<4x32xf32>
    %1169 = vector.extract_strided_slice %1162 {offsets = [0, 32], sizes = [4, 32], strides = [1, 1]} : vector<4x128xf32> to vector<4x32xf32>
    %1170 = arith.negf %1169 : vector<4x32xf32>
    %1171 = math.exp %1170 : vector<4x32xf32>
    %cst_151 = arith.constant 1.000000e+00 : f32
    %1172 = vector.broadcast %cst_151 : f32 to vector<4x32xf32>
    %1173 = arith.addf %1172, %1171 : vector<4x32xf32>
    %1174 = arith.divf %1172, %1173 : vector<4x32xf32>
    %1175 = vector.extract_strided_slice %1162 {offsets = [0, 64], sizes = [4, 32], strides = [1, 1]} : vector<4x128xf32> to vector<4x32xf32>
    %1176 = math.tanh %1175 : vector<4x32xf32>
    %1177 = vector.extract_strided_slice %1162 {offsets = [0, 96], sizes = [4, 32], strides = [1, 1]} : vector<4x128xf32> to vector<4x32xf32>
    %1178 = arith.negf %1177 : vector<4x32xf32>
    %1179 = math.exp %1178 : vector<4x32xf32>
    %cst_152 = arith.constant 1.000000e+00 : f32
    %1180 = vector.broadcast %cst_152 : f32 to vector<4x32xf32>
    %1181 = arith.addf %1180, %1179 : vector<4x32xf32>
    %1182 = arith.divf %1180, %1181 : vector<4x32xf32>
    %1183 = arith.mulf %1174, %1147 : vector<4x32xf32>
    %1184 = arith.mulf %1168, %1176 : vector<4x32xf32>
    %1185 = arith.addf %1183, %1184 : vector<4x32xf32>
    %1186 = math.tanh %1185 : vector<4x32xf32>
    %1187 = arith.mulf %1182, %1186 : vector<4x32xf32>
    %1188 = vector.extract_strided_slice %1187 {offsets = [0, 0], sizes = [2, 32], strides = [1, 1]} : vector<4x32xf32> to vector<2x32xf32>
    %1189 = vector.extract_strided_slice %1187 {offsets = [2, 0], sizes = [2, 32], strides = [1, 1]} : vector<4x32xf32> to vector<2x32xf32>
    %1190 = tpu.concatenate %1188, %1189 in 1 : vector<2x32xf32>, vector<2x32xf32> -> vector<2x64xf32>
    %cst_153 = arith.constant dense<0.000000e+00> : vector<2x256xf32>
    %1191 = tpu.matmul %1190, %993, %cst_153 {dimension_numbers = #tpu.dot_dimension_numbers<[1], [0], [0], [1], [0, 0, 1, 1], [], []>} : vector<2x64xf32>, vector<64x256xf32>, vector<2x256xf32> -> vector<2x256xf32>
    %1192 = vector.extract_strided_slice %998 {offsets = [0, 5, 0], sizes = [2, 1, 128], strides = [1, 1, 1]} : vector<2x8x256xf32> to vector<2x1x128xf32>
    %1193 = vector.shape_cast %1192 : vector<2x1x128xf32> to vector<2x128xf32>
    %1194 = vector.extract_strided_slice %1191 {offsets = [0, 0], sizes = [2, 128], strides = [1, 1]} : vector<2x256xf32> to vector<2x128xf32>
    %1195 = arith.addf %1193, %1194 : vector<2x128xf32>
    %1196 = vector.extract_strided_slice %998 {offsets = [0, 2, 128], sizes = [2, 1, 128], strides = [1, 1, 1]} : vector<2x8x256xf32> to vector<2x1x128xf32>
    %1197 = vector.shape_cast %1196 : vector<2x1x128xf32> to vector<2x128xf32>
    %1198 = vector.extract_strided_slice %1191 {offsets = [0, 128], sizes = [2, 128], strides = [1, 1]} : vector<2x256xf32> to vector<2x128xf32>
    %1199 = arith.addf %1197, %1198 : vector<2x128xf32>
    %1200 = tpu.concatenate %1195, %1199 in 0 : vector<2x128xf32>, vector<2x128xf32> -> vector<4x128xf32>
    %1201 = vector.extract_strided_slice %1200 {offsets = [0, 0], sizes = [4, 32], strides = [1, 1]} : vector<4x128xf32> to vector<4x32xf32>
    %1202 = arith.negf %1201 : vector<4x32xf32>
    %1203 = math.exp %1202 : vector<4x32xf32>
    %cst_154 = arith.constant 1.000000e+00 : f32
    %1204 = vector.broadcast %cst_154 : f32 to vector<4x32xf32>
    %1205 = arith.addf %1204, %1203 : vector<4x32xf32>
    %1206 = arith.divf %1204, %1205 : vector<4x32xf32>
    %1207 = vector.extract_strided_slice %1200 {offsets = [0, 32], sizes = [4, 32], strides = [1, 1]} : vector<4x128xf32> to vector<4x32xf32>
    %1208 = arith.negf %1207 : vector<4x32xf32>
    %1209 = math.exp %1208 : vector<4x32xf32>
    %cst_155 = arith.constant 1.000000e+00 : f32
    %1210 = vector.broadcast %cst_155 : f32 to vector<4x32xf32>
    %1211 = arith.addf %1210, %1209 : vector<4x32xf32>
    %1212 = arith.divf %1210, %1211 : vector<4x32xf32>
    %1213 = vector.extract_strided_slice %1200 {offsets = [0, 64], sizes = [4, 32], strides = [1, 1]} : vector<4x128xf32> to vector<4x32xf32>
    %1214 = math.tanh %1213 : vector<4x32xf32>
    %1215 = vector.extract_strided_slice %1200 {offsets = [0, 96], sizes = [4, 32], strides = [1, 1]} : vector<4x128xf32> to vector<4x32xf32>
    %1216 = arith.negf %1215 : vector<4x32xf32>
    %1217 = math.exp %1216 : vector<4x32xf32>
    %cst_156 = arith.constant 1.000000e+00 : f32
    %1218 = vector.broadcast %cst_156 : f32 to vector<4x32xf32>
    %1219 = arith.addf %1218, %1217 : vector<4x32xf32>
    %1220 = arith.divf %1218, %1219 : vector<4x32xf32>
    %1221 = arith.mulf %1212, %1185 : vector<4x32xf32>
    %1222 = arith.mulf %1206, %1214 : vector<4x32xf32>
    %1223 = arith.addf %1221, %1222 : vector<4x32xf32>
    %1224 = math.tanh %1223 : vector<4x32xf32>
    %1225 = arith.mulf %1220, %1224 : vector<4x32xf32>
    %1226 = vector.extract_strided_slice %1225 {offsets = [0, 0], sizes = [2, 32], strides = [1, 1]} : vector<4x32xf32> to vector<2x32xf32>
    %1227 = vector.extract_strided_slice %1225 {offsets = [2, 0], sizes = [2, 32], strides = [1, 1]} : vector<4x32xf32> to vector<2x32xf32>
    %1228 = tpu.concatenate %1226, %1227 in 1 : vector<2x32xf32>, vector<2x32xf32> -> vector<2x64xf32>
    %cst_157 = arith.constant dense<0.000000e+00> : vector<2x256xf32>
    %1229 = tpu.matmul %1228, %993, %cst_157 {dimension_numbers = #tpu.dot_dimension_numbers<[1], [0], [0], [1], [0, 0, 1, 1], [], []>} : vector<2x64xf32>, vector<64x256xf32>, vector<2x256xf32> -> vector<2x256xf32>
    %1230 = vector.extract_strided_slice %998 {offsets = [0, 6, 0], sizes = [2, 1, 128], strides = [1, 1, 1]} : vector<2x8x256xf32> to vector<2x1x128xf32>
    %1231 = vector.shape_cast %1230 : vector<2x1x128xf32> to vector<2x128xf32>
    %1232 = vector.extract_strided_slice %1229 {offsets = [0, 0], sizes = [2, 128], strides = [1, 1]} : vector<2x256xf32> to vector<2x128xf32>
    %1233 = arith.addf %1231, %1232 : vector<2x128xf32>
    %1234 = vector.extract_strided_slice %998 {offsets = [0, 1, 128], sizes = [2, 1, 128], strides = [1, 1, 1]} : vector<2x8x256xf32> to vector<2x1x128xf32>
    %1235 = vector.shape_cast %1234 : vector<2x1x128xf32> to vector<2x128xf32>
    %1236 = vector.extract_strided_slice %1229 {offsets = [0, 128], sizes = [2, 128], strides = [1, 1]} : vector<2x256xf32> to vector<2x128xf32>
    %1237 = arith.addf %1235, %1236 : vector<2x128xf32>
    %1238 = tpu.concatenate %1233, %1237 in 0 : vector<2x128xf32>, vector<2x128xf32> -> vector<4x128xf32>
    %1239 = vector.extract_strided_slice %1238 {offsets = [0, 0], sizes = [4, 32], strides = [1, 1]} : vector<4x128xf32> to vector<4x32xf32>
    %1240 = arith.negf %1239 : vector<4x32xf32>
    %1241 = math.exp %1240 : vector<4x32xf32>
    %cst_158 = arith.constant 1.000000e+00 : f32
    %1242 = vector.broadcast %cst_158 : f32 to vector<4x32xf32>
    %1243 = arith.addf %1242, %1241 : vector<4x32xf32>
    %1244 = arith.divf %1242, %1243 : vector<4x32xf32>
    %1245 = vector.extract_strided_slice %1238 {offsets = [0, 32], sizes = [4, 32], strides = [1, 1]} : vector<4x128xf32> to vector<4x32xf32>
    %1246 = arith.negf %1245 : vector<4x32xf32>
    %1247 = math.exp %1246 : vector<4x32xf32>
    %cst_159 = arith.constant 1.000000e+00 : f32
    %1248 = vector.broadcast %cst_159 : f32 to vector<4x32xf32>
    %1249 = arith.addf %1248, %1247 : vector<4x32xf32>
    %1250 = arith.divf %1248, %1249 : vector<4x32xf32>
    %1251 = vector.extract_strided_slice %1238 {offsets = [0, 64], sizes = [4, 32], strides = [1, 1]} : vector<4x128xf32> to vector<4x32xf32>
    %1252 = math.tanh %1251 : vector<4x32xf32>
    %1253 = vector.extract_strided_slice %1238 {offsets = [0, 96], sizes = [4, 32], strides = [1, 1]} : vector<4x128xf32> to vector<4x32xf32>
    %1254 = arith.negf %1253 : vector<4x32xf32>
    %1255 = math.exp %1254 : vector<4x32xf32>
    %cst_160 = arith.constant 1.000000e+00 : f32
    %1256 = vector.broadcast %cst_160 : f32 to vector<4x32xf32>
    %1257 = arith.addf %1256, %1255 : vector<4x32xf32>
    %1258 = arith.divf %1256, %1257 : vector<4x32xf32>
    %1259 = arith.mulf %1250, %1223 : vector<4x32xf32>
    %1260 = arith.mulf %1244, %1252 : vector<4x32xf32>
    %1261 = arith.addf %1259, %1260 : vector<4x32xf32>
    %1262 = math.tanh %1261 : vector<4x32xf32>
    %1263 = arith.mulf %1258, %1262 : vector<4x32xf32>
    %1264 = vector.extract_strided_slice %1263 {offsets = [0, 0], sizes = [2, 32], strides = [1, 1]} : vector<4x32xf32> to vector<2x32xf32>
    %1265 = vector.extract_strided_slice %1263 {offsets = [2, 0], sizes = [2, 32], strides = [1, 1]} : vector<4x32xf32> to vector<2x32xf32>
    %1266 = tpu.concatenate %1264, %1265 in 1 : vector<2x32xf32>, vector<2x32xf32> -> vector<2x64xf32>
    %cst_161 = arith.constant dense<0.000000e+00> : vector<2x256xf32>
    %1267 = tpu.matmul %1266, %993, %cst_161 {dimension_numbers = #tpu.dot_dimension_numbers<[1], [0], [0], [1], [0, 0, 1, 1], [], []>} : vector<2x64xf32>, vector<64x256xf32>, vector<2x256xf32> -> vector<2x256xf32>
    %1268 = vector.extract_strided_slice %998 {offsets = [0, 7, 0], sizes = [2, 1, 128], strides = [1, 1, 1]} : vector<2x8x256xf32> to vector<2x1x128xf32>
    %1269 = vector.shape_cast %1268 : vector<2x1x128xf32> to vector<2x128xf32>
    %1270 = vector.extract_strided_slice %1267 {offsets = [0, 0], sizes = [2, 128], strides = [1, 1]} : vector<2x256xf32> to vector<2x128xf32>
    %1271 = arith.addf %1269, %1270 : vector<2x128xf32>
    %1272 = vector.extract_strided_slice %998 {offsets = [0, 0, 128], sizes = [2, 1, 128], strides = [1, 1, 1]} : vector<2x8x256xf32> to vector<2x1x128xf32>
    %1273 = vector.shape_cast %1272 : vector<2x1x128xf32> to vector<2x128xf32>
    %1274 = vector.extract_strided_slice %1267 {offsets = [0, 128], sizes = [2, 128], strides = [1, 1]} : vector<2x256xf32> to vector<2x128xf32>
    %1275 = arith.addf %1273, %1274 : vector<2x128xf32>
    %1276 = tpu.concatenate %1271, %1275 in 0 : vector<2x128xf32>, vector<2x128xf32> -> vector<4x128xf32>
    %1277 = vector.extract_strided_slice %1276 {offsets = [0, 0], sizes = [4, 32], strides = [1, 1]} : vector<4x128xf32> to vector<4x32xf32>
    %1278 = arith.negf %1277 : vector<4x32xf32>
    %1279 = math.exp %1278 : vector<4x32xf32>
    %cst_162 = arith.constant 1.000000e+00 : f32
    %1280 = vector.broadcast %cst_162 : f32 to vector<4x32xf32>
    %1281 = arith.addf %1280, %1279 : vector<4x32xf32>
    %1282 = arith.divf %1280, %1281 : vector<4x32xf32>
    %1283 = vector.extract_strided_slice %1276 {offsets = [0, 32], sizes = [4, 32], strides = [1, 1]} : vector<4x128xf32> to vector<4x32xf32>
    %1284 = arith.negf %1283 : vector<4x32xf32>
    %1285 = math.exp %1284 : vector<4x32xf32>
    %cst_163 = arith.constant 1.000000e+00 : f32
    %1286 = vector.broadcast %cst_163 : f32 to vector<4x32xf32>
    %1287 = arith.addf %1286, %1285 : vector<4x32xf32>
    %1288 = arith.divf %1286, %1287 : vector<4x32xf32>
    %1289 = vector.extract_strided_slice %1276 {offsets = [0, 64], sizes = [4, 32], strides = [1, 1]} : vector<4x128xf32> to vector<4x32xf32>
    %1290 = math.tanh %1289 : vector<4x32xf32>
    %1291 = vector.extract_strided_slice %1276 {offsets = [0, 96], sizes = [4, 32], strides = [1, 1]} : vector<4x128xf32> to vector<4x32xf32>
    %1292 = arith.negf %1291 : vector<4x32xf32>
    %1293 = math.exp %1292 : vector<4x32xf32>
    %cst_164 = arith.constant 1.000000e+00 : f32
    %1294 = vector.broadcast %cst_164 : f32 to vector<4x32xf32>
    %1295 = arith.addf %1294, %1293 : vector<4x32xf32>
    %1296 = arith.divf %1294, %1295 : vector<4x32xf32>
    %1297 = arith.mulf %1288, %1261 : vector<4x32xf32>
    %1298 = arith.mulf %1282, %1290 : vector<4x32xf32>
    %1299 = arith.addf %1297, %1298 : vector<4x32xf32>
    %1300 = math.tanh %1299 : vector<4x32xf32>
    %1301 = arith.mulf %1296, %1300 : vector<4x32xf32>
    %1302 = vector.extract_strided_slice %1301 {offsets = [0, 0], sizes = [2, 32], strides = [1, 1]} : vector<4x32xf32> to vector<2x32xf32>
    %1303 = vector.extract_strided_slice %1301 {offsets = [2, 0], sizes = [2, 32], strides = [1, 1]} : vector<4x32xf32> to vector<2x32xf32>
    %1304 = tpu.concatenate %1036, %1303 in 1 : vector<2x32xf32>, vector<2x32xf32> -> vector<2x64xf32>
    %1305 = tpu.concatenate %1074, %1265 in 1 : vector<2x32xf32>, vector<2x32xf32> -> vector<2x64xf32>
    %1306 = tpu.concatenate %1112, %1227 in 1 : vector<2x32xf32>, vector<2x32xf32> -> vector<2x64xf32>
    %1307 = tpu.concatenate %1150, %1189 in 1 : vector<2x32xf32>, vector<2x32xf32> -> vector<2x64xf32>
    %1308 = tpu.concatenate %1188, %1151 in 1 : vector<2x32xf32>, vector<2x32xf32> -> vector<2x64xf32>
    %1309 = tpu.concatenate %1226, %1113 in 1 : vector<2x32xf32>, vector<2x32xf32> -> vector<2x64xf32>
    %1310 = tpu.concatenate %1264, %1075 in 1 : vector<2x32xf32>, vector<2x32xf32> -> vector<2x64xf32>
    %1311 = tpu.concatenate %1302, %1037 in 1 : vector<2x32xf32>, vector<2x32xf32> -> vector<2x64xf32>
    %1312 = vector.shape_cast %1304 : vector<2x64xf32> to vector<2x1x64xf32>
    %1313 = vector.shape_cast %1305 : vector<2x64xf32> to vector<2x1x64xf32>
    %1314 = vector.shape_cast %1306 : vector<2x64xf32> to vector<2x1x64xf32>
    %1315 = vector.shape_cast %1307 : vector<2x64xf32> to vector<2x1x64xf32>
    %1316 = vector.shape_cast %1308 : vector<2x64xf32> to vector<2x1x64xf32>
    %1317 = vector.shape_cast %1309 : vector<2x64xf32> to vector<2x1x64xf32>
    %1318 = vector.shape_cast %1310 : vector<2x64xf32> to vector<2x1x64xf32>
    %1319 = vector.shape_cast %1311 : vector<2x64xf32> to vector<2x1x64xf32>
    %1320 = tpu.concatenate %1312, %1313, %1314, %1315, %1316, %1317, %1318, %1319 in 1 : vector<2x1x64xf32>, vector<2x1x64xf32>, vector<2x1x64xf32>, vector<2x1x64xf32>, vector<2x1x64xf32>, vector<2x1x64xf32>, vector<2x1x64xf32>, vector<2x1x64xf32> -> vector<2x8x64xf32>
    %c0_165 = arith.constant 0 : index
    %c0_166 = arith.constant 0 : index
    %1321 = vector.load %arg15[%c0_165, %c0_166] : memref<12x32xf32, #tpu.memory_space<vmem>>, vector<12x32xf32>
    %c0_167 = arith.constant 0 : index
    %c0_168 = arith.constant 0 : index
    %1322 = vector.load %arg16[%c0_167, %c0_168] : memref<32x128xf32, #tpu.memory_space<vmem>>, vector<32x128xf32>
    %cst_169 = arith.constant dense<0.000000e+00> : vector<12x128xf32>
    %1323 = tpu.matmul %1321, %1322, %cst_169 {dimension_numbers = #tpu.dot_dimension_numbers<[1], [0], [0], [1], [0, 0, 1, 1], [], []>} : vector<12x32xf32>, vector<32x128xf32>, vector<12x128xf32> -> vector<12x128xf32>
    %c0_170 = arith.constant 0 : index
    %c0_171 = arith.constant 0 : index
    %1324 = vector.load %arg17[%c0_170, %c0_171] : memref<1x128xf32, #tpu.memory_space<vmem>>, vector<1x128xf32>
    %1325 = vector.broadcast %1324 : vector<1x128xf32> to vector<12x128xf32>
    %1326 = arith.addf %1323, %1325 : vector<12x128xf32>
    %cst_172 = arith.constant 0.000000e+00 : f32
    %1327 = vector.broadcast %cst_172 : f32 to vector<12x128xf32>
    %1328 = arith.maximumf %1326, %1327 : vector<12x128xf32>
    %c0_173 = arith.constant 0 : index
    %1329 = memref.load %arg1[%c0_173] : memref<2xi32, #tpu.memory_space<smem>>
    %1330 = vector.extract_strided_slice %1320 {offsets = [0, 0, 0], sizes = [1, 8, 64], strides = [1, 1, 1]} : vector<2x8x64xf32> to vector<1x8x64xf32>
    %1331 = vector.shape_cast %1330 : vector<1x8x64xf32> to vector<8x64xf32>
    %1332 = tpu.iota {dimensions = array<i32: 0>} : vector<8x1xi32>
    %1333 = vector.broadcast %1329 : i32 to vector<8x1xi32>
    %1334 = arith.cmpi eq, %1332, %1333 : vector<8x1xi32>
    %1335 = arith.extui %1334 : vector<8x1xi1> to vector<8x1xi32>
    %1336 = arith.sitofp %1335 : vector<8x1xi32> to vector<8x1xf32>
    %1337 = vector.broadcast %1336 : vector<8x1xf32> to vector<8x64xf32>
    %1338 = arith.mulf %1331, %1337 : vector<8x64xf32>
    %cst_174 = arith.constant dense<0.000000e+00> : vector<64xf32>
    %1339 = vector.multi_reduction <add>, %1338, %cst_174 [0] : vector<8x64xf32> to vector<64xf32>
    %1340 = vector.shape_cast %1339 : vector<64xf32> to vector<1x64xf32>
    %1341 = vector.shape_cast %1340 : vector<1x64xf32> to vector<1x64xf32>
    %1342 = vector.broadcast %1341 : vector<1x64xf32> to vector<8x64xf32>
    %1343 = tpu.concatenate %1331, %1342 in 1 : vector<8x64xf32>, vector<8x64xf32> -> vector<8x128xf32>
    %1344 = vector.extract_strided_slice %1328 {offsets = [0, 0], sizes = [6, 128], strides = [1, 1]} : vector<12x128xf32> to vector<6x128xf32>
    %cst_175 = arith.constant dense<0.000000e+00> : vector<8x6xf32>
    %1345 = tpu.matmul %1343, %1344, %cst_175 {dimension_numbers = #tpu.dot_dimension_numbers<[1], [1], [0], [0], [0, 0, 1, 0], [], []>} : vector<8x128xf32>, vector<6x128xf32>, vector<8x6xf32> -> vector<8x6xf32>
    %c0_176 = arith.constant 0 : index
    %c0_177 = arith.constant 0 : index
    %c0_178 = arith.constant 0 : index
    %1346 = vector.load %arg18[%c0_176, %c0_177, %c0_178] : memref<2x1x6xf32, #tpu.memory_space<vmem>>, vector<1x1x6xf32>
    %1347 = vector.shape_cast %1346 : vector<1x1x6xf32> to vector<1x6xf32>
    %1348 = vector.broadcast %1347 : vector<1x6xf32> to vector<8x6xf32>
    %1349 = arith.addf %1345, %1348 : vector<8x6xf32>
    %c0_179 = arith.constant 0 : index
    %c0_180 = arith.constant 0 : index
    %1350 = vector.load %arg19[%c0_179, %c0_180] : memref<16x6xf32, #tpu.memory_space<vmem>>, vector<8x6xf32>
    tpu.vector_store %arg19[%c0_179, %c0_180], %1349 {strides = array<i32>} : memref<16x6xf32, #tpu.memory_space<vmem>>, vector<8x6xf32>,
    %cst_181 = arith.constant dense<0xFF800000> : vector<8xf32>
    %1351 = vector.multi_reduction <maximumf>, %1349, %cst_181 [1] : vector<8x6xf32> to vector<8xf32>
    %1352 = vector.shape_cast %1351 : vector<8xf32> to vector<8x1xf32>
    %1353 = vector.broadcast %1352 : vector<8x1xf32> to vector<8x6xf32>
    %1354 = arith.subf %1349, %1353 : vector<8x6xf32>
    %1355 = math.exp %1354 : vector<8x6xf32>
    %cst_182 = arith.constant dense<0.000000e+00> : vector<8xf32>
    %1356 = vector.multi_reduction <add>, %1355, %cst_182 [1] : vector<8x6xf32> to vector<8xf32>
    %1357 = vector.shape_cast %1356 : vector<8xf32> to vector<8x1xf32>
    %1358 = vector.broadcast %1357 : vector<8x1xf32> to vector<8x6xf32>
    %1359 = arith.divf %1355, %1358 : vector<8x6xf32>
    %c0_183 = arith.constant 0 : index
    %c0_184 = arith.constant 0 : index
    %1360 = vector.load %arg20[%c0_183, %c0_184] : memref<16x6xf32, #tpu.memory_space<vmem>>, vector<8x6xf32>
    tpu.vector_store %arg20[%c0_183, %c0_184], %1359 {strides = array<i32>} : memref<16x6xf32, #tpu.memory_space<vmem>>, vector<8x6xf32>,
    %c1 = arith.constant 1 : index
    %1361 = memref.load %arg1[%c1] : memref<2xi32, #tpu.memory_space<smem>>
    %1362 = vector.extract_strided_slice %1320 {offsets = [1, 0, 0], sizes = [1, 8, 64], strides = [1, 1, 1]} : vector<2x8x64xf32> to vector<1x8x64xf32>
    %1363 = vector.shape_cast %1362 : vector<1x8x64xf32> to vector<8x64xf32>
    %1364 = tpu.iota {dimensions = array<i32: 0>} : vector<8x1xi32>
    %1365 = vector.broadcast %1361 : i32 to vector<8x1xi32>
    %1366 = arith.cmpi eq, %1364, %1365 : vector<8x1xi32>
    %1367 = arith.extui %1366 : vector<8x1xi1> to vector<8x1xi32>
    %1368 = arith.sitofp %1367 : vector<8x1xi32> to vector<8x1xf32>
    %1369 = vector.broadcast %1368 : vector<8x1xf32> to vector<8x64xf32>
    %1370 = arith.mulf %1363, %1369 : vector<8x64xf32>
    %cst_185 = arith.constant dense<0.000000e+00> : vector<64xf32>
    %1371 = vector.multi_reduction <add>, %1370, %cst_185 [0] : vector<8x64xf32> to vector<64xf32>
    %1372 = vector.shape_cast %1371 : vector<64xf32> to vector<1x64xf32>
    %1373 = vector.shape_cast %1372 : vector<1x64xf32> to vector<1x64xf32>
    %1374 = vector.broadcast %1373 : vector<1x64xf32> to vector<8x64xf32>
    %1375 = tpu.concatenate %1363, %1374 in 1 : vector<8x64xf32>, vector<8x64xf32> -> vector<8x128xf32>
    %1376 = vector.extract_strided_slice %1328 {offsets = [6, 0], sizes = [6, 128], strides = [1, 1]} : vector<12x128xf32> to vector<6x128xf32>
    %cst_186 = arith.constant dense<0.000000e+00> : vector<8x6xf32>
    %1377 = tpu.matmul %1375, %1376, %cst_186 {dimension_numbers = #tpu.dot_dimension_numbers<[1], [1], [0], [0], [0, 0, 1, 0], [], []>} : vector<8x128xf32>, vector<6x128xf32>, vector<8x6xf32> -> vector<8x6xf32>
    %c1_187 = arith.constant 1 : index
    %c0_188 = arith.constant 0 : index
    %c0_189 = arith.constant 0 : index
    %1378 = vector.load %arg18[%c1_187, %c0_188, %c0_189] : memref<2x1x6xf32, #tpu.memory_space<vmem>>, vector<1x1x6xf32>
    %1379 = vector.shape_cast %1378 : vector<1x1x6xf32> to vector<1x6xf32>
    %1380 = vector.broadcast %1379 : vector<1x6xf32> to vector<8x6xf32>
    %1381 = arith.addf %1377, %1380 : vector<8x6xf32>
    %c8 = arith.constant 8 : index
    %c0_190 = arith.constant 0 : index
    %1382 = vector.load %arg19[%c8, %c0_190] : memref<16x6xf32, #tpu.memory_space<vmem>>, vector<8x6xf32>
    tpu.vector_store %arg19[%c8, %c0_190], %1381 {strides = array<i32>} : memref<16x6xf32, #tpu.memory_space<vmem>>, vector<8x6xf32>,
    %cst_191 = arith.constant dense<0xFF800000> : vector<8xf32>
    %1383 = vector.multi_reduction <maximumf>, %1381, %cst_191 [1] : vector<8x6xf32> to vector<8xf32>
    %1384 = vector.shape_cast %1383 : vector<8xf32> to vector<8x1xf32>
    %1385 = vector.broadcast %1384 : vector<8x1xf32> to vector<8x6xf32>
    %1386 = arith.subf %1381, %1385 : vector<8x6xf32>
    %1387 = math.exp %1386 : vector<8x6xf32>
    %cst_192 = arith.constant dense<0.000000e+00> : vector<8xf32>
    %1388 = vector.multi_reduction <add>, %1387, %cst_192 [1] : vector<8x6xf32> to vector<8xf32>
    %1389 = vector.shape_cast %1388 : vector<8xf32> to vector<8x1xf32>
    %1390 = vector.broadcast %1389 : vector<8x1xf32> to vector<8x6xf32>
    %1391 = arith.divf %1387, %1390 : vector<8x6xf32>
    %c8_193 = arith.constant 8 : index
    %c0_194 = arith.constant 0 : index
    %1392 = vector.load %arg20[%c8_193, %c0_194] : memref<16x6xf32, #tpu.memory_space<vmem>>, vector<8x6xf32>
    tpu.vector_store %arg20[%c8_193, %c0_194], %1391 {strides = array<i32>} : memref<16x6xf32, #tpu.memory_space<vmem>>, vector<8x6xf32>,
    return
  }
  func.func @transform_0(%arg0: i32, %arg1: memref<2xi32, #tpu.memory_space<smem>>) -> (i32, i32, i32) {
    %c0_i32 = arith.constant 0 : i32
    %c0_i32_0 = arith.constant 0 : i32
    %c0_i32_1 = arith.constant 0 : i32
    %c0_i32_2 = arith.constant 0 : i32
    return %c0_i32, %c0_i32_0, %c0_i32_1 : i32, i32, i32
  }
  func.func @transform_1(%arg0: i32, %arg1: memref<2xi32, #tpu.memory_space<smem>>) -> (i32, i32) {
    %c0_i32 = arith.constant 0 : i32
    %c0_i32_0 = arith.constant 0 : i32
    %c0_i32_1 = arith.constant 0 : i32
    return %c0_i32, %c0_i32_0 : i32, i32
  }
  func.func @transform_2(%arg0: i32, %arg1: memref<2xi32, #tpu.memory_space<smem>>) -> (i32, i32) {
    %c0_i32 = arith.constant 0 : i32
    %c0_i32_0 = arith.constant 0 : i32
    %c0_i32_1 = arith.constant 0 : i32
    return %c0_i32, %c0_i32_0 : i32, i32
  }
  func.func @transform_3(%arg0: i32, %arg1: memref<2xi32, #tpu.memory_space<smem>>) -> (i32, i32) {
    %c0_i32 = arith.constant 0 : i32
    %c0_i32_0 = arith.constant 0 : i32
    %c0_i32_1 = arith.constant 0 : i32
    return %c0_i32, %c0_i32_0 : i32, i32
  }
  func.func @transform_4(%arg0: i32, %arg1: memref<2xi32, #tpu.memory_space<smem>>) -> (i32, i32) {
    %c0_i32 = arith.constant 0 : i32
    %c0_i32_0 = arith.constant 0 : i32
    %c0_i32_1 = arith.constant 0 : i32
    return %c0_i32, %c0_i32_0 : i32, i32
  }
  func.func @transform_5(%arg0: i32, %arg1: memref<2xi32, #tpu.memory_space<smem>>) -> (i32, i32) {
    %c0_i32 = arith.constant 0 : i32
    %c0_i32_0 = arith.constant 0 : i32
    %c0_i32_1 = arith.constant 0 : i32
    return %c0_i32, %c0_i32_0 : i32, i32
  }
  func.func @transform_6(%arg0: i32, %arg1: memref<2xi32, #tpu.memory_space<smem>>) -> (i32, i32) {
    %c0_i32 = arith.constant 0 : i32
    %c0_i32_0 = arith.constant 0 : i32
    %c0_i32_1 = arith.constant 0 : i32
    return %c0_i32, %c0_i32_0 : i32, i32
  }
  func.func @transform_7(%arg0: i32, %arg1: memref<2xi32, #tpu.memory_space<smem>>) -> (i32, i32) {
    %c0_i32 = arith.constant 0 : i32
    %c0_i32_0 = arith.constant 0 : i32
    %c0_i32_1 = arith.constant 0 : i32
    return %c0_i32, %c0_i32_0 : i32, i32
  }
  func.func @transform_8(%arg0: i32, %arg1: memref<2xi32, #tpu.memory_space<smem>>) -> (i32, i32) {
    %c0_i32 = arith.constant 0 : i32
    %c0_i32_0 = arith.constant 0 : i32
    %c0_i32_1 = arith.constant 0 : i32
    return %c0_i32, %c0_i32_0 : i32, i32
  }
  func.func @transform_9(%arg0: i32, %arg1: memref<2xi32, #tpu.memory_space<smem>>) -> (i32, i32) {
    %c0_i32 = arith.constant 0 : i32
    %c0_i32_0 = arith.constant 0 : i32
    %c0_i32_1 = arith.constant 0 : i32
    return %c0_i32, %c0_i32_0 : i32, i32
  }
  func.func @transform_10(%arg0: i32, %arg1: memref<2xi32, #tpu.memory_space<smem>>) -> (i32, i32) {
    %c0_i32 = arith.constant 0 : i32
    %c0_i32_0 = arith.constant 0 : i32
    %c0_i32_1 = arith.constant 0 : i32
    return %c0_i32, %c0_i32_0 : i32, i32
  }
  func.func @transform_11(%arg0: i32, %arg1: memref<2xi32, #tpu.memory_space<smem>>) -> (i32, i32) {
    %c0_i32 = arith.constant 0 : i32
    %c0_i32_0 = arith.constant 0 : i32
    %c0_i32_1 = arith.constant 0 : i32
    return %c0_i32, %c0_i32_0 : i32, i32
  }
  func.func @transform_12(%arg0: i32, %arg1: memref<2xi32, #tpu.memory_space<smem>>) -> (i32, i32) {
    %c0_i32 = arith.constant 0 : i32
    %c0_i32_0 = arith.constant 0 : i32
    %c0_i32_1 = arith.constant 0 : i32
    return %c0_i32, %c0_i32_0 : i32, i32
  }
  func.func @transform_13(%arg0: i32, %arg1: memref<2xi32, #tpu.memory_space<smem>>) -> (i32, i32) {
    %c0_i32 = arith.constant 0 : i32
    %c0_i32_0 = arith.constant 0 : i32
    %c0_i32_1 = arith.constant 0 : i32
    return %c0_i32, %c0_i32_0 : i32, i32
  }
  func.func @transform_14(%arg0: i32, %arg1: memref<2xi32, #tpu.memory_space<smem>>) -> (i32, i32) {
    %c0_i32 = arith.constant 0 : i32
    %c0_i32_0 = arith.constant 0 : i32
    %c0_i32_1 = arith.constant 0 : i32
    return %c0_i32, %c0_i32_0 : i32, i32
  }
  func.func @transform_15(%arg0: i32, %arg1: memref<2xi32, #tpu.memory_space<smem>>) -> (i32, i32) {
    %c0_i32 = arith.constant 0 : i32
    %c0_i32_0 = arith.constant 0 : i32
    %c0_i32_1 = arith.constant 0 : i32
    return %c0_i32, %c0_i32_0 : i32, i32
  }
  func.func @transform_16(%arg0: i32, %arg1: memref<2xi32, #tpu.memory_space<smem>>) -> (i32, i32, i32) {
    %c0_i32 = arith.constant 0 : i32
    %c0_i32_0 = arith.constant 0 : i32
    %c0_i32_1 = arith.constant 0 : i32
    %c0_i32_2 = arith.constant 0 : i32
    return %c0_i32, %c0_i32_0, %c0_i32_1 : i32, i32, i32
  }
  func.func @transform_17(%arg0: i32, %arg1: memref<2xi32, #tpu.memory_space<smem>>) -> (i32, i32) {
    %c0_i32 = arith.constant 0 : i32
    %c0_i32_0 = arith.constant 0 : i32
    %c0_i32_1 = arith.constant 0 : i32
    return %c0_i32, %c0_i32_0 : i32, i32
  }
  func.func @transform_18(%arg0: i32, %arg1: memref<2xi32, #tpu.memory_space<smem>>) -> (i32, i32) {
    %c0_i32 = arith.constant 0 : i32
    %c0_i32_0 = arith.constant 0 : i32
    %c0_i32_1 = arith.constant 0 : i32
    return %c0_i32, %c0_i32_0 : i32, i32
  }
}

</mosaic_0001>

<bundles_post_ra>
// kernel: forward.2
= control target key start
LH: loop header
LB: loop body
LE: loop exit
PB: predicated region body
PF: predicated region fallthrough
CT: control target
= control target key end

     0   :  { %s5042_s0 = inlined_call_operand.vmem [shape: s32[2], index: 0, kind: input, shape index: {}]   ;;  %s5043_s1 = inlined_call_operand.vmem [shape: f32[2,8,81], index: 1, kind: input, shape index: {}]   ;;  %s5044_s2 = inlined_call_operand.vmem [shape: f32[81,256], index: 2, kind: input, shape index: {}]   ;;  %s5045_s3 = inlined_call_operand.vmem [shape: f32[1,256], index: 3, kind: input, shape index: {}]   ;;  %s5046_s4 = inlined_call_operand.vmem [shape: f32[64,256], index: 4, kind: input, shape index: {}]   ;;  %s5047_s5 = inlined_call_operand.vmem [shape: f32[64,256], index: 5, kind: input, shape index: {}]   ;;  %s5048_s6 = inlined_call_operand.vmem [shape: f32[1,256], index: 6, kind: input, shape index: {}]   ;;  %s5049_s7 = inlined_call_operand.vmem [shape: f32[64,256], index: 7, kind: input, shape index: {}]   ;;  %s5050_s8 = inlined_call_operand.vmem [shape: f32[128,64], index: 8, kind: input, shape index: {}]   ;;  %s5051_s9 = inlined_call_operand.vmem [shape: f32[1,64], index: 9, kind: input, shape index: {}]   ;;  %s5052_s10 = inlined_call_operand.vmem [shape: f32[64,12], index: 10, kind: input, shape index: {}]   ;;  %s5053_s11 = inlined_call_operand.vmem [shape: f32[1,12], index: 11, kind: input, shape index: {}]   ;;  %s5054_s12 = inlined_call_operand.vmem [shape: f32[16,12], index: 12, kind: output, shape index: {0}]   ;;  %s5055_s13 = inlined_call_operand.hbm [shape: f32[16,12], index: 13, kind: output, shape index: {1}]  }
   0x1   :  { %s19_s27 = sshll.u32 %s5042_s0, 4  ;;  %s20_s27 = int_to_ptr.vmem [resolvable:$true] %s19_s27 }
   0x2   :  { %s3906_s28 = scalar_lea.vmem %s20_s27, 16  ;;  %p3911_p1 = scmp.lt.s32.totalorder %s20_s27, %s20_s27 }
   0x3   :  { %p3907_p0 = scmp.ne.s32.totalorder %s20_s27, %s3906_s28  ;;  %p3912_p2 = scmp.lt.s32.totalorder %s3906_s28, %s3906_s28 }
   0x5   :  { %p3913_p3 = por %p3912_p2, %p3911_p1 }
   0x7   :  { %p3914_p4 = pnand %p3913_p3, %p3907_p0 }
   0x9   :  { %3917 = shalt.err (!%p3914_p4)  }
   0xa   :  { %s3944_s29 = smov [#allocation3]  }
   0xb   :  { %22 = dma.vmem_to_smem %s20_s27, 16, %s3944_s29, [#allocation2] }
   0xc   :  { %3940 = dma.done.wait [#allocation2], 16 }
   0xd   :  { %3941 = vsyncadd [#allocation2], 4294967280 }
   0xe   :  { %24 = sfence }
   0xf   :  { %v51_v0 = vld [vmem:[%s5044_s2 + $0x8] sm:$0xff]  ;;  %v53_v1 = vld [vmem:[%s5044_s2 + $0x18] sm:$0xff]  ;;  %v50_v2 = vld [vmem:[%s5044_s2] sm:$0xff]  ;;  %v3945_v7 = vmov 0.0  }
  0x10   :  { %v3413_v3 = vpack.c.bf16 %v53_v1, %v51_v0  ;;  %v52_v4 = vld [vmem:[%s5044_s2 + $0x10] sm:$0xff]  ;;  %v55_v5 = vld [vmem:[%s5044_s2 + $0x28] sm:$0xff]  ;;  %v57_v6 = vld [vmem:[%s5044_s2 + $0x38] sm:$0xff]  ;;  %178 = vmatprep.mubr.f32.mxu0 %v3945_v7  ;;  %259 = vmatprep.mubr.f32.mxu1 %v3945_v7 }
  0x11   :  { %v3415_v8 = vpack.c.bf16 %v52_v4, %v50_v2  ;;  %v3417_v9 = vpack.c.bf16 %v57_v6, %v55_v5  ;;  %v54_v10 = vld [vmem:[%s5044_s2 + $0x20] sm:$0xff]  ;;  %v56_v11 = vld [vmem:[%s5044_s2 + $0x30] sm:$0xff]  ;;  %v74_v12 = vld [vmem:[%s5046_s4 + $0x8] sm:$0xff] }
  0x12   :  { %3414 = vmatprep.subr.bf16.mxu0 %v3413_v3  ;;  %v76_v13 = vld [vmem:[%s5046_s4 + $0x18] sm:$0xff]  ;;  %v73_v14 = vld [vmem:[%s5046_s4] sm:$0xff]  ;;  %v75_v15 = vld [vmem:[%s5046_s4 + $0x10] sm:$0xff]  ;;  %v3419_v16 = vpack.c.bf16 %v56_v11, %v54_v10 }
  0x13   :  { %3416 = vmatpush1.bf16.msra.mxu0 %v3415_v8  ;;  %v4063_v17 = vpack.c.bf16 %v76_v13, %v74_v12  ;;  %v4065_v18 = vpack.c.bf16 %v75_v15, %v73_v14  ;;  %v59_v19 = vld [vmem:[%s5044_s2 + $0x48] sm:$0xff]  ;;  %v61_v20 = vld [vmem:[%s5044_s2 + $0x58] sm:$0xff]  ;;  %v58_v21 = vld [vmem:[%s5044_s2 + $0x40] sm:$0xff] }
  0x14   :  { %3418 = vmatprep.subr.bf16.mxu0 %v3417_v9  ;;  %v3421_v22 = vpack.c.bf16 %v61_v20, %v59_v19  ;;  %v60_v23 = vld [vmem:[%s5044_s2 + $0x50] sm:$0xff]  ;;  %v78_v24 = vld [vmem:[%s5046_s4 + $0x28] sm:$0xff]  ;;  %v80_v25 = vld [vmem:[%s5046_s4 + $0x38] sm:$0xff] }
  0x15   :  { %3434 = vmatprep.subr.bf16.mxu1 %v4063_v17  ;;  %v4086_v26 = vpack.c.bf16 %v80_v25, %v78_v24  ;;  %v77_v27 = vld [vmem:[%s5046_s4 + $0x20] sm:$0xff]  ;;  %v79_v28 = vld [vmem:[%s5046_s4 + $0x30] sm:$0xff]  ;;  %v63_v29 = vld [vmem:[%s5044_s2 + $0x68] sm:$0xff]  ;;  %v3423_v32 = vpack.c.bf16 %v60_v23, %v58_v21 }
  0x16   :  { %3436 = vmatpush1.bf16.msra.mxu1 %v4065_v18  ;;  %v4098_v30 = vpack.c.bf16 %v79_v28, %v77_v27  ;;  %v65_v31 = vld [vmem:[%s5044_s2 + $0x78] sm:$0xff]  ;;  %v82_v33 = vld [vmem:[%s5046_s4 + $0x48] sm:$0xff]  ;;  %v81_v35 = vld [vmem:[%s5046_s4 + $0x40] sm:$0xff] }
  0x17   :  { %3420 = vmatpush1.bf16.msra.mxu0 %v3419_v16  ;;  %3438 = vmatprep.subr.bf16.mxu1 %v4086_v26  ;;  %v84_v34 = vld [vmem:[%s5046_s4 + $0x58] sm:$0xff]  ;;  %v3425_v36 = vpack.c.bf16 %v65_v31, %v63_v29  ;;  %v62_v37 = vld [vmem:[%s5044_s2 + $0x60] sm:$0xff]  ;;  %v64_v38 = vld [vmem:[%s5044_s2 + $0x70] sm:$0xff] }
  0x18   :  { %3422 = vmatprep.subr.bf16.mxu0 %v3421_v22  ;;  %v4119_v39 = vpack.c.bf16 %v84_v34, %v82_v33  ;;  %v83_v40 = vld [vmem:[%s5046_s4 + $0x50] sm:$0xff]  ;;  %v67_v41 = vld [vmem:[%s5044_s2 + $0x88] sm:$0xff]  ;;  %v69_v42 = vld [vmem:[%s5044_s2 + $0x98] sm:$0xff]  ;;  %v3427_v46 = vpack.c.bf16 %v64_v38, %v62_v37 }
  0x19   :  { %v86_v43 = vld [vmem:[%s5046_s4 + $0x68] sm:$0xff]  ;;  %v4134_v44 = vpack.c.bf16 %v83_v40, %v81_v35  ;;  %v88_v45 = vld [vmem:[%s5046_s4 + $0x78] sm:$0xff]  ;;  %v85_v48 = vld [vmem:[%s5046_s4 + $0x60] sm:$0xff]  ;;  %v3429_v50 = vpack.c.bf16 %v69_v42, %v67_v41 }
  0x1a   :  { %3440 = vmatpush1.bf16.msra.mxu1 %v4098_v30  ;;  %v4140_v47 = vpack.c.bf16 %v88_v45, %v86_v43  ;;  %v87_v49 = vld [vmem:[%s5046_s4 + $0x70] sm:$0xff]  ;;  %v66_v51 = vld [vmem:[%s5044_s2 + $0x80] sm:$0xff] }
  0x1b   :  { %3424 = vmatpush1.bf16.msra.mxu0 %v3423_v32  ;;  %3442 = vmatprep.subr.bf16.mxu1 %v4119_v39  ;;  %v68_v52 = vld [vmem:[%s5044_s2 + $0x90] sm:$0xff] }
  0x1c   :  { %3426 = vmatprep.subr.bf16.mxu0 %v3425_v36 }
  0x1d   :  { %25 = vsyncpa [#allocation5], 0  ;;  %v4155_v53 = vpack.c.bf16 %v87_v49, %v85_v48  ;;  %v3431_v54 = vpack.c.bf16 %v68_v52, %v66_v51  ;;  %v71_v55 = vld [vmem:[%s5044_s2 + $0xa8] sm:$0x1]  ;;  %vm107_vm0 = vcmask 1040384   ;;  %v48_v57 = vld [vmem:[%s5043_s1] sm:$0xff]  ;;  %v90_v59 = vlaneseq }
  0x1e   :  { %3444 = vmatpush1.bf16.msra.mxu1 %v4134_v44  ;;  %v70_v56 = vld [vmem:[%s5044_s2 + $0xa0] sm:$0x1]  ;;  %vm100_vm1 = vcmask 662528   ;;  %v49_v58 = vld [vmem:[%s5043_s1 + $0x8] sm:$0xff]  ;;  %vm282_vm2 = vcmask 1041409   ;;  %vm289_vm3 = vcmask 1043459  }
  0x1f   :  { %3428 = vmatpush1.bf16.msra.mxu0 %v3427_v46  ;;  %3446 = vmatprep.subr.bf16.mxu1 %v4140_v47  ;;  %v4195_v60 = vshrl.u32 %v90_v59, 7  ;;  %v72_v62 = vld [vmem:[%s5045_s3] sm:$0x3]  ;;  %vm292_vm4 = vcmask 1041408   ;;  %s3946_s3 = smov 64   ;;  %s3947_s19 = smov 32  }
  0x20   :  { %3430 = vmatprep.subr.bf16.mxu0 %v3429_v50  ;;  %vm326_vm5 = vcmask 261120   ;;  %vm191_vm6 = vcmask 523264   ;;  %vm1527_vm7 = vcmask 1042432   ;;  %vm1530_vm8 = vcmask 1043456   ;;  %s4913_s27 = sld [smem:[#allocation3]]  ;;  %s4918_s28 = sld [smem:[#allocation3 + $0x1]] }
  0x21   :  { %v96_v61 = vsub.s32 1, %v4195_v60  ;;  %v4202_v63 = vsub.s32 0, %v4195_v60  ;;  %vm1533_vm9 = vcmask 1044480   ;;  %vm1536_vm10 = vcmask 1045504  }
  0x22   :  { %3448 = vmatpush1.bf16.msra.mxu1 %v4155_v53  ;;  %vm1539_vm11 = vcmask 1046528   ;;  %vm3241_vm14 = vcmask 97280  }
  0x23   :  { %3432 = vmatpush1.bf16.msra.mxu0 %v3431_v54  ;;  %3450 = vmatprep.subr.bf16.mxu1 %v4063_v17  ;;  %v97_v1 = vrot.slane %v72_v62, %v96_v61  ;;  %v93_v4 = vrot.slane %v72_v62, %v4202_v63 }
  0x24   :  { %3288 = vmatprep.subr.msk.mxu0 %vm107_vm0, %v71_v55 }
  0x25   :  { %260 = vmatmul.mubr.f32.vlgmr.msra.gmra.mrb[0].mxu1 %v3945_v7 }
  0x26   :  { %3452 = vmatpush1.bf16.msra.mxu1 %v4065_v18  ;;  %395 = vmatprep.mubr.f32.mxu1 %v3945_v7 }
  0x27   :  { %3289 = vmatpush1.msk.msra.mxu0 %vm107_vm0, %v70_v56  ;;  %3454 = vmatprep.subr.bf16.mxu1 %v4086_v26 }
  0x28   :  { %3290 = vmatmul.mubr.msk.f32.vlgmr.msra.gmra.mrb[0].mxu0 %vm100_vm1, %v48_v57  ;;  %3466 = vmatprep.subr.bf16.mxu0 %v4063_v17 }
  0x29   :  { %184 = vmatprep.mubr.f32.mxu0 %v3945_v7  ;;  %3468 = vmatpush1.bf16.msra.mxu0 %v4065_v18 }
  0x2a   :  { %3456 = vmatpush1.bf16.msra.mxu1 %v4098_v30  ;;  %3470 = vmatprep.subr.bf16.mxu0 %v4086_v26 }
  0x2b   :  { %3458 = vmatprep.subr.bf16.mxu1 %v4119_v39 }
  0x2c   :  { %3291 = vmatmul.mubr.msk.f32.gmra.mrb[2].mxu0 %vm100_vm1, %v49_v58 }
  0x2d   :  { %3472 = vmatpush1.bf16.msra.mxu0 %v4098_v30  ;;  %527 = vmatprep.mubr.f32.mxu0 %v3945_v7 }
  0x2e   :  { %3460 = vmatpush1.bf16.msra.mxu1 %v4134_v44  ;;  %3474 = vmatprep.subr.bf16.mxu0 %v4119_v39 }
  0x2f   :  { %3462 = vmatprep.subr.bf16.mxu1 %v4140_v47 }
  0x31   :  { %3476 = vmatpush1.bf16.msra.mxu0 %v4134_v44 }
  0x32   :  { %3464 = vmatpush1.bf16.msra.mxu1 %v4155_v53  ;;  %3478 = vmatprep.subr.bf16.mxu0 %v4140_v47 }
  0x33   :  { %3482 = vmatprep.subr.bf16.mxu1 %v4063_v17 }
  0x35   :  { %3480 = vmatpush1.bf16.msra.mxu0 %v4155_v53 }
  0x36   :  { %3498 = vmatprep.subr.bf16.mxu0 %v4063_v17 }
  0xf8   :  { %v261_v0 = vpop.f32.mrb[0].mxu1 }
  0xf9   :  { %v263_v2 = vpop.f32.mrb[1].mxu1  ;;  %v267_v9 = vrot.slane %v261_v0, 1 }
  0xfa   :  { %v273_v8 = vrot.slane %v263_v2, 1  ;;  %v274_v10 = vrot.slane %v263_v2, 2 }
  0xfb   :  { %v180_v3 = vpop.f32.mrb[0].mxu0 }
  0xfc   :  { %v182_v5 = vpop.f32.mrb[1].mxu0  ;;  %v4209_v12 = vadd.f32 %v180_v3, %v93_v4 }
  0xfd   :  { %v4207_v6 = vadd.f32 %v182_v5, %v97_v1 }
  0xfe   :  { %v270_v21 = vadd.f32 %v261_v0, %v4209_v12 }
  0xff   :  { %v186_v11 = vpop.f32.mrb[2].mxu0  ;;  %v277_v15 = vadd.f32 %v273_v8, %v4207_v6 }
 0x100   :  { %v4211_v13 = vadd.f32 %v186_v11, %v93_v4  ;;  %v188_v14 = vpop.f32.mrb[3].mxu0 }
 0x101   :  { %v4214_v16 = vadd.f32 %v188_v14, %v97_v1  ;;  %v287_v23 = vrot.slane %v277_v15, 5 }
 0x102   :  { %v271_v19 = vadd.f32 %v267_v9, %v4211_v13 }
 0x103   :  { %v278_v20 = vadd.f32 %v274_v10, %v4214_v16 }
 0x104   :  { %v281_v22 = vrot.slane %v271_v19, 7 }
 0x105   :  { %v288_v24 = vrot.slane %v278_v20, 4 }
 0x106   :  { %v283_v25 = vsel %vm282_vm2, %v281_v22, %v270_v21 }
 0x107   :  { %v290_v27 = vsel %vm289_vm3, %v288_v24, %v287_v23 }
 0x108   :  { %v293_v28 = vsel %vm292_vm4, %v283_v25, %v290_v27 }
 0x109   :  { %3766 = vtanh.f32 %v293_v28  ;;  %v3292_v31 = vmul.f32 -1.442695, %v293_v28 }
 0x10b   :  { %3768 = vpow2.f32 %v3292_v31 }
 0x113   :  { %v3767_v29 = vpop.eup %3766 }
 0x114   :  { %303 = vrot.lane.b32.xlu0 %v3767_v29, %s3946_s3 }
 0x115   :  { %v3769_v32 = vpop.eup %3768 }
 0x116   :  { %v297_v33 = vadd.f32 1.0, %v3769_v32 }
 0x118   :  { %3770 = vrcp.f32 %v297_v33 }
 0x122   :  { %v3771_v34 = vpop.eup %3770 }
 0x123   :  { %v301_v37 = vmul.f32 0.0, %v3771_v34 }
 0x186   :  { %v304_v35 = vpop.permute.xlu0 %303 }
 0x187   :  { %v306_v36 = vmul.f32 %v3771_v34, %v304_v35 }
 0x189   :  { %308 = vrot.lane.b32.xlu0 %v306_v36, %s3947_s19 }
 0x1fb   :  { %v309_v38 = vpop.permute.xlu0 %308 }
 0x1fc   :  { %v311_v40 = vadd.f32 %v309_v38, %v301_v37 }
 0x1fe   :  { %3772 = vtanh.f32 %v311_v40 }
 0x208   :  { %v3773_v41 = vpop.eup %3772 }
 0x209   :  { %314 = vrot.lane.b32.xlu1 %v3773_v41, %s3946_s3 }
 0x27b   :  { %v315_v42 = vpop.permute.xlu1 %314 }
 0x27c   :  { %v317_v43 = vmul.f32 %v3771_v34, %v315_v42 }
 0x27e   :  { %v322_v45 = vrot.slane %v317_v43, 2  ;;  %319 = vrot.lane.b32.xlu1 %v317_v43, %s3947_s19 }
 0x280   :  { %323 = vrot.lane.b32.xlu0 %v322_v45, %s3946_s3 }
 0x2f0   :  { %v4227_v46 = vpop.permute.xlu1 %319 }
 0x2f2   :  { %v4229_v48 = vpop.permute.xlu0 %323 }
 0x2f3   :  { %v327_v49 = vsel %vm326_vm5, %v4227_v46, %v4229_v48 }
 0x2f4   :  { %3293 = vmatmul.mubr.msk.f32.vlgmr.msra.gmra.mrb[2].mxu1 %vm191_vm6, %v327_v49 }
 0x2f5   :  { %3484 = vmatpush1.bf16.msra.mxu1 %v4065_v18  ;;  %661 = vmatprep.mubr.f32.mxu1 %v3945_v7 }
 0x2f6   :  { %3486 = vmatprep.subr.bf16.mxu1 %v4086_v26 }
 0x2f9   :  { %3488 = vmatpush1.bf16.msra.mxu1 %v4098_v30 }
 0x2fa   :  { %3490 = vmatprep.subr.bf16.mxu1 %v4119_v39 }
 0x2fd   :  { %3492 = vmatpush1.bf16.msra.mxu1 %v4134_v44 }
 0x2fe   :  { %3494 = vmatprep.subr.bf16.mxu1 %v4140_v47 }
 0x301   :  { %3496 = vmatpush1.bf16.msra.mxu1 %v4155_v53 }
 0x302   :  { %3514 = vmatprep.subr.bf16.mxu1 %v4063_v17 }
 0x3c7   :  { %v397_v50 = vpop.f32.mrb[2].mxu1 }
 0x3c8   :  { %v403_v51 = vrot.slane %v397_v50, 7  ;;  %v399_v52 = vpop.f32.mrb[3].mxu1  ;;  %v407_v59 = vadd.f32 %v397_v50, %v4211_v13 }
 0x3c9   :  { %v409_v54 = vrot.slane %v399_v52, 2  ;;  %v410_v55 = vrot.slane %v399_v52, 3 }
 0x3ca   :  { %v406_v56 = vadd.f32 %v403_v51, %v4209_v12 }
 0x3cb   :  { %v413_v57 = vadd.f32 %v409_v54, %v4207_v6  ;;  %v414_v58 = vadd.f32 %v410_v55, %v4214_v16 }
 0x3cc   :  { %v417_v62 = vrot.slane %v406_v56, 1 }
 0x3cd   :  { %v422_v0 = vrot.slane %v413_v57, 4  ;;  %v423_v1 = vrot.slane %v414_v58, 3 }
 0x3ce   :  { %v418_v2 = vsel %vm282_vm2, %v407_v59, %v417_v62 }
 0x3cf   :  { %v424_v3 = vsel %vm289_vm3, %v423_v1, %v422_v0 }
 0x3d0   :  { %v426_v4 = vsel %vm292_vm4, %v418_v2, %v424_v3 }
 0x3d1   :  { %3774 = vtanh.f32 %v426_v4  ;;  %v3294_v8 = vmul.f32 -1.442695, %v426_v4 }
 0x3d3   :  { %3776 = vpow2.f32 %v3294_v8 }
 0x3db   :  { %v3775_v5 = vpop.eup %3774 }
 0x3dc   :  { %436 = vrot.lane.b32.xlu1 %v3775_v5, %s3946_s3 }
 0x3dd   :  { %v3777_v9 = vpop.eup %3776 }
 0x3de   :  { %v430_v10 = vadd.f32 1.0, %v3777_v9 }
 0x3e0   :  { %3778 = vrcp.f32 %v430_v10 }
 0x3ea   :  { %v3779_v11 = vpop.eup %3778 }
 0x3eb   :  { %v434_v19 = vmul.f32 %v3779_v11, %v311_v40 }
 0x44e   :  { %v437_v14 = vpop.permute.xlu1 %436 }
 0x44f   :  { %v439_v15 = vmul.f32 %v3779_v11, %v437_v14 }
 0x451   :  { %441 = vrot.lane.b32.xlu0 %v439_v15, %s3947_s19 }
 0x4c3   :  { %v442_v20 = vpop.permute.xlu0 %441 }
 0x4c4   :  { %v444_v21 = vadd.f32 %v442_v20, %v434_v19 }
 0x4c6   :  { %3780 = vtanh.f32 %v444_v21 }
 0x4d0   :  { %v3781_v22 = vpop.eup %3780 }
 0x4d1   :  { %447 = vrot.lane.b32.xlu1 %v3781_v22, %s3946_s3 }
 0x543   :  { %v448_v23 = vpop.permute.xlu1 %447 }
 0x544   :  { %v450_v24 = vmul.f32 %v3779_v11, %v448_v23 }
 0x546   :  { %v455_v25 = vrot.slane %v450_v24, 2  ;;  %452 = vrot.lane.b32.xlu0 %v450_v24, %s3947_s19 }
 0x548   :  { %456 = vrot.lane.b32.xlu1 %v455_v25, %s3946_s3 }
 0x5b8   :  { %v4256_v27 = vpop.permute.xlu0 %452 }
 0x5ba   :  { %v4258_v28 = vpop.permute.xlu1 %456 }
 0x5bb   :  { %v459_v29 = vsel %vm326_vm5, %v4256_v27, %v4258_v28 }
 0x5bc   :  { %3295 = vmatmul.mubr.msk.f32.vlgmr.msra.gmra.mrb[4].mxu0 %vm191_vm6, %v459_v29 }
 0x5bd   :  { %3500 = vmatpush1.bf16.msra.mxu0 %v4065_v18  ;;  %795 = vmatprep.mubr.f32.mxu0 %v3945_v7 }
 0x5be   :  { %3502 = vmatprep.subr.bf16.mxu0 %v4086_v26 }
 0x5c1   :  { %3504 = vmatpush1.bf16.msra.mxu0 %v4098_v30 }
 0x5c2   :  { %3506 = vmatprep.subr.bf16.mxu0 %v4119_v39 }
 0x5c5   :  { %3508 = vmatpush1.bf16.msra.mxu0 %v4134_v44 }
 0x5c6   :  { %3510 = vmatprep.subr.bf16.mxu0 %v4140_v47 }
 0x5c9   :  { %3512 = vmatpush1.bf16.msra.mxu0 %v4155_v53 }
 0x5ca   :  { %3530 = vmatprep.subr.bf16.mxu0 %v4063_v17 }
 0x68f   :  { %v529_v31 = vpop.f32.mrb[4].mxu0 }
 0x690   :  { %v535_v32 = vrot.slane %v529_v31, 6  ;;  %v536_v33 = vrot.slane %v529_v31, 7  ;;  %v531_v34 = vpop.f32.mrb[5].mxu0 }
 0x691   :  { %v542_v35 = vrot.slane %v531_v34, 3  ;;  %v543_v36 = vrot.slane %v531_v34, 4 }
 0x692   :  { %v539_v37 = vadd.f32 %v535_v32, %v4209_v12  ;;  %v540_v38 = vadd.f32 %v536_v33, %v4211_v13 }
 0x693   :  { %v546_v40 = vadd.f32 %v542_v35, %v4207_v6  ;;  %v547_v41 = vadd.f32 %v543_v36, %v4214_v16 }
 0x694   :  { %v550_v42 = vrot.slane %v539_v37, 2  ;;  %v551_v43 = vrot.slane %v540_v38, 1 }
 0x695   :  { %v556_v45 = vrot.slane %v546_v40, 3  ;;  %v557_v49 = vrot.slane %v547_v41, 2 }
 0x696   :  { %v552_v50 = vsel %vm282_vm2, %v551_v43, %v550_v42 }
 0x697   :  { %v558_v51 = vsel %vm289_vm3, %v557_v49, %v556_v45 }
 0x698   :  { %v560_v52 = vsel %vm292_vm4, %v552_v50, %v558_v51 }
 0x699   :  { %3782 = vtanh.f32 %v560_v52  ;;  %v3296_v55 = vmul.f32 -1.442695, %v560_v52 }
 0x69b   :  { %3784 = vpow2.f32 %v3296_v55 }
 0x6a3   :  { %v3783_v54 = vpop.eup %3782 }
 0x6a4   :  { %570 = vrot.lane.b32.xlu0 %v3783_v54, %s3946_s3 }
 0x6a5   :  { %v3785_v56 = vpop.eup %3784 }
 0x6a6   :  { %v564_v57 = vadd.f32 1.0, %v3785_v56 }
 0x6a8   :  { %3786 = vrcp.f32 %v564_v57 }
 0x6b2   :  { %v3787_v58 = vpop.eup %3786 }
 0x6b3   :  { %v568_v0 = vmul.f32 %v3787_v58, %v444_v21 }
 0x716   :  { %v571_v59 = vpop.permute.xlu0 %570 }
 0x717   :  { %v573_v62 = vmul.f32 %v3787_v58, %v571_v59 }
 0x719   :  { %575 = vrot.lane.b32.xlu1 %v573_v62, %s3947_s19 }
 0x78b   :  { %v576_v1 = vpop.permute.xlu1 %575 }
 0x78c   :  { %v578_v2 = vadd.f32 %v576_v1, %v568_v0 }
 0x78e   :  { %3788 = vtanh.f32 %v578_v2 }
 0x798   :  { %v3789_v3 = vpop.eup %3788 }
 0x799   :  { %581 = vrot.lane.b32.xlu0 %v3789_v3, %s3946_s3 }
 0x80b   :  { %v582_v4 = vpop.permute.xlu0 %581 }
 0x80c   :  { %v584_v5 = vmul.f32 %v3787_v58, %v582_v4 }
 0x80e   :  { %v589_v8 = vrot.slane %v584_v5, 2  ;;  %586 = vrot.lane.b32.xlu1 %v584_v5, %s3947_s19 }
 0x810   :  { %590 = vrot.lane.b32.xlu0 %v589_v8, %s3946_s3 }
 0x880   :  { %v4285_v9 = vpop.permute.xlu1 %586 }
 0x882   :  { %v4287_v10 = vpop.permute.xlu0 %590 }
 0x883   :  { %v593_v11 = vsel %vm326_vm5, %v4285_v9, %v4287_v10 }
 0x884   :  { %3297 = vmatmul.mubr.msk.f32.vlgmr.msra.gmra.mrb[4].mxu1 %vm191_vm6, %v593_v11 }
 0x885   :  { %3516 = vmatpush1.bf16.msra.mxu1 %v4065_v18  ;;  %928 = vmatprep.mubr.f32.mxu1 %v3945_v7 }
 0x886   :  { %3518 = vmatprep.subr.bf16.mxu1 %v4086_v26 }
 0x889   :  { %3520 = vmatpush1.bf16.msra.mxu1 %v4098_v30 }
 0x88a   :  { %3522 = vmatprep.subr.bf16.mxu1 %v4119_v39 }
 0x88d   :  { %3524 = vmatpush1.bf16.msra.mxu1 %v4134_v44 }
 0x88e   :  { %3526 = vmatprep.subr.bf16.mxu1 %v4140_v47 }
 0x891   :  { %3528 = vmatpush1.bf16.msra.mxu1 %v4155_v53 }
 0x892   :  { %3546 = vmatprep.subr.bf16.mxu1 %v4063_v17 }
 0x957   :  { %v663_v14 = vpop.f32.mrb[4].mxu1 }
 0x958   :  { %v669_v15 = vrot.slane %v663_v14, 5  ;;  %v670_v19 = vrot.slane %v663_v14, 6  ;;  %v665_v20 = vpop.f32.mrb[5].mxu1 }
 0x959   :  { %v676_v21 = vrot.slane %v665_v20, 4  ;;  %v677_v22 = vrot.slane %v665_v20, 5 }
 0x95a   :  { %v673_v23 = vadd.f32 %v669_v15, %v4209_v12  ;;  %v674_v24 = vadd.f32 %v670_v19, %v4211_v13 }
 0x95b   :  { %v680_v25 = vadd.f32 %v676_v21, %v4207_v6  ;;  %v681_v29 = vadd.f32 %v677_v22, %v4214_v16 }
 0x95c   :  { %v684_v31 = vrot.slane %v673_v23, 3  ;;  %v685_v32 = vrot.slane %v674_v24, 2 }
 0x95d   :  { %v690_v33 = vrot.slane %v680_v25, 2  ;;  %v691_v34 = vrot.slane %v681_v29, 1 }
 0x95e   :  { %v686_v17 = vsel %vm282_vm2, %v685_v32, %v684_v31 }
 0x95f   :  { %v692_v35 = vsel %vm289_vm3, %v691_v34, %v690_v33 }
 0x960   :  { %v694_v36 = vsel %vm292_vm4, %v686_v17, %v692_v35 }
 0x961   :  { %3790 = vtanh.f32 %v694_v36  ;;  %v3298_v38 = vmul.f32 -1.442695, %v694_v36 }
 0x963   :  { %3792 = vpow2.f32 %v3298_v38 }
 0x96b   :  { %v3791_v37 = vpop.eup %3790 }
 0x96c   :  { %704 = vrot.lane.b32.xlu1 %v3791_v37, %s3946_s3 }
 0x96d   :  { %v3793_v40 = vpop.eup %3792 }
 0x96e   :  { %v698_v41 = vadd.f32 1.0, %v3793_v40 }
 0x970   :  { %3794 = vrcp.f32 %v698_v41 }
 0x97a   :  { %v3795_v42 = vpop.eup %3794 }
 0x97b   :  { %v702_v49 = vmul.f32 %v3795_v42, %v578_v2 }
 0x9de   :  { %v705_v43 = vpop.permute.xlu1 %704 }
 0x9df   :  { %v707_v45 = vmul.f32 %v3795_v42, %v705_v43 }
 0x9e1   :  { %709 = vrot.lane.b32.xlu0 %v707_v45, %s3947_s19 }
 0xa53   :  { %v710_v50 = vpop.permute.xlu0 %709 }
 0xa54   :  { %v712_v51 = vadd.f32 %v710_v50, %v702_v49 }
 0xa56   :  { %3796 = vtanh.f32 %v712_v51 }
 0xa60   :  { %v3797_v52 = vpop.eup %3796 }
 0xa61   :  { %715 = vrot.lane.b32.xlu1 %v3797_v52, %s3946_s3 }
 0xad3   :  { %v716_v54 = vpop.permute.xlu1 %715 }
 0xad4   :  { %v718_v55 = vmul.f32 %v3795_v42, %v716_v54 }
 0xad6   :  { %v723_v56 = vrot.slane %v718_v55, 2  ;;  %720 = vrot.lane.b32.xlu0 %v718_v55, %s3947_s19 }
 0xad8   :  { %724 = vrot.lane.b32.xlu1 %v723_v56, %s3946_s3 }
 0xb48   :  { %v4314_v57 = vpop.permute.xlu0 %720 }
 0xb4a   :  { %v4316_v58 = vpop.permute.xlu1 %724 }
 0xb4b   :  { %v727_v59 = vsel %vm326_vm5, %v4314_v57, %v4316_v58 }
 0xb4c   :  { %3299 = vmatmul.mubr.msk.f32.vlgmr.msra.gmra.mrb[6].mxu0 %vm191_vm6, %v727_v59 }
 0xb4d   :  { %3532 = vmatpush1.bf16.msra.mxu0 %v4065_v18  ;;  %1061 = vmatprep.mubr.f32.mxu0 %v3945_v7 }
 0xb4e   :  { %3534 = vmatprep.subr.bf16.mxu0 %v4086_v26 }
 0xb51   :  { %3536 = vmatpush1.bf16.msra.mxu0 %v4098_v30 }
 0xb52   :  { %3538 = vmatprep.subr.bf16.mxu0 %v4119_v39 }
 0xb55   :  { %3540 = vmatpush1.bf16.msra.mxu0 %v4134_v44 }
 0xb56   :  { %3542 = vmatprep.subr.bf16.mxu0 %v4140_v47 }
 0xb59   :  { %3544 = vmatpush1.bf16.msra.mxu0 %v4155_v53 }
 0xc1f   :  { %v797_v62 = vpop.f32.mrb[6].mxu0 }
 0xc20   :  { %v803_v0 = vrot.slane %v797_v62, 4  ;;  %v804_v1 = vrot.slane %v797_v62, 5  ;;  %v799_v2 = vpop.f32.mrb[7].mxu0 }
 0xc21   :  { %v810_v3 = vrot.slane %v799_v2, 5  ;;  %v811_v4 = vrot.slane %v799_v2, 6 }
 0xc22   :  { %v807_v5 = vadd.f32 %v803_v0, %v4209_v12  ;;  %v808_v8 = vadd.f32 %v804_v1, %v4211_v13 }
 0xc23   :  { %v814_v11 = vadd.f32 %v810_v3, %v4207_v6  ;;  %v815_v19 = vadd.f32 %v811_v4, %v4214_v16 }
 0xc24   :  { %v818_v14 = vrot.slane %v807_v5, 4  ;;  %v819_v15 = vrot.slane %v808_v8, 3 }
 0xc25   :  { %v824_v20 = vrot.slane %v814_v11, 1 }
 0xc26   :  { %v820_v21 = vsel %vm282_vm2, %v819_v15, %v818_v14 }
 0xc27   :  { %v825_v22 = vsel %vm289_vm3, %v815_v19, %v824_v20 }
 0xc28   :  { %v827_v23 = vsel %vm292_vm4, %v820_v21, %v825_v22 }
 0xc29   :  { %3798 = vtanh.f32 %v827_v23  ;;  %v3300_v25 = vmul.f32 -1.442695, %v827_v23 }
 0xc2b   :  { %3800 = vpow2.f32 %v3300_v25 }
 0xc33   :  { %v3799_v24 = vpop.eup %3798 }
 0xc34   :  { %837 = vrot.lane.b32.xlu0 %v3799_v24, %s3946_s3 }
 0xc35   :  { %v3801_v29 = vpop.eup %3800 }
 0xc36   :  { %v831_v31 = vadd.f32 1.0, %v3801_v29 }
 0xc38   :  { %3802 = vrcp.f32 %v831_v31 }
 0xc42   :  { %v3803_v32 = vpop.eup %3802 }
 0xc43   :  { %v835_v17 = vmul.f32 %v3803_v32, %v712_v51 }
 0xca6   :  { %v838_v33 = vpop.permute.xlu0 %837 }
 0xca7   :  { %v840_v34 = vmul.f32 %v3803_v32, %v838_v33 }
 0xca9   :  { %842 = vrot.lane.b32.xlu1 %v840_v34, %s3947_s19 }
 0xd1b   :  { %v843_v35 = vpop.permute.xlu1 %842 }
 0xd1c   :  { %v845_v36 = vadd.f32 %v843_v35, %v835_v17 }
 0xd1e   :  { %3804 = vtanh.f32 %v845_v36 }
 0xd28   :  { %v3805_v37 = vpop.eup %3804 }
 0xd29   :  { %848 = vrot.lane.b32.xlu0 %v3805_v37, %s3946_s3 }
 0xd9b   :  { %v849_v38 = vpop.permute.xlu0 %848 }
 0xd9c   :  { %v851_v40 = vmul.f32 %v3803_v32, %v849_v38 }
 0xd9e   :  { %v856_v41 = vrot.slane %v851_v40, 2  ;;  %853 = vrot.lane.b32.xlu1 %v851_v40, %s3947_s19 }
 0xda0   :  { %857 = vrot.lane.b32.xlu0 %v856_v41, %s3946_s3 }
 0xe10   :  { %v4342_v42 = vpop.permute.xlu1 %853 }
 0xe12   :  { %v4344_v43 = vpop.permute.xlu0 %857 }
 0xe13   :  { %v860_v45 = vsel %vm326_vm5, %v4342_v42, %v4344_v43 }
 0xe14   :  { %3301 = vmatmul.mubr.msk.f32.vlgmr.msra.gmra.mrb[6].mxu1 %vm191_vm6, %v860_v45 }
 0xe15   :  { %3548 = vmatpush1.bf16.msra.mxu1 %v4065_v18  ;;  %1194 = vmatprep.mubr.f32.mxu1 %v3945_v7 }
 0xe16   :  { %3550 = vmatprep.subr.bf16.mxu1 %v4086_v26 }
 0xe19   :  { %3552 = vmatpush1.bf16.msra.mxu1 %v4098_v30 }
 0xe1a   :  { %3554 = vmatprep.subr.bf16.mxu1 %v4119_v39 }
 0xe1d   :  { %3556 = vmatpush1.bf16.msra.mxu1 %v4134_v44 }
 0xe1e   :  { %3558 = vmatprep.subr.bf16.mxu1 %v4140_v47 }
 0xe21   :  { %3560 = vmatpush1.bf16.msra.mxu1 %v4155_v53 }
 0xee7   :  { %v930_v49 = vpop.f32.mrb[6].mxu1 }
 0xee8   :  { %v936_v50 = vrot.slane %v930_v49, 3  ;;  %v937_v51 = vrot.slane %v930_v49, 4  ;;  %v932_v52 = vpop.f32.mrb[7].mxu1 }
 0xee9   :  { %v943_v54 = vrot.slane %v932_v52, 6  ;;  %v944_v18 = vrot.slane %v932_v52, 7 }
 0xeea   :  { %v940_v55 = vadd.f32 %v936_v50, %v4209_v12  ;;  %v941_v26 = vadd.f32 %v937_v51, %v4211_v13 }
 0xeeb   :  { %v948_v30 = vadd.f32 %v944_v18, %v4214_v16  ;;  %v947_v44 = vadd.f32 %v943_v54, %v4207_v6 }
 0xeec   :  { %v951_v56 = vrot.slane %v940_v55, 5  ;;  %v952_v39 = vrot.slane %v941_v26, 4 }
 0xeed   :  { %v957_v59 = vrot.slane %v948_v30, 7 }
 0xeee   :  { %v953_v47 = vsel %vm282_vm2, %v952_v39, %v951_v56 }
 0xeef   :  { %v958_v53 = vsel %vm289_vm3, %v957_v59, %v947_v44 }
 0xef0   :  { %v960_v62 = vsel %vm292_vm4, %v953_v47, %v958_v53 }
 0xef1   :  { %3806 = vtanh.f32 %v960_v62  ;;  %v3302_v1 = vmul.f32 -1.442695, %v960_v62 }
 0xef3   :  { %3808 = vpow2.f32 %v3302_v1 }
 0xefb   :  { %v3807_v0 = vpop.eup %3806 }
 0xefc   :  { %970 = vrot.lane.b32.xlu1 %v3807_v0, %s3946_s3 }
 0xefd   :  { %v3809_v2 = vpop.eup %3808 }
 0xefe   :  { %v964_v3 = vadd.f32 1.0, %v3809_v2 }
 0xf00   :  { %3810 = vrcp.f32 %v964_v3 }
 0xf0a   :  { %v3811_v4 = vpop.eup %3810 }
 0xf0b   :  { %v968_v11 = vmul.f32 %v3811_v4, %v845_v36 }
 0xf6e   :  { %v971_v5 = vpop.permute.xlu1 %970 }
 0xf6f   :  { %v973_v8 = vmul.f32 %v3811_v4, %v971_v5 }
 0xf71   :  { %975 = vrot.lane.b32.xlu0 %v973_v8, %s3947_s19 }
 0xfe3   :  { %v976_v14 = vpop.permute.xlu0 %975 }
 0xfe4   :  { %v978_v15 = vadd.f32 %v976_v14, %v968_v11 }
 0xfe6   :  { %3812 = vtanh.f32 %v978_v15 }
 0xff0   :  { %v3813_v19 = vpop.eup %3812 }
 0xff1   :  { %981 = vrot.lane.b32.xlu1 %v3813_v19, %s3946_s3 }
0x1063   :  { %v982_v20 = vpop.permute.xlu1 %981 }
0x1064   :  { %v984_v21 = vmul.f32 %v3811_v4, %v982_v20 }
0x1066   :  { %v989_v22 = vrot.slane %v984_v21, 2  ;;  %986 = vrot.lane.b32.xlu0 %v984_v21, %s3947_s19 }
0x1068   :  { %990 = vrot.lane.b32.xlu1 %v989_v22, %s3946_s3 }
0x10d8   :  { %v4370_v23 = vpop.permute.xlu0 %986 }
0x10da   :  { %v4372_v24 = vpop.permute.xlu1 %990 }
0x10db   :  { %v993_v25 = vsel %vm326_vm5, %v4370_v23, %v4372_v24 }
0x10dc   :  { %3303 = vmatmul.mubr.msk.f32.vlgmr.msra.gmra.mrb[8].mxu0 %vm191_vm6, %v993_v25 }
0x10dd   :  { %1656 = vmatprep.mubr.f32.mxu0 %v3945_v7 }
0x11af   :  { %v1063_v29 = vpop.f32.mrb[8].mxu0 }
0x11b0   :  { %v1069_v31 = vrot.slane %v1063_v29, 2  ;;  %v1070_v32 = vrot.slane %v1063_v29, 3  ;;  %v1065_v33 = vpop.f32.mrb[9].mxu0 }
0x11b1   :  { %v1076_v34 = vrot.slane %v1065_v33, 7  ;;  %v1080_v17 = vadd.f32 %v1065_v33, %v4214_v16 }
0x11b2   :  { %v1073_v35 = vadd.f32 %v1069_v31, %v4209_v12  ;;  %v1074_v36 = vadd.f32 %v1070_v32, %v4211_v13 }
0x11b3   :  { %v1079_v37 = vadd.f32 %v1076_v34, %v4207_v6  ;;  %v1090_v45 = vrot.slane %v1080_v17, 6 }
0x11b4   :  { %v1083_v38 = vrot.slane %v1073_v35, 6  ;;  %v1084_v40 = vrot.slane %v1074_v36, 5 }
0x11b5   :  { %v1089_v41 = vrot.slane %v1079_v37, 7 }
0x11b6   :  { %v1085_v49 = vsel %vm282_vm2, %v1084_v40, %v1083_v38 }
0x11b7   :  { %v1091_v50 = vsel %vm289_vm3, %v1090_v45, %v1089_v41  ;;  %v1543_v41 = vld [vmem:[%s5047_s5 + $0x8] sm:$0xff]  ;;  %v1545_v45 = vld [vmem:[%s5047_s5 + $0x18] sm:$0xff] }
0x11b8   :  { %v1093_v51 = vsel %vm292_vm4, %v1085_v49, %v1091_v50  ;;  %v1560_v49 = vld [vmem:[%s5049_s7 + $0x8] sm:$0xff]  ;;  %v3561_v50 = vpack.c.bf16 %v1545_v45, %v1543_v41  ;;  %v1571_v45 = vld [vmem:[%s5049_s7 + $0x60] sm:$0xff] }
0x11b9   :  { %3814 = vtanh.f32 %v1093_v51  ;;  %v3304_v54 = vmul.f32 -1.442695, %v1093_v51  ;;  %v1562_v51 = vld [vmem:[%s5049_s7 + $0x18] sm:$0xff] }
0x11ba   :  { %3562 = vmatprep.subr.bf16.mxu0 %v3561_v50 }
0x11bb   :  { %3816 = vpow2.f32 %v3304_v54  ;;  %v1544_v54 = vld [vmem:[%s5047_s5 + $0x10] sm:$0xff] }
0x11c3   :  { %v3815_v52 = vpop.eup %3814 }
0x11c4   :  { %1103 = vrot.lane.b32.xlu0 %v3815_v52, %s3946_s3  ;;  %v1542_v52 = vld [vmem:[%s5047_s5] sm:$0xff] }
0x11c5   :  { %v3817_v18 = vpop.eup %3816 }
0x11c6   :  { %v1097_v55 = vadd.f32 1.0, %v3817_v18  ;;  %v4431_v18 = vpack.c.bf16 %v1562_v51, %v1560_v49  ;;  %v1573_v49 = vld [vmem:[%s5049_s7 + $0x70] sm:$0xff] }
0x11c7   :  { %v4530_v51 = vpack.c.bf16 %v1573_v49, %v1571_v45 }
0x11c8   :  { %3818 = vrcp.f32 %v1097_v55  ;;  %v3563_v55 = vpack.c.bf16 %v1544_v54, %v1542_v52  ;;  %3578 = vmatprep.subr.bf16.mxu1 %v4431_v18 }
0x11ca   :  { %3564 = vmatpush1.bf16.msra.mxu0 %v3563_v55 }
0x11d2   :  { %v3819_v26 = vpop.eup %3818 }
0x11d3   :  { %v1101_v39 = vmul.f32 %v3819_v26, %v978_v15 }
0x1236   :  { %v1104_v30 = vpop.permute.xlu0 %1103 }
0x1237   :  { %v1106_v56 = vmul.f32 %v3819_v26, %v1104_v30  ;;  %v1561_v30 = vld [vmem:[%s5049_s7 + $0x10] sm:$0xff] }
0x1239   :  { %1108 = vrot.lane.b32.xlu1 %v1106_v56, %s3947_s19 }
0x12ab   :  { %v1109_v44 = vpop.permute.xlu1 %1108 }
0x12ac   :  { %v1111_v59 = vadd.f32 %v1109_v44, %v1101_v39  ;;  %v1547_v44 = vld [vmem:[%s5047_s5 + $0x28] sm:$0xff] }
0x12ae   :  { %3820 = vtanh.f32 %v1111_v59 }
0x12b8   :  { %v3821_v47 = vpop.eup %3820 }
0x12b9   :  { %1114 = vrot.lane.b32.xlu0 %v3821_v47, %s3946_s3  ;;  %v1564_v47 = vld [vmem:[%s5049_s7 + $0x28] sm:$0xff] }
0x132b   :  { %v1115_v53 = vpop.permute.xlu0 %1114 }
0x132c   :  { %v1117_v62 = vmul.f32 %v3819_v26, %v1115_v53  ;;  %v1559_v26 = vld [vmem:[%s5049_s7] sm:$0xff] }
0x132d   :  { %v4439_v56 = vpack.c.bf16 %v1561_v30, %v1559_v26 }
0x132e   :  { %v1122_v0 = vrot.slane %v1117_v62, 2  ;;  %1119 = vrot.lane.b32.xlu1 %v1117_v62, %s3947_s19  ;;  %v1566_v62 = vld [vmem:[%s5049_s7 + $0x38] sm:$0xff] }
0x1330   :  { %1123 = vrot.lane.b32.xlu0 %v1122_v0, %s3946_s3  ;;  %v1546_v0 = vld [vmem:[%s5047_s5 + $0x20] sm:$0xff] }
0x13a0   :  { %v4391_v1 = vpop.permute.xlu1 %1119 }
0x13a2   :  { %v4393_v2 = vpop.permute.xlu0 %1123 }
0x13a3   :  { %v1126_v3 = vsel %vm326_vm5, %v4391_v1, %v4393_v2 }
0x13a4   :  { %3305 = vmatmul.mubr.msk.f32.vlgmr.msra.gmra.mrb[8].mxu1 %vm191_vm6, %v1126_v3  ;;  %v1548_v3 = vld [vmem:[%s5047_s5 + $0x30] sm:$0xff] }
0x13a5   :  { %1733 = vmatprep.mubr.f32.mxu1 %v3945_v7  ;;  %3580 = vmatpush1.bf16.msra.mxu1 %v4439_v56 }
0x1477   :  { %v1196_v4 = vpop.f32.mrb[8].mxu1 }
0x1478   :  { %v1202_v5 = vrot.slane %v1196_v4, 1  ;;  %v1203_v8 = vrot.slane %v1196_v4, 2  ;;  %v1198_v11 = vpop.f32.mrb[9].mxu1  ;;  %v4462_v4 = vpack.c.bf16 %v1566_v62, %v1564_v47  ;;  %v1261_v62 = vsel %vm326_vm5, %v4370_v23, %v4287_v10 }
0x1479   :  { %v1209_v14 = vrot.slane %v1198_v11, 1  ;;  %v1212_v15 = vadd.f32 %v1198_v11, %v4207_v6  ;;  %v1565_v11 = vld [vmem:[%s5049_s7 + $0x30] sm:$0xff] }
0x147a   :  { %v1206_v19 = vadd.f32 %v1202_v5, %v4209_v12  ;;  %v1207_v20 = vadd.f32 %v1203_v8, %v4211_v13  ;;  %v3567_v5 = vpack.c.bf16 %v1548_v3, %v1546_v0  ;;  %v1563_v8 = vld [vmem:[%s5049_s7 + $0x20] sm:$0xff]  ;;  %3582 = vmatprep.subr.bf16.mxu1 %v4462_v4 }
0x147b   :  { %v1213_v21 = vadd.f32 %v1209_v14, %v4214_v16  ;;  %v1222_v29 = vrot.slane %v1212_v15, 6  ;;  %v4470_v14 = vpack.c.bf16 %v1565_v11, %v1563_v8  ;;  %v1551_v15 = vld [vmem:[%s5047_s5 + $0x48] sm:$0xff] }
0x147c   :  { %v1216_v22 = vrot.slane %v1206_v19, 7  ;;  %v1217_v25 = vrot.slane %v1207_v20, 6  ;;  %v1553_v19 = vld [vmem:[%s5047_s5 + $0x58] sm:$0xff]  ;;  %v1568_v20 = vld [vmem:[%s5049_s7 + $0x48] sm:$0xff] }
0x147d   :  { %v1223_v31 = vrot.slane %v1213_v21, 5  ;;  %3584 = vmatpush1.bf16.msra.mxu1 %v4470_v14  ;;  %v3569_v21 = vpack.c.bf16 %v1553_v19, %v1551_v15 }
0x147e   :  { %v1218_v32 = vsel %vm282_vm2, %v1217_v25, %v1216_v22  ;;  %v1570_v22 = vld [vmem:[%s5049_s7 + $0x58] sm:$0xff]  ;;  %v1550_v25 = vld [vmem:[%s5047_s5 + $0x40] sm:$0xff] }
0x147f   :  { %v1224_v33 = vsel %vm289_vm3, %v1223_v31, %v1222_v29  ;;  %v1552_v29 = vld [vmem:[%s5047_s5 + $0x50] sm:$0xff]  ;;  %v4492_v31 = vpack.c.bf16 %v1570_v22, %v1568_v20 }
0x1480   :  { %v1226_v34 = vsel %vm292_vm4, %v1218_v32, %v1224_v33  ;;  %v3571_v32 = vpack.c.bf16 %v1552_v29, %v1550_v25  ;;  %v1567_v33 = vld [vmem:[%s5049_s7 + $0x40] sm:$0xff] }
0x1481   :  { %3822 = vtanh.f32 %v1226_v34  ;;  %v3306_v6 = vmul.f32 -1.442695, %v1226_v34  ;;  %v1569_v34 = vld [vmem:[%s5049_s7 + $0x50] sm:$0xff]  ;;  %3586 = vmatprep.subr.bf16.mxu1 %v4492_v31 }
0x1483   :  { %3824 = vpow2.f32 %v3306_v6  ;;  %v1555_v6 = vld [vmem:[%s5047_s5 + $0x68] sm:$0xff] }
0x148b   :  { %v3823_v17 = vpop.eup %3822 }
0x148c   :  { %1236 = vrot.lane.b32.xlu1 %v3823_v17, %s3946_s3  ;;  %v4500_v17 = vpack.c.bf16 %v1569_v34, %v1567_v33 }
0x148d   :  { %v3825_v12 = vpop.eup %3824 }
0x148e   :  { %v1230_v13 = vadd.f32 1.0, %v3825_v12  ;;  %v1557_v12 = vld [vmem:[%s5047_s5 + $0x78] sm:$0xff]  ;;  %3588 = vmatpush1.bf16.msra.mxu1 %v4500_v17 }
0x1490   :  { %3826 = vrcp.f32 %v1230_v13  ;;  %v1572_v13 = vld [vmem:[%s5049_s7 + $0x68] sm:$0xff] }
0x149a   :  { %v4408_v16 = vpop.eup %3826 }
0x149b   :  { %v1234_v37 = vmul.f32 %v4408_v16, %v1111_v59  ;;  %v1549_v59 = vld [vmem:[%s5047_s5 + $0x38] sm:$0xff] }
0x149c   :  { %v3565_v53 = vpack.c.bf16 %v1549_v59, %v1547_v44  ;;  %v1259_v44 = vsel %vm326_vm5, %v4314_v57, %v4344_v43 }
0x149e   :  { %3566 = vmatprep.subr.bf16.mxu0 %v3565_v53  ;;  %v1257_v53 = vsel %vm326_vm5, %v4256_v27, %v4393_v2  ;;  %v1262_v27 = vsel %vm326_vm5, %v4391_v1, %v4258_v28 }
0x149f   :  { %3568 = vmatpush1.bf16.msra.mxu0 %v3567_v5 }
0x14a0   :  { %3570 = vmatprep.subr.bf16.mxu0 %v3569_v21 }
0x14a3   :  { %3572 = vmatpush1.bf16.msra.mxu0 %v3571_v32 }
0x14fe   :  { %v1237_v35 = vpop.permute.xlu1 %1236 }
0x14ff   :  { %v1239_v36 = vmul.f32 %v4408_v16, %v1237_v35  ;;  %v3573_v35 = vpack.c.bf16 %v1557_v12, %v1555_v6 }
0x1501   :  { %1241 = vrot.lane.b32.xlu0 %v1239_v36, %s3947_s19  ;;  %v1574_v36 = vld [vmem:[%s5049_s7 + $0x78] sm:$0xff]  ;;  %3574 = vmatprep.subr.bf16.mxu0 %v3573_v35 }
0x1573   :  { %v1242_v38 = vpop.permute.xlu0 %1241 }
0x1574   :  { %v1244_v40 = vadd.f32 %v1242_v38, %v1234_v37  ;;  %v1554_v37 = vld [vmem:[%s5047_s5 + $0x60] sm:$0xff]  ;;  %v1556_v38 = vld [vmem:[%s5047_s5 + $0x70] sm:$0xff] }
0x1575   :  { %v3575_v41 = vpack.c.bf16 %v1556_v38, %v1554_v37 }
0x1576   :  { %3828 = vtanh.f32 %v1244_v40  ;;  %v4522_v40 = vpack.c.bf16 %v1574_v36, %v1572_v13 }
0x1577   :  { %3576 = vmatpush1.bf16.msra.mxu0 %v3575_v41 }
0x1578   :  { %3590 = vmatprep.subr.bf16.mxu1 %v4522_v40  ;;  %3594 = vmatprep.subr.bf16.mxu0 %v4431_v18 }
0x1579   :  { %3592 = vmatpush1.bf16.msra.mxu1 %v4530_v51 }
0x157a   :  { %3610 = vmatprep.subr.bf16.mxu1 %v4431_v18 }
0x157c   :  { %1734 = vmatmul.mubr.f32.vlgmr.msra.gmra.mrb[10].mxu1 %v3945_v7 }
0x157d   :  { %3612 = vmatpush1.bf16.msra.mxu1 %v4439_v56  ;;  %1997 = vmatprep.mubr.f32.mxu1 %v3945_v7 }
0x157e   :  { %3614 = vmatprep.subr.bf16.mxu1 %v4462_v4 }
0x1580   :  { %v3829_v39 = vpop.eup %3828 }
0x1581   :  { %1247 = vrot.lane.b32.xlu1 %v3829_v39, %s3946_s3  ;;  %3616 = vmatpush1.bf16.msra.mxu1 %v4470_v14  ;;  %v1260_v39 = vsel %vm326_vm5, %v4342_v42, %v4316_v58  ;;  %v1258_v58 = vsel %vm326_vm5, %v4285_v9, %v4372_v24 }
0x1582   :  { %3618 = vmatprep.subr.bf16.mxu1 %v4492_v31 }
0x1585   :  { %3620 = vmatpush1.bf16.msra.mxu1 %v4500_v17 }
0x1586   :  { %3622 = vmatprep.subr.bf16.mxu1 %v4522_v40 }
0x1589   :  { %3624 = vmatpush1.bf16.msra.mxu1 %v4530_v51 }
0x158a   :  { %3642 = vmatprep.subr.bf16.mxu1 %v4431_v18 }
0x15f3   :  { %v1248_v50 = vpop.permute.xlu1 %1247 }
0x15f4   :  { %v1250_v52 = vmul.f32 %v4408_v16, %v1248_v50  ;;  %v3948_v16 = vmov 1966171168  }
0x15f5   :  { %v1269_v55 = vunpack.c.l.s4 %v3948_v16 }
0x15f6   :  { %v1252_v54 = vrot.slane %v1250_v52, 2  ;;  %1263 = vrot.lane.b32.xlu1 %v1250_v52, %s3947_s19 }
0x15f7   :  { %v1270_v26 = vunpack.c.0.s8 %v1269_v55 }
0x15f8   :  { %1253 = vrot.lane.b32.xlu0 %v1252_v54, %s3946_s3 }
0x15f9   :  { %v4550_v30 = vsub.s32 %v1270_v26, %v4195_v60 }
0x15fb   :  { %v1368_v59 = vrot.slane %v1260_v39, %v4550_v30  ;;  %v1345_v47 = vrot.slane %v1259_v44, %v4550_v30  ;;  %v1299_v0 = vrot.slane %v1257_v53, %v4550_v30  ;;  %v1391_v43 = vrot.slane %v1261_v62, %v4550_v30 }
0x15fc   :  { %v1322_v3 = vrot.slane %v1258_v58, %v4550_v30  ;;  %v1414_v19 = vrot.slane %v1262_v27, %v4550_v30 }
0x15fd   :  { %v1369_v42 = vcombine.high %v1368_v59, %v1368_v59  ;;  %v1346_v57 = vcombine.high %v1345_v47, %v1345_v47  ;;  %v1376_v2 = vrot.slane %v1368_v59, %v4550_v30  ;;  %v1300_v23 = vcombine.high %v1299_v0, %v1299_v0 }
0x15fe   :  { %v1353_v5 = vrot.slane %v1345_v47, %v4550_v30  ;;  %v1392_v24 = vcombine.high %v1391_v43, %v1391_v43  ;;  %v1399_v11 = vrot.slane %v1391_v43, %v4550_v30  ;;  %v1323_v15 = vcombine.high %v1322_v3, %v1322_v3 }
0x15ff   :  { %v1383_v10 = vrot.slane %v1369_v42, %v4550_v30  ;;  %v1360_v9 = vrot.slane %v1346_v57, %v4550_v30  ;;  %v1330_v28 = vrot.slane %v1322_v3, %v4550_v30  ;;  %v1307_v1 = vrot.slane %v1299_v0, %v4550_v30 }
0x1600   :  { %v1486_v22 = vrot.slane %v1376_v2, %v4202_v63  ;;  %v1314_v29 = vrot.slane %v1300_v23, %v4550_v30  ;;  %v1476_v33 = vrot.slane %v1353_v5, %v4202_v63  ;;  %v1406_v12 = vrot.slane %v1392_v24, %v4550_v30 }
0x1601   :  { %v1490_v25 = vrot.slane %v1383_v10, %v4202_v63  ;;  %v1480_v34 = vrot.slane %v1360_v9, %v4202_v63  ;;  %v1496_v13 = vrot.slane %v1399_v11, %v4202_v63  ;;  %v1337_v35 = vrot.slane %v1323_v15, %v4550_v30  ;;  %v1558_v15 = vld [vmem:[%s5048_s6] sm:$0x3] }
0x1602   :  { %v1415_v36 = vcombine.high %v1414_v19, %v1414_v19  ;;  %v1466_v37 = vrot.slane %v1330_v28, %v4202_v63  ;;  %v1456_v38 = vrot.slane %v1307_v1, %v4202_v63  ;;  %v1422_v45 = vrot.slane %v1414_v19, %v4550_v30 }
0x1603   :  { %v1460_v49 = vrot.slane %v1314_v29, %v4202_v63  ;;  %v1470_v55 = vrot.slane %v1337_v35, %v4202_v63  ;;  %v1500_v44 = vrot.slane %v1406_v12, %v4202_v63  ;;  %v1583_v19 = vrot.slane %v1558_v15, %v96_v61 }
0x1604   :  { %v1429_v26 = vrot.slane %v1415_v36, %v4550_v30  ;;  %v1506_v53 = vrot.slane %v1422_v45, %v4202_v63  ;;  %v1579_v28 = vrot.slane %v1558_v15, %v4202_v63 }
0x1606   :  { %v1510_v3 = vrot.slane %v1429_v26, %v4202_v63 }
0x1668   :  { %v1264_v8 = vpop.permute.xlu1 %1263 }
0x1669   :  { %v1266_v20 = vsel %vm326_vm5, %v1264_v8, %v4229_v48  ;;  %v1735_v8 = vpop.f32.mrb[10].mxu1 }
0x166a   :  { %v1254_v21 = vpop.permute.xlu0 %1253  ;;  %v1437_v48 = vrot.slane %v1266_v20, %v4550_v30  ;;  %v1737_v11 = vpop.f32.mrb[11].mxu1 }
0x166b   :  { %v1256_v32 = vsel %vm326_vm5, %v4227_v46, %v1254_v21  ;;  %v1748_v29 = vrot.slane %v1737_v11, 2 }
0x166c   :  { %v1274_v6 = vrot.slane %v1256_v32, %v4550_v30  ;;  %v1438_v50 = vcombine.high %v1437_v48, %v1437_v48  ;;  %v1445_v52 = vrot.slane %v1437_v48, %v4550_v30 }
0x166e   :  { %v1275_v46 = vcombine.high %v1274_v6, %v1274_v6  ;;  %v1282_v41 = vrot.slane %v1274_v6, %v4550_v30  ;;  %v1452_v42 = vrot.slane %v1438_v50, %v4550_v30  ;;  %v1516_v0 = vrot.slane %v1445_v52, %v4202_v63 }
0x1670   :  { %v1289_v54 = vrot.slane %v1275_v46, %v4550_v30  ;;  %v1523_v16 = vsel %vm107_vm0, %v1282_v41, %v1456_v38  ;;  %v1520_v9 = vrot.slane %v1452_v42, %v4202_v63 }
0x1671   :  { %v1525_v39 = vsel %vm292_vm4, %v1523_v16, %v1466_v37 }
0x1672   :  { %v1524_v59 = vsel %vm107_vm0, %v1289_v54, %v1460_v49  ;;  %v1528_v47 = vsel %vm1527_vm7, %v1525_v39, %v1476_v33 }
0x1673   :  { %v1526_v62 = vsel %vm292_vm4, %v1524_v59, %v1470_v55  ;;  %v1531_v58 = vsel %vm1530_vm8, %v1528_v47, %v1486_v22  ;;  %v1747_v22 = vrot.slane %v1737_v11, 1 }
0x1674   :  { %v1534_v57 = vsel %vm1533_vm9, %v1531_v58, %v1496_v13  ;;  %v1529_v43 = vsel %vm1527_vm7, %v1526_v62, %v1480_v34 }
0x1675   :  { %v1537_v27 = vsel %vm1536_vm10, %v1534_v57, %v1506_v53  ;;  %v1532_v2 = vsel %vm1530_vm8, %v1529_v43, %v1490_v25  ;;  %v1741_v25 = vrot.slane %v1735_v8, 1 }
0x1676   :  { %v1540_v10 = vsel %vm1539_vm11, %v1537_v27, %v1516_v0  ;;  %v1535_v23 = vsel %vm1533_vm9, %v1532_v2, %v1500_v44 }
0x1677   :  { %3307 = vmatmul.mubr.msk.f32.vlgmr.msra.gmra.mrb[10].mxu0 %vm191_vm6, %v1540_v10  ;;  %v1538_v5 = vsel %vm1536_vm10, %v1535_v23, %v1510_v3 }
0x1678   :  { %1662 = vmatprep.mubr.f32.mxu0 %v3945_v7  ;;  %3596 = vmatpush1.bf16.msra.mxu0 %v4439_v56  ;;  %v1541_v24 = vsel %vm1539_vm11, %v1538_v5, %v1520_v9 }
0x1679   :  { %3598 = vmatprep.subr.bf16.mxu0 %v4462_v4 }
0x167b   :  { %3308 = vmatmul.mubr.msk.f32.gmra.mrb[12].mxu0 %vm191_vm6, %v1541_v24 }
0x167c   :  { %3600 = vmatpush1.bf16.msra.mxu0 %v4470_v14  ;;  %1865 = vmatprep.mubr.f32.mxu0 %v3945_v7 }
0x167d   :  { %3602 = vmatprep.subr.bf16.mxu0 %v4492_v31 }
0x1680   :  { %3604 = vmatpush1.bf16.msra.mxu0 %v4500_v17 }
0x1681   :  { %3606 = vmatprep.subr.bf16.mxu0 %v4522_v40 }
0x1684   :  { %3608 = vmatpush1.bf16.msra.mxu0 %v4530_v51 }
0x1685   :  { %3626 = vmatprep.subr.bf16.mxu0 %v4431_v18 }
0x174a   :  { %v1658_v20 = vpop.f32.mrb[10].mxu0 }
0x174b   :  { %v1660_v1 = vpop.f32.mrb[11].mxu0  ;;  %v4646_v33 = vadd.f32 %v1658_v20, %v1579_v28 }
0x174c   :  { %v4644_v21 = vadd.f32 %v1660_v1, %v1583_v19 }
0x174d   :  { %v1744_v35 = vadd.f32 %v1735_v8, %v4646_v33 }
0x174e   :  { %v1664_v32 = vpop.f32.mrb[12].mxu0  ;;  %v1751_v6 = vadd.f32 %v1747_v22, %v4644_v21 }
0x174f   :  { %v4648_v34 = vadd.f32 %v1664_v32, %v1579_v28  ;;  %v1666_v48 = vpop.f32.mrb[13].mxu0 }
0x1750   :  { %v4651_v12 = vadd.f32 %v1666_v48, %v1583_v19  ;;  %v1760_v37 = vrot.slane %v1751_v6, 5 }
0x1751   :  { %v1745_v61 = vadd.f32 %v1741_v25, %v4648_v34 }
0x1752   :  { %v1752_v13 = vadd.f32 %v1748_v29, %v4651_v12 }
0x1753   :  { %v1755_v36 = vrot.slane %v1745_v61, 7 }
0x1754   :  { %v1761_v38 = vrot.slane %v1752_v13, 4 }
0x1755   :  { %v1756_v46 = vsel %vm282_vm2, %v1755_v36, %v1744_v35 }
0x1756   :  { %v1762_v41 = vsel %vm289_vm3, %v1761_v38, %v1760_v37 }
0x1757   :  { %v1764_v45 = vsel %vm292_vm4, %v1756_v46, %v1762_v41 }
0x1758   :  { %3830 = vtanh.f32 %v1764_v45  ;;  %v3309_v50 = vmul.f32 -1.442695, %v1764_v45 }
0x175a   :  { %3832 = vpow2.f32 %v3309_v50 }
0x1762   :  { %v3831_v49 = vpop.eup %3830 }
0x1763   :  { %1774 = vrot.lane.b32.xlu0 %v3831_v49, %s3946_s3 }
0x1764   :  { %v3833_v52 = vpop.eup %3832 }
0x1765   :  { %v1768_v54 = vadd.f32 1.0, %v3833_v52 }
0x1767   :  { %3834 = vrcp.f32 %v1768_v54 }
0x1771   :  { %v3835_v16 = vpop.eup %3834 }
0x1772   :  { %v1772_v39 = vmul.f32 0.0, %v3835_v16 }
0x17d5   :  { %v1775_v55 = vpop.permute.xlu0 %1774 }
0x17d6   :  { %v1777_v26 = vmul.f32 %v3835_v16, %v1775_v55 }
0x17d8   :  { %1779 = vrot.lane.b32.xlu1 %v1777_v26, %s3947_s19 }
0x184a   :  { %v1780_v44 = vpop.permute.xlu1 %1779 }
0x184b   :  { %v1782_v59 = vadd.f32 %v1780_v44, %v1772_v39 }
0x184d   :  { %3836 = vtanh.f32 %v1782_v59 }
0x1857   :  { %v3837_v47 = vpop.eup %3836 }
0x1858   :  { %1785 = vrot.lane.b32.xlu0 %v3837_v47, %s3946_s3 }
0x18ca   :  { %v1786_v53 = vpop.permute.xlu0 %1785 }
0x18cb   :  { %v1788_v62 = vmul.f32 %v3835_v16, %v1786_v53 }
0x18cd   :  { %v1793_v58 = vrot.slane %v1788_v62, 2  ;;  %1790 = vrot.lane.b32.xlu1 %v1788_v62, %s3947_s19 }
0x18cf   :  { %1794 = vrot.lane.b32.xlu0 %v1793_v58, %s3946_s3 }
0x193f   :  { %v4664_v42 = vpop.permute.xlu1 %1790 }
0x1941   :  { %v4666_v0 = vpop.permute.xlu0 %1794 }
0x1942   :  { %v1797_v57 = vsel %vm326_vm5, %v4664_v42, %v4666_v0 }
0x1943   :  { %3310 = vmatmul.mubr.msk.f32.vlgmr.msra.gmra.mrb[14].mxu0 %vm191_vm6, %v1797_v57 }
0x1944   :  { %3628 = vmatpush1.bf16.msra.mxu0 %v4439_v56  ;;  %2131 = vmatprep.mubr.f32.mxu0 %v3945_v7 }
0x1945   :  { %3630 = vmatprep.subr.bf16.mxu0 %v4462_v4 }
0x1948   :  { %3632 = vmatpush1.bf16.msra.mxu0 %v4470_v14 }
0x1949   :  { %3634 = vmatprep.subr.bf16.mxu0 %v4492_v31 }
0x194c   :  { %3636 = vmatpush1.bf16.msra.mxu0 %v4500_v17 }
0x194d   :  { %3638 = vmatprep.subr.bf16.mxu0 %v4522_v40 }
0x1950   :  { %3640 = vmatpush1.bf16.msra.mxu0 %v4530_v51 }
0x1951   :  { %3658 = vmatprep.subr.bf16.mxu0 %v4431_v18 }
0x1a16   :  { %v1867_v43 = vpop.f32.mrb[14].mxu0 }
0x1a17   :  { %v1873_v3 = vrot.slane %v1867_v43, 7  ;;  %v1869_v27 = vpop.f32.mrb[15].mxu0  ;;  %v1877_v24 = vadd.f32 %v1867_v43, %v4648_v34 }
0x1a18   :  { %v1879_v2 = vrot.slane %v1869_v27, 2  ;;  %v1880_v10 = vrot.slane %v1869_v27, 3 }
0x1a19   :  { %v1876_v23 = vadd.f32 %v1873_v3, %v4646_v33 }
0x1a1a   :  { %v1883_v5 = vadd.f32 %v1879_v2, %v4644_v21  ;;  %v1884_v9 = vadd.f32 %v1880_v10, %v4651_v12 }
0x1a1b   :  { %v1887_v8 = vrot.slane %v1876_v23, 1 }
0x1a1c   :  { %v1892_v11 = vrot.slane %v1883_v5, 4  ;;  %v1893_v15 = vrot.slane %v1884_v9, 3 }
0x1a1d   :  { %v1888_v19 = vsel %vm282_vm2, %v1877_v24, %v1887_v8 }
0x1a1e   :  { %v1894_v20 = vsel %vm289_vm3, %v1893_v15, %v1892_v11 }
0x1a1f   :  { %v1896_v28 = vsel %vm292_vm4, %v1888_v19, %v1894_v20 }
0x1a20   :  { %3838 = vtanh.f32 %v1896_v28  ;;  %v3311_v22 = vmul.f32 -1.442695, %v1896_v28 }
0x1a22   :  { %3840 = vpow2.f32 %v3311_v22 }
0x1a2a   :  { %v3839_v1 = vpop.eup %3838 }
0x1a2b   :  { %1906 = vrot.lane.b32.xlu1 %v3839_v1, %s3946_s3 }
0x1a2c   :  { %v3841_v25 = vpop.eup %3840 }
0x1a2d   :  { %v1900_v29 = vadd.f32 1.0, %v3841_v25 }
0x1a2f   :  { %3842 = vrcp.f32 %v1900_v29 }
0x1a39   :  { %v3843_v32 = vpop.eup %3842 }
0x1a3a   :  { %v1904_v61 = vmul.f32 %v3843_v32, %v1782_v59 }
0x1a9d   :  { %v1907_v48 = vpop.permute.xlu1 %1906 }
0x1a9e   :  { %v1909_v6 = vmul.f32 %v3843_v32, %v1907_v48 }
0x1aa0   :  { %1911 = vrot.lane.b32.xlu0 %v1909_v6, %s3947_s19 }
0x1b12   :  { %v1912_v13 = vpop.permute.xlu0 %1911 }
0x1b13   :  { %v1914_v35 = vadd.f32 %v1912_v13, %v1904_v61 }
0x1b15   :  { %3844 = vtanh.f32 %v1914_v35 }
0x1b1f   :  { %v3845_v36 = vpop.eup %3844 }
0x1b20   :  { %1917 = vrot.lane.b32.xlu1 %v3845_v36, %s3946_s3 }
0x1b92   :  { %v1918_v37 = vpop.permute.xlu1 %1917 }
0x1b93   :  { %v1920_v38 = vmul.f32 %v3843_v32, %v1918_v37 }
0x1b95   :  { %v1925_v46 = vrot.slane %v1920_v38, 2  ;;  %1922 = vrot.lane.b32.xlu0 %v1920_v38, %s3947_s19 }
0x1b97   :  { %1926 = vrot.lane.b32.xlu1 %v1925_v46, %s3946_s3 }
0x1c07   :  { %v4693_v41 = vpop.permute.xlu0 %1922 }
0x1c09   :  { %v4695_v45 = vpop.permute.xlu1 %1926 }
0x1c0a   :  { %v1929_v49 = vsel %vm326_vm5, %v4693_v41, %v4695_v45 }
0x1c0b   :  { %3312 = vmatmul.mubr.msk.f32.vlgmr.msra.gmra.mrb[12].mxu1 %vm191_vm6, %v1929_v49 }
0x1c0c   :  { %3644 = vmatpush1.bf16.msra.mxu1 %v4439_v56  ;;  %2265 = vmatprep.mubr.f32.mxu1 %v3945_v7 }
0x1c0d   :  { %3646 = vmatprep.subr.bf16.mxu1 %v4462_v4 }
0x1c10   :  { %3648 = vmatpush1.bf16.msra.mxu1 %v4470_v14 }
0x1c11   :  { %3650 = vmatprep.subr.bf16.mxu1 %v4492_v31 }
0x1c14   :  { %3652 = vmatpush1.bf16.msra.mxu1 %v4500_v17 }
0x1c15   :  { %3654 = vmatprep.subr.bf16.mxu1 %v4522_v40 }
0x1c18   :  { %3656 = vmatpush1.bf16.msra.mxu1 %v4530_v51 }
0x1c19   :  { %3674 = vmatprep.subr.bf16.mxu1 %v4431_v18 }
0x1cde   :  { %v1999_v50 = vpop.f32.mrb[12].mxu1 }
0x1cdf   :  { %v2005_v52 = vrot.slane %v1999_v50, 6  ;;  %v2006_v54 = vrot.slane %v1999_v50, 7  ;;  %v2001_v16 = vpop.f32.mrb[13].mxu1 }
0x1ce0   :  { %v2012_v55 = vrot.slane %v2001_v16, 3  ;;  %v2013_v26 = vrot.slane %v2001_v16, 4 }
0x1ce1   :  { %v2009_v39 = vadd.f32 %v2005_v52, %v4646_v33  ;;  %v2010_v44 = vadd.f32 %v2006_v54, %v4648_v34 }
0x1ce2   :  { %v2016_v59 = vadd.f32 %v2012_v55, %v4644_v21  ;;  %v2017_v47 = vadd.f32 %v2013_v26, %v4651_v12 }
0x1ce3   :  { %v2020_v53 = vrot.slane %v2009_v39, 2  ;;  %v2021_v62 = vrot.slane %v2010_v44, 1 }
0x1ce4   :  { %v2026_v58 = vrot.slane %v2016_v59, 3  ;;  %v2027_v57 = vrot.slane %v2017_v47, 2 }
0x1ce5   :  { %v2022_v43 = vsel %vm282_vm2, %v2021_v62, %v2020_v53 }
0x1ce6   :  { %v2028_v3 = vsel %vm289_vm3, %v2027_v57, %v2026_v58 }
0x1ce7   :  { %v2030_v27 = vsel %vm292_vm4, %v2022_v43, %v2028_v3 }
0x1ce8   :  { %3846 = vtanh.f32 %v2030_v27  ;;  %v3313_v10 = vmul.f32 -1.442695, %v2030_v27 }
0x1cea   :  { %3848 = vpow2.f32 %v3313_v10 }
0x1cf2   :  { %v3847_v2 = vpop.eup %3846 }
0x1cf3   :  { %2040 = vrot.lane.b32.xlu0 %v3847_v2, %s3946_s3 }
0x1cf4   :  { %v3849_v23 = vpop.eup %3848 }
0x1cf5   :  { %v2034_v5 = vadd.f32 1.0, %v3849_v23 }
0x1cf7   :  { %3850 = vrcp.f32 %v2034_v5 }
0x1d01   :  { %v3851_v9 = vpop.eup %3850 }
0x1d02   :  { %v2038_v11 = vmul.f32 %v3851_v9, %v1914_v35 }
0x1d65   :  { %v2041_v24 = vpop.permute.xlu0 %2040 }
0x1d66   :  { %v2043_v8 = vmul.f32 %v3851_v9, %v2041_v24 }
0x1d68   :  { %2045 = vrot.lane.b32.xlu1 %v2043_v8, %s3947_s19 }
0x1dda   :  { %v2046_v15 = vpop.permute.xlu1 %2045 }
0x1ddb   :  { %v2048_v19 = vadd.f32 %v2046_v15, %v2038_v11 }
0x1ddd   :  { %3852 = vtanh.f32 %v2048_v19 }
0x1de7   :  { %v3853_v20 = vpop.eup %3852 }
0x1de8   :  { %2051 = vrot.lane.b32.xlu0 %v3853_v20, %s3946_s3 }
0x1e5a   :  { %v2052_v28 = vpop.permute.xlu0 %2051 }
0x1e5b   :  { %v2054_v1 = vmul.f32 %v3851_v9, %v2052_v28 }
0x1e5d   :  { %v2059_v22 = vrot.slane %v2054_v1, 2  ;;  %2056 = vrot.lane.b32.xlu1 %v2054_v1, %s3947_s19 }
0x1e5f   :  { %2060 = vrot.lane.b32.xlu0 %v2059_v22, %s3946_s3 }
0x1ecf   :  { %v4722_v25 = vpop.permute.xlu1 %2056 }
0x1ed1   :  { %v4724_v29 = vpop.permute.xlu0 %2060 }
0x1ed2   :  { %v2063_v32 = vsel %vm326_vm5, %v4722_v25, %v4724_v29 }
0x1ed3   :  { %3314 = vmatmul.mubr.msk.f32.vlgmr.msra.gmra.mrb[16].mxu0 %vm191_vm6, %v2063_v32 }
0x1ed4   :  { %3660 = vmatpush1.bf16.msra.mxu0 %v4439_v56  ;;  %2398 = vmatprep.mubr.f32.mxu0 %v3945_v7 }
0x1ed5   :  { %3662 = vmatprep.subr.bf16.mxu0 %v4462_v4 }
0x1ed8   :  { %3664 = vmatpush1.bf16.msra.mxu0 %v4470_v14 }
0x1ed9   :  { %3666 = vmatprep.subr.bf16.mxu0 %v4492_v31 }
0x1edc   :  { %3668 = vmatpush1.bf16.msra.mxu0 %v4500_v17 }
0x1edd   :  { %3670 = vmatprep.subr.bf16.mxu0 %v4522_v40 }
0x1ee0   :  { %3672 = vmatpush1.bf16.msra.mxu0 %v4530_v51 }
0x1ee1   :  { %3690 = vmatprep.subr.bf16.mxu0 %v4431_v18 }
0x1fa6   :  { %v2133_v48 = vpop.f32.mrb[16].mxu0 }
0x1fa7   :  { %v2139_v6 = vrot.slane %v2133_v48, 5  ;;  %v2140_v61 = vrot.slane %v2133_v48, 6  ;;  %v2135_v13 = vpop.f32.mrb[17].mxu0 }
0x1fa8   :  { %v2146_v35 = vrot.slane %v2135_v13, 4  ;;  %v2147_v36 = vrot.slane %v2135_v13, 5 }
0x1fa9   :  { %v2143_v37 = vadd.f32 %v2139_v6, %v4646_v33  ;;  %v2144_v38 = vadd.f32 %v2140_v61, %v4648_v34 }
0x1faa   :  { %v2150_v46 = vadd.f32 %v2146_v35, %v4644_v21  ;;  %v2151_v49 = vadd.f32 %v2147_v36, %v4651_v12 }
0x1fab   :  { %v2154_v50 = vrot.slane %v2143_v37, 3  ;;  %v2155_v52 = vrot.slane %v2144_v38, 2 }
0x1fac   :  { %v2160_v54 = vrot.slane %v2150_v46, 2  ;;  %v2161_v16 = vrot.slane %v2151_v49, 1 }
0x1fad   :  { %v2156_v18 = vsel %vm282_vm2, %v2155_v52, %v2154_v50 }
0x1fae   :  { %v2162_v55 = vsel %vm289_vm3, %v2161_v16, %v2160_v54 }
0x1faf   :  { %v2164_v26 = vsel %vm292_vm4, %v2156_v18, %v2162_v55 }
0x1fb0   :  { %3854 = vtanh.f32 %v2164_v26  ;;  %v3315_v44 = vmul.f32 -1.442695, %v2164_v26 }
0x1fb2   :  { %3856 = vpow2.f32 %v3315_v44 }
0x1fba   :  { %v3855_v39 = vpop.eup %3854 }
0x1fbb   :  { %2174 = vrot.lane.b32.xlu1 %v3855_v39, %s3946_s3 }
0x1fbc   :  { %v3857_v59 = vpop.eup %3856 }
0x1fbd   :  { %v2168_v47 = vadd.f32 1.0, %v3857_v59 }
0x1fbf   :  { %3858 = vrcp.f32 %v2168_v47 }
0x1fc9   :  { %v3859_v53 = vpop.eup %3858 }
0x1fca   :  { %v2172_v57 = vmul.f32 %v3859_v53, %v2048_v19 }
0x202d   :  { %v2175_v62 = vpop.permute.xlu1 %2174 }
0x202e   :  { %v2177_v58 = vmul.f32 %v3859_v53, %v2175_v62 }
0x2030   :  { %2179 = vrot.lane.b32.xlu0 %v2177_v58, %s3947_s19 }
0x20a2   :  { %v2180_v43 = vpop.permute.xlu0 %2179 }
0x20a3   :  { %v2182_v3 = vadd.f32 %v2180_v43, %v2172_v57 }
0x20a5   :  { %3860 = vtanh.f32 %v2182_v3 }
0x20af   :  { %v3861_v27 = vpop.eup %3860 }
0x20b0   :  { %2185 = vrot.lane.b32.xlu1 %v3861_v27, %s3946_s3 }
0x2122   :  { %v2186_v2 = vpop.permute.xlu1 %2185 }
0x2123   :  { %v2188_v10 = vmul.f32 %v3859_v53, %v2186_v2 }
0x2125   :  { %v2193_v23 = vrot.slane %v2188_v10, 2  ;;  %2190 = vrot.lane.b32.xlu0 %v2188_v10, %s3947_s19 }
0x2127   :  { %2194 = vrot.lane.b32.xlu1 %v2193_v23, %s3946_s3 }
0x2197   :  { %v4751_v5 = vpop.permute.xlu0 %2190 }
0x2199   :  { %v4753_v9 = vpop.permute.xlu1 %2194 }
0x219a   :  { %v2197_v24 = vsel %vm326_vm5, %v4751_v5, %v4753_v9 }
0x219b   :  { %3316 = vmatmul.mubr.msk.f32.vlgmr.msra.gmra.mrb[14].mxu1 %vm191_vm6, %v2197_v24 }
0x219c   :  { %3676 = vmatpush1.bf16.msra.mxu1 %v4439_v56  ;;  %2531 = vmatprep.mubr.f32.mxu1 %v3945_v7 }
0x219d   :  { %3678 = vmatprep.subr.bf16.mxu1 %v4462_v4 }
0x21a0   :  { %3680 = vmatpush1.bf16.msra.mxu1 %v4470_v14 }
0x21a1   :  { %3682 = vmatprep.subr.bf16.mxu1 %v4492_v31 }
0x21a4   :  { %3684 = vmatpush1.bf16.msra.mxu1 %v4500_v17 }
0x21a5   :  { %3686 = vmatprep.subr.bf16.mxu1 %v4522_v40 }
0x21a8   :  { %3688 = vmatpush1.bf16.msra.mxu1 %v4530_v51 }
0x226e   :  { %v2267_v8 = vpop.f32.mrb[14].mxu1 }
0x226f   :  { %v2273_v11 = vrot.slane %v2267_v8, 4  ;;  %v2274_v15 = vrot.slane %v2267_v8, 5  ;;  %v2269_v19 = vpop.f32.mrb[15].mxu1 }
0x2270   :  { %v2280_v20 = vrot.slane %v2269_v19, 5  ;;  %v2281_v28 = vrot.slane %v2269_v19, 6 }
0x2271   :  { %v2277_v1 = vadd.f32 %v2273_v11, %v4646_v33  ;;  %v2278_v22 = vadd.f32 %v2274_v15, %v4648_v34 }
0x2272   :  { %v2284_v32 = vadd.f32 %v2280_v20, %v4644_v21  ;;  %v2285_v61 = vadd.f32 %v2281_v28, %v4651_v12 }
0x2273   :  { %v2288_v48 = vrot.slane %v2277_v1, 4  ;;  %v2289_v6 = vrot.slane %v2278_v22, 3 }
0x2274   :  { %v2294_v13 = vrot.slane %v2284_v32, 1 }
0x2275   :  { %v2290_v35 = vsel %vm282_vm2, %v2289_v6, %v2288_v48 }
0x2276   :  { %v2295_v36 = vsel %vm289_vm3, %v2285_v61, %v2294_v13 }
0x2277   :  { %v2297_v37 = vsel %vm292_vm4, %v2290_v35, %v2295_v36 }
0x2278   :  { %3862 = vtanh.f32 %v2297_v37  ;;  %v3317_v46 = vmul.f32 -1.442695, %v2297_v37 }
0x227a   :  { %3864 = vpow2.f32 %v3317_v46 }
0x2282   :  { %v3863_v38 = vpop.eup %3862 }
0x2283   :  { %2307 = vrot.lane.b32.xlu0 %v3863_v38, %s3946_s3 }
0x2284   :  { %v3865_v49 = vpop.eup %3864 }
0x2285   :  { %v2301_v50 = vadd.f32 1.0, %v3865_v49 }
0x2287   :  { %3866 = vrcp.f32 %v2301_v50 }
0x2291   :  { %v3867_v52 = vpop.eup %3866 }
0x2292   :  { %v2305_v18 = vmul.f32 %v3867_v52, %v2182_v3 }
0x22f5   :  { %v2308_v54 = vpop.permute.xlu0 %2307 }
0x22f6   :  { %v2310_v16 = vmul.f32 %v3867_v52, %v2308_v54 }
0x22f8   :  { %2312 = vrot.lane.b32.xlu1 %v2310_v16, %s3947_s19 }
0x236a   :  { %v2313_v55 = vpop.permute.xlu1 %2312 }
0x236b   :  { %v2315_v26 = vadd.f32 %v2313_v55, %v2305_v18 }
0x236d   :  { %3868 = vtanh.f32 %v2315_v26 }
0x2377   :  { %v3869_v39 = vpop.eup %3868 }
0x2378   :  { %2318 = vrot.lane.b32.xlu0 %v3869_v39, %s3946_s3 }
0x23ea   :  { %v2319_v44 = vpop.permute.xlu0 %2318 }
0x23eb   :  { %v2321_v59 = vmul.f32 %v3867_v52, %v2319_v44 }
0x23ed   :  { %v2326_v47 = vrot.slane %v2321_v59, 2  ;;  %2323 = vrot.lane.b32.xlu1 %v2321_v59, %s3947_s19 }
0x23ef   :  { %2327 = vrot.lane.b32.xlu0 %v2326_v47, %s3946_s3 }
0x245f   :  { %v4779_v53 = vpop.permute.xlu1 %2323 }
0x2461   :  { %v4781_v62 = vpop.permute.xlu0 %2327 }
0x2462   :  { %v2330_v58 = vsel %vm326_vm5, %v4779_v53, %v4781_v62 }
0x2463   :  { %3318 = vmatmul.mubr.msk.f32.vlgmr.msra.gmra.mrb[18].mxu0 %vm191_vm6, %v2330_v58 }
0x2464   :  { %3692 = vmatpush1.bf16.msra.mxu0 %v4439_v56  ;;  %2664 = vmatprep.mubr.f32.mxu0 %v3945_v7 }
0x2465   :  { %3694 = vmatprep.subr.bf16.mxu0 %v4462_v4 }
0x2468   :  { %3696 = vmatpush1.bf16.msra.mxu0 %v4470_v14 }
0x2469   :  { %3698 = vmatprep.subr.bf16.mxu0 %v4492_v31 }
0x246c   :  { %3700 = vmatpush1.bf16.msra.mxu0 %v4500_v17 }
0x246d   :  { %3702 = vmatprep.subr.bf16.mxu0 %v4522_v40 }
0x2470   :  { %3704 = vmatpush1.bf16.msra.mxu0 %v4530_v51 }
0x2536   :  { %v2400_v57 = vpop.f32.mrb[18].mxu0 }
0x2537   :  { %v2406_v43 = vrot.slane %v2400_v57, 3  ;;  %v2407_v3 = vrot.slane %v2400_v57, 4  ;;  %v2402_v27 = vpop.f32.mrb[19].mxu0 }
0x2538   :  { %v2413_v2 = vrot.slane %v2402_v27, 6  ;;  %v2414_v56 = vrot.slane %v2402_v27, 7 }
0x2539   :  { %v2410_v10 = vadd.f32 %v2406_v43, %v4646_v33  ;;  %v2411_v4 = vadd.f32 %v2407_v3, %v4648_v34 }
0x253a   :  { %v2418_v14 = vadd.f32 %v2414_v56, %v4651_v12  ;;  %v2417_v17 = vadd.f32 %v2413_v2, %v4644_v21 }
0x253b   :  { %v2421_v23 = vrot.slane %v2410_v10, 5  ;;  %v2422_v31 = vrot.slane %v2411_v4, 4 }
0x253c   :  { %v2427_v24 = vrot.slane %v2418_v14, 7 }
0x253d   :  { %v2423_v40 = vsel %vm282_vm2, %v2422_v31, %v2421_v23 }
0x253e   :  { %v2428_v51 = vsel %vm289_vm3, %v2427_v24, %v2417_v17 }
0x253f   :  { %v2430_v8 = vsel %vm292_vm4, %v2423_v40, %v2428_v51 }
0x2540   :  { %3870 = vtanh.f32 %v2430_v8  ;;  %v3319_v15 = vmul.f32 -1.442695, %v2430_v8 }
0x2542   :  { %3872 = vpow2.f32 %v3319_v15 }
0x254a   :  { %v3871_v11 = vpop.eup %3870 }
0x254b   :  { %2440 = vrot.lane.b32.xlu1 %v3871_v11, %s3946_s3 }
0x254c   :  { %v3873_v19 = vpop.eup %3872 }
0x254d   :  { %v2434_v20 = vadd.f32 1.0, %v3873_v19 }
0x254f   :  { %3874 = vrcp.f32 %v2434_v20 }
0x2559   :  { %v3875_v28 = vpop.eup %3874 }
0x255a   :  { %v2438_v32 = vmul.f32 %v3875_v28, %v2315_v26 }
0x25bd   :  { %v2441_v1 = vpop.permute.xlu1 %2440 }
0x25be   :  { %v2443_v22 = vmul.f32 %v3875_v28, %v2441_v1 }
0x25c0   :  { %2445 = vrot.lane.b32.xlu0 %v2443_v22, %s3947_s19 }
0x2632   :  { %v2446_v48 = vpop.permute.xlu0 %2445 }
0x2633   :  { %v2448_v6 = vadd.f32 %v2446_v48, %v2438_v32 }
0x2635   :  { %3876 = vtanh.f32 %v2448_v6 }
0x263f   :  { %v3877_v61 = vpop.eup %3876 }
0x2640   :  { %2451 = vrot.lane.b32.xlu1 %v3877_v61, %s3946_s3 }
0x26b2   :  { %v2452_v13 = vpop.permute.xlu1 %2451 }
0x26b3   :  { %v2454_v35 = vmul.f32 %v3875_v28, %v2452_v13 }
0x26b5   :  { %v2459_v36 = vrot.slane %v2454_v35, 2  ;;  %2456 = vrot.lane.b32.xlu0 %v2454_v35, %s3947_s19 }
0x26b7   :  { %2460 = vrot.lane.b32.xlu1 %v2459_v36, %s3946_s3 }
0x2727   :  { %v4807_v37 = vpop.permute.xlu0 %2456 }
0x2729   :  { %v4809_v38 = vpop.permute.xlu1 %2460 }
0x272a   :  { %v2463_v46 = vsel %vm326_vm5, %v4807_v37, %v4809_v38 }
0x272b   :  { %3320 = vmatmul.mubr.msk.f32.vlgmr.msra.gmra.mrb[16].mxu1 %vm191_vm6, %v2463_v46 }
0x27fe   :  { %v2533_v49 = vpop.f32.mrb[16].mxu1 }
0x27ff   :  { %v2539_v50 = vrot.slane %v2533_v49, 2  ;;  %v2540_v52 = vrot.slane %v2533_v49, 3  ;;  %v2535_v54 = vpop.f32.mrb[17].mxu1 }
0x2800   :  { %v2546_v16 = vrot.slane %v2535_v54, 7  ;;  %v2550_v18 = vadd.f32 %v2535_v54, %v4651_v12 }
0x2801   :  { %v2543_v55 = vadd.f32 %v2539_v50, %v4646_v33  ;;  %v2544_v26 = vadd.f32 %v2540_v52, %v4648_v34 }
0x2802   :  { %v2549_v39 = vadd.f32 %v2546_v16, %v4644_v21  ;;  %v2560_v58 = vrot.slane %v2550_v18, 6 }
0x2803   :  { %v2553_v44 = vrot.slane %v2543_v55, 6  ;;  %v2554_v59 = vrot.slane %v2544_v26, 5 }
0x2804   :  { %v2559_v47 = vrot.slane %v2549_v39, 7 }
0x2805   :  { %v2555_v57 = vsel %vm282_vm2, %v2554_v59, %v2553_v44 }
0x2806   :  { %v2561_v43 = vsel %vm289_vm3, %v2560_v58, %v2559_v47 }
0x2807   :  { %v2563_v3 = vsel %vm292_vm4, %v2555_v57, %v2561_v43 }
0x2808   :  { %3878 = vtanh.f32 %v2563_v3  ;;  %v3321_v2 = vmul.f32 -1.442695, %v2563_v3  ;;  %v3045_v3 = vld [vmem:[%s5050_s8] sm:$0xff] }
0x280a   :  { %3880 = vpow2.f32 %v3321_v2  ;;  %v3047_v2 = vld [vmem:[%s5050_s8 + $0x10] sm:$0xff] }
0x2812   :  { %v3879_v27 = vpop.eup %3878 }
0x2813   :  { %2573 = vrot.lane.b32.xlu0 %v3879_v27, %s3946_s3  ;;  %v3046_v27 = vld [vmem:[%s5050_s8 + $0x8] sm:$0xff] }
0x2814   :  { %v3881_v56 = vpop.eup %3880 }
0x2815   :  { %v2567_v10 = vadd.f32 1.0, %v3881_v56  ;;  %v3705_v56 = vpack.c.bf16 %v3046_v27, %v3045_v3 }
0x2817   :  { %3882 = vrcp.f32 %v2567_v10  ;;  %v3048_v10 = vld [vmem:[%s5050_s8 + $0x18] sm:$0xff]  ;;  %3706 = vmatprep.subr.bf16.mxu1 %v3705_v56 }
0x2818   :  { %3708 = vmatpush3.bf16.msra.mxu1 %v3705_v56  ;;  %v3010_v56 = vstv %s4913_s27 }
0x2819   :  { %vm3011_vm12 = vcmp.eq.s32.totalorder %v4195_v60, %v3010_v56  ;;  %v3150_v56 = vld [vmem:[%s5052_s10 + $0x28] sm:$0xff] }
0x2821   :  { %v3883_v4 = vpop.eup %3882 }
0x2822   :  { %v2571_v31 = vmul.f32 %v3883_v4, %v2448_v6 }
0x2885   :  { %v2574_v14 = vpop.permute.xlu0 %2573 }
0x2886   :  { %v2576_v23 = vmul.f32 %v3883_v4, %v2574_v14  ;;  %v3049_v14 = vld [vmem:[%s5050_s8 + $0x20] sm:$0xff] }
0x2888   :  { %2578 = vrot.lane.b32.xlu1 %v2576_v23, %s3947_s19  ;;  %v3050_v23 = vld [vmem:[%s5050_s8 + $0x28] sm:$0xff] }
0x28fa   :  { %v2579_v17 = vpop.permute.xlu1 %2578 }
0x28fb   :  { %v2581_v24 = vadd.f32 %v2579_v17, %v2571_v31  ;;  %v3713_v31 = vpack.c.bf16 %v3050_v23, %v3049_v14  ;;  %v3051_v17 = vld [vmem:[%s5050_s8 + $0x30] sm:$0xff] }
0x28fd   :  { %3884 = vtanh.f32 %v2581_v24 }
0x2907   :  { %v3885_v40 = vpop.eup %3884 }
0x2908   :  { %2584 = vrot.lane.b32.xlu0 %v3885_v40, %s3946_s3 }
0x297a   :  { %v2585_v51 = vpop.permute.xlu0 %2584 }
0x297b   :  { %v2587_v8 = vmul.f32 %v3883_v4, %v2585_v51  ;;  %v3709_v4 = vpack.c.bf16 %v3048_v10, %v3047_v2  ;;  %v3053_v51 = vld [vmem:[%s5050_s8 + $0x40] sm:$0xff] }
0x297d   :  { %v2592_v11 = vrot.slane %v2587_v8, 2  ;;  %2589 = vrot.lane.b32.xlu1 %v2587_v8, %s3947_s19  ;;  %3710 = vmatprep.subr.bf16.mxu1 %v3709_v4  ;;  %v3054_v8 = vld [vmem:[%s5050_s8 + $0x48] sm:$0xff] }
0x297e   :  { %3712 = vmatpush3.bf16.msra.mxu1 %v3709_v4 }
0x297f   :  { %2593 = vrot.lane.b32.xlu0 %v2592_v11, %s3946_s3  ;;  %3714 = vmatprep.subr.bf16.mxu1 %v3713_v31  ;;  %v3721_v11 = vpack.c.bf16 %v3054_v8, %v3053_v51 }
0x2982   :  { %3716 = vmatpush3.bf16.msra.mxu1 %v3713_v31 }
0x29ef   :  { %v4827_v15 = vpop.permute.xlu1 %2589 }
0x29f1   :  { %v4829_v19 = vpop.permute.xlu0 %2593 }
0x29f2   :  { %v2596_v20 = vsel %vm326_vm5, %v4827_v15, %v4829_v19 }
0x29f3   :  { %3322 = vmatmul.mubr.msk.f32.vlgmr.msra.gmra.mrb[20].mxu0 %vm191_vm6, %v2596_v20  ;;  %v3055_v20 = vld [vmem:[%s5050_s8 + $0x50] sm:$0xff] }
0x2ac6   :  { %v2666_v28 = vpop.f32.mrb[20].mxu0 }
0x2ac7   :  { %v2672_v1 = vrot.slane %v2666_v28, 1  ;;  %v2673_v22 = vrot.slane %v2666_v28, 2  ;;  %v2668_v32 = vpop.f32.mrb[21].mxu0  ;;  %v3056_v28 = vld [vmem:[%s5050_s8 + $0x58] sm:$0xff] }
0x2ac8   :  { %v2679_v48 = vrot.slane %v2668_v32, 1  ;;  %v2682_v6 = vadd.f32 %v2668_v32, %v4644_v21  ;;  %v3058_v32 = vld [vmem:[%s5050_s8 + $0x68] sm:$0xff] }
0x2ac9   :  { %v2676_v61 = vadd.f32 %v2672_v1, %v4646_v33  ;;  %v2677_v13 = vadd.f32 %v2673_v22, %v4648_v34  ;;  %v3725_v1 = vpack.c.bf16 %v3056_v28, %v3055_v20  ;;  %v3057_v22 = vld [vmem:[%s5050_s8 + $0x60] sm:$0xff] }
0x2aca   :  { %v2683_v35 = vadd.f32 %v2679_v48, %v4651_v12  ;;  %v2692_v49 = vrot.slane %v2682_v6, 6  ;;  %v3729_v48 = vpack.c.bf16 %v3058_v32, %v3057_v22  ;;  %v2730_v6 = vsel %vm326_vm5, %v4779_v53, %v4753_v9 }
0x2acb   :  { %v2686_v36 = vrot.slane %v2676_v61, 7  ;;  %v2687_v46 = vrot.slane %v2677_v13, 6  ;;  %v2729_v61 = vsel %vm326_vm5, %v4751_v5, %v4781_v62  ;;  %v2838_v13 = vrot.slane %v2730_v6, %v4550_v30 }
0x2acc   :  { %v2693_v50 = vrot.slane %v2683_v35, 5  ;;  %v2815_v35 = vrot.slane %v2729_v61, %v4550_v30  ;;  %v2728_v9 = vsel %vm326_vm5, %v4722_v25, %v4809_v38 }
0x2acd   :  { %v2688_v52 = vsel %vm282_vm2, %v2687_v46, %v2686_v36  ;;  %v2727_v36 = vsel %vm326_vm5, %v4693_v41, %v4829_v19  ;;  %v2731_v46 = vsel %vm326_vm5, %v4807_v37, %v4724_v29  ;;  %v2732_v41 = vsel %vm326_vm5, %v4827_v15, %v4695_v45 }
0x2ace   :  { %v2694_v54 = vsel %vm289_vm3, %v2693_v50, %v2692_v49  ;;  %v2769_v53 = vrot.slane %v2727_v36, %v4550_v30  ;;  %v2839_v49 = vcombine.high %v2838_v13, %v2838_v13  ;;  %v2816_v5 = vcombine.high %v2815_v35, %v2815_v35 }
0x2acf   :  { %v2696_v16 = vsel %vm292_vm4, %v2688_v52, %v2694_v54  ;;  %v2861_v62 = vrot.slane %v2731_v46, %v4550_v30  ;;  %v2792_v50 = vrot.slane %v2728_v9, %v4550_v30  ;;  %v2846_v52 = vrot.slane %v2838_v13, %v4550_v30 }
0x2ad0   :  { %3886 = vtanh.f32 %v2696_v16  ;;  %v3323_v21 = vmul.f32 -1.442695, %v2696_v16  ;;  %v2770_v29 = vcombine.high %v2769_v53, %v2769_v53  ;;  %v2853_v37 = vrot.slane %v2839_v49, %v4550_v30 }
0x2ad1   :  { %v2823_v25 = vrot.slane %v2815_v35, %v4550_v30  ;;  %v2830_v38 = vrot.slane %v2816_v5, %v4550_v30  ;;  %v2862_v19 = vcombine.high %v2861_v62, %v2861_v62  ;;  %v2793_v16 = vcombine.high %v2792_v50, %v2792_v50 }
0x2ad2   :  { %3888 = vpow2.f32 %v3323_v21  ;;  %v2777_v21 = vrot.slane %v2769_v53, %v4550_v30  ;;  %v2956_v15 = vrot.slane %v2846_v52, %v4202_v63 }
0x2ad4   :  { %v2926_v3 = vrot.slane %v2777_v21, %v4202_v63 }
0x2ada   :  { %v3887_v18 = vpop.eup %3886 }
0x2adb   :  { %2706 = vrot.lane.b32.xlu1 %v3887_v18, %s3946_s3  ;;  %v2884_v18 = vrot.slane %v2732_v41, %v4550_v30 }
0x2adc   :  { %v3889_v33 = vpop.eup %3888 }
0x2add   :  { %v2700_v34 = vadd.f32 1.0, %v3889_v33  ;;  %v2892_v14 = vrot.slane %v2884_v18, %v4550_v30 }
0x2adf   :  { %3890 = vrcp.f32 %v2700_v34  ;;  %v2976_v32 = vrot.slane %v2892_v14, %v4202_v63  ;;  %v3152_v14 = vld [vmem:[%s5052_s10 + $0x38] sm:$0xff] }
0x2ae9   :  { %v3891_v12 = vpop.eup %3890 }
0x2aea   :  { %v2704_v39 = vmul.f32 %v3891_v12, %v2581_v24  ;;  %v3052_v24 = vld [vmem:[%s5050_s8 + $0x38] sm:$0xff] }
0x2aeb   :  { %v3717_v40 = vpack.c.bf16 %v3052_v24, %v3051_v17 }
0x2aed   :  { %3718 = vmatprep.subr.bf16.mxu1 %v3717_v40 }
0x2aee   :  { %3720 = vmatpush3.bf16.msra.mxu1 %v3717_v40  ;;  %v3028_v40 = vstv %s4918_s28 }
0x2aef   :  { %3722 = vmatprep.subr.bf16.mxu1 %v3721_v11  ;;  %vm3029_vm13 = vcmp.eq.s32.totalorder %v4195_v60, %v3028_v40 }
0x2af0   :  { %v3326_v5 = vsel %vm3029_vm13, 1.0, %v3945_v7 }
0x2af2   :  { %3724 = vmatpush3.bf16.msra.mxu1 %v3721_v11 }
0x2af3   :  { %3726 = vmatprep.subr.bf16.mxu1 %v3725_v1 }
0x2af6   :  { %3728 = vmatpush3.bf16.msra.mxu1 %v3725_v1 }
0x2af7   :  { %3730 = vmatprep.subr.bf16.mxu1 %v3729_v48 }
0x2afa   :  { %3732 = vmatpush3.bf16.msra.mxu1 %v3729_v48 }
0x2b4d   :  { %v2707_v55 = vpop.permute.xlu1 %2706 }
0x2b4e   :  { %v2709_v26 = vmul.f32 %v3891_v12, %v2707_v55  ;;  %v2800_v55 = vrot.slane %v2792_v50, %v4550_v30 }
0x2b50   :  { %2711 = vrot.lane.b32.xlu0 %v2709_v26, %s3947_s19  ;;  %v2784_v26 = vrot.slane %v2770_v29, %v4550_v30  ;;  %v2936_v4 = vrot.slane %v2800_v55, %v4202_v63 }
0x2b52   :  { %v2930_v23 = vrot.slane %v2784_v26, %v4202_v63 }
0x2bc2   :  { %v2712_v44 = vpop.permute.xlu0 %2711 }
0x2bc3   :  { %v2714_v59 = vadd.f32 %v2712_v44, %v2704_v39  ;;  %v2960_v44 = vrot.slane %v2853_v37, %v4202_v63 }
0x2bc5   :  { %3892 = vtanh.f32 %v2714_v59  ;;  %v2946_v59 = vrot.slane %v2823_v25, %v4202_v63  ;;  %v3059_v25 = vld [vmem:[%s5050_s8 + $0x70] sm:$0xff] }
0x2bcf   :  { %v3893_v47 = vpop.eup %3892 }
0x2bd0   :  { %2717 = vrot.lane.b32.xlu1 %v3893_v47, %s3946_s3 }
0x2c42   :  { %v2718_v58 = vpop.permute.xlu1 %2717 }
0x2c43   :  { %v2720_v57 = vmul.f32 %v3891_v12, %v2718_v58  ;;  %v2869_v12 = vrot.slane %v2861_v62, %v4550_v30  ;;  %v2876_v58 = vrot.slane %v2862_v19, %v4550_v30 }
0x2c45   :  { %v2722_v43 = vrot.slane %v2720_v57, 2  ;;  %2733 = vrot.lane.b32.xlu1 %v2720_v57, %s3947_s19  ;;  %v2807_v57 = vrot.slane %v2793_v16, %v4550_v30  ;;  %v2966_v10 = vrot.slane %v2869_v12, %v4202_v63  ;;  %v2970_v20 = vrot.slane %v2876_v58, %v4202_v63  ;;  %v3145_v58 = vld [vmem:[%s5052_s10] sm:$0xff] }
0x2c47   :  { %2723 = vrot.lane.b32.xlu0 %v2722_v43, %s3946_s3  ;;  %v2885_v43 = vcombine.high %v2884_v18, %v2884_v18  ;;  %v2940_v51 = vrot.slane %v2807_v57, %v4202_v63  ;;  %v3146_v57 = vld [vmem:[%s5052_s10 + $0x8] sm:$0xff] }
0x2c49   :  { %v2899_v8 = vrot.slane %v2885_v43, %v4550_v30  ;;  %v3737_v43 = vpack.c.bf16 %v3146_v57, %v3145_v58 }
0x2c4b   :  { %v2980_v36 = vrot.slane %v2899_v8, %v4202_v63  ;;  %3738 = vmatprep.subr.bf16.mxu0 %v3737_v43 }
0x2c4c   :  { %3740 = vmatpush3.bf16.msra.mxu0 %v3737_v43 }
0x2cb7   :  { %v2734_v54 = vpop.permute.xlu1 %2733 }
0x2cb8   :  { %v2736_v45 = vsel %vm326_vm5, %v2734_v54, %v4666_v0  ;;  %v2950_v0 = vrot.slane %v2830_v38, %v4202_v63 }
0x2cb9   :  { %v2907_v33 = vrot.slane %v2736_v45, %v4550_v30  ;;  %v2724_v34 = vpop.permute.xlu0 %2723 }
0x2cba   :  { %v2726_v39 = vsel %vm326_vm5, %v4664_v42, %v2724_v34 }
0x2cbb   :  { %v2744_v47 = vrot.slane %v2726_v39, %v4550_v30  ;;  %v2908_v27 = vcombine.high %v2907_v33, %v2907_v33  ;;  %v2915_v31 = vrot.slane %v2907_v33, %v4550_v30 }
0x2cbd   :  { %v2745_v2 = vcombine.high %v2744_v47, %v2744_v47  ;;  %v2752_v42 = vrot.slane %v2744_v47, %v4550_v30  ;;  %v2922_v28 = vrot.slane %v2908_v27, %v4550_v30  ;;  %v2986_v61 = vrot.slane %v2915_v31, %v4202_v63  ;;  %v3148_v27 = vld [vmem:[%s5052_s10 + $0x18] sm:$0xff]  ;;  %v3327_v31 = vld [vmem:[%s5051_s9] ss:$0 sm:$0xff] }
0x2cbf   :  { %v2759_v17 = vrot.slane %v2745_v2, %v4550_v30  ;;  %v2993_v24 = vsel %vm107_vm0, %v2752_v42, %v2926_v3  ;;  %v3324_v30 = vsel %vm3011_vm12, 1.0, %v3945_v7  ;;  %v2990_v53 = vrot.slane %v2922_v28, %v4202_v63  ;;  %v3060_v63 = vld [vmem:[%s5050_s8 + $0x78] sm:$0xff]  ;;  %v3147_v3 = vld [vmem:[%s5052_s10 + $0x10] sm:$0xff]  ;;  %v3149_v42 = vld [vmem:[%s5052_s10 + $0x20] sm:$0xff] }
0x2cc0   :  { %v2995_v11 = vsel %vm292_vm4, %v2993_v24, %v2936_v4  ;;  %v3733_v7 = vpack.c.bf16 %v3060_v63, %v3059_v25  ;;  %v3741_v2 = vpack.c.bf16 %v3148_v27, %v3147_v3  ;;  %v3745_v4 = vpack.c.bf16 %v3150_v56, %v3149_v42 }
0x2cc1   :  { %v2994_v1 = vsel %vm107_vm0, %v2759_v17, %v2930_v23  ;;  %v2997_v22 = vsel %vm1527_vm7, %v2995_v11, %v2946_v59 }
0x2cc2   :  { %v2996_v48 = vsel %vm292_vm4, %v2994_v1, %v2940_v51  ;;  %v2999_v6 = vsel %vm1530_vm8, %v2997_v22, %v2956_v15  ;;  %3734 = vmatprep.subr.bf16.mxu1 %v3733_v7  ;;  %3742 = vmatprep.subr.bf16.mxu0 %v3741_v2 }
0x2cc3   :  { %v2998_v13 = vsel %vm1527_vm7, %v2996_v48, %v2950_v0  ;;  %v3001_v35 = vsel %vm1533_vm9, %v2999_v6, %v2966_v10  ;;  %3736 = vmatpush3.bf16.msra.mxu1 %v3733_v7  ;;  %v3151_v10 = vld [vmem:[%s5052_s10 + $0x30] sm:$0xff]  ;;  %3744 = vmatpush3.bf16.msra.mxu0 %v3741_v2 }
0x2cc4   :  { %v3000_v46 = vsel %vm1530_vm8, %v2998_v13, %v2960_v44  ;;  %v3003_v9 = vsel %vm1536_vm10, %v3001_v35, %v2976_v32  ;;  %v3749_v23 = vpack.c.bf16 %v3152_v14, %v3151_v10  ;;  %3746 = vmatprep.subr.bf16.mxu0 %v3745_v4 }
0x2cc5   :  { %v3002_v49 = vsel %vm1533_vm9, %v3000_v46, %v2970_v20  ;;  %v3005_v60 = vsel %vm1539_vm11, %v3003_v9, %v2986_v61  ;;  %v3328_v20 = vld [vmem:[%s5053_s11] ss:$0 sm:$0xff]  ;;  %s3949_s11 = smov [#allocation4]  }
0x2cc6   :  { %v3004_v62 = vsel %vm1536_vm10, %v3002_v49, %v2980_v36  ;;  %v3014_v50 = vmul.f32 %v3324_v30, %v3005_v60 }
0x2cc7   :  { %v3006_v52 = vsel %vm1539_vm11, %v3004_v62, %v2990_v53  ;;  %3748 = vmatpush3.bf16.msra.mxu0 %v3745_v4 }
0x2cc8   :  { %v3015_v41 = vsel %vm191_vm6, %v3014_v50, 0.0  ;;  %v3032_v29 = vmul.f32 %v3326_v5, %v3006_v52  ;;  %3750 = vmatprep.subr.bf16.mxu0 %v3749_v23 }
0x2cc9   :  { %v3016_v37 = vrot.slane %v3015_v41, 4 }
0x2cca   :  { %v3033_v38 = vsel %vm191_vm6, %v3032_v29, 0.0 }
0x2ccb   :  { %v3017_v19 = vadd.f32 %v3016_v37, %v3015_v41  ;;  %v3034_v54 = vrot.slane %v3033_v38, 4  ;;  %3752 = vmatpush3.bf16.msra.mxu0 %v3749_v23 }
0x2ccd   :  { %v3018_v16 = vrot.slane %v3017_v19, 2  ;;  %v3035_v18 = vadd.f32 %v3034_v54, %v3033_v38 }
0x2ccf   :  { %v3019_v21 = vadd.f32 %v3018_v16, %v3017_v19  ;;  %v3036_v45 = vrot.slane %v3035_v18, 2 }
0x2cd1   :  { %v3020_v15 = vrot.slane %v3019_v21, 1  ;;  %v3037_v33 = vadd.f32 %v3036_v45, %v3035_v18 }
0x2cd3   :  { %v3038_v34 = vrot.slane %v3037_v33, 1  ;;  %v3021_v12 = vadd.f32 %v3020_v15, %v3019_v21 }
0x2cd5   :  { %v3039_v55 = vadd.f32 %v3038_v34, %v3037_v33 }
0x2cd7   :  { %v3761_v26 = vpack.i.bf16 %v3039_v55, %v3021_v12 }
0x2cd9   :  { %3762 = vrot.lane.b32.xlu0 %v3761_v26, %s3946_s3 }
0x2d4b   :  { %v3763_v39 = vpop.permute.xlu0 %3762 }
0x2d4c   :  { %v3765_v44 = vunpack.i.h.bf16 %v3763_v39  ;;  %v3764_v59 = vunpack.i.l.bf16 %v3763_v39 }
0x2d4e   :  { %v3026_v0 = vsel %vm191_vm6, %v3005_v60, %v3764_v59  ;;  %v3044_v47 = vsel %vm191_vm6, %v3006_v52, %v3765_v44 }
0x2d4f   :  { %3391 = vmatprep.mubr.f32.mxu1 %v3026_v0 }
0x2d50   :  { %3392 = vmatmul.mubr.f32.vlgmr.msra.gmra.mrb[18].mxu1 %v3044_v47 }
0x2e23   :  { %v3393_v17 = vpop.f32.mrb[18].mxu1 }
0x2e24   :  { %v3140_v24 = vadd.f32 %v3393_v17, %v3327_v31  ;;  %v3134_v40 = vpop.f32.mrb[19].mxu1 }
0x2e25   :  { %v3135_v51 = vadd.f32 %v3327_v31, %v3134_v40 }
0x2e27   :  { %3894 = vtanh.f32 %v3135_v51 }
0x2e28   :  { %3896 = vtanh.f32 %v3140_v24 }
0x2e31   :  { %v3895_v8 = vpop.eup %3894 }
0x2e32   :  { %v3897_v11 = vpop.eup %3896  ;;  %3410 = vmatprep.mubr.msk.f32.mxu0 %vm191_vm6, %v3895_v8 }
0x2e33   :  { %3411 = vmatmul.mubr.msk.f32.vlgmr.msra.gmra.mrb[22].mxu0 %vm191_vm6, %v3897_v11 }
0x2f06   :  { %v3412_v28 = vpop.f32.mrb[22].mxu0 }
0x2f07   :  { %v3238_v1 = vadd.f32 %v3412_v28, %v3328_v20  ;;  %v3232_v22 = vpop.f32.mrb[23].mxu0 }
0x2f08   :  { %v3233_v32 = vadd.f32 %v3328_v20, %v3232_v22 }
0x2f09   :  { %3243 = vst.msk [vmem:[%s5054_s12 + $0x8] sm:$0xff] %vm3241_vm14, %v3238_v1  ;;  %v3247_v48 = vsel %vm3241_vm14, %v3238_v1, -inf }
0x2f0a   :  { %3242 = vst.msk [vmem:[%s5054_s12] sm:$0xff] %vm3241_vm14, %v3233_v32  ;;  %3248 = vmax.xlane.f32.xlu0 %v3247_v48  ;;  %v3244_v6 = vsel %vm3241_vm14, %v3233_v32, -inf  ;;  %s3275_s12 = sshll.u32 %s3949_s11, 4  ;;  %s3276_s12 = int_to_ptr.vmem [resolvable:$true] %s3275_s12 }
0x2f0b   :  { %3245 = vmax.xlane.f32.xlu1 %v3244_v6  ;;  %s3918_s29 = scalar_lea.vmem %s3276_s12, 256  ;;  %p3923_p6 = scmp.lt.s32.totalorder %s3276_s12, %s3276_s12 }
0x2f0c   :  { %p3919_p5 = scmp.ne.s32.totalorder %s3276_s12, %s3918_s29  ;;  %p3924_p7 = scmp.lt.s32.totalorder %s3918_s29, %s3918_s29 }
0x2f0e   :  { %p3925_p8 = por %p3924_p7, %p3923_p6 }
0x2f10   :  { %p3926_p9 = pnand %p3925_p8, %p3919_p5 }
0x2f97   :  { %v3249_v61 = vpop.xlane.xlu0 %3248 }
0x2f98   :  { %v3251_v13 = vsub.f32 %v3238_v1, %v3249_v61  ;;  %v3246_v35 = vpop.xlane.xlu1 %3245 }
0x2f99   :  { %v3250_v30 = vsub.f32 %v3233_v32, %v3246_v35 }
0x2f9a   :  { %v3254_v36 = vmul.f32 1.442695, %v3251_v13 }
0x2f9b   :  { %v3252_v46 = vmul.f32 1.442695, %v3250_v30 }
0x2f9c   :  { %3898 = vpow2.f32 %v3254_v36 }
0x2f9d   :  { %3900 = vpow2.f32 %v3252_v46 }
0x2fa6   :  { %v3899_v9 = vpop.eup %3898 }
0x2fa7   :  { %v3901_v53 = vpop.eup %3900  ;;  %v3259_v49 = vsel %vm3241_vm14, %v3899_v9, 0.0 }
0x2fa8   :  { %3260 = vadd.xlane.f32.xlu1 %v3259_v49  ;;  %v3256_v60 = vsel %vm3241_vm14, %v3901_v53, 0.0 }
0x2fa9   :  { %3257 = vadd.xlane.f32.xlu0 %v3256_v60 }
0x3035   :  { %v3261_v5 = vpop.xlane.xlu1 %3260 }
0x3036   :  { %3902 = vrcp.f32 %v3261_v5  ;;  %v3258_v62 = vpop.xlane.xlu0 %3257 }
0x3037   :  { %3904 = vrcp.f32 %v3258_v62 }
0x3040   :  { %v3903_v50 = vpop.eup %3902 }
0x3041   :  { %v3905_v52 = vpop.eup %3904  ;;  %v3265_v41 = vmul.f32 %v3903_v50, %v3899_v9 }
0x3042   :  { %v3263_v29 = vmul.f32 %v3905_v52, %v3901_v53 }
0x3043   :  { %3267 = vst.msk [vmem:[#allocation4 + $0x8] sm:$0xff] %vm3241_vm14, %v3265_v41 }
0x3044   :  { %3266 = vst.msk [vmem:[#allocation4] sm:$0xff] %vm3241_vm14, %v3263_v29 }
0x3045   :  { %3929 = shalt.err (!%p3926_p9)
}
0x3046   :  { %s3930_s30 = scalar_lea.hbm %s5055_s13, 256 }
0x3047   :  { %p3931_p10 = scmp.ne.s32.totalorder %s5055_s13, %s3930_s30  ;;  %p3934_p11 = scmp.lt.u32.totalorder %s3930_s30, %s5055_s13 }
0x3049   :  { %p3936_p12 = pnand %p3934_p11, %p3931_p10 }
0x304b   :  { %3939 = shalt.err (!%p3936_p12)
}
0x304c   :  { %s3950_s3 = smov 128   ;;  %s3951_s0 = smov 8  }
0x304d   :  { %3281 = dma.vmem_to_hbm [thread:$0]  %s3276_s12, 256, %s5055_s13, [#allocation5], %s3950_s3, %s3950_s3, %s3951_s0  }
0x304e   :  { %3942 = dma.done.wait [#allocation5], 256  }
0x304f   :  { %3943 = vsyncadd [#allocation5], 4294967040 }
0x3050   :  { %3287 = vsyncpa [#allocation5], 1 }

// kernel: forward.3
= control target key start
LH: loop header
LB: loop body
LE: loop exit
PB: predicated region body
PF: predicated region fallthrough
CT: control target
= control target key end

     0   :  { %s9259_s0 = inlined_call_operand.vmem [shape: s32[2], index: 0, kind: input, shape index: {}]   ;;  %s9260_s1 = inlined_call_operand.vmem [shape: f32[2,8,113], index: 1, kind: input, shape index: {}]   ;;  %s9261_s2 = inlined_call_operand.vmem [shape: f32[113,256], index: 2, kind: input, shape index: {}]   ;;  %s9262_s3 = inlined_call_operand.vmem [shape: f32[1,256], index: 3, kind: input, shape index: {}]   ;;  %s9263_s4 = inlined_call_operand.vmem [shape: f32[64,256], index: 4, kind: input, shape index: {}]   ;;  %s9264_s5 = inlined_call_operand.vmem [shape: f32[64,256], index: 5, kind: input, shape index: {}]   ;;  %s9265_s6 = inlined_call_operand.vmem [shape: f32[1,256], index: 6, kind: input, shape index: {}]   ;;  %s9266_s7 = inlined_call_operand.vmem [shape: f32[64,256], index: 7, kind: input, shape index: {}]   ;;  %s9267_s8 = inlined_call_operand.vmem [shape: f32[64,256], index: 8, kind: input, shape index: {}]   ;;  %s9268_s9 = inlined_call_operand.vmem [shape: f32[1,256], index: 9, kind: input, shape index: {}]   ;;  %s9269_s10 = inlined_call_operand.vmem [shape: f32[64,256], index: 10, kind: input, shape index: {}]   ;;  %s9270_s11 = inlined_call_operand.vmem [shape: f32[64,256], index: 11, kind: input, shape index: {}]   ;;  %s9271_s12 = inlined_call_operand.vmem [shape: f32[1,256], index: 12, kind: input, shape index: {}]   ;;  %s9272_s13 = inlined_call_operand.vmem [shape: f32[64,256], index: 13, kind: input, shape index: {}]   ;;  %s9273_s14 = inlined_call_operand.vmem [shape: f32[12,32], index: 14, kind: input, shape index: {}]   ;;  %s9274_s15 = inlined_call_operand.vmem [shape: f32[32,128], index: 15, kind: input, shape index: {}]   ;;  %s9275_s16 = inlined_call_operand.vmem [shape: f32[1,128], index: 16, kind: input, shape index: {}]   ;;  %s9276_s17 = inlined_call_operand.vmem [shape: f32[2,1,6], index: 17, kind: input, shape index: {}]   ;;  %s9277_s18 = inlined_call_operand.vmem [shape: f32[16,6], index: 18, kind: output, shape index: {0}]   ;;  %s9278_s19 = inlined_call_operand.vmem [shape: f32[16,6], index: 19, kind: output, shape index: {1}]  }
   0x1   :  { %9281 = sst [smem:[#allocation5_spill]] %s9259_s0 }
   0x2   :  { %9282 = sst [smem:[#allocation6_spill]] %s9260_s1  ;;  %s9286_s20 = sld [smem:[#allocation5_spill]] }
   0x3   :  { %9283 = sst [smem:[#allocation7_spill]] %s9261_s2 }
   0x4   :  { %9284 = sst [smem:[#allocation8_spill]] %s9262_s3 }
   0x5   :  { %9285 = sst [smem:[#allocation9_spill]] %s9271_s12 }
   0x8   :  { %s25_s12 = sshll.u32 %s9286_s20, 4  ;;  %s26_s12 = int_to_ptr.vmem [resolvable:$true] %s25_s12 }
   0x9   :  { %s7268_s21 = scalar_lea.vmem %s26_s12, 16  ;;  %p7273_p1 = scmp.lt.s32.totalorder %s26_s12, %s26_s12 }
   0xa   :  { %p7269_p0 = scmp.ne.s32.totalorder %s26_s12, %s7268_s21  ;;  %p7274_p2 = scmp.lt.s32.totalorder %s7268_s21, %s7268_s21 }
   0xc   :  { %p7275_p3 = por %p7274_p2, %p7273_p1 }
   0xe   :  { %p7276_p4 = pnand %p7275_p3, %p7269_p0 }
  0x10   :  { %7279 = shalt.err (!%p7276_p4)  }
  0x11   :  { %s7282_s1 = smov [#allocation3]  }
  0x12   :  { %28 = dma.vmem_to_smem %s26_s12, 16, %s7282_s1, [#allocation2] }
  0x13   :  { %7280 = dma.done.wait [#allocation2], 16 }
  0x14   :  { %7281 = vsyncadd [#allocation2], 4294967280 }
  0x15   :  { %30 = sfence }
  0x16   :  { %s9287_s23 = sld [smem:[#allocation7_spill]]  ;;  %v7283_v7 = vmov 0.0   ;;  %v99_v19 = vld [vmem:[%s9263_s4 + $0x8] sm:$0xff]  ;;  %v101_v20 = vld [vmem:[%s9263_s4 + $0x18] sm:$0xff]  ;;  %v98_v23 = vld [vmem:[%s9263_s4] sm:$0xff]  ;;  %vm132_vm0 = vcmask 1040384  }
  0x17   :  { %203 = vmatprep.mubr.f32.mxu0 %v7283_v7  ;;  %284 = vmatprep.mubr.f32.mxu1 %v7283_v7  ;;  %v7441_v22 = vpack.c.bf16 %v101_v20, %v99_v19  ;;  %v100_v24 = vld [vmem:[%s9263_s4 + $0x10] sm:$0xff]  ;;  %v103_v27 = vld [vmem:[%s9263_s4 + $0x28] sm:$0xff]  ;;  %v105_v28 = vld [vmem:[%s9263_s4 + $0x38] sm:$0xff]  ;;  %s9288_s25 = sld [smem:[#allocation6_spill]]  ;;  %vm125_vm1 = vcmask 924672   ;;  %vm307_vm2 = vcmask 1041409  }
  0x18   :  { %v7449_v25 = vpack.c.bf16 %v100_v24, %v98_v23  ;;  %v102_v29 = vld [vmem:[%s9263_s4 + $0x20] sm:$0xff]  ;;  %v7468_v33 = vpack.c.bf16 %v105_v28, %v103_v27  ;;  %v104_v34 = vld [vmem:[%s9263_s4 + $0x30] sm:$0xff]  ;;  %v107_v38 = vld [vmem:[%s9263_s4 + $0x48] sm:$0xff]  ;;  %vm314_vm3 = vcmask 1043459   ;;  %vm317_vm4 = vcmask 1041408   ;;  %s7284_s28 = smov 64  }
  0x19   :  { %6431 = vmatprep.subr.bf16.mxu1 %v7441_v22  ;;  %v7479_v37 = vpack.c.bf16 %v104_v34, %v102_v29  ;;  %v109_v39 = vld [vmem:[%s9263_s4 + $0x58] sm:$0xff]  ;;  %v106_v40 = vld [vmem:[%s9263_s4 + $0x40] sm:$0xff]  ;;  %v108_v41 = vld [vmem:[%s9263_s4 + $0x50] sm:$0xff]  ;;  %s7285_s12 = smov 32   ;;  %vm351_vm5 = vcmask 261120   ;;  %vm216_vm6 = vcmask 523264  }
  0x1a   :  { %6433 = vmatpush1.bf16.msra.mxu1 %v7449_v25  ;;  %v7500_v45 = vpack.c.bf16 %v109_v39, %v107_v38  ;;  %v7506_v48 = vpack.c.bf16 %v108_v41, %v106_v40  ;;  %v111_v49 = vld [vmem:[%s9263_s4 + $0x68] sm:$0xff]  ;;  %v113_v50 = vld [vmem:[%s9263_s4 + $0x78] sm:$0xff]  ;;  %v110_v53 = vld [vmem:[%s9263_s4 + $0x60] sm:$0xff]  ;;  %vm1552_vm7 = vcmask 1042432   ;;  %vm1555_vm8 = vcmask 1043456   ;;  %s9290_s27 = sld [smem:[#allocation9_spill]] }
  0x1b   :  { %6435 = vmatprep.subr.bf16.mxu1 %v7468_v33  ;;  %v7518_v52 = vpack.c.bf16 %v113_v50, %v111_v49  ;;  %v112_v54 = vld [vmem:[%s9263_s4 + $0x70] sm:$0xff]  ;;  %s9289_s4 = sld [smem:[#allocation8_spill]]  ;;  %vm1558_vm9 = vcmask 1044480   ;;  %vm1561_vm10 = vcmask 1045504   ;;  %vm1564_vm11 = vcmask 1046528  }
  0x1c   :  { %v68_v0 = vld [vmem:[%s9287_s23 + $0x8] sm:$0xff]  ;;  %v70_v1 = vld [vmem:[%s9287_s23 + $0x18] sm:$0xff]  ;;  %v67_v2 = vld [vmem:[%s9287_s23] sm:$0xff]  ;;  %v7533_v59 = vpack.c.bf16 %v112_v54, %v110_v53  ;;  %vm7287_vm14 = vmmov 0   ;;  %vm6155_vm15 = vcmask 48128  }
  0x1d   :  { %v6402_v3 = vpack.c.bf16 %v70_v1, %v68_v0  ;;  %v69_v4 = vld [vmem:[%s9287_s23 + $0x10] sm:$0xff]  ;;  %v72_v5 = vld [vmem:[%s9287_s23 + $0x28] sm:$0xff]  ;;  %v74_v6 = vld [vmem:[%s9287_s23 + $0x38] sm:$0xff] }
  0x1e   :  { %v6404_v8 = vpack.c.bf16 %v69_v4, %v67_v2  ;;  %v6406_v9 = vpack.c.bf16 %v74_v6, %v72_v5  ;;  %v71_v10 = vld [vmem:[%s9287_s23 + $0x20] sm:$0xff]  ;;  %v73_v11 = vld [vmem:[%s9287_s23 + $0x30] sm:$0xff]  ;;  %v76_v12 = vld [vmem:[%s9287_s23 + $0x48] sm:$0xff]  ;;  %6437 = vmatpush1.bf16.msra.mxu1 %v7479_v37 }
  0x1f   :  { %6403 = vmatprep.subr.bf16.mxu0 %v6402_v3  ;;  %v78_v13 = vld [vmem:[%s9287_s23 + $0x58] sm:$0xff]  ;;  %v6408_v14 = vpack.c.bf16 %v73_v11, %v71_v10  ;;  %v75_v15 = vld [vmem:[%s9287_s23 + $0x40] sm:$0xff]  ;;  %v77_v16 = vld [vmem:[%s9287_s23 + $0x50] sm:$0xff]  ;;  %6439 = vmatprep.subr.bf16.mxu1 %v7500_v45 }
  0x20   :  { %6405 = vmatpush1.bf16.msra.mxu0 %v6404_v8  ;;  %v6410_v17 = vpack.c.bf16 %v78_v13, %v76_v12  ;;  %v80_v18 = vld [vmem:[%s9287_s23 + $0x68] sm:$0xff]  ;;  %v82_v21 = vld [vmem:[%s9287_s23 + $0x78] sm:$0xff]  ;;  %v6412_v26 = vpack.c.bf16 %v77_v16, %v75_v15  ;;  %v79_v31 = vld [vmem:[%s9287_s23 + $0x60] sm:$0xff]  ;;  %v115_v8 = vlaneseq }
  0x21   :  { %6407 = vmatprep.subr.bf16.mxu0 %v6406_v9  ;;  %v6414_v30 = vpack.c.bf16 %v82_v21, %v80_v18  ;;  %v81_v32 = vld [vmem:[%s9287_s23 + $0x70] sm:$0xff]  ;;  %v84_v35 = vld [vmem:[%s9287_s23 + $0x88] sm:$0xff]  ;;  %v86_v36 = vld [vmem:[%s9287_s23 + $0x98] sm:$0xff] }
  0x22   :  { %v6416_v42 = vpack.c.bf16 %v81_v32, %v79_v31  ;;  %v83_v43 = vld [vmem:[%s9287_s23 + $0x80] sm:$0xff]  ;;  %v85_v44 = vld [vmem:[%s9287_s23 + $0x90] sm:$0xff]  ;;  %v6418_v46 = vpack.c.bf16 %v86_v36, %v84_v35  ;;  %v88_v47 = vld [vmem:[%s9287_s23 + $0xa8] sm:$0xff]  ;;  %6441 = vmatpush1.bf16.msra.mxu1 %v7506_v48  ;;  %v7585_v9 = vshrl.u32 %v115_v8, 7 }
  0x23   :  { %v90_v51 = vld [vmem:[%s9287_s23 + $0xb8] sm:$0xff]  ;;  %v6420_v55 = vpack.c.bf16 %v85_v44, %v83_v43  ;;  %v87_v57 = vld [vmem:[%s9287_s23 + $0xa0] sm:$0xff]  ;;  %v89_v58 = vld [vmem:[%s9287_s23 + $0xb0] sm:$0xff]  ;;  %6443 = vmatprep.subr.bf16.mxu1 %v7518_v52 }
  0x24   :  { %6409 = vmatpush1.bf16.msra.mxu0 %v6408_v14  ;;  %v6422_v56 = vpack.c.bf16 %v90_v51, %v88_v47  ;;  %v92_v60 = vld [vmem:[%s9287_s23 + $0xc8] sm:$0xff]  ;;  %v94_v61 = vld [vmem:[%s9287_s23 + $0xd8] sm:$0xff]  ;;  %v6424_v62 = vpack.c.bf16 %v89_v58, %v87_v57  ;;  %v91_v0 = vld [vmem:[%s9287_s23 + $0xc0] sm:$0xff]  ;;  %v7588_v12 = vsub.s32 1, %v7585_v9  ;;  %v7594_v14 = vsub.s32 0, %v7585_v9 }
  0x25   :  { %6411 = vmatprep.subr.bf16.mxu0 %v6410_v17  ;;  %v6426_v63 = vpack.c.bf16 %v94_v61, %v92_v60  ;;  %v93_v1 = vld [vmem:[%s9287_s23 + $0xd0] sm:$0xff]  ;;  %v96_v3 = vld [vmem:[%s9287_s23 + $0xe8] sm:$0x1]  ;;  %v95_v4 = vld [vmem:[%s9287_s23 + $0xe0] sm:$0x1] }
  0x26   :  { %6445 = vmatpush1.bf16.msra.mxu1 %v7533_v59  ;;  %v6428_v2 = vpack.c.bf16 %v93_v1, %v91_v0  ;;  %v65_v5 = vld [vmem:[%s9288_s25] sm:$0xff]  ;;  %v66_v6 = vld [vmem:[%s9288_s25 + $0x8] sm:$0xff] }
  0x27   :  { %6447 = vmatprep.subr.bf16.mxu1 %v7441_v22  ;;  %v97_v13 = vld [vmem:[%s9289_s4] sm:$0x3] }
  0x28   :  { %6413 = vmatpush1.bf16.msra.mxu0 %v6412_v26  ;;  %v122_v15 = vrot.slane %v97_v13, %v7588_v12  ;;  %v118_v17 = vrot.slane %v97_v13, %v7594_v14 }
  0x29   :  { %6415 = vmatprep.subr.bf16.mxu0 %v6414_v30  ;;  %285 = vmatmul.mubr.f32.vlgmr.msra.gmra.mrb[0].mxu1 %v7283_v7 }
  0x2a   :  { %6449 = vmatpush1.bf16.msra.mxu1 %v7449_v25  ;;  %420 = vmatprep.mubr.f32.mxu1 %v7283_v7 }
  0x2b   :  { %6451 = vmatprep.subr.bf16.mxu1 %v7468_v33 }
  0x2c   :  { %6417 = vmatpush1.bf16.msra.mxu0 %v6416_v42 }
  0x2d   :  { %6419 = vmatprep.subr.bf16.mxu0 %v6418_v46 }
  0x2e   :  { %6453 = vmatpush1.bf16.msra.mxu1 %v7479_v37 }
  0x2f   :  { %6455 = vmatprep.subr.bf16.mxu1 %v7500_v45 }
  0x30   :  { %6421 = vmatpush1.bf16.msra.mxu0 %v6420_v55 }
  0x31   :  { %6423 = vmatprep.subr.bf16.mxu0 %v6422_v56 }
  0x32   :  { %6457 = vmatpush1.bf16.msra.mxu1 %v7506_v48 }
  0x33   :  { %6459 = vmatprep.subr.bf16.mxu1 %v7518_v52 }
  0x34   :  { %6425 = vmatpush1.bf16.msra.mxu0 %v6424_v62 }
  0x35   :  { %6427 = vmatprep.subr.bf16.mxu0 %v6426_v63 }
  0x36   :  { %6461 = vmatpush1.bf16.msra.mxu1 %v7533_v59 }
  0x37   :  { %6479 = vmatprep.subr.bf16.mxu1 %v7441_v22 }
  0x38   :  { %6429 = vmatpush1.bf16.msra.mxu0 %v6428_v2 }
  0x39   :  { %6292 = vmatprep.subr.msk.mxu0 %vm132_vm0, %v96_v3 }
  0x3c   :  { %6293 = vmatpush1.msk.msra.mxu0 %vm132_vm0, %v95_v4 }
  0x3d   :  { %6294 = vmatmul.mubr.msk.f32.vlgmr.msra.gmra.mrb[0].mxu0 %vm125_vm1, %v65_v5  ;;  %6463 = vmatprep.subr.bf16.mxu0 %v7441_v22 }
  0x3e   :  { %209 = vmatprep.mubr.f32.mxu0 %v7283_v7  ;;  %6465 = vmatpush1.bf16.msra.mxu0 %v7449_v25 }
  0x3f   :  { %6467 = vmatprep.subr.bf16.mxu0 %v7468_v33 }
  0x41   :  { %6295 = vmatmul.mubr.msk.f32.gmra.mrb[2].mxu0 %vm125_vm1, %v66_v6 }
  0x42   :  { %552 = vmatprep.mubr.f32.mxu0 %v7283_v7  ;;  %6469 = vmatpush1.bf16.msra.mxu0 %v7479_v37 }
  0x43   :  { %6471 = vmatprep.subr.bf16.mxu0 %v7500_v45 }
  0x46   :  { %6473 = vmatpush1.bf16.msra.mxu0 %v7506_v48 }
  0x47   :  { %6475 = vmatprep.subr.bf16.mxu0 %v7518_v52 }
  0x4a   :  { %6477 = vmatpush1.bf16.msra.mxu0 %v7533_v59 }
  0x4b   :  { %6495 = vmatprep.subr.bf16.mxu0 %v7441_v22 }
  0xfc   :  { %v286_v10 = vpop.f32.mrb[0].mxu1 }
  0xfd   :  { %v288_v11 = vpop.f32.mrb[1].mxu1  ;;  %v292_v21 = vrot.slane %v286_v10, 1 }
  0xfe   :  { %v298_v20 = vrot.slane %v288_v11, 1  ;;  %v299_v23 = vrot.slane %v288_v11, 2 }
 0x110   :  { %v205_v16 = vpop.f32.mrb[0].mxu0 }
 0x111   :  { %v207_v18 = vpop.f32.mrb[1].mxu0  ;;  %v7600_v26 = vadd.f32 %v205_v16, %v118_v17 }
 0x112   :  { %v7598_v19 = vadd.f32 %v207_v18, %v122_v15 }
 0x113   :  { %v295_v34 = vadd.f32 %v286_v10, %v7600_v26 }
 0x114   :  { %v211_v24 = vpop.f32.mrb[2].mxu0  ;;  %v302_v29 = vadd.f32 %v298_v20, %v7598_v19 }
 0x115   :  { %v7602_v27 = vadd.f32 %v211_v24, %v118_v17  ;;  %v213_v28 = vpop.f32.mrb[3].mxu0 }
 0x116   :  { %v7605_v30 = vadd.f32 %v213_v28, %v122_v15  ;;  %v312_v36 = vrot.slane %v302_v29, 5 }
 0x117   :  { %v296_v31 = vadd.f32 %v292_v21, %v7602_v27 }
 0x118   :  { %v303_v32 = vadd.f32 %v299_v23, %v7605_v30 }
 0x119   :  { %v306_v35 = vrot.slane %v296_v31, 7 }
 0x11a   :  { %v313_v38 = vrot.slane %v303_v32, 4 }
 0x11b   :  { %v308_v39 = vsel %vm307_vm2, %v306_v35, %v295_v34 }
 0x11c   :  { %v315_v40 = vsel %vm314_vm3, %v313_v38, %v312_v36 }
 0x11d   :  { %v318_v41 = vsel %vm317_vm4, %v308_v39, %v315_v40 }
 0x11e   :  { %7004 = vtanh.f32 %v318_v41  ;;  %v6296_v43 = vmul.f32 -1.442695, %v318_v41 }
 0x120   :  { %7006 = vpow2.f32 %v6296_v43 }
 0x128   :  { %v7005_v42 = vpop.eup %7004 }
 0x129   :  { %328 = vrot.lane.b32.xlu0 %v7005_v42, %s7284_s28 }
 0x12a   :  { %v7007_v44 = vpop.eup %7006 }
 0x12b   :  { %v322_v46 = vadd.f32 1.0, %v7007_v44 }
 0x12d   :  { %7008 = vrcp.f32 %v322_v46 }
 0x137   :  { %v7009_v47 = vpop.eup %7008 }
 0x138   :  { %v326_v51 = vmul.f32 0.0, %v7009_v47 }
 0x19b   :  { %v329_v49 = vpop.permute.xlu0 %328 }
 0x19c   :  { %v331_v50 = vmul.f32 %v7009_v47, %v329_v49 }
 0x19e   :  { %333 = vrot.lane.b32.xlu0 %v331_v50, %s7285_s12 }
 0x210   :  { %v334_v53 = vpop.permute.xlu0 %333 }
 0x211   :  { %v336_v54 = vadd.f32 %v334_v53, %v326_v51 }
 0x213   :  { %7010 = vtanh.f32 %v336_v54 }
 0x21d   :  { %v7011_v55 = vpop.eup %7010 }
 0x21e   :  { %339 = vrot.lane.b32.xlu1 %v7011_v55, %s7284_s28 }
 0x290   :  { %v340_v56 = vpop.permute.xlu1 %339 }
 0x291   :  { %v342_v57 = vmul.f32 %v7009_v47, %v340_v56 }
 0x293   :  { %v347_v58 = vrot.slane %v342_v57, 2  ;;  %344 = vrot.lane.b32.xlu1 %v342_v57, %s7285_s12 }
 0x295   :  { %348 = vrot.lane.b32.xlu0 %v347_v58, %s7284_s28 }
 0x305   :  { %v7618_v60 = vpop.permute.xlu1 %344 }
 0x307   :  { %v7620_v61 = vpop.permute.xlu0 %348 }
 0x308   :  { %v352_v62 = vsel %vm351_vm5, %v7618_v60, %v7620_v61 }
 0x309   :  { %6297 = vmatmul.mubr.msk.f32.vlgmr.msra.gmra.mrb[2].mxu1 %vm216_vm6, %v352_v62 }
 0x30a   :  { %6481 = vmatpush1.bf16.msra.mxu1 %v7449_v25  ;;  %686 = vmatprep.mubr.f32.mxu1 %v7283_v7 }
 0x30b   :  { %6483 = vmatprep.subr.bf16.mxu1 %v7468_v33 }
 0x30e   :  { %6485 = vmatpush1.bf16.msra.mxu1 %v7479_v37 }
 0x30f   :  { %6487 = vmatprep.subr.bf16.mxu1 %v7500_v45 }
 0x312   :  { %6489 = vmatpush1.bf16.msra.mxu1 %v7506_v48 }
 0x313   :  { %6491 = vmatprep.subr.bf16.mxu1 %v7518_v52 }
 0x316   :  { %6493 = vmatpush1.bf16.msra.mxu1 %v7533_v59 }
 0x317   :  { %6511 = vmatprep.subr.bf16.mxu1 %v7441_v22 }
 0x3dc   :  { %v422_v63 = vpop.f32.mrb[2].mxu1 }
 0x3dd   :  { %v428_v0 = vrot.slane %v422_v63, 7  ;;  %v424_v1 = vpop.f32.mrb[3].mxu1  ;;  %v432_v8 = vadd.f32 %v422_v63, %v7602_v27 }
 0x3de   :  { %v434_v2 = vrot.slane %v424_v1, 2  ;;  %v435_v3 = vrot.slane %v424_v1, 3 }
 0x3df   :  { %v431_v4 = vadd.f32 %v428_v0, %v7600_v26 }
 0x3e0   :  { %v438_v5 = vadd.f32 %v434_v2, %v7598_v19  ;;  %v439_v6 = vadd.f32 %v435_v3, %v7605_v30 }
 0x3e1   :  { %v442_v10 = vrot.slane %v431_v4, 1 }
 0x3e2   :  { %v447_v11 = vrot.slane %v438_v5, 4  ;;  %v448_v13 = vrot.slane %v439_v6, 3 }
 0x3e3   :  { %v443_v15 = vsel %vm307_vm2, %v432_v8, %v442_v10 }
 0x3e4   :  { %v449_v16 = vsel %vm314_vm3, %v448_v13, %v447_v11 }
 0x3e5   :  { %v451_v17 = vsel %vm317_vm4, %v443_v15, %v449_v16 }
 0x3e6   :  { %7012 = vtanh.f32 %v451_v17  ;;  %v6298_v20 = vmul.f32 -1.442695, %v451_v17 }
 0x3e8   :  { %7014 = vpow2.f32 %v6298_v20 }
 0x3f0   :  { %v7013_v18 = vpop.eup %7012 }
 0x3f1   :  { %461 = vrot.lane.b32.xlu1 %v7013_v18, %s7284_s28 }
 0x3f2   :  { %v7015_v21 = vpop.eup %7014 }
 0x3f3   :  { %v455_v23 = vadd.f32 1.0, %v7015_v21 }
 0x3f5   :  { %7016 = vrcp.f32 %v455_v23 }
 0x3ff   :  { %v7017_v24 = vpop.eup %7016 }
 0x400   :  { %v459_v31 = vmul.f32 %v7017_v24, %v336_v54 }
 0x463   :  { %v462_v28 = vpop.permute.xlu1 %461 }
 0x464   :  { %v464_v29 = vmul.f32 %v7017_v24, %v462_v28 }
 0x466   :  { %466 = vrot.lane.b32.xlu0 %v464_v29, %s7285_s12 }
 0x4d8   :  { %v467_v32 = vpop.permute.xlu0 %466 }
 0x4d9   :  { %v469_v34 = vadd.f32 %v467_v32, %v459_v31 }
 0x4db   :  { %7018 = vtanh.f32 %v469_v34 }
 0x4e5   :  { %v7019_v35 = vpop.eup %7018 }
 0x4e6   :  { %472 = vrot.lane.b32.xlu1 %v7019_v35, %s7284_s28 }
 0x558   :  { %v473_v36 = vpop.permute.xlu1 %472 }
 0x559   :  { %v475_v38 = vmul.f32 %v7017_v24, %v473_v36 }
 0x55b   :  { %v480_v39 = vrot.slane %v475_v38, 2  ;;  %477 = vrot.lane.b32.xlu0 %v475_v38, %s7285_s12 }
 0x55d   :  { %481 = vrot.lane.b32.xlu1 %v480_v39, %s7284_s28 }
 0x5cd   :  { %v7647_v40 = vpop.permute.xlu0 %477 }
 0x5cf   :  { %v7649_v41 = vpop.permute.xlu1 %481 }
 0x5d0   :  { %v484_v42 = vsel %vm351_vm5, %v7647_v40, %v7649_v41 }
 0x5d1   :  { %6299 = vmatmul.mubr.msk.f32.vlgmr.msra.gmra.mrb[4].mxu0 %vm216_vm6, %v484_v42 }
 0x5d2   :  { %6497 = vmatpush1.bf16.msra.mxu0 %v7449_v25  ;;  %820 = vmatprep.mubr.f32.mxu0 %v7283_v7 }
 0x5d3   :  { %6499 = vmatprep.subr.bf16.mxu0 %v7468_v33 }
 0x5d6   :  { %6501 = vmatpush1.bf16.msra.mxu0 %v7479_v37 }
 0x5d7   :  { %6503 = vmatprep.subr.bf16.mxu0 %v7500_v45 }
 0x5da   :  { %6505 = vmatpush1.bf16.msra.mxu0 %v7506_v48 }
 0x5db   :  { %6507 = vmatprep.subr.bf16.mxu0 %v7518_v52 }
 0x5de   :  { %6509 = vmatpush1.bf16.msra.mxu0 %v7533_v59 }
 0x5df   :  { %6527 = vmatprep.subr.bf16.mxu0 %v7441_v22 }
 0x6a4   :  { %v554_v43 = vpop.f32.mrb[4].mxu0 }
 0x6a5   :  { %v560_v44 = vrot.slane %v554_v43, 6  ;;  %v561_v46 = vrot.slane %v554_v43, 7  ;;  %v556_v47 = vpop.f32.mrb[5].mxu0 }
 0x6a6   :  { %v567_v49 = vrot.slane %v556_v47, 3  ;;  %v568_v50 = vrot.slane %v556_v47, 4 }
 0x6a7   :  { %v564_v51 = vadd.f32 %v560_v44, %v7600_v26  ;;  %v565_v53 = vadd.f32 %v561_v46, %v7602_v27 }
 0x6a8   :  { %v571_v54 = vadd.f32 %v567_v49, %v7598_v19  ;;  %v572_v55 = vadd.f32 %v568_v50, %v7605_v30 }
 0x6a9   :  { %v575_v56 = vrot.slane %v564_v51, 2  ;;  %v576_v57 = vrot.slane %v565_v53, 1 }
 0x6aa   :  { %v581_v58 = vrot.slane %v571_v54, 3  ;;  %v582_v62 = vrot.slane %v572_v55, 2 }
 0x6ab   :  { %v577_v63 = vsel %vm307_vm2, %v576_v57, %v575_v56 }
 0x6ac   :  { %v583_v0 = vsel %vm314_vm3, %v582_v62, %v581_v58 }
 0x6ad   :  { %v585_v1 = vsel %vm317_vm4, %v577_v63, %v583_v0 }
 0x6ae   :  { %7020 = vtanh.f32 %v585_v1  ;;  %v6300_v3 = vmul.f32 -1.442695, %v585_v1 }
 0x6b0   :  { %7022 = vpow2.f32 %v6300_v3 }
 0x6b8   :  { %v7021_v2 = vpop.eup %7020 }
 0x6b9   :  { %595 = vrot.lane.b32.xlu0 %v7021_v2, %s7284_s28 }
 0x6ba   :  { %v7023_v4 = vpop.eup %7022 }
 0x6bb   :  { %v589_v5 = vadd.f32 1.0, %v7023_v4 }
 0x6bd   :  { %7024 = vrcp.f32 %v589_v5 }
 0x6c7   :  { %v7025_v6 = vpop.eup %7024 }
 0x6c8   :  { %v593_v11 = vmul.f32 %v7025_v6, %v469_v34 }
 0x72b   :  { %v596_v8 = vpop.permute.xlu0 %595 }
 0x72c   :  { %v598_v10 = vmul.f32 %v7025_v6, %v596_v8 }
 0x72e   :  { %600 = vrot.lane.b32.xlu1 %v598_v10, %s7285_s12 }
 0x7a0   :  { %v601_v13 = vpop.permute.xlu1 %600 }
 0x7a1   :  { %v603_v15 = vadd.f32 %v601_v13, %v593_v11 }
 0x7a3   :  { %7026 = vtanh.f32 %v603_v15 }
 0x7ad   :  { %v7027_v16 = vpop.eup %7026 }
 0x7ae   :  { %606 = vrot.lane.b32.xlu0 %v7027_v16, %s7284_s28 }
 0x820   :  { %v607_v17 = vpop.permute.xlu0 %606 }
 0x821   :  { %v609_v18 = vmul.f32 %v7025_v6, %v607_v17 }
 0x823   :  { %v614_v20 = vrot.slane %v609_v18, 2  ;;  %611 = vrot.lane.b32.xlu1 %v609_v18, %s7285_s12 }
 0x825   :  { %615 = vrot.lane.b32.xlu0 %v614_v20, %s7284_s28 }
 0x895   :  { %v7676_v21 = vpop.permute.xlu1 %611 }
 0x897   :  { %v7678_v23 = vpop.permute.xlu0 %615 }
 0x898   :  { %v618_v24 = vsel %vm351_vm5, %v7676_v21, %v7678_v23 }
 0x899   :  { %6301 = vmatmul.mubr.msk.f32.vlgmr.msra.gmra.mrb[4].mxu1 %vm216_vm6, %v618_v24 }
 0x89a   :  { %6513 = vmatpush1.bf16.msra.mxu1 %v7449_v25  ;;  %953 = vmatprep.mubr.f32.mxu1 %v7283_v7 }
 0x89b   :  { %6515 = vmatprep.subr.bf16.mxu1 %v7468_v33 }
 0x89e   :  { %6517 = vmatpush1.bf16.msra.mxu1 %v7479_v37 }
 0x89f   :  { %6519 = vmatprep.subr.bf16.mxu1 %v7500_v45 }
 0x8a2   :  { %6521 = vmatpush1.bf16.msra.mxu1 %v7506_v48 }
 0x8a3   :  { %6523 = vmatprep.subr.bf16.mxu1 %v7518_v52 }
 0x8a6   :  { %6525 = vmatpush1.bf16.msra.mxu1 %v7533_v59 }
 0x8a7   :  { %6543 = vmatprep.subr.bf16.mxu1 %v7441_v22 }
 0x96c   :  { %v688_v28 = vpop.f32.mrb[4].mxu1 }
 0x96d   :  { %v694_v29 = vrot.slane %v688_v28, 5  ;;  %v695_v31 = vrot.slane %v688_v28, 6  ;;  %v690_v32 = vpop.f32.mrb[5].mxu1 }
 0x96e   :  { %v701_v34 = vrot.slane %v690_v32, 4  ;;  %v702_v35 = vrot.slane %v690_v32, 5 }
 0x96f   :  { %v698_v36 = vadd.f32 %v694_v29, %v7600_v26  ;;  %v699_v38 = vadd.f32 %v695_v31, %v7602_v27 }
 0x970   :  { %v705_v39 = vadd.f32 %v701_v34, %v7598_v19  ;;  %v706_v42 = vadd.f32 %v702_v35, %v7605_v30 }
 0x971   :  { %v709_v43 = vrot.slane %v698_v36, 3  ;;  %v710_v44 = vrot.slane %v699_v38, 2 }
 0x972   :  { %v715_v46 = vrot.slane %v705_v39, 2  ;;  %v716_v47 = vrot.slane %v706_v42, 1 }
 0x973   :  { %v711_v22 = vsel %vm307_vm2, %v710_v44, %v709_v43 }
 0x974   :  { %v717_v49 = vsel %vm314_vm3, %v716_v47, %v715_v46 }
 0x975   :  { %v719_v50 = vsel %vm317_vm4, %v711_v22, %v717_v49 }
 0x976   :  { %7028 = vtanh.f32 %v719_v50  ;;  %v6302_v53 = vmul.f32 -1.442695, %v719_v50 }
 0x978   :  { %7030 = vpow2.f32 %v6302_v53 }
 0x980   :  { %v7029_v51 = vpop.eup %7028 }
 0x981   :  { %729 = vrot.lane.b32.xlu1 %v7029_v51, %s7284_s28 }
 0x982   :  { %v7031_v54 = vpop.eup %7030 }
 0x983   :  { %v723_v55 = vadd.f32 1.0, %v7031_v54 }
 0x985   :  { %7032 = vrcp.f32 %v723_v55 }
 0x98f   :  { %v7033_v56 = vpop.eup %7032 }
 0x990   :  { %v727_v62 = vmul.f32 %v7033_v56, %v603_v15 }
 0x9f3   :  { %v730_v57 = vpop.permute.xlu1 %729 }
 0x9f4   :  { %v732_v58 = vmul.f32 %v7033_v56, %v730_v57 }
 0x9f6   :  { %734 = vrot.lane.b32.xlu0 %v732_v58, %s7285_s12 }
 0xa68   :  { %v735_v63 = vpop.permute.xlu0 %734 }
 0xa69   :  { %v737_v0 = vadd.f32 %v735_v63, %v727_v62 }
 0xa6b   :  { %7034 = vtanh.f32 %v737_v0 }
 0xa75   :  { %v7035_v1 = vpop.eup %7034 }
 0xa76   :  { %740 = vrot.lane.b32.xlu1 %v7035_v1, %s7284_s28 }
 0xae8   :  { %v741_v2 = vpop.permute.xlu1 %740 }
 0xae9   :  { %v743_v3 = vmul.f32 %v7033_v56, %v741_v2 }
 0xaeb   :  { %v748_v4 = vrot.slane %v743_v3, 2  ;;  %745 = vrot.lane.b32.xlu0 %v743_v3, %s7285_s12 }
 0xaed   :  { %749 = vrot.lane.b32.xlu1 %v748_v4, %s7284_s28 }
 0xb5d   :  { %v7705_v5 = vpop.permute.xlu0 %745 }
 0xb5f   :  { %v7707_v6 = vpop.permute.xlu1 %749 }
 0xb60   :  { %v752_v8 = vsel %vm351_vm5, %v7705_v5, %v7707_v6 }
 0xb61   :  { %6303 = vmatmul.mubr.msk.f32.vlgmr.msra.gmra.mrb[6].mxu0 %vm216_vm6, %v752_v8 }
 0xb62   :  { %6529 = vmatpush1.bf16.msra.mxu0 %v7449_v25  ;;  %1086 = vmatprep.mubr.f32.mxu0 %v7283_v7 }
 0xb63   :  { %6531 = vmatprep.subr.bf16.mxu0 %v7468_v33 }
 0xb66   :  { %6533 = vmatpush1.bf16.msra.mxu0 %v7479_v37 }
 0xb67   :  { %6535 = vmatprep.subr.bf16.mxu0 %v7500_v45 }
 0xb6a   :  { %6537 = vmatpush1.bf16.msra.mxu0 %v7506_v48 }
 0xb6b   :  { %6539 = vmatprep.subr.bf16.mxu0 %v7518_v52 }
 0xb6e   :  { %6541 = vmatpush1.bf16.msra.mxu0 %v7533_v59 }
 0xc34   :  { %v822_v10 = vpop.f32.mrb[6].mxu0 }
 0xc35   :  { %v828_v11 = vrot.slane %v822_v10, 4  ;;  %v829_v13 = vrot.slane %v822_v10, 5  ;;  %v824_v15 = vpop.f32.mrb[7].mxu0 }
 0xc36   :  { %v835_v16 = vrot.slane %v824_v15, 5  ;;  %v836_v17 = vrot.slane %v824_v15, 6 }
 0xc37   :  { %v832_v18 = vadd.f32 %v828_v11, %v7600_v26  ;;  %v833_v20 = vadd.f32 %v829_v13, %v7602_v27 }
 0xc38   :  { %v839_v24 = vadd.f32 %v835_v16, %v7598_v19  ;;  %v840_v31 = vadd.f32 %v836_v17, %v7605_v30 }
 0xc39   :  { %v843_v28 = vrot.slane %v832_v18, 4  ;;  %v844_v29 = vrot.slane %v833_v20, 3 }
 0xc3a   :  { %v849_v32 = vrot.slane %v839_v24, 1 }
 0xc3b   :  { %v845_v34 = vsel %vm307_vm2, %v844_v29, %v843_v28 }
 0xc3c   :  { %v850_v35 = vsel %vm314_vm3, %v840_v31, %v849_v32 }
 0xc3d   :  { %v852_v36 = vsel %vm317_vm4, %v845_v34, %v850_v35 }
 0xc3e   :  { %7036 = vtanh.f32 %v852_v36  ;;  %v6304_v39 = vmul.f32 -1.442695, %v852_v36 }
 0xc40   :  { %7038 = vpow2.f32 %v6304_v39 }
 0xc48   :  { %v7037_v38 = vpop.eup %7036 }
 0xc49   :  { %862 = vrot.lane.b32.xlu0 %v7037_v38, %s7284_s28 }
 0xc4a   :  { %v7039_v42 = vpop.eup %7038 }
 0xc4b   :  { %v856_v43 = vadd.f32 1.0, %v7039_v42 }
 0xc4d   :  { %7040 = vrcp.f32 %v856_v43 }
 0xc57   :  { %v7041_v44 = vpop.eup %7040 }
 0xc58   :  { %v860_v22 = vmul.f32 %v7041_v44, %v737_v0 }
 0xcbb   :  { %v863_v46 = vpop.permute.xlu0 %862 }
 0xcbc   :  { %v865_v47 = vmul.f32 %v7041_v44, %v863_v46 }
 0xcbe   :  { %867 = vrot.lane.b32.xlu1 %v865_v47, %s7285_s12 }
 0xd30   :  { %v868_v49 = vpop.permute.xlu1 %867 }
 0xd31   :  { %v870_v50 = vadd.f32 %v868_v49, %v860_v22 }
 0xd33   :  { %7042 = vtanh.f32 %v870_v50 }
 0xd3d   :  { %v7043_v51 = vpop.eup %7042 }
 0xd3e   :  { %873 = vrot.lane.b32.xlu0 %v7043_v51, %s7284_s28 }
 0xdb0   :  { %v874_v53 = vpop.permute.xlu0 %873 }
 0xdb1   :  { %v876_v54 = vmul.f32 %v7041_v44, %v874_v53 }
 0xdb3   :  { %v881_v55 = vrot.slane %v876_v54, 2  ;;  %878 = vrot.lane.b32.xlu1 %v876_v54, %s7285_s12 }
 0xdb5   :  { %882 = vrot.lane.b32.xlu0 %v881_v55, %s7284_s28 }
 0xe25   :  { %v7733_v56 = vpop.permute.xlu1 %878 }
 0xe27   :  { %v7735_v57 = vpop.permute.xlu0 %882 }
 0xe28   :  { %v885_v58 = vsel %vm351_vm5, %v7733_v56, %v7735_v57 }
 0xe29   :  { %6305 = vmatmul.mubr.msk.f32.vlgmr.msra.gmra.mrb[6].mxu1 %vm216_vm6, %v885_v58 }
 0xe2a   :  { %6545 = vmatpush1.bf16.msra.mxu1 %v7449_v25  ;;  %1219 = vmatprep.mubr.f32.mxu1 %v7283_v7 }
 0xe2b   :  { %6547 = vmatprep.subr.bf16.mxu1 %v7468_v33 }
 0xe2e   :  { %6549 = vmatpush1.bf16.msra.mxu1 %v7479_v37 }
 0xe2f   :  { %6551 = vmatprep.subr.bf16.mxu1 %v7500_v45 }
 0xe32   :  { %6553 = vmatpush1.bf16.msra.mxu1 %v7506_v48 }
 0xe33   :  { %6555 = vmatprep.subr.bf16.mxu1 %v7518_v52 }
 0xe36   :  { %6557 = vmatpush1.bf16.msra.mxu1 %v7533_v59 }
 0xefc   :  { %v955_v62 = vpop.f32.mrb[6].mxu1 }
 0xefd   :  { %v961_v63 = vrot.slane %v955_v62, 3  ;;  %v962_v0 = vrot.slane %v955_v62, 4  ;;  %v957_v1 = vpop.f32.mrb[7].mxu1 }
 0xefe   :  { %v968_v2 = vrot.slane %v957_v1, 6  ;;  %v969_v25 = vrot.slane %v957_v1, 7 }
 0xeff   :  { %v965_v3 = vadd.f32 %v961_v63, %v7600_v26  ;;  %v966_v33 = vadd.f32 %v962_v0, %v7602_v27 }
 0xf00   :  { %v973_v37 = vadd.f32 %v969_v25, %v7605_v30  ;;  %v972_v48 = vadd.f32 %v968_v2, %v7598_v19 }
 0xf01   :  { %v976_v4 = vrot.slane %v965_v3, 5  ;;  %v977_v45 = vrot.slane %v966_v33, 4 }
 0xf02   :  { %v982_v8 = vrot.slane %v973_v37, 7 }
 0xf03   :  { %v978_v52 = vsel %vm307_vm2, %v977_v45, %v976_v4 }
 0xf04   :  { %v983_v59 = vsel %vm314_vm3, %v982_v8, %v972_v48 }
 0xf05   :  { %v985_v10 = vsel %vm317_vm4, %v978_v52, %v983_v59 }
 0xf06   :  { %7044 = vtanh.f32 %v985_v10  ;;  %v6306_v13 = vmul.f32 -1.442695, %v985_v10 }
 0xf08   :  { %7046 = vpow2.f32 %v6306_v13 }
 0xf10   :  { %v7045_v11 = vpop.eup %7044 }
 0xf11   :  { %995 = vrot.lane.b32.xlu1 %v7045_v11, %s7284_s28 }
 0xf12   :  { %v7047_v15 = vpop.eup %7046 }
 0xf13   :  { %v989_v16 = vadd.f32 1.0, %v7047_v15 }
 0xf15   :  { %7048 = vrcp.f32 %v989_v16 }
 0xf1f   :  { %v7049_v17 = vpop.eup %7048 }
 0xf20   :  { %v993_v24 = vmul.f32 %v7049_v17, %v870_v50 }
 0xf83   :  { %v996_v18 = vpop.permute.xlu1 %995 }
 0xf84   :  { %v998_v20 = vmul.f32 %v7049_v17, %v996_v18 }
 0xf86   :  { %1000 = vrot.lane.b32.xlu0 %v998_v20, %s7285_s12 }
 0xff8   :  { %v1001_v28 = vpop.permute.xlu0 %1000 }
 0xff9   :  { %v1003_v29 = vadd.f32 %v1001_v28, %v993_v24 }
 0xffb   :  { %7050 = vtanh.f32 %v1003_v29 }
0x1005   :  { %v7051_v31 = vpop.eup %7050 }
0x1006   :  { %1006 = vrot.lane.b32.xlu1 %v7051_v31, %s7284_s28 }
0x1078   :  { %v1007_v32 = vpop.permute.xlu1 %1006 }
0x1079   :  { %v1009_v34 = vmul.f32 %v7049_v17, %v1007_v32 }
0x107b   :  { %v1014_v35 = vrot.slane %v1009_v34, 2  ;;  %1011 = vrot.lane.b32.xlu0 %v1009_v34, %s7285_s12 }
0x107d   :  { %1015 = vrot.lane.b32.xlu1 %v1014_v35, %s7284_s28 }
0x10ed   :  { %v7761_v36 = vpop.permute.xlu0 %1011 }
0x10ef   :  { %v7763_v38 = vpop.permute.xlu1 %1015 }
0x10f0   :  { %v1018_v39 = vsel %vm351_vm5, %v7761_v36, %v7763_v38 }
0x10f1   :  { %6307 = vmatmul.mubr.msk.f32.vlgmr.msra.gmra.mrb[8].mxu0 %vm216_vm6, %v1018_v39 }
0x10f2   :  { %1681 = vmatprep.mubr.f32.mxu0 %v7283_v7 }
0x11c4   :  { %v1088_v42 = vpop.f32.mrb[8].mxu0 }
0x11c5   :  { %v1094_v43 = vrot.slane %v1088_v42, 2  ;;  %v1095_v44 = vrot.slane %v1088_v42, 3  ;;  %v1090_v46 = vpop.f32.mrb[9].mxu0 }
0x11c6   :  { %v1101_v47 = vrot.slane %v1090_v46, 7  ;;  %v1105_v22 = vadd.f32 %v1090_v46, %v7605_v30 }
0x11c7   :  { %v1098_v49 = vadd.f32 %v1094_v43, %v7600_v26  ;;  %v1099_v50 = vadd.f32 %v1095_v44, %v7602_v27 }
0x11c8   :  { %v1104_v51 = vadd.f32 %v1101_v47, %v7598_v19  ;;  %v1115_v58 = vrot.slane %v1105_v22, 6 }
0x11c9   :  { %v1108_v53 = vrot.slane %v1098_v49, 6  ;;  %v1109_v54 = vrot.slane %v1099_v50, 5 }
0x11ca   :  { %v1114_v55 = vrot.slane %v1104_v51, 7 }
0x11cb   :  { %v1110_v62 = vsel %vm307_vm2, %v1109_v54, %v1108_v53 }
0x11cc   :  { %v1116_v63 = vsel %vm314_vm3, %v1115_v58, %v1114_v55  ;;  %v1568_v55 = vld [vmem:[%s9264_s5 + $0x8] sm:$0xff]  ;;  %v1570_v58 = vld [vmem:[%s9264_s5 + $0x18] sm:$0xff] }
0x11cd   :  { %v1118_v0 = vsel %vm317_vm4, %v1110_v62, %v1116_v63  ;;  %v1585_v62 = vld [vmem:[%s9266_s7 + $0x8] sm:$0xff]  ;;  %v6558_v63 = vpack.c.bf16 %v1570_v58, %v1568_v55  ;;  %v1596_v58 = vld [vmem:[%s9266_s7 + $0x60] sm:$0xff] }
0x11ce   :  { %7052 = vtanh.f32 %v1118_v0  ;;  %v6308_v2 = vmul.f32 -1.442695, %v1118_v0  ;;  %v1587_v0 = vld [vmem:[%s9266_s7 + $0x18] sm:$0xff] }
0x11cf   :  { %6559 = vmatprep.subr.bf16.mxu0 %v6558_v63 }
0x11d0   :  { %7054 = vpow2.f32 %v6308_v2  ;;  %v1569_v2 = vld [vmem:[%s9264_s5 + $0x10] sm:$0xff] }
0x11d8   :  { %v7053_v1 = vpop.eup %7052 }
0x11d9   :  { %1128 = vrot.lane.b32.xlu0 %v7053_v1, %s7284_s28  ;;  %v1567_v1 = vld [vmem:[%s9264_s5] sm:$0xff] }
0x11da   :  { %v7055_v25 = vpop.eup %7054 }
0x11db   :  { %v1122_v3 = vadd.f32 1.0, %v7055_v25  ;;  %v7822_v25 = vpack.c.bf16 %v1587_v0, %v1585_v62  ;;  %v1598_v62 = vld [vmem:[%s9266_s7 + $0x70] sm:$0xff] }
0x11dc   :  { %v7921_v0 = vpack.c.bf16 %v1598_v62, %v1596_v58 }
0x11dd   :  { %7056 = vrcp.f32 %v1122_v3  ;;  %v6560_v3 = vpack.c.bf16 %v1569_v2, %v1567_v1  ;;  %6575 = vmatprep.subr.bf16.mxu1 %v7822_v25 }
0x11df   :  { %6561 = vmatpush1.bf16.msra.mxu0 %v6560_v3 }
0x11e7   :  { %v7057_v33 = vpop.eup %7056 }
0x11e8   :  { %v1126_v45 = vmul.f32 %v7057_v33, %v1003_v29 }
0x124b   :  { %v1129_v37 = vpop.permute.xlu0 %1128 }
0x124c   :  { %v1131_v4 = vmul.f32 %v7057_v33, %v1129_v37  ;;  %v1586_v37 = vld [vmem:[%s9266_s7 + $0x10] sm:$0xff] }
0x124e   :  { %1133 = vrot.lane.b32.xlu1 %v1131_v4, %s7285_s12 }
0x12c0   :  { %v1134_v48 = vpop.permute.xlu1 %1133 }
0x12c1   :  { %v1136_v8 = vadd.f32 %v1134_v48, %v1126_v45  ;;  %v1572_v48 = vld [vmem:[%s9264_s5 + $0x28] sm:$0xff] }
0x12c3   :  { %7058 = vtanh.f32 %v1136_v8 }
0x12cd   :  { %v7059_v52 = vpop.eup %7058 }
0x12ce   :  { %1139 = vrot.lane.b32.xlu0 %v7059_v52, %s7284_s28  ;;  %v1589_v52 = vld [vmem:[%s9266_s7 + $0x28] sm:$0xff] }
0x1340   :  { %v1140_v59 = vpop.permute.xlu0 %1139 }
0x1341   :  { %v1142_v10 = vmul.f32 %v7057_v33, %v1140_v59  ;;  %v1584_v33 = vld [vmem:[%s9266_s7] sm:$0xff] }
0x1342   :  { %v7830_v4 = vpack.c.bf16 %v1586_v37, %v1584_v33 }
0x1343   :  { %v1147_v11 = vrot.slane %v1142_v10, 2  ;;  %1144 = vrot.lane.b32.xlu1 %v1142_v10, %s7285_s12  ;;  %v1591_v10 = vld [vmem:[%s9266_s7 + $0x38] sm:$0xff] }
0x1345   :  { %1148 = vrot.lane.b32.xlu0 %v1147_v11, %s7284_s28  ;;  %v1571_v11 = vld [vmem:[%s9264_s5 + $0x20] sm:$0xff] }
0x13b5   :  { %v7782_v13 = vpop.permute.xlu1 %1144 }
0x13b7   :  { %v7784_v15 = vpop.permute.xlu0 %1148 }
0x13b8   :  { %v1151_v16 = vsel %vm351_vm5, %v7782_v13, %v7784_v15 }
0x13b9   :  { %6309 = vmatmul.mubr.msk.f32.vlgmr.msra.gmra.mrb[8].mxu1 %vm216_vm6, %v1151_v16  ;;  %v1573_v16 = vld [vmem:[%s9264_s5 + $0x30] sm:$0xff] }
0x13ba   :  { %1758 = vmatprep.mubr.f32.mxu1 %v7283_v7  ;;  %6577 = vmatpush1.bf16.msra.mxu1 %v7830_v4 }
0x148c   :  { %v1221_v17 = vpop.f32.mrb[8].mxu1 }
0x148d   :  { %v1227_v18 = vrot.slane %v1221_v17, 1  ;;  %v1228_v20 = vrot.slane %v1221_v17, 2  ;;  %v1223_v24 = vpop.f32.mrb[9].mxu1  ;;  %v7853_v17 = vpack.c.bf16 %v1591_v10, %v1589_v52  ;;  %v1286_v10 = vsel %vm351_vm5, %v7761_v36, %v7678_v23 }
0x148e   :  { %v1234_v28 = vrot.slane %v1223_v24, 1  ;;  %v1237_v29 = vadd.f32 %v1223_v24, %v7598_v19  ;;  %v1590_v24 = vld [vmem:[%s9266_s7 + $0x30] sm:$0xff] }
0x148f   :  { %v1231_v31 = vadd.f32 %v1227_v18, %v7600_v26  ;;  %v1232_v32 = vadd.f32 %v1228_v20, %v7602_v27  ;;  %v6564_v18 = vpack.c.bf16 %v1573_v16, %v1571_v11  ;;  %v1588_v20 = vld [vmem:[%s9266_s7 + $0x20] sm:$0xff]  ;;  %6579 = vmatprep.subr.bf16.mxu1 %v7853_v17 }
0x1490   :  { %v1238_v34 = vadd.f32 %v1234_v28, %v7605_v30  ;;  %v1247_v42 = vrot.slane %v1237_v29, 6  ;;  %v7861_v28 = vpack.c.bf16 %v1590_v24, %v1588_v20  ;;  %v1576_v29 = vld [vmem:[%s9264_s5 + $0x48] sm:$0xff] }
0x1491   :  { %v1241_v35 = vrot.slane %v1231_v31, 7  ;;  %v1242_v39 = vrot.slane %v1232_v32, 6  ;;  %v1578_v31 = vld [vmem:[%s9264_s5 + $0x58] sm:$0xff]  ;;  %v1593_v32 = vld [vmem:[%s9266_s7 + $0x48] sm:$0xff] }
0x1492   :  { %v1248_v43 = vrot.slane %v1238_v34, 5  ;;  %6581 = vmatpush1.bf16.msra.mxu1 %v7861_v28  ;;  %v6566_v34 = vpack.c.bf16 %v1578_v31, %v1576_v29 }
0x1493   :  { %v1243_v44 = vsel %vm307_vm2, %v1242_v39, %v1241_v35  ;;  %v1595_v35 = vld [vmem:[%s9266_s7 + $0x58] sm:$0xff]  ;;  %v1575_v39 = vld [vmem:[%s9264_s5 + $0x40] sm:$0xff] }
0x1494   :  { %v1249_v46 = vsel %vm314_vm3, %v1248_v43, %v1247_v42  ;;  %v1577_v42 = vld [vmem:[%s9264_s5 + $0x50] sm:$0xff]  ;;  %v7883_v43 = vpack.c.bf16 %v1595_v35, %v1593_v32 }
0x1495   :  { %v1251_v47 = vsel %vm317_vm4, %v1243_v44, %v1249_v46  ;;  %v6568_v44 = vpack.c.bf16 %v1577_v42, %v1575_v39  ;;  %v1592_v46 = vld [vmem:[%s9266_s7 + $0x40] sm:$0xff] }
0x1496   :  { %7060 = vtanh.f32 %v1251_v47  ;;  %v6310_v19 = vmul.f32 -1.442695, %v1251_v47  ;;  %v1594_v47 = vld [vmem:[%s9266_s7 + $0x50] sm:$0xff]  ;;  %6583 = vmatprep.subr.bf16.mxu1 %v7883_v43 }
0x1498   :  { %7062 = vpow2.f32 %v6310_v19  ;;  %v1580_v19 = vld [vmem:[%s9264_s5 + $0x68] sm:$0xff] }
0x14a0   :  { %v7061_v22 = vpop.eup %7060 }
0x14a1   :  { %1261 = vrot.lane.b32.xlu1 %v7061_v22, %s7284_s28  ;;  %v7891_v22 = vpack.c.bf16 %v1594_v47, %v1592_v46 }
0x14a2   :  { %v7063_v26 = vpop.eup %7062 }
0x14a3   :  { %v1255_v27 = vadd.f32 1.0, %v7063_v26  ;;  %v1582_v26 = vld [vmem:[%s9264_s5 + $0x78] sm:$0xff]  ;;  %6585 = vmatpush1.bf16.msra.mxu1 %v7891_v22 }
0x14a5   :  { %7064 = vrcp.f32 %v1255_v27  ;;  %v1597_v27 = vld [vmem:[%s9266_s7 + $0x68] sm:$0xff] }
0x14af   :  { %v7799_v30 = vpop.eup %7064 }
0x14b0   :  { %v1259_v51 = vmul.f32 %v7799_v30, %v1136_v8  ;;  %v1574_v8 = vld [vmem:[%s9264_s5 + $0x38] sm:$0xff] }
0x14b1   :  { %v6562_v59 = vpack.c.bf16 %v1574_v8, %v1572_v48  ;;  %v1284_v48 = vsel %vm351_vm5, %v7705_v5, %v7735_v57 }
0x14b3   :  { %6563 = vmatprep.subr.bf16.mxu0 %v6562_v59  ;;  %v1282_v59 = vsel %vm351_vm5, %v7647_v40, %v7784_v15  ;;  %v1287_v40 = vsel %vm351_vm5, %v7782_v13, %v7649_v41 }
0x14b4   :  { %6565 = vmatpush1.bf16.msra.mxu0 %v6564_v18 }
0x14b5   :  { %6567 = vmatprep.subr.bf16.mxu0 %v6566_v34 }
0x14b8   :  { %6569 = vmatpush1.bf16.msra.mxu0 %v6568_v44 }
0x1513   :  { %v1262_v49 = vpop.permute.xlu1 %1261 }
0x1514   :  { %v1264_v50 = vmul.f32 %v7799_v30, %v1262_v49  ;;  %v6570_v49 = vpack.c.bf16 %v1582_v26, %v1580_v19 }
0x1516   :  { %1266 = vrot.lane.b32.xlu0 %v1264_v50, %s7285_s12  ;;  %v1599_v50 = vld [vmem:[%s9266_s7 + $0x78] sm:$0xff]  ;;  %6571 = vmatprep.subr.bf16.mxu0 %v6570_v49 }
0x1588   :  { %v1267_v53 = vpop.permute.xlu0 %1266 }
0x1589   :  { %v1269_v54 = vadd.f32 %v1267_v53, %v1259_v51  ;;  %v1579_v51 = vld [vmem:[%s9264_s5 + $0x60] sm:$0xff]  ;;  %v1581_v53 = vld [vmem:[%s9264_s5 + $0x70] sm:$0xff] }
0x158a   :  { %v6572_v55 = vpack.c.bf16 %v1581_v53, %v1579_v51 }
0x158b   :  { %7066 = vtanh.f32 %v1269_v54  ;;  %v7913_v54 = vpack.c.bf16 %v1599_v50, %v1597_v27 }
0x158c   :  { %6573 = vmatpush1.bf16.msra.mxu0 %v6572_v55 }
0x158d   :  { %6587 = vmatprep.subr.bf16.mxu1 %v7913_v54  ;;  %6591 = vmatprep.subr.bf16.mxu0 %v7822_v25 }
0x158e   :  { %6589 = vmatpush1.bf16.msra.mxu1 %v7921_v0 }
0x158f   :  { %6607 = vmatprep.subr.bf16.mxu1 %v7822_v25 }
0x1591   :  { %1759 = vmatmul.mubr.f32.vlgmr.msra.gmra.mrb[10].mxu1 %v7283_v7 }
0x1592   :  { %6609 = vmatpush1.bf16.msra.mxu1 %v7830_v4  ;;  %2022 = vmatprep.mubr.f32.mxu1 %v7283_v7 }
0x1593   :  { %6611 = vmatprep.subr.bf16.mxu1 %v7853_v17 }
0x1595   :  { %v7067_v45 = vpop.eup %7066 }
0x1596   :  { %1272 = vrot.lane.b32.xlu1 %v7067_v45, %s7284_s28  ;;  %6613 = vmatpush1.bf16.msra.mxu1 %v7861_v28  ;;  %v1285_v45 = vsel %vm351_vm5, %v7733_v56, %v7707_v6  ;;  %v1283_v6 = vsel %vm351_vm5, %v7676_v21, %v7763_v38 }
0x1597   :  { %6615 = vmatprep.subr.bf16.mxu1 %v7883_v43 }
0x159a   :  { %6617 = vmatpush1.bf16.msra.mxu1 %v7891_v22 }
0x159b   :  { %6619 = vmatprep.subr.bf16.mxu1 %v7913_v54 }
0x159e   :  { %6621 = vmatpush1.bf16.msra.mxu1 %v7921_v0 }
0x159f   :  { %6639 = vmatprep.subr.bf16.mxu1 %v7822_v25 }
0x1608   :  { %v1273_v63 = vpop.permute.xlu1 %1272 }
0x1609   :  { %v1275_v1 = vmul.f32 %v7799_v30, %v1273_v63  ;;  %v7286_v30 = vmov 1966171168  }
0x160a   :  { %v1294_v3 = vunpack.c.l.s4 %v7286_v30 }
0x160b   :  { %v1277_v2 = vrot.slane %v1275_v1, 2  ;;  %1288 = vrot.lane.b32.xlu1 %v1275_v1, %s7285_s12 }
0x160c   :  { %v1295_v33 = vunpack.c.0.s8 %v1294_v3 }
0x160d   :  { %1278 = vrot.lane.b32.xlu0 %v1277_v2, %s7284_s28 }
0x160e   :  { %v7941_v37 = vsub.s32 %v1295_v33, %v7585_v9 }
0x1610   :  { %v1393_v8 = vrot.slane %v1285_v45, %v7941_v37  ;;  %v1370_v52 = vrot.slane %v1284_v48, %v7941_v37  ;;  %v1324_v11 = vrot.slane %v1282_v59, %v7941_v37  ;;  %v1416_v57 = vrot.slane %v1286_v10, %v7941_v37 }
0x1611   :  { %v1347_v16 = vrot.slane %v1283_v6, %v7941_v37  ;;  %v1439_v31 = vrot.slane %v1287_v40, %v7941_v37 }
0x1612   :  { %v1394_v56 = vcombine.high %v1393_v8, %v1393_v8  ;;  %v1371_v5 = vcombine.high %v1370_v52, %v1370_v52  ;;  %v1401_v15 = vrot.slane %v1393_v8, %v7941_v37  ;;  %v1325_v36 = vcombine.high %v1324_v11, %v1324_v11 }
0x1613   :  { %v1378_v18 = vrot.slane %v1370_v52, %v7941_v37  ;;  %v1417_v38 = vcombine.high %v1416_v57, %v1416_v57  ;;  %v1424_v24 = vrot.slane %v1416_v57, %v7941_v37  ;;  %v1348_v29 = vcombine.high %v1347_v16, %v1347_v16 }
0x1614   :  { %v1408_v23 = vrot.slane %v1394_v56, %v7941_v37  ;;  %v1385_v21 = vrot.slane %v1371_v5, %v7941_v37  ;;  %v1355_v41 = vrot.slane %v1347_v16, %v7941_v37  ;;  %v1332_v13 = vrot.slane %v1324_v11, %v7941_v37 }
0x1615   :  { %v1511_v35 = vrot.slane %v1401_v15, %v7594_v14  ;;  %v1339_v42 = vrot.slane %v1325_v36, %v7941_v37  ;;  %v1501_v46 = vrot.slane %v1378_v18, %v7594_v14  ;;  %v1431_v26 = vrot.slane %v1417_v38, %v7941_v37 }
0x1616   :  { %v1515_v39 = vrot.slane %v1408_v23, %v7594_v14  ;;  %v1505_v47 = vrot.slane %v1385_v21, %v7594_v14  ;;  %v1521_v27 = vrot.slane %v1424_v24, %v7594_v14  ;;  %v1362_v49 = vrot.slane %v1348_v29, %v7941_v37  ;;  %v1583_v29 = vld [vmem:[%s9265_s6] sm:$0x3] }
0x1617   :  { %v1440_v50 = vcombine.high %v1439_v31, %v1439_v31  ;;  %v1491_v51 = vrot.slane %v1355_v41, %v7594_v14  ;;  %v1481_v53 = vrot.slane %v1332_v13, %v7594_v14  ;;  %v1447_v58 = vrot.slane %v1439_v31, %v7941_v37 }
0x1618   :  { %v1485_v62 = vrot.slane %v1339_v42, %v7594_v14  ;;  %v1495_v3 = vrot.slane %v1362_v49, %v7594_v14  ;;  %v1525_v48 = vrot.slane %v1431_v26, %v7594_v14  ;;  %v1608_v31 = vrot.slane %v1583_v29, %v7588_v12 }
0x1619   :  { %v1454_v33 = vrot.slane %v1440_v50, %v7941_v37  ;;  %v1531_v59 = vrot.slane %v1447_v58, %v7594_v14  ;;  %v1604_v41 = vrot.slane %v1583_v29, %v7594_v14 }
0x161b   :  { %v1535_v40 = vrot.slane %v1454_v33, %v7594_v14 }
0x167d   :  { %v1289_v20 = vpop.permute.xlu1 %1288 }
0x167e   :  { %v1291_v32 = vsel %vm351_vm5, %v1289_v20, %v7620_v61  ;;  %v1760_v20 = vpop.f32.mrb[10].mxu1 }
0x167f   :  { %v1279_v34 = vpop.permute.xlu0 %1278  ;;  %v1462_v61 = vrot.slane %v1291_v32, %v7941_v37  ;;  %v1762_v24 = vpop.f32.mrb[11].mxu1 }
0x1680   :  { %v1281_v44 = vsel %vm351_vm5, %v7618_v60, %v1279_v34  ;;  %v1773_v42 = vrot.slane %v1762_v24, 2 }
0x1681   :  { %v1299_v19 = vrot.slane %v1281_v44, %v7941_v37  ;;  %v1463_v63 = vcombine.high %v1462_v61, %v1462_v61  ;;  %v1470_v1 = vrot.slane %v1462_v61, %v7941_v37 }
0x1683   :  { %v1300_v60 = vcombine.high %v1299_v19, %v1299_v19  ;;  %v1307_v55 = vrot.slane %v1299_v19, %v7941_v37  ;;  %v1477_v56 = vrot.slane %v1463_v63, %v7941_v37  ;;  %v1541_v11 = vrot.slane %v1470_v1, %v7594_v14 }
0x1685   :  { %v1314_v2 = vrot.slane %v1300_v60, %v7941_v37  ;;  %v1548_v30 = vsel %vm132_vm0, %v1307_v55, %v1481_v53  ;;  %v1545_v21 = vrot.slane %v1477_v56, %v7594_v14 }
0x1686   :  { %v1550_v45 = vsel %vm317_vm4, %v1548_v30, %v1491_v51 }
0x1687   :  { %v1549_v8 = vsel %vm132_vm0, %v1314_v2, %v1485_v62  ;;  %v1553_v52 = vsel %vm1552_vm7, %v1550_v45, %v1501_v46 }
0x1688   :  { %v1551_v10 = vsel %vm317_vm4, %v1549_v8, %v1495_v3  ;;  %v1556_v6 = vsel %vm1555_vm8, %v1553_v52, %v1511_v35  ;;  %v1772_v35 = vrot.slane %v1762_v24, 1 }
0x1689   :  { %v1559_v5 = vsel %vm1558_vm9, %v1556_v6, %v1521_v27  ;;  %v1554_v57 = vsel %vm1552_vm7, %v1551_v10, %v1505_v47 }
0x168a   :  { %v1562_v16 = vsel %vm1561_vm10, %v1559_v5, %v1531_v59  ;;  %v1557_v15 = vsel %vm1555_vm8, %v1554_v57, %v1515_v39  ;;  %v1766_v39 = vrot.slane %v1760_v20, 1 }
0x168b   :  { %v1565_v23 = vsel %vm1564_vm11, %v1562_v16, %v1541_v11  ;;  %v1560_v36 = vsel %vm1558_vm9, %v1557_v15, %v1525_v48 }
0x168c   :  { %6311 = vmatmul.mubr.msk.f32.vlgmr.msra.gmra.mrb[10].mxu0 %vm216_vm6, %v1565_v23  ;;  %v1563_v18 = vsel %vm1561_vm10, %v1560_v36, %v1535_v40 }
0x168d   :  { %1687 = vmatprep.mubr.f32.mxu0 %v7283_v7  ;;  %6593 = vmatpush1.bf16.msra.mxu0 %v7830_v4  ;;  %v1566_v38 = vsel %vm1564_vm11, %v1563_v18, %v1545_v21 }
0x168e   :  { %6595 = vmatprep.subr.bf16.mxu0 %v7853_v17 }
0x1690   :  { %6312 = vmatmul.mubr.msk.f32.gmra.mrb[12].mxu0 %vm216_vm6, %v1566_v38 }
0x1691   :  { %6597 = vmatpush1.bf16.msra.mxu0 %v7861_v28  ;;  %1890 = vmatprep.mubr.f32.mxu0 %v7283_v7 }
0x1692   :  { %6599 = vmatprep.subr.bf16.mxu0 %v7883_v43 }
0x1695   :  { %6601 = vmatpush1.bf16.msra.mxu0 %v7891_v22 }
0x1696   :  { %6603 = vmatprep.subr.bf16.mxu0 %v7913_v54 }
0x1699   :  { %6605 = vmatpush1.bf16.msra.mxu0 %v7921_v0 }
0x169a   :  { %6623 = vmatprep.subr.bf16.mxu0 %v7822_v25 }
0x175f   :  { %v1683_v32 = vpop.f32.mrb[10].mxu0 }
0x1760   :  { %v1685_v13 = vpop.f32.mrb[11].mxu0  ;;  %v8036_v46 = vadd.f32 %v1683_v32, %v1604_v41 }
0x1761   :  { %v8034_v34 = vadd.f32 %v1685_v13, %v1608_v31 }
0x1762   :  { %v1769_v50 = vadd.f32 %v1760_v20, %v8036_v46 }
0x1763   :  { %v1689_v44 = vpop.f32.mrb[12].mxu0  ;;  %v1776_v19 = vadd.f32 %v1772_v35, %v8034_v34 }
0x1764   :  { %v8038_v47 = vadd.f32 %v1689_v44, %v1604_v41  ;;  %v1691_v61 = vpop.f32.mrb[13].mxu0 }
0x1765   :  { %v8041_v26 = vadd.f32 %v1691_v61, %v1608_v31  ;;  %v1785_v53 = vrot.slane %v1776_v19, 5 }
0x1766   :  { %v1770_v27 = vadd.f32 %v1766_v39, %v8038_v47 }
0x1767   :  { %v1777_v49 = vadd.f32 %v1773_v42, %v8041_v26 }
0x1768   :  { %v1780_v51 = vrot.slane %v1770_v27, 7 }
0x1769   :  { %v1786_v60 = vrot.slane %v1777_v49, 4 }
0x176a   :  { %v1781_v55 = vsel %vm307_vm2, %v1780_v51, %v1769_v50 }
0x176b   :  { %v1787_v58 = vsel %vm314_vm3, %v1786_v60, %v1785_v53 }
0x176c   :  { %v1789_v62 = vsel %vm317_vm4, %v1781_v55, %v1787_v58 }
0x176d   :  { %7068 = vtanh.f32 %v1789_v62  ;;  %v6313_v1 = vmul.f32 -1.442695, %v1789_v62 }
0x176f   :  { %7070 = vpow2.f32 %v6313_v1 }
0x1777   :  { %v7069_v63 = vpop.eup %7068 }
0x1778   :  { %1799 = vrot.lane.b32.xlu0 %v7069_v63, %s7284_s28 }
0x1779   :  { %v7071_v2 = vpop.eup %7070 }
0x177a   :  { %v1793_v30 = vadd.f32 1.0, %v7071_v2 }
0x177c   :  { %7072 = vrcp.f32 %v1793_v30 }
0x1786   :  { %v7073_v3 = vpop.eup %7072 }
0x1787   :  { %v1797_v48 = vmul.f32 0.0, %v7073_v3 }
0x17ea   :  { %v1800_v33 = vpop.permute.xlu0 %1799 }
0x17eb   :  { %v1802_v45 = vmul.f32 %v7073_v3, %v1800_v33 }
0x17ed   :  { %1804 = vrot.lane.b32.xlu1 %v1802_v45, %s7285_s12 }
0x185f   :  { %v1805_v8 = vpop.permute.xlu1 %1804 }
0x1860   :  { %v1807_v52 = vadd.f32 %v1805_v8, %v1797_v48 }
0x1862   :  { %7074 = vtanh.f32 %v1807_v52 }
0x186c   :  { %v7075_v59 = vpop.eup %7074 }
0x186d   :  { %1810 = vrot.lane.b32.xlu0 %v7075_v59, %s7284_s28 }
0x18df   :  { %v1811_v10 = vpop.permute.xlu0 %1810 }
0x18e0   :  { %v1813_v6 = vmul.f32 %v7073_v3, %v1811_v10 }
0x18e2   :  { %v1818_v56 = vrot.slane %v1813_v6, 2  ;;  %1815 = vrot.lane.b32.xlu1 %v1813_v6, %s7285_s12 }
0x18e4   :  { %1819 = vrot.lane.b32.xlu0 %v1818_v56, %s7284_s28 }
0x1954   :  { %v8054_v11 = vpop.permute.xlu1 %1815 }
0x1956   :  { %v8056_v5 = vpop.permute.xlu0 %1819 }
0x1957   :  { %v1822_v57 = vsel %vm351_vm5, %v8054_v11, %v8056_v5 }
0x1958   :  { %6314 = vmatmul.mubr.msk.f32.vlgmr.msra.gmra.mrb[14].mxu0 %vm216_vm6, %v1822_v57 }
0x1959   :  { %6625 = vmatpush1.bf16.msra.mxu0 %v7830_v4  ;;  %2156 = vmatprep.mubr.f32.mxu0 %v7283_v7 }
0x195a   :  { %6627 = vmatprep.subr.bf16.mxu0 %v7853_v17 }
0x195d   :  { %6629 = vmatpush1.bf16.msra.mxu0 %v7861_v28 }
0x195e   :  { %6631 = vmatprep.subr.bf16.mxu0 %v7883_v43 }
0x1961   :  { %6633 = vmatpush1.bf16.msra.mxu0 %v7891_v22 }
0x1962   :  { %6635 = vmatprep.subr.bf16.mxu0 %v7913_v54 }
0x1965   :  { %6637 = vmatpush1.bf16.msra.mxu0 %v7921_v0 }
0x1966   :  { %6655 = vmatprep.subr.bf16.mxu0 %v7822_v25 }
0x1a2b   :  { %v1892_v16 = vpop.f32.mrb[14].mxu0 }
0x1a2c   :  { %v1898_v40 = vrot.slane %v1892_v16, 7  ;;  %v1894_v15 = vpop.f32.mrb[15].mxu0  ;;  %v1902_v20 = vadd.f32 %v1892_v16, %v8038_v47 }
0x1a2d   :  { %v1904_v23 = vrot.slane %v1894_v15, 2  ;;  %v1905_v36 = vrot.slane %v1894_v15, 3 }
0x1a2e   :  { %v1901_v18 = vadd.f32 %v1898_v40, %v8036_v46 }
0x1a2f   :  { %v1908_v21 = vadd.f32 %v1904_v23, %v8034_v34  ;;  %v1909_v38 = vadd.f32 %v1905_v36, %v8041_v26 }
0x1a30   :  { %v1912_v24 = vrot.slane %v1901_v18, 1 }
0x1a31   :  { %v1917_v29 = vrot.slane %v1908_v21, 4  ;;  %v1918_v31 = vrot.slane %v1909_v38, 3 }
0x1a32   :  { %v1913_v32 = vsel %vm307_vm2, %v1902_v20, %v1912_v24 }
0x1a33   :  { %v1919_v41 = vsel %vm314_vm3, %v1918_v31, %v1917_v29 }
0x1a34   :  { %v1921_v13 = vsel %vm317_vm4, %v1913_v32, %v1919_v41 }
0x1a35   :  { %7076 = vtanh.f32 %v1921_v13  ;;  %v6315_v39 = vmul.f32 -1.442695, %v1921_v13 }
0x1a37   :  { %7078 = vpow2.f32 %v6315_v39 }
0x1a3f   :  { %v7077_v35 = vpop.eup %7076 }
0x1a40   :  { %1931 = vrot.lane.b32.xlu1 %v7077_v35, %s7284_s28 }
0x1a41   :  { %v7079_v42 = vpop.eup %7078 }
0x1a42   :  { %v1925_v44 = vadd.f32 1.0, %v7079_v42 }
0x1a44   :  { %7080 = vrcp.f32 %v1925_v44 }
0x1a4e   :  { %v7081_v61 = vpop.eup %7080 }
0x1a4f   :  { %v1929_v49 = vmul.f32 %v7081_v61, %v1807_v52 }
0x1ab2   :  { %v1932_v19 = vpop.permute.xlu1 %1931 }
0x1ab3   :  { %v1934_v27 = vmul.f32 %v7081_v61, %v1932_v19 }
0x1ab5   :  { %1936 = vrot.lane.b32.xlu0 %v1934_v27, %s7285_s12 }
0x1b27   :  { %v1937_v50 = vpop.permute.xlu0 %1936 }
0x1b28   :  { %v1939_v51 = vadd.f32 %v1937_v50, %v1929_v49 }
0x1b2a   :  { %7082 = vtanh.f32 %v1939_v51 }
0x1b34   :  { %v7083_v53 = vpop.eup %7082 }
0x1b35   :  { %1942 = vrot.lane.b32.xlu1 %v7083_v53, %s7284_s28 }
0x1ba7   :  { %v1943_v60 = vpop.permute.xlu1 %1942 }
0x1ba8   :  { %v1945_v55 = vmul.f32 %v7081_v61, %v1943_v60 }
0x1baa   :  { %v1950_v58 = vrot.slane %v1945_v55, 2  ;;  %1947 = vrot.lane.b32.xlu0 %v1945_v55, %s7285_s12 }
0x1bac   :  { %1951 = vrot.lane.b32.xlu1 %v1950_v58, %s7284_s28 }
0x1c1c   :  { %v8083_v62 = vpop.permute.xlu0 %1947 }
0x1c1e   :  { %v8085_v63 = vpop.permute.xlu1 %1951 }
0x1c1f   :  { %v1954_v1 = vsel %vm351_vm5, %v8083_v62, %v8085_v63 }
0x1c20   :  { %6316 = vmatmul.mubr.msk.f32.vlgmr.msra.gmra.mrb[12].mxu1 %vm216_vm6, %v1954_v1 }
0x1c21   :  { %6641 = vmatpush1.bf16.msra.mxu1 %v7830_v4  ;;  %2290 = vmatprep.mubr.f32.mxu1 %v7283_v7 }
0x1c22   :  { %6643 = vmatprep.subr.bf16.mxu1 %v7853_v17 }
0x1c25   :  { %6645 = vmatpush1.bf16.msra.mxu1 %v7861_v28 }
0x1c26   :  { %6647 = vmatprep.subr.bf16.mxu1 %v7883_v43 }
0x1c29   :  { %6649 = vmatpush1.bf16.msra.mxu1 %v7891_v22 }
0x1c2a   :  { %6651 = vmatprep.subr.bf16.mxu1 %v7913_v54 }
0x1c2d   :  { %6653 = vmatpush1.bf16.msra.mxu1 %v7921_v0 }
0x1c2e   :  { %6671 = vmatprep.subr.bf16.mxu1 %v7822_v25 }
0x1cf3   :  { %v2024_v2 = vpop.f32.mrb[12].mxu1 }
0x1cf4   :  { %v2030_v30 = vrot.slane %v2024_v2, 6  ;;  %v2031_v3 = vrot.slane %v2024_v2, 7  ;;  %v2026_v33 = vpop.f32.mrb[13].mxu1 }
0x1cf5   :  { %v2037_v45 = vrot.slane %v2026_v33, 3  ;;  %v2038_v48 = vrot.slane %v2026_v33, 4 }
0x1cf6   :  { %v2034_v8 = vadd.f32 %v2030_v30, %v8036_v46  ;;  %v2035_v52 = vadd.f32 %v2031_v3, %v8038_v47 }
0x1cf7   :  { %v2041_v59 = vadd.f32 %v2037_v45, %v8034_v34  ;;  %v2042_v10 = vadd.f32 %v2038_v48, %v8041_v26 }
0x1cf8   :  { %v2045_v6 = vrot.slane %v2034_v8, 2  ;;  %v2046_v56 = vrot.slane %v2035_v52, 1 }
0x1cf9   :  { %v2051_v57 = vrot.slane %v2041_v59, 3  ;;  %v2052_v16 = vrot.slane %v2042_v10, 2 }
0x1cfa   :  { %v2047_v40 = vsel %vm307_vm2, %v2046_v56, %v2045_v6 }
0x1cfb   :  { %v2053_v15 = vsel %vm314_vm3, %v2052_v16, %v2051_v57 }
0x1cfc   :  { %v2055_v23 = vsel %vm317_vm4, %v2047_v40, %v2053_v15 }
0x1cfd   :  { %7084 = vtanh.f32 %v2055_v23  ;;  %v6317_v18 = vmul.f32 -1.442695, %v2055_v23 }
0x1cff   :  { %7086 = vpow2.f32 %v6317_v18 }
0x1d07   :  { %v7085_v36 = vpop.eup %7084 }
0x1d08   :  { %2065 = vrot.lane.b32.xlu0 %v7085_v36, %s7284_s28 }
0x1d09   :  { %v7087_v21 = vpop.eup %7086 }
0x1d0a   :  { %v2059_v38 = vadd.f32 1.0, %v7087_v21 }
0x1d0c   :  { %7088 = vrcp.f32 %v2059_v38 }
0x1d16   :  { %v7089_v20 = vpop.eup %7088 }
0x1d17   :  { %v2063_v31 = vmul.f32 %v7089_v20, %v1939_v51 }
0x1d7a   :  { %v2066_v24 = vpop.permute.xlu0 %2065 }
0x1d7b   :  { %v2068_v29 = vmul.f32 %v7089_v20, %v2066_v24 }
0x1d7d   :  { %2070 = vrot.lane.b32.xlu1 %v2068_v29, %s7285_s12 }
0x1def   :  { %v2071_v32 = vpop.permute.xlu1 %2070 }
0x1df0   :  { %v2073_v41 = vadd.f32 %v2071_v32, %v2063_v31 }
0x1df2   :  { %7090 = vtanh.f32 %v2073_v41 }
0x1dfc   :  { %v7091_v13 = vpop.eup %7090 }
0x1dfd   :  { %2076 = vrot.lane.b32.xlu0 %v7091_v13, %s7284_s28 }
0x1e6f   :  { %v2077_v35 = vpop.permute.xlu0 %2076 }
0x1e70   :  { %v2079_v39 = vmul.f32 %v7089_v20, %v2077_v35 }
0x1e72   :  { %v2084_v42 = vrot.slane %v2079_v39, 2  ;;  %2081 = vrot.lane.b32.xlu1 %v2079_v39, %s7285_s12 }
0x1e74   :  { %2085 = vrot.lane.b32.xlu0 %v2084_v42, %s7284_s28 }
0x1ee4   :  { %v8112_v44 = vpop.permute.xlu1 %2081 }
0x1ee6   :  { %v8114_v61 = vpop.permute.xlu0 %2085 }
0x1ee7   :  { %v2088_v19 = vsel %vm351_vm5, %v8112_v44, %v8114_v61 }
0x1ee8   :  { %6318 = vmatmul.mubr.msk.f32.vlgmr.msra.gmra.mrb[16].mxu0 %vm216_vm6, %v2088_v19 }
0x1ee9   :  { %6657 = vmatpush1.bf16.msra.mxu0 %v7830_v4  ;;  %2423 = vmatprep.mubr.f32.mxu0 %v7283_v7 }
0x1eea   :  { %6659 = vmatprep.subr.bf16.mxu0 %v7853_v17 }
0x1eed   :  { %6661 = vmatpush1.bf16.msra.mxu0 %v7861_v28 }
0x1eee   :  { %6663 = vmatprep.subr.bf16.mxu0 %v7883_v43 }
0x1ef1   :  { %6665 = vmatpush1.bf16.msra.mxu0 %v7891_v22 }
0x1ef2   :  { %6667 = vmatprep.subr.bf16.mxu0 %v7913_v54 }
0x1ef5   :  { %6669 = vmatpush1.bf16.msra.mxu0 %v7921_v0 }
0x1ef6   :  { %6687 = vmatprep.subr.bf16.mxu0 %v7822_v25 }
0x1fbb   :  { %v2158_v27 = vpop.f32.mrb[16].mxu0 }
0x1fbc   :  { %v2164_v49 = vrot.slane %v2158_v27, 5  ;;  %v2165_v50 = vrot.slane %v2158_v27, 6  ;;  %v2160_v51 = vpop.f32.mrb[17].mxu0 }
0x1fbd   :  { %v2171_v53 = vrot.slane %v2160_v51, 4  ;;  %v2172_v60 = vrot.slane %v2160_v51, 5 }
0x1fbe   :  { %v2168_v55 = vadd.f32 %v2164_v49, %v8036_v46  ;;  %v2169_v58 = vadd.f32 %v2165_v50, %v8038_v47 }
0x1fbf   :  { %v2175_v1 = vadd.f32 %v2171_v53, %v8034_v34  ;;  %v2176_v2 = vadd.f32 %v2172_v60, %v8041_v26 }
0x1fc0   :  { %v2179_v30 = vrot.slane %v2168_v55, 3  ;;  %v2180_v3 = vrot.slane %v2169_v58, 2 }
0x1fc1   :  { %v2185_v33 = vrot.slane %v2175_v1, 2  ;;  %v2186_v45 = vrot.slane %v2176_v2, 1 }
0x1fc2   :  { %v2181_v25 = vsel %vm307_vm2, %v2180_v3, %v2179_v30 }
0x1fc3   :  { %v2187_v48 = vsel %vm314_vm3, %v2186_v45, %v2185_v33 }
0x1fc4   :  { %v2189_v8 = vsel %vm317_vm4, %v2181_v25, %v2187_v48 }
0x1fc5   :  { %7092 = vtanh.f32 %v2189_v8  ;;  %v6319_v59 = vmul.f32 -1.442695, %v2189_v8 }
0x1fc7   :  { %7094 = vpow2.f32 %v6319_v59 }
0x1fcf   :  { %v7093_v52 = vpop.eup %7092 }
0x1fd0   :  { %2199 = vrot.lane.b32.xlu1 %v7093_v52, %s7284_s28 }
0x1fd1   :  { %v7095_v10 = vpop.eup %7094 }
0x1fd2   :  { %v2193_v6 = vadd.f32 1.0, %v7095_v10 }
0x1fd4   :  { %7096 = vrcp.f32 %v2193_v6 }
0x1fde   :  { %v7097_v56 = vpop.eup %7096 }
0x1fdf   :  { %v2197_v40 = vmul.f32 %v7097_v56, %v2073_v41 }
0x2042   :  { %v2200_v57 = vpop.permute.xlu1 %2199 }
0x2043   :  { %v2202_v16 = vmul.f32 %v7097_v56, %v2200_v57 }
0x2045   :  { %2204 = vrot.lane.b32.xlu0 %v2202_v16, %s7285_s12 }
0x20b7   :  { %v2205_v15 = vpop.permute.xlu0 %2204 }
0x20b8   :  { %v2207_v23 = vadd.f32 %v2205_v15, %v2197_v40 }
0x20ba   :  { %7098 = vtanh.f32 %v2207_v23 }
0x20c4   :  { %v7099_v36 = vpop.eup %7098 }
0x20c5   :  { %2210 = vrot.lane.b32.xlu1 %v7099_v36, %s7284_s28 }
0x2137   :  { %v2211_v18 = vpop.permute.xlu1 %2210 }
0x2138   :  { %v2213_v21 = vmul.f32 %v7097_v56, %v2211_v18 }
0x213a   :  { %v2218_v38 = vrot.slane %v2213_v21, 2  ;;  %2215 = vrot.lane.b32.xlu0 %v2213_v21, %s7285_s12 }
0x213c   :  { %2219 = vrot.lane.b32.xlu1 %v2218_v38, %s7284_s28 }
0x21ac   :  { %v8141_v20 = vpop.permute.xlu0 %2215 }
0x21ae   :  { %v8143_v24 = vpop.permute.xlu1 %2219 }
0x21af   :  { %v2222_v29 = vsel %vm351_vm5, %v8141_v20, %v8143_v24 }
0x21b0   :  { %6320 = vmatmul.mubr.msk.f32.vlgmr.msra.gmra.mrb[14].mxu1 %vm216_vm6, %v2222_v29 }
0x21b1   :  { %6673 = vmatpush1.bf16.msra.mxu1 %v7830_v4  ;;  %2556 = vmatprep.mubr.f32.mxu1 %v7283_v7 }
0x21b2   :  { %6675 = vmatprep.subr.bf16.mxu1 %v7853_v17 }
0x21b5   :  { %6677 = vmatpush1.bf16.msra.mxu1 %v7861_v28 }
0x21b6   :  { %6679 = vmatprep.subr.bf16.mxu1 %v7883_v43 }
0x21b9   :  { %6681 = vmatpush1.bf16.msra.mxu1 %v7891_v22 }
0x21ba   :  { %6683 = vmatprep.subr.bf16.mxu1 %v7913_v54 }
0x21bd   :  { %6685 = vmatpush1.bf16.msra.mxu1 %v7921_v0 }
0x2283   :  { %v2292_v31 = vpop.f32.mrb[14].mxu1 }
0x2284   :  { %v2298_v32 = vrot.slane %v2292_v31, 4  ;;  %v2299_v41 = vrot.slane %v2292_v31, 5  ;;  %v2294_v13 = vpop.f32.mrb[15].mxu1 }
0x2285   :  { %v2305_v35 = vrot.slane %v2294_v13, 5  ;;  %v2306_v39 = vrot.slane %v2294_v13, 6 }
0x2286   :  { %v2302_v42 = vadd.f32 %v2298_v32, %v8036_v46  ;;  %v2303_v19 = vadd.f32 %v2299_v41, %v8038_v47 }
0x2287   :  { %v2309_v27 = vadd.f32 %v2305_v35, %v8034_v34  ;;  %v2310_v51 = vadd.f32 %v2306_v39, %v8041_v26 }
0x2288   :  { %v2313_v49 = vrot.slane %v2302_v42, 4  ;;  %v2314_v50 = vrot.slane %v2303_v19, 3 }
0x2289   :  { %v2319_v53 = vrot.slane %v2309_v27, 1 }
0x228a   :  { %v2315_v60 = vsel %vm307_vm2, %v2314_v50, %v2313_v49 }
0x228b   :  { %v2320_v55 = vsel %vm314_vm3, %v2310_v51, %v2319_v53 }
0x228c   :  { %v2322_v58 = vsel %vm317_vm4, %v2315_v60, %v2320_v55 }
0x228d   :  { %7100 = vtanh.f32 %v2322_v58  ;;  %v6321_v2 = vmul.f32 -1.442695, %v2322_v58 }
0x228f   :  { %7102 = vpow2.f32 %v6321_v2 }
0x2297   :  { %v7101_v1 = vpop.eup %7100 }
0x2298   :  { %2332 = vrot.lane.b32.xlu0 %v7101_v1, %s7284_s28 }
0x2299   :  { %v7103_v30 = vpop.eup %7102 }
0x229a   :  { %v2326_v3 = vadd.f32 1.0, %v7103_v30 }
0x229c   :  { %7104 = vrcp.f32 %v2326_v3 }
0x22a6   :  { %v7105_v33 = vpop.eup %7104 }
0x22a7   :  { %v2330_v48 = vmul.f32 %v7105_v33, %v2207_v23 }
0x230a   :  { %v2333_v45 = vpop.permute.xlu0 %2332 }
0x230b   :  { %v2335_v25 = vmul.f32 %v7105_v33, %v2333_v45 }
0x230d   :  { %2337 = vrot.lane.b32.xlu1 %v2335_v25, %s7285_s12 }
0x237f   :  { %v2338_v8 = vpop.permute.xlu1 %2337 }
0x2380   :  { %v2340_v52 = vadd.f32 %v2338_v8, %v2330_v48 }
0x2382   :  { %7106 = vtanh.f32 %v2340_v52 }
0x238c   :  { %v7107_v59 = vpop.eup %7106 }
0x238d   :  { %2343 = vrot.lane.b32.xlu0 %v7107_v59, %s7284_s28 }
0x23ff   :  { %v2344_v10 = vpop.permute.xlu0 %2343 }
0x2400   :  { %v2346_v6 = vmul.f32 %v7105_v33, %v2344_v10 }
0x2402   :  { %v2351_v56 = vrot.slane %v2346_v6, 2  ;;  %2348 = vrot.lane.b32.xlu1 %v2346_v6, %s7285_s12 }
0x2404   :  { %2352 = vrot.lane.b32.xlu0 %v2351_v56, %s7284_s28 }
0x2474   :  { %v8169_v57 = vpop.permute.xlu1 %2348 }
0x2476   :  { %v8171_v16 = vpop.permute.xlu0 %2352 }
0x2477   :  { %v2355_v40 = vsel %vm351_vm5, %v8169_v57, %v8171_v16 }
0x2478   :  { %6322 = vmatmul.mubr.msk.f32.vlgmr.msra.gmra.mrb[18].mxu0 %vm216_vm6, %v2355_v40 }
0x2479   :  { %6689 = vmatpush1.bf16.msra.mxu0 %v7830_v4  ;;  %2689 = vmatprep.mubr.f32.mxu0 %v7283_v7 }
0x247a   :  { %6691 = vmatprep.subr.bf16.mxu0 %v7853_v17 }
0x247d   :  { %6693 = vmatpush1.bf16.msra.mxu0 %v7861_v28 }
0x247e   :  { %6695 = vmatprep.subr.bf16.mxu0 %v7883_v43 }
0x2481   :  { %6697 = vmatpush1.bf16.msra.mxu0 %v7891_v22 }
0x2482   :  { %6699 = vmatprep.subr.bf16.mxu0 %v7913_v54 }
0x2485   :  { %6701 = vmatpush1.bf16.msra.mxu0 %v7921_v0 }
0x254b   :  { %v2425_v15 = vpop.f32.mrb[18].mxu0 }
0x254c   :  { %v2431_v23 = vrot.slane %v2425_v15, 3  ;;  %v2432_v36 = vrot.slane %v2425_v15, 4  ;;  %v2427_v18 = vpop.f32.mrb[19].mxu0 }
0x254d   :  { %v2438_v21 = vrot.slane %v2427_v18, 6  ;;  %v2439_v4 = vrot.slane %v2427_v18, 7 }
0x254e   :  { %v2435_v38 = vadd.f32 %v2431_v23, %v8036_v46  ;;  %v2436_v17 = vadd.f32 %v2432_v36, %v8038_v47 }
0x254f   :  { %v2443_v28 = vadd.f32 %v2439_v4, %v8041_v26  ;;  %v2442_v22 = vadd.f32 %v2438_v21, %v8034_v34 }
0x2550   :  { %v2446_v29 = vrot.slane %v2435_v38, 5  ;;  %v2447_v43 = vrot.slane %v2436_v17, 4 }
0x2551   :  { %v2452_v31 = vrot.slane %v2443_v28, 7 }
0x2552   :  { %v2448_v54 = vsel %vm307_vm2, %v2447_v43, %v2446_v29 }
0x2553   :  { %v2453_v0 = vsel %vm314_vm3, %v2452_v31, %v2442_v22 }
0x2554   :  { %v2455_v32 = vsel %vm317_vm4, %v2448_v54, %v2453_v0 }
0x2555   :  { %7108 = vtanh.f32 %v2455_v32  ;;  %v6323_v13 = vmul.f32 -1.442695, %v2455_v32 }
0x2557   :  { %7110 = vpow2.f32 %v6323_v13 }
0x255f   :  { %v7109_v41 = vpop.eup %7108 }
0x2560   :  { %2465 = vrot.lane.b32.xlu1 %v7109_v41, %s7284_s28 }
0x2561   :  { %v7111_v35 = vpop.eup %7110 }
0x2562   :  { %v2459_v39 = vadd.f32 1.0, %v7111_v35 }
0x2564   :  { %7112 = vrcp.f32 %v2459_v39 }
0x256e   :  { %v7113_v42 = vpop.eup %7112 }
0x256f   :  { %v2463_v49 = vmul.f32 %v7113_v42, %v2340_v52 }
0x25d2   :  { %v2466_v19 = vpop.permute.xlu1 %2465 }
0x25d3   :  { %v2468_v27 = vmul.f32 %v7113_v42, %v2466_v19 }
0x25d5   :  { %2470 = vrot.lane.b32.xlu0 %v2468_v27, %s7285_s12 }
0x2647   :  { %v2471_v50 = vpop.permute.xlu0 %2470 }
0x2648   :  { %v2473_v51 = vadd.f32 %v2471_v50, %v2463_v49 }
0x264a   :  { %7114 = vtanh.f32 %v2473_v51 }
0x2654   :  { %v7115_v53 = vpop.eup %7114 }
0x2655   :  { %2476 = vrot.lane.b32.xlu1 %v7115_v53, %s7284_s28 }
0x26c7   :  { %v2477_v60 = vpop.permute.xlu1 %2476 }
0x26c8   :  { %v2479_v55 = vmul.f32 %v7113_v42, %v2477_v60 }
0x26ca   :  { %v2484_v58 = vrot.slane %v2479_v55, 2  ;;  %2481 = vrot.lane.b32.xlu0 %v2479_v55, %s7285_s12 }
0x26cc   :  { %2485 = vrot.lane.b32.xlu1 %v2484_v58, %s7284_s28 }
0x273c   :  { %v8197_v1 = vpop.permute.xlu0 %2481 }
0x273e   :  { %v8199_v2 = vpop.permute.xlu1 %2485 }
0x273f   :  { %v2488_v30 = vsel %vm351_vm5, %v8197_v1, %v8199_v2 }
0x2740   :  { %6324 = vmatmul.mubr.msk.f32.vlgmr.msra.gmra.mrb[16].mxu1 %vm216_vm6, %v2488_v30 }
0x2741   :  { %3146 = vmatprep.mubr.f32.mxu1 %v7283_v7 }
0x2813   :  { %v2558_v3 = vpop.f32.mrb[16].mxu1 }
0x2814   :  { %v2564_v33 = vrot.slane %v2558_v3, 2  ;;  %v2565_v45 = vrot.slane %v2558_v3, 3  ;;  %v2560_v25 = vpop.f32.mrb[17].mxu1 }
0x2815   :  { %v2571_v48 = vrot.slane %v2560_v25, 7  ;;  %v2575_v8 = vadd.f32 %v2560_v25, %v8041_v26 }
0x2816   :  { %v2568_v52 = vadd.f32 %v2564_v33, %v8036_v46  ;;  %v2569_v59 = vadd.f32 %v2565_v45, %v8038_v47 }
0x2817   :  { %v2574_v10 = vadd.f32 %v2571_v48, %v8034_v34  ;;  %v2585_v15 = vrot.slane %v2575_v8, 6 }
0x2818   :  { %v2578_v6 = vrot.slane %v2568_v52, 6  ;;  %v2579_v56 = vrot.slane %v2569_v59, 5 }
0x2819   :  { %v2584_v40 = vrot.slane %v2574_v10, 7 }
0x281a   :  { %v2580_v23 = vsel %vm307_vm2, %v2579_v56, %v2578_v6 }
0x281b   :  { %v2586_v36 = vsel %vm314_vm3, %v2585_v15, %v2584_v40  ;;  %v3033_v15 = vld [vmem:[%s9267_s8 + $0x8] sm:$0xff] }
0x281c   :  { %v2588_v18 = vsel %vm317_vm4, %v2580_v23, %v2586_v36  ;;  %v3035_v23 = vld [vmem:[%s9267_s8 + $0x18] sm:$0xff]  ;;  %v3050_v36 = vld [vmem:[%s9269_s10 + $0x8] sm:$0xff] }
0x281d   :  { %7116 = vtanh.f32 %v2588_v18  ;;  %v6325_v4 = vmul.f32 -1.442695, %v2588_v18  ;;  %v6702_v18 = vpack.c.bf16 %v3035_v23, %v3033_v15 }
0x281f   :  { %7118 = vpow2.f32 %v6325_v4  ;;  %v3032_v4 = vld [vmem:[%s9267_s8] sm:$0xff]  ;;  %6703 = vmatprep.subr.bf16.mxu1 %v6702_v18  ;;  %v3063_v18 = vld [vmem:[%s9269_s10 + $0x70] sm:$0xff] }
0x2827   :  { %v7117_v21 = vpop.eup %7116 }
0x2828   :  { %2598 = vrot.lane.b32.xlu0 %v7117_v21, %s7284_s28  ;;  %v3052_v21 = vld [vmem:[%s9269_s10 + $0x18] sm:$0xff] }
0x2829   :  { %v7119_v38 = vpop.eup %7118 }
0x282a   :  { %v2592_v17 = vadd.f32 1.0, %v7119_v38  ;;  %v3034_v38 = vld [vmem:[%s9267_s8 + $0x10] sm:$0xff] }
0x282c   :  { %7120 = vrcp.f32 %v2592_v17  ;;  %v8258_v17 = vpack.c.bf16 %v3052_v21, %v3050_v36  ;;  %v3061_v36 = vld [vmem:[%s9269_s10 + $0x60] sm:$0xff] }
0x282e   :  { %6719 = vmatprep.subr.bf16.mxu0 %v8258_v17 }
0x2836   :  { %v7121_v28 = vpop.eup %7120 }
0x2837   :  { %v2596_v22 = vmul.f32 %v7121_v28, %v2473_v51 }
0x289a   :  { %v2599_v29 = vpop.permute.xlu0 %2598 }
0x289b   :  { %v2601_v43 = vmul.f32 %v7121_v28, %v2599_v29  ;;  %v3049_v29 = vld [vmem:[%s9269_s10] sm:$0xff] }
0x289d   :  { %2603 = vrot.lane.b32.xlu1 %v2601_v43, %s7285_s12  ;;  %v3051_v43 = vld [vmem:[%s9269_s10 + $0x10] sm:$0xff] }
0x290f   :  { %v2604_v31 = vpop.permute.xlu1 %2603 }
0x2910   :  { %v2606_v54 = vadd.f32 %v2604_v31, %v2596_v22  ;;  %v8266_v22 = vpack.c.bf16 %v3051_v43, %v3049_v29  ;;  %v2755_v29 = vsel %vm351_vm5, %v8169_v57, %v8143_v24  ;;  %v2754_v43 = vsel %vm351_vm5, %v8141_v20, %v8171_v16 }
0x2912   :  { %7122 = vtanh.f32 %v2606_v54 }
0x291c   :  { %v7123_v0 = vpop.eup %7122 }
0x291d   :  { %2609 = vrot.lane.b32.xlu0 %v7123_v0, %s7284_s28  ;;  %v3039_v0 = vld [vmem:[%s9267_s8 + $0x38] sm:$0xff] }
0x298f   :  { %v2610_v32 = vpop.permute.xlu0 %2609 }
0x2990   :  { %v2612_v41 = vmul.f32 %v7121_v28, %v2610_v32  ;;  %v6704_v28 = vpack.c.bf16 %v3034_v38, %v3032_v4  ;;  %v3054_v32 = vld [vmem:[%s9269_s10 + $0x28] sm:$0xff]  ;;  %v8357_v4 = vpack.c.bf16 %v3063_v18, %v3061_v36 }
0x2992   :  { %v2617_v13 = vrot.slane %v2612_v41, 2  ;;  %2614 = vrot.lane.b32.xlu1 %v2612_v41, %s7285_s12  ;;  %6705 = vmatpush1.bf16.msra.mxu1 %v6704_v28 }
0x2994   :  { %2618 = vrot.lane.b32.xlu0 %v2617_v13, %s7284_s28  ;;  %v3056_v13 = vld [vmem:[%s9269_s10 + $0x38] sm:$0xff] }
0x2a04   :  { %v8218_v35 = vpop.permute.xlu1 %2614 }
0x2a05   :  { %v2757_v20 = vsel %vm351_vm5, %v8218_v35, %v8085_v63 }
0x2a06   :  { %v8220_v39 = vpop.permute.xlu0 %2618 }
0x2a07   :  { %v2621_v42 = vsel %vm351_vm5, %v8218_v35, %v8220_v39 }
0x2a08   :  { %6326 = vmatmul.mubr.msk.f32.vlgmr.msra.gmra.mrb[20].mxu0 %vm216_vm6, %v2621_v42  ;;  %v3036_v42 = vld [vmem:[%s9267_s8 + $0x20] sm:$0xff] }
0x2a09   :  { %3223 = vmatprep.mubr.f32.mxu0 %v7283_v7  ;;  %6721 = vmatpush1.bf16.msra.mxu0 %v8266_v22 }
0x2adb   :  { %v2691_v19 = vpop.f32.mrb[20].mxu0 }
0x2adc   :  { %v2697_v27 = vrot.slane %v2691_v19, 1  ;;  %v2698_v49 = vrot.slane %v2691_v19, 2  ;;  %v2693_v50 = vpop.f32.mrb[21].mxu0  ;;  %v3038_v19 = vld [vmem:[%s9267_s8 + $0x30] sm:$0xff] }
0x2add   :  { %v2704_v51 = vrot.slane %v2693_v50, 1  ;;  %v2707_v53 = vadd.f32 %v2693_v50, %v8034_v34  ;;  %v3053_v50 = vld [vmem:[%s9269_s10 + $0x20] sm:$0xff] }
0x2ade   :  { %v2701_v60 = vadd.f32 %v2697_v27, %v8036_v46  ;;  %v2702_v55 = vadd.f32 %v2698_v49, %v8038_v47  ;;  %v8289_v27 = vpack.c.bf16 %v3056_v13, %v3054_v32  ;;  %v6708_v49 = vpack.c.bf16 %v3038_v19, %v3036_v42 }
0x2adf   :  { %v2708_v58 = vadd.f32 %v2704_v51, %v8041_v26  ;;  %v2717_v33 = vrot.slane %v2707_v53, 6  ;;  %v3055_v51 = vld [vmem:[%s9269_s10 + $0x30] sm:$0xff]  ;;  %v2840_v32 = vrot.slane %v2754_v43, %v7941_v37  ;;  %v2909_v19 = vrot.slane %v2757_v20, %v7941_v37 }
0x2ae0   :  { %v2711_v30 = vrot.slane %v2701_v60, 7  ;;  %v2712_v3 = vrot.slane %v2702_v55, 6  ;;  %v8297_v53 = vpack.c.bf16 %v3055_v51, %v3053_v50  ;;  %6723 = vmatprep.subr.bf16.mxu0 %v8289_v27  ;;  %v3041_v60 = vld [vmem:[%s9267_s8 + $0x48] sm:$0xff]  ;;  %v3043_v55 = vld [vmem:[%s9267_s8 + $0x58] sm:$0xff] }
0x2ae1   :  { %v2718_v45 = vrot.slane %v2708_v58, 5  ;;  %v3058_v58 = vld [vmem:[%s9269_s10 + $0x48] sm:$0xff]  ;;  %v2848_v13 = vrot.slane %v2840_v32, %v7941_v37 }
0x2ae2   :  { %v2713_v25 = vsel %vm307_vm2, %v2712_v3, %v2711_v30  ;;  %6725 = vmatpush1.bf16.msra.mxu0 %v8297_v53  ;;  %v6710_v30 = vpack.c.bf16 %v3043_v55, %v3041_v60  ;;  %v3060_v3 = vld [vmem:[%s9269_s10 + $0x58] sm:$0xff] }
0x2ae3   :  { %v2719_v48 = vsel %vm314_vm3, %v2718_v45, %v2717_v33  ;;  %v3040_v33 = vld [vmem:[%s9267_s8 + $0x40] sm:$0xff]  ;;  %v3042_v45 = vld [vmem:[%s9267_s8 + $0x50] sm:$0xff] }
0x2ae4   :  { %v2721_v8 = vsel %vm317_vm4, %v2713_v25, %v2719_v48  ;;  %v8319_v25 = vpack.c.bf16 %v3060_v3, %v3058_v58  ;;  %v6712_v48 = vpack.c.bf16 %v3042_v45, %v3040_v33  ;;  %v2971_v3 = vrot.slane %v2848_v13, %v7594_v14 }
0x2ae5   :  { %7124 = vtanh.f32 %v2721_v8  ;;  %v6327_v34 = vmul.f32 -1.442695, %v2721_v8  ;;  %v3057_v8 = vld [vmem:[%s9269_s10 + $0x40] sm:$0xff]  ;;  %v2910_v45 = vcombine.high %v2909_v19, %v2909_v19 }
0x2ae6   :  { %6727 = vmatprep.subr.bf16.mxu0 %v8319_v25 }
0x2ae7   :  { %7126 = vpow2.f32 %v6327_v34 }
0x2aef   :  { %v7125_v52 = vpop.eup %7124 }
0x2af0   :  { %2731 = vrot.lane.b32.xlu1 %v7125_v52, %s7284_s28  ;;  %v3059_v52 = vld [vmem:[%s9269_s10 + $0x50] sm:$0xff] }
0x2af1   :  { %v7127_v46 = vpop.eup %7126  ;;  %v8327_v34 = vpack.c.bf16 %v3059_v52, %v3057_v8 }
0x2af2   :  { %v2725_v47 = vadd.f32 1.0, %v7127_v46  ;;  %v3045_v46 = vld [vmem:[%s9267_s8 + $0x68] sm:$0xff] }
0x2af3   :  { %6729 = vmatpush1.bf16.msra.mxu0 %v8327_v34 }
0x2af4   :  { %7128 = vrcp.f32 %v2725_v47  ;;  %v3047_v47 = vld [vmem:[%s9267_s8 + $0x78] sm:$0xff] }
0x2afe   :  { %v8235_v26 = vpop.eup %7128 }
0x2aff   :  { %v2729_v6 = vmul.f32 %v8235_v26, %v2606_v54  ;;  %v3037_v54 = vld [vmem:[%s9267_s8 + $0x28] sm:$0xff] }
0x2b00   :  { %v6706_v41 = vpack.c.bf16 %v3039_v0, %v3037_v54  ;;  %v2863_v0 = vrot.slane %v2755_v29, %v7941_v37 }
0x2b02   :  { %6707 = vmatprep.subr.bf16.mxu1 %v6706_v41 }
0x2b03   :  { %6709 = vmatpush1.bf16.msra.mxu1 %v6708_v49 }
0x2b04   :  { %6711 = vmatprep.subr.bf16.mxu1 %v6710_v30 }
0x2b07   :  { %6713 = vmatpush1.bf16.msra.mxu1 %v6712_v48 }
0x2b62   :  { %v2732_v59 = vpop.permute.xlu1 %2731 }
0x2b63   :  { %v2734_v10 = vmul.f32 %v8235_v26, %v2732_v59  ;;  %v3062_v59 = vld [vmem:[%s9269_s10 + $0x68] sm:$0xff] }
0x2b65   :  { %2736 = vrot.lane.b32.xlu0 %v2734_v10, %s7285_s12  ;;  %v6714_v10 = vpack.c.bf16 %v3047_v47, %v3045_v46 }
0x2b67   :  { %6715 = vmatprep.subr.bf16.mxu1 %v6714_v10 }
0x2bd7   :  { %v2737_v56 = vpop.permute.xlu0 %2736 }
0x2bd8   :  { %v2739_v40 = vadd.f32 %v2737_v56, %v2729_v6  ;;  %v3064_v6 = vld [vmem:[%s9269_s10 + $0x78] sm:$0xff]  ;;  %v3044_v56 = vld [vmem:[%s9267_s8 + $0x60] sm:$0xff] }
0x2bd9   :  { %v8349_v15 = vpack.c.bf16 %v3064_v6, %v3062_v59  ;;  %v2917_v59 = vrot.slane %v2909_v19, %v7941_v37 }
0x2bda   :  { %7130 = vtanh.f32 %v2739_v40  ;;  %v3046_v40 = vld [vmem:[%s9267_s8 + $0x70] sm:$0xff] }
0x2bdb   :  { %v6716_v23 = vpack.c.bf16 %v3046_v40, %v3044_v56  ;;  %6731 = vmatprep.subr.bf16.mxu0 %v8349_v15 }
0x2bdc   :  { %6733 = vmatpush1.bf16.msra.mxu0 %v8357_v4 }
0x2bdd   :  { %6717 = vmatpush1.bf16.msra.mxu1 %v6716_v23  ;;  %6751 = vmatprep.subr.bf16.mxu0 %v8258_v17 }
0x2bde   :  { %6735 = vmatprep.subr.bf16.mxu1 %v8258_v17 }
0x2bdf   :  { %3224 = vmatmul.mubr.f32.vlgmr.msra.gmra.mrb[22].mxu0 %v7283_v7 }
0x2be0   :  { %6753 = vmatpush1.bf16.msra.mxu0 %v8266_v22  ;;  %3487 = vmatprep.mubr.f32.mxu0 %v7283_v7 }
0x2be1   :  { %6755 = vmatprep.subr.bf16.mxu0 %v8289_v27 }
0x2be4   :  { %v7131_v31 = vpop.eup %7130  ;;  %6757 = vmatpush1.bf16.msra.mxu0 %v8297_v53 }
0x2be5   :  { %2742 = vrot.lane.b32.xlu1 %v7131_v31, %s7284_s28  ;;  %6759 = vmatprep.subr.bf16.mxu0 %v8319_v25  ;;  %v2753_v31 = vsel %vm351_vm5, %v8112_v44, %v8199_v2  ;;  %v2864_v44 = vcombine.high %v2863_v0, %v2863_v0  ;;  %v2871_v2 = vrot.slane %v2863_v0, %v7941_v37 }
0x2be6   :  { %v2817_v24 = vrot.slane %v2753_v31, %v7941_v37 }
0x2be7   :  { %v2878_v60 = vrot.slane %v2864_v44, %v7941_v37  ;;  %v2981_v55 = vrot.slane %v2871_v2, %v7594_v14 }
0x2be8   :  { %6761 = vmatpush1.bf16.msra.mxu0 %v8327_v34  ;;  %v2818_v42 = vcombine.high %v2817_v24, %v2817_v24  ;;  %v2825_v35 = vrot.slane %v2817_v24, %v7941_v37 }
0x2be9   :  { %6763 = vmatprep.subr.bf16.mxu0 %v8349_v15  ;;  %v2985_v36 = vrot.slane %v2878_v60, %v7594_v14 }
0x2bea   :  { %v2832_v33 = vrot.slane %v2818_v42, %v7941_v37  ;;  %v2961_v47 = vrot.slane %v2825_v35, %v7594_v14 }
0x2bec   :  { %6765 = vmatpush1.bf16.msra.mxu0 %v8357_v4  ;;  %v2965_v18 = vrot.slane %v2832_v33, %v7594_v14 }
0x2bed   :  { %6783 = vmatprep.subr.bf16.mxu0 %v8258_v17 }
0x2c57   :  { %v2743_v21 = vpop.permute.xlu1 %2742 }
0x2c58   :  { %v2745_v38 = vmul.f32 %v8235_v26, %v2743_v21  ;;  %v2752_v26 = vsel %vm351_vm5, %v8083_v62, %v8220_v39  ;;  %v2756_v62 = vsel %vm351_vm5, %v8197_v1, %v8114_v61  ;;  %v2841_v39 = vcombine.high %v2840_v32, %v2840_v32 }
0x2c59   :  { %v2794_v54 = vrot.slane %v2752_v26, %v7941_v37  ;;  %v2886_v57 = vrot.slane %v2756_v62, %v7941_v37  ;;  %v2924_v21 = vrot.slane %v2910_v45, %v7941_v37 }
0x2c5a   :  { %v2747_v28 = vrot.slane %v2745_v38, 2  ;;  %2758 = vrot.lane.b32.xlu1 %v2745_v38, %s7285_s12 }
0x2c5b   :  { %v2795_v16 = vcombine.high %v2794_v54, %v2794_v54  ;;  %v2802_v1 = vrot.slane %v2794_v54, %v7941_v37  ;;  %v2887_v63 = vcombine.high %v2886_v57, %v2886_v57  ;;  %v2894_v48 = vrot.slane %v2886_v57, %v7941_v37 }
0x2c5c   :  { %2748 = vrot.lane.b32.xlu0 %v2747_v28, %s7284_s28  ;;  %v3001_v54 = vrot.slane %v2917_v59, %v7594_v14 }
0x2c5d   :  { %v2809_v50 = vrot.slane %v2795_v16, %v7941_v37  ;;  %v2951_v8 = vrot.slane %v2802_v1, %v7594_v14  ;;  %v2901_v46 = vrot.slane %v2887_v63, %v7941_v37  ;;  %v2991_v26 = vrot.slane %v2894_v48, %v7594_v14 }
0x2c5e   :  { %v3005_v16 = vrot.slane %v2924_v21, %v7594_v14 }
0x2c5f   :  { %v2955_v10 = vrot.slane %v2809_v50, %v7594_v14  ;;  %v2995_v31 = vrot.slane %v2901_v46, %v7594_v14 }
0x2ccc   :  { %v2759_v41 = vpop.permute.xlu1 %2758 }
0x2ccd   :  { %v2761_v61 = vsel %vm351_vm5, %v2759_v41, %v8056_v5  ;;  %v2855_v5 = vrot.slane %v2841_v39, %v7941_v37 }
0x2cce   :  { %v2749_v49 = vpop.permute.xlu0 %2748  ;;  %v2932_v58 = vrot.slane %v2761_v61, %v7941_v37  ;;  %v3225_v61 = vpop.f32.mrb[22].mxu0 }
0x2ccf   :  { %v2751_v51 = vsel %vm351_vm5, %v8054_v11, %v2749_v49  ;;  %v2975_v28 = vrot.slane %v2855_v5, %v7594_v14  ;;  %v3227_v1 = vpop.f32.mrb[23].mxu0  ;;  %v3048_v49 = vld [vmem:[%s9268_s9] sm:$0x3] }
0x2cd0   :  { %v2769_v30 = vrot.slane %v2751_v51, %v7941_v37  ;;  %v2933_v6 = vcombine.high %v2932_v58, %v2932_v58  ;;  %v2940_v56 = vrot.slane %v2932_v58, %v7941_v37  ;;  %v3073_v63 = vrot.slane %v3048_v49, %v7588_v12 }
0x2cd1   :  { %v3069_v50 = vrot.slane %v3048_v49, %v7594_v14  ;;  %v3231_v58 = vrot.slane %v3225_v61, 1 }
0x2cd2   :  { %v2770_v11 = vcombine.high %v2769_v30, %v2769_v30  ;;  %v2777_v52 = vrot.slane %v2769_v30, %v7941_v37  ;;  %v2947_v62 = vrot.slane %v2933_v6, %v7941_v37  ;;  %v3011_v24 = vrot.slane %v2940_v56, %v7594_v14 }
0x2cd3   :  { %v3238_v30 = vrot.slane %v3227_v1, 2 }
0x2cd4   :  { %v2784_v40 = vrot.slane %v2770_v11, %v7941_v37  ;;  %v3018_v23 = vsel %vm132_vm0, %v2777_v52, %v2951_v8  ;;  %v3015_v42 = vrot.slane %v2947_v62, %v7594_v14 }
0x2cd5   :  { %v3020_v38 = vsel %vm317_vm4, %v3018_v23, %v2961_v47 }
0x2cd6   :  { %v3019_v29 = vsel %vm132_vm0, %v2784_v40, %v2955_v10  ;;  %v3022_v43 = vsel %vm1552_vm7, %v3020_v38, %v2971_v3 }
0x2cd7   :  { %v3021_v0 = vsel %vm317_vm4, %v3019_v29, %v2965_v18  ;;  %v3024_v32 = vsel %vm1555_vm8, %v3022_v43, %v2981_v55  ;;  %v3237_v55 = vrot.slane %v3227_v1, 1 }
0x2cd8   :  { %v3026_v20 = vsel %vm1558_vm9, %v3024_v32, %v2991_v26  ;;  %v3023_v57 = vsel %vm1552_vm7, %v3021_v0, %v2975_v28 }
0x2cd9   :  { %v3028_v44 = vsel %vm1561_vm10, %v3026_v20, %v3001_v54  ;;  %v3025_v2 = vsel %vm1555_vm8, %v3023_v57, %v2985_v36 }
0x2cda   :  { %v3030_v39 = vsel %vm1564_vm11, %v3028_v44, %v3011_v24  ;;  %v3027_v41 = vsel %vm1558_vm9, %v3025_v2, %v2995_v31 }
0x2cdb   :  { %6328 = vmatmul.mubr.msk.f32.vlgmr.msra.gmra.mrb[18].mxu1 %vm216_vm6, %v3030_v39  ;;  %v3029_v13 = vsel %vm1561_vm10, %v3027_v41, %v3005_v16 }
0x2cdc   :  { %3152 = vmatprep.mubr.f32.mxu1 %v7283_v7  ;;  %6737 = vmatpush1.bf16.msra.mxu1 %v8266_v22  ;;  %v3031_v19 = vsel %vm1564_vm11, %v3029_v13, %v3015_v42 }
0x2cdd   :  { %6739 = vmatprep.subr.bf16.mxu1 %v8289_v27 }
0x2cdf   :  { %6329 = vmatmul.mubr.msk.f32.gmra.mrb[20].mxu1 %vm216_vm6, %v3031_v19 }
0x2ce0   :  { %6741 = vmatpush1.bf16.msra.mxu1 %v8297_v53  ;;  %3355 = vmatprep.mubr.f32.mxu1 %v7283_v7 }
0x2ce1   :  { %6743 = vmatprep.subr.bf16.mxu1 %v8319_v25 }
0x2ce4   :  { %6745 = vmatpush1.bf16.msra.mxu1 %v8327_v34 }
0x2ce5   :  { %6747 = vmatprep.subr.bf16.mxu1 %v8349_v15 }
0x2ce8   :  { %6749 = vmatpush1.bf16.msra.mxu1 %v8357_v4 }
0x2ce9   :  { %6767 = vmatprep.subr.bf16.mxu1 %v8258_v17 }
0x2dae   :  { %v3148_v35 = vpop.f32.mrb[18].mxu1 }
0x2daf   :  { %v3150_v51 = vpop.f32.mrb[19].mxu1  ;;  %v8469_v3 = vadd.f32 %v3148_v35, %v3069_v50 }
0x2db0   :  { %v8467_v60 = vadd.f32 %v3150_v51, %v3073_v63 }
0x2db1   :  { %v3234_v46 = vadd.f32 %v3225_v61, %v8469_v3 }
0x2db2   :  { %v3154_v5 = vpop.f32.mrb[20].mxu1  ;;  %v3241_v48 = vadd.f32 %v3237_v55, %v8467_v60 }
0x2db3   :  { %v8471_v33 = vadd.f32 %v3154_v5, %v3069_v50  ;;  %v3156_v45 = vpop.f32.mrb[21].mxu1 }
0x2db4   :  { %v8474_v8 = vadd.f32 %v3156_v45, %v3073_v63  ;;  %v3250_v59 = vrot.slane %v3241_v48, 5 }
0x2db5   :  { %v3235_v11 = vadd.f32 %v3231_v58, %v8471_v33 }
0x2db6   :  { %v3242_v52 = vadd.f32 %v3238_v30, %v8474_v8 }
0x2db7   :  { %v3245_v47 = vrot.slane %v3235_v11, 7 }
0x2db8   :  { %v3251_v10 = vrot.slane %v3242_v52, 4 }
0x2db9   :  { %v3246_v6 = vsel %vm307_vm2, %v3245_v47, %v3234_v46 }
0x2dba   :  { %v3252_v56 = vsel %vm314_vm3, %v3251_v10, %v3250_v59 }
0x2dbb   :  { %v3254_v40 = vsel %vm317_vm4, %v3246_v6, %v3252_v56 }
0x2dbc   :  { %7132 = vtanh.f32 %v3254_v40  ;;  %v6330_v36 = vmul.f32 -1.442695, %v3254_v40 }
0x2dbe   :  { %7134 = vpow2.f32 %v6330_v36 }
0x2dc6   :  { %v7133_v23 = vpop.eup %7132 }
0x2dc7   :  { %3264 = vrot.lane.b32.xlu0 %v7133_v23, %s7284_s28 }
0x2dc8   :  { %v7135_v18 = vpop.eup %7134 }
0x2dc9   :  { %v3258_v21 = vadd.f32 1.0, %v7135_v18 }
0x2dcb   :  { %7136 = vrcp.f32 %v3258_v21 }
0x2dd5   :  { %v7137_v38 = vpop.eup %7136 }
0x2dd6   :  { %v3262_v29 = vmul.f32 0.0, %v7137_v38 }
0x2e39   :  { %v3265_v28 = vpop.permute.xlu0 %3264 }
0x2e3a   :  { %v3267_v26 = vmul.f32 %v7137_v38, %v3265_v28 }
0x2e3c   :  { %3269 = vrot.lane.b32.xlu1 %v3267_v26, %s7285_s12 }
0x2eae   :  { %v3270_v43 = vpop.permute.xlu1 %3269 }
0x2eaf   :  { %v3272_v31 = vadd.f32 %v3270_v43, %v3262_v29 }
0x2eb1   :  { %7138 = vtanh.f32 %v3272_v31 }
0x2ebb   :  { %v7139_v54 = vpop.eup %7138 }
0x2ebc   :  { %3275 = vrot.lane.b32.xlu0 %v7139_v54, %s7284_s28 }
0x2f2e   :  { %v3276_v0 = vpop.permute.xlu0 %3275 }
0x2f2f   :  { %v3278_v32 = vmul.f32 %v7137_v38, %v3276_v0 }
0x2f31   :  { %v3283_v62 = vrot.slane %v3278_v32, 2  ;;  %3280 = vrot.lane.b32.xlu1 %v3278_v32, %s7285_s12 }
0x2f33   :  { %3284 = vrot.lane.b32.xlu0 %v3283_v62, %s7284_s28 }
0x2fa3   :  { %v8487_v24 = vpop.permute.xlu1 %3280 }
0x2fa5   :  { %v8489_v20 = vpop.permute.xlu0 %3284 }
0x2fa6   :  { %v3287_v57 = vsel %vm351_vm5, %v8487_v24, %v8489_v20 }
0x2fa7   :  { %6331 = vmatmul.mubr.msk.f32.vlgmr.msra.gmra.mrb[22].mxu1 %vm216_vm6, %v3287_v57 }
0x2fa8   :  { %6769 = vmatpush1.bf16.msra.mxu1 %v8266_v22  ;;  %3621 = vmatprep.mubr.f32.mxu1 %v7283_v7 }
0x2fa9   :  { %6771 = vmatprep.subr.bf16.mxu1 %v8289_v27 }
0x2fac   :  { %6773 = vmatpush1.bf16.msra.mxu1 %v8297_v53 }
0x2fad   :  { %6775 = vmatprep.subr.bf16.mxu1 %v8319_v25 }
0x2fb0   :  { %6777 = vmatpush1.bf16.msra.mxu1 %v8327_v34 }
0x2fb1   :  { %6779 = vmatprep.subr.bf16.mxu1 %v8349_v15 }
0x2fb4   :  { %6781 = vmatpush1.bf16.msra.mxu1 %v8357_v4 }
0x2fb5   :  { %6799 = vmatprep.subr.bf16.mxu1 %v8258_v17 }
0x307a   :  { %v3357_v16 = vpop.f32.mrb[22].mxu1 }
0x307b   :  { %v3363_v44 = vrot.slane %v3357_v16, 7  ;;  %v3359_v2 = vpop.f32.mrb[23].mxu1  ;;  %v3367_v61 = vadd.f32 %v3357_v16, %v8471_v33 }
0x307c   :  { %v3369_v39 = vrot.slane %v3359_v2, 2  ;;  %v3370_v41 = vrot.slane %v3359_v2, 3 }
0x307d   :  { %v3366_v13 = vadd.f32 %v3363_v44, %v8469_v3 }
0x307e   :  { %v3373_v42 = vadd.f32 %v3369_v39, %v8467_v60  ;;  %v3374_v19 = vadd.f32 %v3370_v41, %v8474_v8 }
0x307f   :  { %v3377_v1 = vrot.slane %v3366_v13, 1 }
0x3080   :  { %v3382_v49 = vrot.slane %v3373_v42, 4  ;;  %v3383_v63 = vrot.slane %v3374_v19, 3 }
0x3081   :  { %v3378_v35 = vsel %vm307_vm2, %v3367_v61, %v3377_v1 }
0x3082   :  { %v3384_v50 = vsel %vm314_vm3, %v3383_v63, %v3382_v49 }
0x3083   :  { %v3386_v51 = vsel %vm317_vm4, %v3378_v35, %v3384_v50 }
0x3084   :  { %7140 = vtanh.f32 %v3386_v51  ;;  %v6332_v58 = vmul.f32 -1.442695, %v3386_v51 }
0x3086   :  { %7142 = vpow2.f32 %v6332_v58 }
0x308e   :  { %v7141_v55 = vpop.eup %7140 }
0x308f   :  { %3396 = vrot.lane.b32.xlu1 %v7141_v55, %s7284_s28 }
0x3090   :  { %v7143_v30 = vpop.eup %7142 }
0x3091   :  { %v3390_v5 = vadd.f32 1.0, %v7143_v30 }
0x3093   :  { %7144 = vrcp.f32 %v3390_v5 }
0x309d   :  { %v7145_v45 = vpop.eup %7144 }
0x309e   :  { %v3394_v52 = vmul.f32 %v7145_v45, %v3272_v31 }
0x3101   :  { %v3397_v48 = vpop.permute.xlu1 %3396 }
0x3102   :  { %v3399_v11 = vmul.f32 %v7145_v45, %v3397_v48 }
0x3104   :  { %3401 = vrot.lane.b32.xlu0 %v3399_v11, %s7285_s12 }
0x3176   :  { %v3402_v46 = vpop.permute.xlu0 %3401 }
0x3177   :  { %v3404_v47 = vadd.f32 %v3402_v46, %v3394_v52 }
0x3179   :  { %7146 = vtanh.f32 %v3404_v47 }
0x3183   :  { %v7147_v59 = vpop.eup %7146 }
0x3184   :  { %3407 = vrot.lane.b32.xlu1 %v7147_v59, %s7284_s28 }
0x31f6   :  { %v3408_v10 = vpop.permute.xlu1 %3407 }
0x31f7   :  { %v3410_v6 = vmul.f32 %v7145_v45, %v3408_v10 }
0x31f9   :  { %v3415_v56 = vrot.slane %v3410_v6, 2  ;;  %3412 = vrot.lane.b32.xlu0 %v3410_v6, %s7285_s12 }
0x31fb   :  { %3416 = vrot.lane.b32.xlu1 %v3415_v56, %s7284_s28 }
0x326b   :  { %v8516_v40 = vpop.permute.xlu0 %3412 }
0x326d   :  { %v8518_v23 = vpop.permute.xlu1 %3416 }
0x326e   :  { %v3419_v36 = vsel %vm351_vm5, %v8516_v40, %v8518_v23 }
0x326f   :  { %6333 = vmatmul.mubr.msk.f32.vlgmr.msra.gmra.mrb[24].mxu0 %vm216_vm6, %v3419_v36 }
0x3270   :  { %6785 = vmatpush1.bf16.msra.mxu0 %v8266_v22  ;;  %3755 = vmatprep.mubr.f32.mxu0 %v7283_v7 }
0x3271   :  { %6787 = vmatprep.subr.bf16.mxu0 %v8289_v27 }
0x3274   :  { %6789 = vmatpush1.bf16.msra.mxu0 %v8297_v53 }
0x3275   :  { %6791 = vmatprep.subr.bf16.mxu0 %v8319_v25 }
0x3278   :  { %6793 = vmatpush1.bf16.msra.mxu0 %v8327_v34 }
0x3279   :  { %6795 = vmatprep.subr.bf16.mxu0 %v8349_v15 }
0x327c   :  { %6797 = vmatpush1.bf16.msra.mxu0 %v8357_v4 }
0x327d   :  { %6815 = vmatprep.subr.bf16.mxu0 %v8258_v17 }
0x3342   :  { %v3489_v18 = vpop.f32.mrb[24].mxu0 }
0x3343   :  { %v3495_v21 = vrot.slane %v3489_v18, 6  ;;  %v3496_v38 = vrot.slane %v3489_v18, 7  ;;  %v3491_v28 = vpop.f32.mrb[25].mxu0 }
0x3344   :  { %v3502_v26 = vrot.slane %v3491_v28, 3  ;;  %v3503_v29 = vrot.slane %v3491_v28, 4 }
0x3345   :  { %v3499_v43 = vadd.f32 %v3495_v21, %v8469_v3  ;;  %v3500_v31 = vadd.f32 %v3496_v38, %v8471_v33 }
0x3346   :  { %v3506_v54 = vadd.f32 %v3502_v26, %v8467_v60  ;;  %v3507_v0 = vadd.f32 %v3503_v29, %v8474_v8 }
0x3347   :  { %v3510_v32 = vrot.slane %v3499_v43, 2  ;;  %v3511_v62 = vrot.slane %v3500_v31, 1 }
0x3348   :  { %v3516_v57 = vrot.slane %v3506_v54, 3  ;;  %v3517_v16 = vrot.slane %v3507_v0, 2 }
0x3349   :  { %v3512_v44 = vsel %vm307_vm2, %v3511_v62, %v3510_v32 }
0x334a   :  { %v3518_v2 = vsel %vm314_vm3, %v3517_v16, %v3516_v57 }
0x334b   :  { %v3520_v39 = vsel %vm317_vm4, %v3512_v44, %v3518_v2 }
0x334c   :  { %7148 = vtanh.f32 %v3520_v39  ;;  %v6334_v13 = vmul.f32 -1.442695, %v3520_v39 }
0x334e   :  { %7150 = vpow2.f32 %v6334_v13 }
0x3356   :  { %v7149_v41 = vpop.eup %7148 }
0x3357   :  { %3530 = vrot.lane.b32.xlu0 %v7149_v41, %s7284_s28 }
0x3358   :  { %v7151_v42 = vpop.eup %7150 }
0x3359   :  { %v3524_v19 = vadd.f32 1.0, %v7151_v42 }
0x335b   :  { %7152 = vrcp.f32 %v3524_v19 }
0x3365   :  { %v7153_v61 = vpop.eup %7152 }
0x3366   :  { %v3528_v63 = vmul.f32 %v7153_v61, %v3404_v47 }
0x33c9   :  { %v3531_v1 = vpop.permute.xlu0 %3530 }
0x33ca   :  { %v3533_v49 = vmul.f32 %v7153_v61, %v3531_v1 }
0x33cc   :  { %3535 = vrot.lane.b32.xlu1 %v3533_v49, %s7285_s12 }
0x343e   :  { %v3536_v35 = vpop.permute.xlu1 %3535 }
0x343f   :  { %v3538_v50 = vadd.f32 %v3536_v35, %v3528_v63 }
0x3441   :  { %7154 = vtanh.f32 %v3538_v50 }
0x344b   :  { %v7155_v51 = vpop.eup %7154 }
0x344c   :  { %3541 = vrot.lane.b32.xlu0 %v7155_v51, %s7284_s28 }
0x34be   :  { %v3542_v55 = vpop.permute.xlu0 %3541 }
0x34bf   :  { %v3544_v58 = vmul.f32 %v7153_v61, %v3542_v55 }
0x34c1   :  { %v3549_v30 = vrot.slane %v3544_v58, 2  ;;  %3546 = vrot.lane.b32.xlu1 %v3544_v58, %s7285_s12 }
0x34c3   :  { %3550 = vrot.lane.b32.xlu0 %v3549_v30, %s7284_s28 }
0x3533   :  { %v8545_v5 = vpop.permute.xlu1 %3546 }
0x3535   :  { %v8547_v45 = vpop.permute.xlu0 %3550 }
0x3536   :  { %v3553_v48 = vsel %vm351_vm5, %v8545_v5, %v8547_v45 }
0x3537   :  { %6335 = vmatmul.mubr.msk.f32.vlgmr.msra.gmra.mrb[24].mxu1 %vm216_vm6, %v3553_v48 }
0x3538   :  { %6801 = vmatpush1.bf16.msra.mxu1 %v8266_v22  ;;  %3888 = vmatprep.mubr.f32.mxu1 %v7283_v7 }
0x3539   :  { %6803 = vmatprep.subr.bf16.mxu1 %v8289_v27 }
0x353c   :  { %6805 = vmatpush1.bf16.msra.mxu1 %v8297_v53 }
0x353d   :  { %6807 = vmatprep.subr.bf16.mxu1 %v8319_v25 }
0x3540   :  { %6809 = vmatpush1.bf16.msra.mxu1 %v8327_v34 }
0x3541   :  { %6811 = vmatprep.subr.bf16.mxu1 %v8349_v15 }
0x3544   :  { %6813 = vmatpush1.bf16.msra.mxu1 %v8357_v4 }
0x3545   :  { %6831 = vmatprep.subr.bf16.mxu1 %v8258_v17 }
0x360a   :  { %v3623_v11 = vpop.f32.mrb[24].mxu1 }
0x360b   :  { %v3629_v52 = vrot.slane %v3623_v11, 5  ;;  %v3630_v46 = vrot.slane %v3623_v11, 6  ;;  %v3625_v47 = vpop.f32.mrb[25].mxu1 }
0x360c   :  { %v3636_v59 = vrot.slane %v3625_v47, 4  ;;  %v3637_v10 = vrot.slane %v3625_v47, 5 }
0x360d   :  { %v3633_v6 = vadd.f32 %v3629_v52, %v8469_v3  ;;  %v3634_v56 = vadd.f32 %v3630_v46, %v8471_v33 }
0x360e   :  { %v3640_v36 = vadd.f32 %v3636_v59, %v8467_v60  ;;  %v3641_v18 = vadd.f32 %v3637_v10, %v8474_v8 }
0x360f   :  { %v3644_v21 = vrot.slane %v3633_v6, 3  ;;  %v3645_v38 = vrot.slane %v3634_v56, 2 }
0x3610   :  { %v3650_v28 = vrot.slane %v3640_v36, 2  ;;  %v3651_v26 = vrot.slane %v3641_v18, 1 }
0x3611   :  { %v3646_v17 = vsel %vm307_vm2, %v3645_v38, %v3644_v21 }
0x3612   :  { %v3652_v29 = vsel %vm314_vm3, %v3651_v26, %v3650_v28 }
0x3613   :  { %v3654_v43 = vsel %vm317_vm4, %v3646_v17, %v3652_v29 }
0x3614   :  { %7156 = vtanh.f32 %v3654_v43  ;;  %v6336_v54 = vmul.f32 -1.442695, %v3654_v43 }
0x3616   :  { %7158 = vpow2.f32 %v6336_v54 }
0x361e   :  { %v7157_v31 = vpop.eup %7156 }
0x361f   :  { %3664 = vrot.lane.b32.xlu1 %v7157_v31, %s7284_s28 }
0x3620   :  { %v7159_v0 = vpop.eup %7158 }
0x3621   :  { %v3658_v32 = vadd.f32 1.0, %v7159_v0 }
0x3623   :  { %7160 = vrcp.f32 %v3658_v32 }
0x362d   :  { %v7161_v62 = vpop.eup %7160 }
0x362e   :  { %v3662_v44 = vmul.f32 %v7161_v62, %v3538_v50 }
0x3691   :  { %v3665_v57 = vpop.permute.xlu1 %3664 }
0x3692   :  { %v3667_v16 = vmul.f32 %v7161_v62, %v3665_v57 }
0x3694   :  { %3669 = vrot.lane.b32.xlu0 %v3667_v16, %s7285_s12 }
0x3706   :  { %v3670_v2 = vpop.permute.xlu0 %3669 }
0x3707   :  { %v3672_v39 = vadd.f32 %v3670_v2, %v3662_v44 }
0x3709   :  { %7162 = vtanh.f32 %v3672_v39 }
0x3713   :  { %v7163_v41 = vpop.eup %7162 }
0x3714   :  { %3675 = vrot.lane.b32.xlu1 %v7163_v41, %s7284_s28 }
0x3786   :  { %v3676_v13 = vpop.permute.xlu1 %3675 }
0x3787   :  { %v3678_v42 = vmul.f32 %v7161_v62, %v3676_v13 }
0x3789   :  { %v3683_v19 = vrot.slane %v3678_v42, 2  ;;  %3680 = vrot.lane.b32.xlu0 %v3678_v42, %s7285_s12 }
0x378b   :  { %3684 = vrot.lane.b32.xlu1 %v3683_v19, %s7284_s28 }
0x37fb   :  { %v8574_v61 = vpop.permute.xlu0 %3680 }
0x37fd   :  { %v8576_v1 = vpop.permute.xlu1 %3684 }
0x37fe   :  { %v3687_v49 = vsel %vm351_vm5, %v8574_v61, %v8576_v1 }
0x37ff   :  { %6337 = vmatmul.mubr.msk.f32.vlgmr.msra.gmra.mrb[26].mxu0 %vm216_vm6, %v3687_v49 }
0x3800   :  { %6817 = vmatpush1.bf16.msra.mxu0 %v8266_v22  ;;  %4021 = vmatprep.mubr.f32.mxu0 %v7283_v7 }
0x3801   :  { %6819 = vmatprep.subr.bf16.mxu0 %v8289_v27 }
0x3804   :  { %6821 = vmatpush1.bf16.msra.mxu0 %v8297_v53 }
0x3805   :  { %6823 = vmatprep.subr.bf16.mxu0 %v8319_v25 }
0x3808   :  { %6825 = vmatpush1.bf16.msra.mxu0 %v8327_v34 }
0x3809   :  { %6827 = vmatprep.subr.bf16.mxu0 %v8349_v15 }
0x380c   :  { %6829 = vmatpush1.bf16.msra.mxu0 %v8357_v4 }
0x38d2   :  { %v3757_v63 = vpop.f32.mrb[26].mxu0 }
0x38d3   :  { %v3763_v35 = vrot.slane %v3757_v63, 4  ;;  %v3764_v50 = vrot.slane %v3757_v63, 5  ;;  %v3759_v51 = vpop.f32.mrb[27].mxu0 }
0x38d4   :  { %v3770_v55 = vrot.slane %v3759_v51, 5  ;;  %v3771_v58 = vrot.slane %v3759_v51, 6 }
0x38d5   :  { %v3767_v30 = vadd.f32 %v3763_v35, %v8469_v3  ;;  %v3768_v48 = vadd.f32 %v3764_v50, %v8471_v33 }
0x38d6   :  { %v3774_v11 = vadd.f32 %v3770_v55, %v8467_v60  ;;  %v3775_v47 = vadd.f32 %v3771_v58, %v8474_v8 }
0x38d7   :  { %v3778_v52 = vrot.slane %v3767_v30, 4  ;;  %v3779_v46 = vrot.slane %v3768_v48, 3 }
0x38d8   :  { %v3784_v59 = vrot.slane %v3774_v11, 1 }
0x38d9   :  { %v3780_v10 = vsel %vm307_vm2, %v3779_v46, %v3778_v52 }
0x38da   :  { %v3785_v6 = vsel %vm314_vm3, %v3775_v47, %v3784_v59 }
0x38db   :  { %v3787_v56 = vsel %vm317_vm4, %v3780_v10, %v3785_v6 }
0x38dc   :  { %7164 = vtanh.f32 %v3787_v56  ;;  %v6338_v18 = vmul.f32 -1.442695, %v3787_v56 }
0x38de   :  { %7166 = vpow2.f32 %v6338_v18 }
0x38e6   :  { %v7165_v36 = vpop.eup %7164 }
0x38e7   :  { %3797 = vrot.lane.b32.xlu0 %v7165_v36, %s7284_s28 }
0x38e8   :  { %v7167_v21 = vpop.eup %7166 }
0x38e9   :  { %v3791_v38 = vadd.f32 1.0, %v7167_v21 }
0x38eb   :  { %7168 = vrcp.f32 %v3791_v38 }
0x38f5   :  { %v7169_v28 = vpop.eup %7168 }
0x38f6   :  { %v3795_v29 = vmul.f32 %v7169_v28, %v3672_v39 }
0x3959   :  { %v3798_v26 = vpop.permute.xlu0 %3797 }
0x395a   :  { %v3800_v17 = vmul.f32 %v7169_v28, %v3798_v26 }
0x395c   :  { %3802 = vrot.lane.b32.xlu1 %v3800_v17, %s7285_s12 }
0x39ce   :  { %v3803_v43 = vpop.permute.xlu1 %3802 }
0x39cf   :  { %v3805_v31 = vadd.f32 %v3803_v43, %v3795_v29 }
0x39d1   :  { %7170 = vtanh.f32 %v3805_v31 }
0x39db   :  { %v7171_v54 = vpop.eup %7170 }
0x39dc   :  { %3808 = vrot.lane.b32.xlu0 %v7171_v54, %s7284_s28 }
0x3a4e   :  { %v3809_v0 = vpop.permute.xlu0 %3808 }
0x3a4f   :  { %v3811_v32 = vmul.f32 %v7169_v28, %v3809_v0 }
0x3a51   :  { %v3816_v62 = vrot.slane %v3811_v32, 2  ;;  %3813 = vrot.lane.b32.xlu1 %v3811_v32, %s7285_s12 }
0x3a53   :  { %3817 = vrot.lane.b32.xlu0 %v3816_v62, %s7284_s28 }
0x3ac3   :  { %v8602_v57 = vpop.permute.xlu1 %3813 }
0x3ac5   :  { %v8604_v16 = vpop.permute.xlu0 %3817 }
0x3ac6   :  { %v3820_v44 = vsel %vm351_vm5, %v8602_v57, %v8604_v16 }
0x3ac7   :  { %6339 = vmatmul.mubr.msk.f32.vlgmr.msra.gmra.mrb[26].mxu1 %vm216_vm6, %v3820_v44 }
0x3ac8   :  { %6833 = vmatpush1.bf16.msra.mxu1 %v8266_v22  ;;  %4154 = vmatprep.mubr.f32.mxu1 %v7283_v7 }
0x3ac9   :  { %6835 = vmatprep.subr.bf16.mxu1 %v8289_v27 }
0x3acc   :  { %6837 = vmatpush1.bf16.msra.mxu1 %v8297_v53 }
0x3acd   :  { %6839 = vmatprep.subr.bf16.mxu1 %v8319_v25 }
0x3ad0   :  { %6841 = vmatpush1.bf16.msra.mxu1 %v8327_v34 }
0x3ad1   :  { %6843 = vmatprep.subr.bf16.mxu1 %v8349_v15 }
0x3ad4   :  { %6845 = vmatpush1.bf16.msra.mxu1 %v8357_v4 }
0x3b9a   :  { %v3890_v2 = vpop.f32.mrb[26].mxu1 }
0x3b9b   :  { %v3896_v39 = vrot.slane %v3890_v2, 3  ;;  %v3897_v41 = vrot.slane %v3890_v2, 4  ;;  %v3892_v13 = vpop.f32.mrb[27].mxu1 }
0x3b9c   :  { %v3903_v42 = vrot.slane %v3892_v13, 6  ;;  %v3904_v22 = vrot.slane %v3892_v13, 7 }
0x3b9d   :  { %v3900_v19 = vadd.f32 %v3896_v39, %v8469_v3  ;;  %v3901_v27 = vadd.f32 %v3897_v41, %v8471_v33 }
0x3b9e   :  { %v3908_v53 = vadd.f32 %v3904_v22, %v8474_v8  ;;  %v3907_v34 = vadd.f32 %v3903_v42, %v8467_v60 }
0x3b9f   :  { %v3911_v49 = vrot.slane %v3900_v19, 5  ;;  %v3912_v25 = vrot.slane %v3901_v27, 4 }
0x3ba0   :  { %v3917_v63 = vrot.slane %v3908_v53, 7 }
0x3ba1   :  { %v3913_v15 = vsel %vm307_vm2, %v3912_v25, %v3911_v49 }
0x3ba2   :  { %v3918_v4 = vsel %vm314_vm3, %v3917_v63, %v3907_v34 }
0x3ba3   :  { %v3920_v35 = vsel %vm317_vm4, %v3913_v15, %v3918_v4 }
0x3ba4   :  { %7172 = vtanh.f32 %v3920_v35  ;;  %v6340_v51 = vmul.f32 -1.442695, %v3920_v35 }
0x3ba6   :  { %7174 = vpow2.f32 %v6340_v51 }
0x3bae   :  { %v7173_v50 = vpop.eup %7172 }
0x3baf   :  { %3930 = vrot.lane.b32.xlu1 %v7173_v50, %s7284_s28 }
0x3bb0   :  { %v7175_v55 = vpop.eup %7174 }
0x3bb1   :  { %v3924_v58 = vadd.f32 1.0, %v7175_v55 }
0x3bb3   :  { %7176 = vrcp.f32 %v3924_v58 }
0x3bbd   :  { %v7177_v30 = vpop.eup %7176 }
0x3bbe   :  { %v3928_v52 = vmul.f32 %v7177_v30, %v3805_v31 }
0x3c21   :  { %v3931_v48 = vpop.permute.xlu1 %3930 }
0x3c22   :  { %v3933_v11 = vmul.f32 %v7177_v30, %v3931_v48 }
0x3c24   :  { %3935 = vrot.lane.b32.xlu0 %v3933_v11, %s7285_s12 }
0x3c96   :  { %v3936_v46 = vpop.permute.xlu0 %3935 }
0x3c97   :  { %v3938_v47 = vadd.f32 %v3936_v46, %v3928_v52 }
0x3c99   :  { %7178 = vtanh.f32 %v3938_v47 }
0x3ca3   :  { %v7179_v59 = vpop.eup %7178 }
0x3ca4   :  { %3941 = vrot.lane.b32.xlu1 %v7179_v59, %s7284_s28 }
0x3d16   :  { %v3942_v10 = vpop.permute.xlu1 %3941 }
0x3d17   :  { %v3944_v6 = vmul.f32 %v7177_v30, %v3942_v10 }
0x3d19   :  { %v3949_v56 = vrot.slane %v3944_v6, 2  ;;  %3946 = vrot.lane.b32.xlu0 %v3944_v6, %s7285_s12 }
0x3d1b   :  { %3950 = vrot.lane.b32.xlu1 %v3949_v56, %s7284_s28 }
0x3d8b   :  { %v8630_v36 = vpop.permute.xlu0 %3946 }
0x3d8d   :  { %v8632_v18 = vpop.permute.xlu1 %3950 }
0x3d8e   :  { %v3953_v21 = vsel %vm351_vm5, %v8630_v36, %v8632_v18 }
0x3d8f   :  { %6341 = vmatmul.mubr.msk.f32.vlgmr.msra.gmra.mrb[28].mxu0 %vm216_vm6, %v3953_v21 }
0x3d90   :  { %4611 = vmatprep.mubr.f32.mxu0 %v7283_v7 }
0x3e62   :  { %v4023_v38 = vpop.f32.mrb[28].mxu0 }
0x3e63   :  { %v4029_v28 = vrot.slane %v4023_v38, 2  ;;  %v4030_v26 = vrot.slane %v4023_v38, 3  ;;  %v4025_v17 = vpop.f32.mrb[29].mxu0 }
0x3e64   :  { %v4036_v29 = vrot.slane %v4025_v17, 7  ;;  %v4040_v43 = vadd.f32 %v4025_v17, %v8474_v8 }
0x3e65   :  { %v4033_v31 = vadd.f32 %v4029_v28, %v8469_v3  ;;  %v4034_v54 = vadd.f32 %v4030_v26, %v8471_v33 }
0x3e66   :  { %v4039_v0 = vadd.f32 %v4036_v29, %v8467_v60  ;;  %v4050_v2 = vrot.slane %v4040_v43, 6 }
0x3e67   :  { %v4043_v32 = vrot.slane %v4033_v31, 6  ;;  %v4044_v62 = vrot.slane %v4034_v54, 5 }
0x3e68   :  { %v4049_v44 = vrot.slane %v4039_v0, 7 }
0x3e69   :  { %v4045_v39 = vsel %vm307_vm2, %v4044_v62, %v4043_v32 }
0x3e6a   :  { %v4051_v41 = vsel %vm314_vm3, %v4050_v2, %v4049_v44  ;;  %v4498_v2 = vld [vmem:[%s9270_s11 + $0x8] sm:$0xff] }
0x3e6b   :  { %v4053_v13 = vsel %vm317_vm4, %v4045_v39, %v4051_v41  ;;  %v4500_v39 = vld [vmem:[%s9270_s11 + $0x18] sm:$0xff]  ;;  %v4515_v41 = vld [vmem:[%s9272_s13 + $0x8] sm:$0xff] }
0x3e6c   :  { %7180 = vtanh.f32 %v4053_v13  ;;  %v6342_v22 = vmul.f32 -1.442695, %v4053_v13  ;;  %v6846_v13 = vpack.c.bf16 %v4500_v39, %v4498_v2 }
0x3e6e   :  { %7182 = vpow2.f32 %v6342_v22  ;;  %v4497_v22 = vld [vmem:[%s9270_s11] sm:$0xff]  ;;  %6847 = vmatprep.subr.bf16.mxu0 %v6846_v13  ;;  %v4528_v13 = vld [vmem:[%s9272_s13 + $0x70] sm:$0xff] }
0x3e76   :  { %v7181_v42 = vpop.eup %7180 }
0x3e77   :  { %4063 = vrot.lane.b32.xlu0 %v7181_v42, %s7284_s28  ;;  %v4517_v42 = vld [vmem:[%s9272_s13 + $0x18] sm:$0xff] }
0x3e78   :  { %v7183_v19 = vpop.eup %7182 }
0x3e79   :  { %v4057_v27 = vadd.f32 1.0, %v7183_v19  ;;  %v4499_v19 = vld [vmem:[%s9270_s11 + $0x10] sm:$0xff] }
0x3e7b   :  { %7184 = vrcp.f32 %v4057_v27  ;;  %v8691_v27 = vpack.c.bf16 %v4517_v42, %v4515_v41  ;;  %v4526_v41 = vld [vmem:[%s9272_s13 + $0x60] sm:$0xff] }
0x3e7d   :  { %6863 = vmatprep.subr.bf16.mxu1 %v8691_v27 }
0x3e85   :  { %v7185_v53 = vpop.eup %7184 }
0x3e86   :  { %v4061_v34 = vmul.f32 %v7185_v53, %v3938_v47 }
0x3ee9   :  { %v4064_v49 = vpop.permute.xlu0 %4063 }
0x3eea   :  { %v4066_v25 = vmul.f32 %v7185_v53, %v4064_v49  ;;  %v4514_v49 = vld [vmem:[%s9272_s13] sm:$0xff] }
0x3eec   :  { %4068 = vrot.lane.b32.xlu1 %v4066_v25, %s7285_s12  ;;  %v4516_v25 = vld [vmem:[%s9272_s13 + $0x10] sm:$0xff] }
0x3f5e   :  { %v4069_v63 = vpop.permute.xlu1 %4068 }
0x3f5f   :  { %v4071_v15 = vadd.f32 %v4069_v63, %v4061_v34  ;;  %v8699_v34 = vpack.c.bf16 %v4516_v25, %v4514_v49  ;;  %v4220_v49 = vsel %vm351_vm5, %v8602_v57, %v8576_v1  ;;  %v4219_v25 = vsel %vm351_vm5, %v8574_v61, %v8604_v16 }
0x3f61   :  { %7186 = vtanh.f32 %v4071_v15 }
0x3f6b   :  { %v7187_v4 = vpop.eup %7186 }
0x3f6c   :  { %4074 = vrot.lane.b32.xlu0 %v7187_v4, %s7284_s28  ;;  %v4504_v4 = vld [vmem:[%s9270_s11 + $0x38] sm:$0xff] }
0x3fde   :  { %v4075_v35 = vpop.permute.xlu0 %4074 }
0x3fdf   :  { %v4077_v50 = vmul.f32 %v7185_v53, %v4075_v35  ;;  %v6848_v53 = vpack.c.bf16 %v4499_v19, %v4497_v22  ;;  %v4519_v35 = vld [vmem:[%s9272_s13 + $0x28] sm:$0xff]  ;;  %v8790_v22 = vpack.c.bf16 %v4528_v13, %v4526_v41 }
0x3fe1   :  { %v4082_v51 = vrot.slane %v4077_v50, 2  ;;  %4079 = vrot.lane.b32.xlu1 %v4077_v50, %s7285_s12  ;;  %6849 = vmatpush1.bf16.msra.mxu0 %v6848_v53 }
0x3fe3   :  { %4083 = vrot.lane.b32.xlu0 %v4082_v51, %s7284_s28  ;;  %v4521_v51 = vld [vmem:[%s9272_s13 + $0x38] sm:$0xff] }
0x4053   :  { %v8651_v55 = vpop.permute.xlu1 %4079 }
0x4054   :  { %v4222_v61 = vsel %vm351_vm5, %v8651_v55, %v8518_v23 }
0x4055   :  { %v8653_v58 = vpop.permute.xlu0 %4083 }
0x4056   :  { %v4086_v30 = vsel %vm351_vm5, %v8651_v55, %v8653_v58 }
0x4057   :  { %6343 = vmatmul.mubr.msk.f32.vlgmr.msra.gmra.mrb[28].mxu1 %vm216_vm6, %v4086_v30  ;;  %v4501_v30 = vld [vmem:[%s9270_s11 + $0x20] sm:$0xff] }
0x4058   :  { %4688 = vmatprep.mubr.f32.mxu1 %v7283_v7  ;;  %6865 = vmatpush1.bf16.msra.mxu1 %v8699_v34 }
0x412a   :  { %v4156_v48 = vpop.f32.mrb[28].mxu1 }
0x412b   :  { %v4162_v11 = vrot.slane %v4156_v48, 1  ;;  %v4163_v52 = vrot.slane %v4156_v48, 2  ;;  %v4158_v46 = vpop.f32.mrb[29].mxu1  ;;  %v4503_v48 = vld [vmem:[%s9270_s11 + $0x30] sm:$0xff] }
0x412c   :  { %v4169_v47 = vrot.slane %v4158_v46, 1  ;;  %v4172_v59 = vadd.f32 %v4158_v46, %v8467_v60  ;;  %v4518_v46 = vld [vmem:[%s9272_s13 + $0x20] sm:$0xff] }
0x412d   :  { %v4166_v10 = vadd.f32 %v4162_v11, %v8469_v3  ;;  %v4167_v6 = vadd.f32 %v4163_v52, %v8471_v33  ;;  %v8722_v11 = vpack.c.bf16 %v4521_v51, %v4519_v35  ;;  %v6852_v52 = vpack.c.bf16 %v4503_v48, %v4501_v30 }
0x412e   :  { %v4173_v56 = vadd.f32 %v4169_v47, %v8474_v8  ;;  %v4182_v28 = vrot.slane %v4172_v59, 6  ;;  %v4520_v47 = vld [vmem:[%s9272_s13 + $0x30] sm:$0xff]  ;;  %v4305_v35 = vrot.slane %v4219_v25, %v7941_v37  ;;  %v4374_v48 = vrot.slane %v4222_v61, %v7941_v37 }
0x412f   :  { %v4176_v21 = vrot.slane %v4166_v10, 7  ;;  %v4177_v38 = vrot.slane %v4167_v6, 6  ;;  %v8730_v59 = vpack.c.bf16 %v4520_v47, %v4518_v46  ;;  %6867 = vmatprep.subr.bf16.mxu1 %v8722_v11  ;;  %v4506_v10 = vld [vmem:[%s9270_s11 + $0x48] sm:$0xff]  ;;  %v4508_v6 = vld [vmem:[%s9270_s11 + $0x58] sm:$0xff] }
0x4130   :  { %v4183_v26 = vrot.slane %v4173_v56, 5  ;;  %v4523_v56 = vld [vmem:[%s9272_s13 + $0x48] sm:$0xff]  ;;  %v4313_v51 = vrot.slane %v4305_v35, %v7941_v37 }
0x4131   :  { %v4178_v17 = vsel %vm307_vm2, %v4177_v38, %v4176_v21  ;;  %6869 = vmatpush1.bf16.msra.mxu1 %v8730_v59  ;;  %v6854_v21 = vpack.c.bf16 %v4508_v6, %v4506_v10  ;;  %v4525_v38 = vld [vmem:[%s9272_s13 + $0x58] sm:$0xff] }
0x4132   :  { %v4184_v29 = vsel %vm314_vm3, %v4183_v26, %v4182_v28  ;;  %v4505_v28 = vld [vmem:[%s9270_s11 + $0x40] sm:$0xff]  ;;  %v4507_v26 = vld [vmem:[%s9270_s11 + $0x50] sm:$0xff] }
0x4133   :  { %v4186_v43 = vsel %vm317_vm4, %v4178_v17, %v4184_v29  ;;  %v8752_v17 = vpack.c.bf16 %v4525_v38, %v4523_v56  ;;  %v6856_v29 = vpack.c.bf16 %v4507_v26, %v4505_v28  ;;  %v4436_v38 = vrot.slane %v4313_v51, %v7594_v14 }
0x4134   :  { %7188 = vtanh.f32 %v4186_v43  ;;  %v6344_v60 = vmul.f32 -1.442695, %v4186_v43  ;;  %v4522_v43 = vld [vmem:[%s9272_s13 + $0x40] sm:$0xff]  ;;  %v4375_v26 = vcombine.high %v4374_v48, %v4374_v48 }
0x4135   :  { %6871 = vmatprep.subr.bf16.mxu1 %v8752_v17 }
0x4136   :  { %7190 = vpow2.f32 %v6344_v60 }
0x413e   :  { %v7189_v31 = vpop.eup %7188 }
0x413f   :  { %4196 = vrot.lane.b32.xlu1 %v7189_v31, %s7284_s28  ;;  %v4524_v31 = vld [vmem:[%s9272_s13 + $0x50] sm:$0xff] }
0x4140   :  { %v7191_v3 = vpop.eup %7190  ;;  %v8760_v60 = vpack.c.bf16 %v4524_v31, %v4522_v43 }
0x4141   :  { %v4190_v33 = vadd.f32 1.0, %v7191_v3  ;;  %v4510_v3 = vld [vmem:[%s9270_s11 + $0x68] sm:$0xff] }
0x4142   :  { %6873 = vmatpush1.bf16.msra.mxu1 %v8760_v60 }
0x4143   :  { %7192 = vrcp.f32 %v4190_v33  ;;  %v4512_v33 = vld [vmem:[%s9270_s11 + $0x78] sm:$0xff] }
0x414d   :  { %v8668_v8 = vpop.eup %7192 }
0x414e   :  { %v4194_v32 = vmul.f32 %v8668_v8, %v4071_v15  ;;  %v4502_v15 = vld [vmem:[%s9270_s11 + $0x28] sm:$0xff] }
0x414f   :  { %v6850_v50 = vpack.c.bf16 %v4504_v4, %v4502_v15  ;;  %v4328_v4 = vrot.slane %v4220_v49, %v7941_v37 }
0x4151   :  { %6851 = vmatprep.subr.bf16.mxu0 %v6850_v50 }
0x4152   :  { %6853 = vmatpush1.bf16.msra.mxu0 %v6852_v52 }
0x4153   :  { %6855 = vmatprep.subr.bf16.mxu0 %v6854_v21 }
0x4156   :  { %6857 = vmatpush1.bf16.msra.mxu0 %v6856_v29 }
0x41b1   :  { %v4197_v54 = vpop.permute.xlu1 %4196 }
0x41b2   :  { %v4199_v0 = vmul.f32 %v8668_v8, %v4197_v54  ;;  %v4527_v54 = vld [vmem:[%s9272_s13 + $0x68] sm:$0xff] }
0x41b4   :  { %4201 = vrot.lane.b32.xlu0 %v4199_v0, %s7285_s12  ;;  %v6858_v0 = vpack.c.bf16 %v4512_v33, %v4510_v3 }
0x41b6   :  { %6859 = vmatprep.subr.bf16.mxu0 %v6858_v0 }
0x4226   :  { %v4202_v62 = vpop.permute.xlu0 %4201 }
0x4227   :  { %v4204_v44 = vadd.f32 %v4202_v62, %v4194_v32  ;;  %v4529_v32 = vld [vmem:[%s9272_s13 + $0x78] sm:$0xff]  ;;  %v4509_v62 = vld [vmem:[%s9270_s11 + $0x60] sm:$0xff] }
0x4228   :  { %v8782_v2 = vpack.c.bf16 %v4529_v32, %v4527_v54  ;;  %v4382_v54 = vrot.slane %v4374_v48, %v7941_v37 }
0x4229   :  { %7194 = vtanh.f32 %v4204_v44  ;;  %v4511_v44 = vld [vmem:[%s9270_s11 + $0x70] sm:$0xff] }
0x422a   :  { %v6860_v39 = vpack.c.bf16 %v4511_v44, %v4509_v62  ;;  %6875 = vmatprep.subr.bf16.mxu1 %v8782_v2 }
0x422b   :  { %6877 = vmatpush1.bf16.msra.mxu1 %v8790_v22 }
0x422c   :  { %6861 = vmatpush1.bf16.msra.mxu0 %v6860_v39  ;;  %6895 = vmatprep.subr.bf16.mxu1 %v8691_v27 }
0x422d   :  { %6879 = vmatprep.subr.bf16.mxu0 %v8691_v27 }
0x422e   :  { %4689 = vmatmul.mubr.f32.vlgmr.msra.gmra.mrb[30].mxu1 %v7283_v7 }
0x422f   :  { %6897 = vmatpush1.bf16.msra.mxu1 %v8699_v34  ;;  %4952 = vmatprep.mubr.f32.mxu1 %v7283_v7 }
0x4230   :  { %6899 = vmatprep.subr.bf16.mxu1 %v8722_v11 }
0x4233   :  { %v7195_v63 = vpop.eup %7194  ;;  %6901 = vmatpush1.bf16.msra.mxu1 %v8730_v59 }
0x4234   :  { %4207 = vrot.lane.b32.xlu1 %v7195_v63, %s7284_s28  ;;  %6903 = vmatprep.subr.bf16.mxu1 %v8752_v17  ;;  %v4218_v63 = vsel %vm351_vm5, %v8545_v5, %v8632_v18  ;;  %v4329_v5 = vcombine.high %v4328_v4, %v4328_v4  ;;  %v4336_v18 = vrot.slane %v4328_v4, %v7941_v37 }
0x4235   :  { %v4282_v1 = vrot.slane %v4218_v63, %v7941_v37 }
0x4236   :  { %v4343_v10 = vrot.slane %v4329_v5, %v7941_v37  ;;  %v4446_v6 = vrot.slane %v4336_v18, %v7594_v14 }
0x4237   :  { %6905 = vmatpush1.bf16.msra.mxu1 %v8760_v60  ;;  %v4283_v30 = vcombine.high %v4282_v1, %v4282_v1  ;;  %v4290_v55 = vrot.slane %v4282_v1, %v7941_v37 }
0x4238   :  { %6907 = vmatprep.subr.bf16.mxu1 %v8782_v2  ;;  %v4450_v41 = vrot.slane %v4343_v10, %v7594_v14 }
0x4239   :  { %v4297_v28 = vrot.slane %v4283_v30, %v7941_v37  ;;  %v4426_v33 = vrot.slane %v4290_v55, %v7594_v14 }
0x423b   :  { %6909 = vmatpush1.bf16.msra.mxu1 %v8790_v22  ;;  %v4430_v13 = vrot.slane %v4297_v28, %v7594_v14 }
0x423c   :  { %6927 = vmatprep.subr.bf16.mxu1 %v8691_v27 }
0x42a6   :  { %v4208_v42 = vpop.permute.xlu1 %4207 }
0x42a7   :  { %v4210_v19 = vmul.f32 %v8668_v8, %v4208_v42  ;;  %v4217_v8 = vsel %vm351_vm5, %v8516_v40, %v8653_v58  ;;  %v4221_v40 = vsel %vm351_vm5, %v8630_v36, %v8547_v45  ;;  %v4306_v58 = vcombine.high %v4305_v35, %v4305_v35 }
0x42a8   :  { %v4259_v15 = vrot.slane %v4217_v8, %v7941_v37  ;;  %v4351_v57 = vrot.slane %v4221_v40, %v7941_v37  ;;  %v4389_v42 = vrot.slane %v4375_v26, %v7941_v37 }
0x42a9   :  { %v4212_v53 = vrot.slane %v4210_v19, 2  ;;  %4223 = vrot.lane.b32.xlu1 %v4210_v19, %s7285_s12 }
0x42aa   :  { %v4260_v16 = vcombine.high %v4259_v15, %v4259_v15  ;;  %v4267_v36 = vrot.slane %v4259_v15, %v7941_v37  ;;  %v4352_v23 = vcombine.high %v4351_v57, %v4351_v57  ;;  %v4359_v29 = vrot.slane %v4351_v57, %v7941_v37 }
0x42ab   :  { %4213 = vrot.lane.b32.xlu0 %v4212_v53, %s7284_s28  ;;  %v4466_v15 = vrot.slane %v4382_v54, %v7594_v14 }
0x42ac   :  { %v4274_v46 = vrot.slane %v4260_v16, %v7941_v37  ;;  %v4416_v43 = vrot.slane %v4267_v36, %v7594_v14  ;;  %v4366_v3 = vrot.slane %v4352_v23, %v7941_v37  ;;  %v4456_v8 = vrot.slane %v4359_v29, %v7594_v14 }
0x42ad   :  { %v4470_v16 = vrot.slane %v4389_v42, %v7594_v14 }
0x42ae   :  { %v4420_v0 = vrot.slane %v4274_v46, %v7594_v14  ;;  %v4460_v63 = vrot.slane %v4366_v3, %v7594_v14 }
0x431b   :  { %v4224_v50 = vpop.permute.xlu1 %4223 }
0x431c   :  { %v4226_v45 = vsel %vm351_vm5, %v4224_v50, %v8489_v20  ;;  %v4320_v20 = vrot.slane %v4306_v58, %v7941_v37 }
0x431d   :  { %v4214_v52 = vpop.permute.xlu0 %4213  ;;  %v4397_v56 = vrot.slane %v4226_v45, %v7941_v37  ;;  %v4690_v45 = vpop.f32.mrb[30].mxu1 }
0x431e   :  { %v4216_v47 = vsel %vm351_vm5, %v8487_v24, %v4214_v52  ;;  %v4440_v53 = vrot.slane %v4320_v20, %v7594_v14  ;;  %v4692_v36 = vpop.f32.mrb[31].mxu1  ;;  %v4513_v52 = vld [vmem:[%s9290_s27] sm:$0x3] }
0x431f   :  { %v4234_v21 = vrot.slane %v4216_v47, %v7941_v37  ;;  %v4398_v32 = vcombine.high %v4397_v56, %v4397_v56  ;;  %v4405_v62 = vrot.slane %v4397_v56, %v7941_v37  ;;  %v4538_v23 = vrot.slane %v4513_v52, %v7588_v12 }
0x4320   :  { %v4534_v46 = vrot.slane %v4513_v52, %v7594_v14  ;;  %v4696_v56 = vrot.slane %v4690_v45, 1 }
0x4321   :  { %v4235_v24 = vcombine.high %v4234_v21, %v4234_v21  ;;  %v4242_v31 = vrot.slane %v4234_v21, %v7941_v37  ;;  %v4412_v40 = vrot.slane %v4398_v32, %v7941_v37  ;;  %v4476_v1 = vrot.slane %v4405_v62, %v7594_v14 }
0x4322   :  { %v4703_v21 = vrot.slane %v4692_v36, 2 }
0x4323   :  { %v4249_v44 = vrot.slane %v4235_v24, %v7941_v37  ;;  %v4483_v39 = vsel %vm132_vm0, %v4242_v31, %v4416_v43  ;;  %v4480_v30 = vrot.slane %v4412_v40, %v7594_v14 }
0x4324   :  { %v4485_v19 = vsel %vm317_vm4, %v4483_v39, %v4426_v33 }
0x4325   :  { %v4484_v49 = vsel %vm132_vm0, %v4249_v44, %v4420_v0  ;;  %v4487_v25 = vsel %vm1552_vm7, %v4485_v19, %v4436_v38 }
0x4326   :  { %v4486_v4 = vsel %vm317_vm4, %v4484_v49, %v4430_v13  ;;  %v4489_v35 = vsel %vm1555_vm8, %v4487_v25, %v4446_v6  ;;  %v4702_v6 = vrot.slane %v4692_v36, 1 }
0x4327   :  { %v4491_v61 = vsel %vm1558_vm9, %v4489_v35, %v4456_v8  ;;  %v4488_v57 = vsel %vm1552_vm7, %v4486_v4, %v4440_v53 }
0x4328   :  { %v4493_v5 = vsel %vm1561_vm10, %v4491_v61, %v4466_v15  ;;  %v4490_v18 = vsel %vm1555_vm8, %v4488_v57, %v4450_v41 }
0x4329   :  { %v4495_v58 = vsel %vm1564_vm11, %v4493_v5, %v4476_v1  ;;  %v4492_v50 = vsel %vm1558_vm9, %v4490_v18, %v4460_v63 }
0x432a   :  { %6345 = vmatmul.mubr.msk.f32.vlgmr.msra.gmra.mrb[30].mxu0 %vm216_vm6, %v4495_v58  ;;  %v4494_v51 = vsel %vm1561_vm10, %v4492_v50, %v4470_v16 }
0x432b   :  { %4617 = vmatprep.mubr.f32.mxu0 %v7283_v7  ;;  %6881 = vmatpush1.bf16.msra.mxu0 %v8699_v34  ;;  %v4496_v48 = vsel %vm1564_vm11, %v4494_v51, %v4480_v30 }
0x432c   :  { %6883 = vmatprep.subr.bf16.mxu0 %v8722_v11 }
0x432e   :  { %6346 = vmatmul.mubr.msk.f32.gmra.mrb[32].mxu0 %vm216_vm6, %v4496_v48 }
0x432f   :  { %6885 = vmatpush1.bf16.msra.mxu0 %v8730_v59  ;;  %4820 = vmatprep.mubr.f32.mxu0 %v7283_v7 }
0x4330   :  { %6887 = vmatprep.subr.bf16.mxu0 %v8752_v17 }
0x4333   :  { %6889 = vmatpush1.bf16.msra.mxu0 %v8760_v60 }
0x4334   :  { %6891 = vmatprep.subr.bf16.mxu0 %v8782_v2 }
0x4337   :  { %6893 = vmatpush1.bf16.msra.mxu0 %v8790_v22 }
0x4338   :  { %6911 = vmatprep.subr.bf16.mxu0 %v8691_v27 }
0x43fd   :  { %v4613_v55 = vpop.f32.mrb[30].mxu0 }
0x43fe   :  { %v4615_v47 = vpop.f32.mrb[31].mxu0  ;;  %v8902_v38 = vadd.f32 %v4613_v55, %v4534_v46 }
0x43ff   :  { %v8900_v10 = vadd.f32 %v4615_v47, %v4538_v23 }
0x4400   :  { %v4699_v31 = vadd.f32 %v4690_v45, %v8902_v38 }
0x4401   :  { %v4619_v20 = vpop.f32.mrb[32].mxu0  ;;  %v4706_v29 = vadd.f32 %v4702_v6, %v8900_v10 }
0x4402   :  { %v8904_v28 = vadd.f32 %v4619_v20, %v4534_v46  ;;  %v4621_v26 = vpop.f32.mrb[33].mxu0 }
0x4403   :  { %v8907_v43 = vadd.f32 %v4621_v26, %v4538_v23  ;;  %v4715_v33 = vrot.slane %v4706_v29, 5 }
0x4404   :  { %v4700_v12 = vadd.f32 %v4696_v56, %v8904_v28 }
0x4405   :  { %v4707_v24 = vadd.f32 %v4703_v21, %v8907_v43 }
0x4406   :  { %v4710_v3 = vrot.slane %v4700_v12, 7 }
0x4407   :  { %v4716_v54 = vrot.slane %v4707_v24, 4 }
0x4408   :  { %v4711_v0 = vsel %vm307_vm2, %v4710_v3, %v4699_v31 }
0x4409   :  { %v4717_v32 = vsel %vm314_vm3, %v4716_v54, %v4715_v33 }
0x440a   :  { %v4719_v62 = vsel %vm317_vm4, %v4711_v0, %v4717_v32 }
0x440b   :  { %7196 = vtanh.f32 %v4719_v62  ;;  %v6347_v39 = vmul.f32 -1.442695, %v4719_v62 }
0x440d   :  { %7198 = vpow2.f32 %v6347_v39 }
0x4415   :  { %v7197_v44 = vpop.eup %7196 }
0x4416   :  { %4729 = vrot.lane.b32.xlu0 %v7197_v44, %s7284_s28 }
0x4417   :  { %v7199_v41 = vpop.eup %7198 }
0x4418   :  { %v4723_v13 = vadd.f32 1.0, %v7199_v41 }
0x441a   :  { %7200 = vrcp.f32 %v4723_v13 }
0x4424   :  { %v7201_v42 = vpop.eup %7200 }
0x4425   :  { %v4727_v8 = vmul.f32 0.0, %v7201_v42 }
0x4488   :  { %v4730_v19 = vpop.permute.xlu0 %4729 }
0x4489   :  { %v4732_v53 = vmul.f32 %v7201_v42, %v4730_v19 }
0x448b   :  { %4734 = vrot.lane.b32.xlu1 %v4732_v53, %s7285_s12 }
0x44fd   :  { %v4735_v49 = vpop.permute.xlu1 %4734 }
0x44fe   :  { %v4737_v25 = vadd.f32 %v4735_v49, %v4727_v8 }
0x4500   :  { %7202 = vtanh.f32 %v4737_v25 }
0x450a   :  { %v7203_v63 = vpop.eup %7202 }
0x450b   :  { %4740 = vrot.lane.b32.xlu0 %v7203_v63, %s7284_s28 }
0x457d   :  { %v4741_v15 = vpop.permute.xlu0 %4740 }
0x457e   :  { %v4743_v4 = vmul.f32 %v7201_v42, %v4741_v15 }
0x4580   :  { %v4748_v35 = vrot.slane %v4743_v4, 2  ;;  %4745 = vrot.lane.b32.xlu1 %v4743_v4, %s7285_s12 }
0x4582   :  { %4749 = vrot.lane.b32.xlu0 %v4748_v35, %s7284_s28 }
0x45f2   :  { %v8920_v40 = vpop.permute.xlu1 %4745 }
0x45f4   :  { %v8922_v1 = vpop.permute.xlu0 %4749 }
0x45f5   :  { %v4752_v61 = vsel %vm351_vm5, %v8920_v40, %v8922_v1 }
0x45f6   :  { %6348 = vmatmul.mubr.msk.f32.vlgmr.msra.gmra.mrb[34].mxu0 %vm216_vm6, %v4752_v61 }
0x45f7   :  { %6913 = vmatpush1.bf16.msra.mxu0 %v8699_v34  ;;  %5086 = vmatprep.mubr.f32.mxu0 %v7283_v7 }
0x45f8   :  { %6915 = vmatprep.subr.bf16.mxu0 %v8722_v11 }
0x45fb   :  { %6917 = vmatpush1.bf16.msra.mxu0 %v8730_v59 }
0x45fc   :  { %6919 = vmatprep.subr.bf16.mxu0 %v8752_v17 }
0x45ff   :  { %6921 = vmatpush1.bf16.msra.mxu0 %v8760_v60 }
0x4600   :  { %6923 = vmatprep.subr.bf16.mxu0 %v8782_v2 }
0x4603   :  { %6925 = vmatpush1.bf16.msra.mxu0 %v8790_v22 }
0x4604   :  { %6943 = vmatprep.subr.bf16.mxu0 %v8691_v27 }
0x46c9   :  { %v4822_v57 = vpop.f32.mrb[34].mxu0 }
0x46ca   :  { %v4828_v16 = vrot.slane %v4822_v57, 7  ;;  %v4824_v5 = vpop.f32.mrb[35].mxu0  ;;  %v4832_v48 = vadd.f32 %v4822_v57, %v8904_v28 }
0x46cb   :  { %v4834_v18 = vrot.slane %v4824_v5, 2  ;;  %v4835_v58 = vrot.slane %v4824_v5, 3 }
0x46cc   :  { %v4831_v50 = vadd.f32 %v4828_v16, %v8902_v38 }
0x46cd   :  { %v4838_v51 = vadd.f32 %v4834_v18, %v8900_v10  ;;  %v4839_v30 = vadd.f32 %v4835_v58, %v8907_v43 }
0x46ce   :  { %v4842_v45 = vrot.slane %v4831_v50, 1 }
0x46cf   :  { %v4847_v36 = vrot.slane %v4838_v51, 4  ;;  %v4848_v52 = vrot.slane %v4839_v30, 3 }
0x46d0   :  { %v4843_v23 = vsel %vm307_vm2, %v4832_v48, %v4842_v45 }
0x46d1   :  { %v4849_v55 = vsel %vm314_vm3, %v4848_v52, %v4847_v36 }
0x46d2   :  { %v4851_v46 = vsel %vm317_vm4, %v4843_v23, %v4849_v55 }
0x46d3   :  { %7204 = vtanh.f32 %v4851_v46  ;;  %v6349_v6 = vmul.f32 -1.442695, %v4851_v46 }
0x46d5   :  { %7206 = vpow2.f32 %v6349_v6 }
0x46dd   :  { %v7205_v47 = vpop.eup %7204 }
0x46de   :  { %4861 = vrot.lane.b32.xlu1 %v7205_v47, %s7284_s28 }
0x46df   :  { %v7207_v56 = vpop.eup %7206 }
0x46e0   :  { %v4855_v21 = vadd.f32 1.0, %v7207_v56 }
0x46e2   :  { %7208 = vrcp.f32 %v4855_v21 }
0x46ec   :  { %v7209_v20 = vpop.eup %7208 }
0x46ed   :  { %v4859_v12 = vmul.f32 %v7209_v20, %v4737_v25 }
0x4750   :  { %v4862_v26 = vpop.permute.xlu1 %4861 }
0x4751   :  { %v4864_v29 = vmul.f32 %v7209_v20, %v4862_v26 }
0x4753   :  { %4866 = vrot.lane.b32.xlu0 %v4864_v29, %s7285_s12 }
0x47c5   :  { %v4867_v24 = vpop.permute.xlu0 %4866 }
0x47c6   :  { %v4869_v31 = vadd.f32 %v4867_v24, %v4859_v12 }
0x47c8   :  { %7210 = vtanh.f32 %v4869_v31 }
0x47d2   :  { %v7211_v3 = vpop.eup %7210 }
0x47d3   :  { %4872 = vrot.lane.b32.xlu1 %v7211_v3, %s7284_s28 }
0x4845   :  { %v4873_v33 = vpop.permute.xlu1 %4872 }
0x4846   :  { %v4875_v54 = vmul.f32 %v7209_v20, %v4873_v33 }
0x4848   :  { %v4880_v0 = vrot.slane %v4875_v54, 2  ;;  %4877 = vrot.lane.b32.xlu0 %v4875_v54, %s7285_s12 }
0x484a   :  { %4881 = vrot.lane.b32.xlu1 %v4880_v0, %s7284_s28 }
0x48ba   :  { %v8949_v32 = vpop.permute.xlu0 %4877 }
0x48bc   :  { %v8951_v62 = vpop.permute.xlu1 %4881 }
0x48bd   :  { %v4884_v44 = vsel %vm351_vm5, %v8949_v32, %v8951_v62 }
0x48be   :  { %6350 = vmatmul.mubr.msk.f32.vlgmr.msra.gmra.mrb[32].mxu1 %vm216_vm6, %v4884_v44 }
0x48bf   :  { %6929 = vmatpush1.bf16.msra.mxu1 %v8699_v34  ;;  %5220 = vmatprep.mubr.f32.mxu1 %v7283_v7 }
0x48c0   :  { %6931 = vmatprep.subr.bf16.mxu1 %v8722_v11 }
0x48c3   :  { %6933 = vmatpush1.bf16.msra.mxu1 %v8730_v59 }
0x48c4   :  { %6935 = vmatprep.subr.bf16.mxu1 %v8752_v17 }
0x48c7   :  { %6937 = vmatpush1.bf16.msra.mxu1 %v8760_v60 }
0x48c8   :  { %6939 = vmatprep.subr.bf16.mxu1 %v8782_v2 }
0x48cb   :  { %6941 = vmatpush1.bf16.msra.mxu1 %v8790_v22 }
0x48cc   :  { %6959 = vmatprep.subr.bf16.mxu1 %v8691_v27 }
0x4991   :  { %v4954_v39 = vpop.f32.mrb[32].mxu1 }
0x4992   :  { %v4960_v41 = vrot.slane %v4954_v39, 6  ;;  %v4961_v13 = vrot.slane %v4954_v39, 7  ;;  %v4956_v42 = vpop.f32.mrb[33].mxu1 }
0x4993   :  { %v4967_v19 = vrot.slane %v4956_v42, 3  ;;  %v4968_v53 = vrot.slane %v4956_v42, 4 }
0x4994   :  { %v4964_v8 = vadd.f32 %v4960_v41, %v8902_v38  ;;  %v4965_v49 = vadd.f32 %v4961_v13, %v8904_v28 }
0x4995   :  { %v4971_v25 = vadd.f32 %v4967_v19, %v8900_v10  ;;  %v4972_v63 = vadd.f32 %v4968_v53, %v8907_v43 }
0x4996   :  { %v4975_v15 = vrot.slane %v4964_v8, 2  ;;  %v4976_v4 = vrot.slane %v4965_v49, 1 }
0x4997   :  { %v4981_v35 = vrot.slane %v4971_v25, 3  ;;  %v4982_v61 = vrot.slane %v4972_v63, 2 }
0x4998   :  { %v4977_v57 = vsel %vm307_vm2, %v4976_v4, %v4975_v15 }
0x4999   :  { %v4983_v16 = vsel %vm314_vm3, %v4982_v61, %v4981_v35 }
0x499a   :  { %v4985_v5 = vsel %vm317_vm4, %v4977_v57, %v4983_v16 }
0x499b   :  { %7212 = vtanh.f32 %v4985_v5  ;;  %v6351_v58 = vmul.f32 -1.442695, %v4985_v5 }
0x499d   :  { %7214 = vpow2.f32 %v6351_v58 }
0x49a5   :  { %v7213_v18 = vpop.eup %7212 }
0x49a6   :  { %4995 = vrot.lane.b32.xlu0 %v7213_v18, %s7284_s28 }
0x49a7   :  { %v7215_v50 = vpop.eup %7214 }
0x49a8   :  { %v4989_v51 = vadd.f32 1.0, %v7215_v50 }
0x49aa   :  { %7216 = vrcp.f32 %v4989_v51 }
0x49b4   :  { %v7217_v30 = vpop.eup %7216 }
0x49b5   :  { %v4993_v36 = vmul.f32 %v7217_v30, %v4869_v31 }
0x4a18   :  { %v4996_v48 = vpop.permute.xlu0 %4995 }
0x4a19   :  { %v4998_v45 = vmul.f32 %v7217_v30, %v4996_v48 }
0x4a1b   :  { %5000 = vrot.lane.b32.xlu1 %v4998_v45, %s7285_s12 }
0x4a8d   :  { %v5001_v52 = vpop.permute.xlu1 %5000 }
0x4a8e   :  { %v5003_v23 = vadd.f32 %v5001_v52, %v4993_v36 }
0x4a90   :  { %7218 = vtanh.f32 %v5003_v23 }
0x4a9a   :  { %v7219_v55 = vpop.eup %7218 }
0x4a9b   :  { %5006 = vrot.lane.b32.xlu0 %v7219_v55, %s7284_s28 }
0x4b0d   :  { %v5007_v46 = vpop.permute.xlu0 %5006 }
0x4b0e   :  { %v5009_v47 = vmul.f32 %v7217_v30, %v5007_v46 }
0x4b10   :  { %v5014_v6 = vrot.slane %v5009_v47, 2  ;;  %5011 = vrot.lane.b32.xlu1 %v5009_v47, %s7285_s12 }
0x4b12   :  { %5015 = vrot.lane.b32.xlu0 %v5014_v6, %s7284_s28 }
0x4b82   :  { %v8978_v56 = vpop.permute.xlu1 %5011 }
0x4b84   :  { %v8980_v21 = vpop.permute.xlu0 %5015 }
0x4b85   :  { %v5018_v20 = vsel %vm351_vm5, %v8978_v56, %v8980_v21 }
0x4b86   :  { %6352 = vmatmul.mubr.msk.f32.vlgmr.msra.gmra.mrb[36].mxu0 %vm216_vm6, %v5018_v20 }
0x4b87   :  { %6945 = vmatpush1.bf16.msra.mxu0 %v8699_v34  ;;  %5353 = vmatprep.mubr.f32.mxu0 %v7283_v7 }
0x4b88   :  { %6947 = vmatprep.subr.bf16.mxu0 %v8722_v11 }
0x4b8b   :  { %6949 = vmatpush1.bf16.msra.mxu0 %v8730_v59 }
0x4b8c   :  { %6951 = vmatprep.subr.bf16.mxu0 %v8752_v17 }
0x4b8f   :  { %6953 = vmatpush1.bf16.msra.mxu0 %v8760_v60 }
0x4b90   :  { %6955 = vmatprep.subr.bf16.mxu0 %v8782_v2 }
0x4b93   :  { %6957 = vmatpush1.bf16.msra.mxu0 %v8790_v22 }
0x4b94   :  { %6975 = vmatprep.subr.bf16.mxu0 %v8691_v27 }
0x4c59   :  { %v5088_v26 = vpop.f32.mrb[36].mxu0 }
0x4c5a   :  { %v5094_v29 = vrot.slane %v5088_v26, 5  ;;  %v5095_v12 = vrot.slane %v5088_v26, 6  ;;  %v5090_v24 = vpop.f32.mrb[37].mxu0 }
0x4c5b   :  { %v5101_v31 = vrot.slane %v5090_v24, 4  ;;  %v5102_v3 = vrot.slane %v5090_v24, 5 }
0x4c5c   :  { %v5098_v33 = vadd.f32 %v5094_v29, %v8902_v38  ;;  %v5099_v54 = vadd.f32 %v5095_v12, %v8904_v28 }
0x4c5d   :  { %v5105_v0 = vadd.f32 %v5101_v31, %v8900_v10  ;;  %v5106_v44 = vadd.f32 %v5102_v3, %v8907_v43 }
0x4c5e   :  { %v5109_v39 = vrot.slane %v5098_v33, 3  ;;  %v5110_v41 = vrot.slane %v5099_v54, 2 }
0x4c5f   :  { %v5115_v13 = vrot.slane %v5105_v0, 2  ;;  %v5116_v42 = vrot.slane %v5106_v44, 1 }
0x4c60   :  { %v5111_v27 = vsel %vm307_vm2, %v5110_v41, %v5109_v39 }
0x4c61   :  { %v5117_v19 = vsel %vm314_vm3, %v5116_v42, %v5115_v13 }
0x4c62   :  { %v5119_v53 = vsel %vm317_vm4, %v5111_v27, %v5117_v19 }
0x4c63   :  { %7220 = vtanh.f32 %v5119_v53  ;;  %v6353_v49 = vmul.f32 -1.442695, %v5119_v53 }
0x4c65   :  { %7222 = vpow2.f32 %v6353_v49 }
0x4c6d   :  { %v7221_v8 = vpop.eup %7220 }
0x4c6e   :  { %5129 = vrot.lane.b32.xlu1 %v7221_v8, %s7284_s28 }
0x4c6f   :  { %v7223_v25 = vpop.eup %7222 }
0x4c70   :  { %v5123_v63 = vadd.f32 1.0, %v7223_v25 }
0x4c72   :  { %7224 = vrcp.f32 %v5123_v63 }
0x4c7c   :  { %v7225_v15 = vpop.eup %7224 }
0x4c7d   :  { %v5127_v61 = vmul.f32 %v7225_v15, %v5003_v23 }
0x4ce0   :  { %v5130_v4 = vpop.permute.xlu1 %5129 }
0x4ce1   :  { %v5132_v35 = vmul.f32 %v7225_v15, %v5130_v4 }
0x4ce3   :  { %5134 = vrot.lane.b32.xlu0 %v5132_v35, %s7285_s12 }
0x4d55   :  { %v5135_v57 = vpop.permute.xlu0 %5134 }
0x4d56   :  { %v5137_v16 = vadd.f32 %v5135_v57, %v5127_v61 }
0x4d58   :  { %7226 = vtanh.f32 %v5137_v16 }
0x4d62   :  { %v7227_v5 = vpop.eup %7226 }
0x4d63   :  { %5140 = vrot.lane.b32.xlu1 %v7227_v5, %s7284_s28 }
0x4dd5   :  { %v5141_v18 = vpop.permute.xlu1 %5140 }
0x4dd6   :  { %v5143_v58 = vmul.f32 %v7225_v15, %v5141_v18 }
0x4dd8   :  { %v5148_v50 = vrot.slane %v5143_v58, 2  ;;  %5145 = vrot.lane.b32.xlu0 %v5143_v58, %s7285_s12 }
0x4dda   :  { %5149 = vrot.lane.b32.xlu1 %v5148_v50, %s7284_s28 }
0x4e4a   :  { %v9007_v51 = vpop.permute.xlu0 %5145 }
0x4e4c   :  { %v9009_v30 = vpop.permute.xlu1 %5149 }
0x4e4d   :  { %v5152_v48 = vsel %vm351_vm5, %v9007_v51, %v9009_v30 }
0x4e4e   :  { %6354 = vmatmul.mubr.msk.f32.vlgmr.msra.gmra.mrb[34].mxu1 %vm216_vm6, %v5152_v48 }
0x4e4f   :  { %6961 = vmatpush1.bf16.msra.mxu1 %v8699_v34  ;;  %5486 = vmatprep.mubr.f32.mxu1 %v7283_v7 }
0x4e50   :  { %6963 = vmatprep.subr.bf16.mxu1 %v8722_v11 }
0x4e53   :  { %6965 = vmatpush1.bf16.msra.mxu1 %v8730_v59 }
0x4e54   :  { %6967 = vmatprep.subr.bf16.mxu1 %v8752_v17 }
0x4e57   :  { %6969 = vmatpush1.bf16.msra.mxu1 %v8760_v60 }
0x4e58   :  { %6971 = vmatprep.subr.bf16.mxu1 %v8782_v2 }
0x4e5b   :  { %6973 = vmatpush1.bf16.msra.mxu1 %v8790_v22 }
0x4f21   :  { %v5222_v45 = vpop.f32.mrb[34].mxu1 }
0x4f22   :  { %v5228_v36 = vrot.slane %v5222_v45, 4  ;;  %v5229_v52 = vrot.slane %v5222_v45, 5  ;;  %v5224_v23 = vpop.f32.mrb[35].mxu1 }
0x4f23   :  { %v5235_v55 = vrot.slane %v5224_v23, 5  ;;  %v5236_v46 = vrot.slane %v5224_v23, 6 }
0x4f24   :  { %v5232_v47 = vadd.f32 %v5228_v36, %v8902_v38  ;;  %v5233_v6 = vadd.f32 %v5229_v52, %v8904_v28 }
0x4f25   :  { %v5239_v20 = vadd.f32 %v5235_v55, %v8900_v10  ;;  %v5240_v12 = vadd.f32 %v5236_v46, %v8907_v43 }
0x4f26   :  { %v5243_v26 = vrot.slane %v5232_v47, 4  ;;  %v5244_v29 = vrot.slane %v5233_v6, 3 }
0x4f27   :  { %v5249_v24 = vrot.slane %v5239_v20, 1 }
0x4f28   :  { %v5245_v31 = vsel %vm307_vm2, %v5244_v29, %v5243_v26 }
0x4f29   :  { %v5250_v3 = vsel %vm314_vm3, %v5240_v12, %v5249_v24 }
0x4f2a   :  { %v5252_v33 = vsel %vm317_vm4, %v5245_v31, %v5250_v3 }
0x4f2b   :  { %7228 = vtanh.f32 %v5252_v33  ;;  %v6355_v0 = vmul.f32 -1.442695, %v5252_v33 }
0x4f2d   :  { %7230 = vpow2.f32 %v6355_v0 }
0x4f35   :  { %v7229_v54 = vpop.eup %7228 }
0x4f36   :  { %5262 = vrot.lane.b32.xlu0 %v7229_v54, %s7284_s28 }
0x4f37   :  { %v7231_v44 = vpop.eup %7230 }
0x4f38   :  { %v5256_v39 = vadd.f32 1.0, %v7231_v44 }
0x4f3a   :  { %7232 = vrcp.f32 %v5256_v39 }
0x4f44   :  { %v7233_v41 = vpop.eup %7232 }
0x4f45   :  { %v5260_v27 = vmul.f32 %v7233_v41, %v5137_v16 }
0x4fa8   :  { %v5263_v13 = vpop.permute.xlu0 %5262 }
0x4fa9   :  { %v5265_v42 = vmul.f32 %v7233_v41, %v5263_v13 }
0x4fab   :  { %5267 = vrot.lane.b32.xlu1 %v5265_v42, %s7285_s12 }
0x501d   :  { %v5268_v19 = vpop.permute.xlu1 %5267 }
0x501e   :  { %v5270_v53 = vadd.f32 %v5268_v19, %v5260_v27 }
0x5020   :  { %7234 = vtanh.f32 %v5270_v53 }
0x502a   :  { %v7235_v8 = vpop.eup %7234 }
0x502b   :  { %5273 = vrot.lane.b32.xlu0 %v7235_v8, %s7284_s28 }
0x509d   :  { %v5274_v49 = vpop.permute.xlu0 %5273 }
0x509e   :  { %v5276_v25 = vmul.f32 %v7233_v41, %v5274_v49 }
0x50a0   :  { %v5281_v63 = vrot.slane %v5276_v25, 2  ;;  %5278 = vrot.lane.b32.xlu1 %v5276_v25, %s7285_s12 }
0x50a2   :  { %5282 = vrot.lane.b32.xlu0 %v5281_v63, %s7284_s28 }
0x5112   :  { %v9035_v15 = vpop.permute.xlu1 %5278 }
0x5114   :  { %v9037_v4 = vpop.permute.xlu0 %5282 }
0x5115   :  { %v5285_v35 = vsel %vm351_vm5, %v9035_v15, %v9037_v4 }
0x5116   :  { %6356 = vmatmul.mubr.msk.f32.vlgmr.msra.gmra.mrb[38].mxu0 %vm216_vm6, %v5285_v35 }
0x5117   :  { %6977 = vmatpush1.bf16.msra.mxu0 %v8699_v34  ;;  %5619 = vmatprep.mubr.f32.mxu0 %v7283_v7 }
0x5118   :  { %6979 = vmatprep.subr.bf16.mxu0 %v8722_v11 }
0x511b   :  { %6981 = vmatpush1.bf16.msra.mxu0 %v8730_v59 }
0x511c   :  { %6983 = vmatprep.subr.bf16.mxu0 %v8752_v17 }
0x511f   :  { %6985 = vmatpush1.bf16.msra.mxu0 %v8760_v60 }
0x5120   :  { %6987 = vmatprep.subr.bf16.mxu0 %v8782_v2 }
0x5123   :  { %6989 = vmatpush1.bf16.msra.mxu0 %v8790_v22 }
0x51e9   :  { %v5355_v61 = vpop.f32.mrb[38].mxu0 }
0x51ea   :  { %v5361_v57 = vrot.slane %v5355_v61, 3  ;;  %v5362_v16 = vrot.slane %v5355_v61, 4  ;;  %v5357_v5 = vpop.f32.mrb[39].mxu0 }
0x51eb   :  { %v5368_v18 = vrot.slane %v5357_v5, 6  ;;  %v5369_v34 = vrot.slane %v5357_v5, 7 }
0x51ec   :  { %v5365_v58 = vadd.f32 %v5361_v57, %v8902_v38  ;;  %v5366_v11 = vadd.f32 %v5362_v16, %v8904_v28 }
0x51ed   :  { %v5373_v59 = vadd.f32 %v5369_v34, %v8907_v43  ;;  %v5372_v60 = vadd.f32 %v5368_v18, %v8900_v10 }
0x51ee   :  { %v5376_v50 = vrot.slane %v5365_v58, 5  ;;  %v5377_v17 = vrot.slane %v5366_v11, 4 }
0x51ef   :  { %v5382_v48 = vrot.slane %v5373_v59, 7 }
0x51f0   :  { %v5378_v2 = vsel %vm307_vm2, %v5377_v17, %v5376_v50 }
0x51f1   :  { %v5383_v22 = vsel %vm314_vm3, %v5382_v48, %v5372_v60 }
0x51f2   :  { %v5385_v45 = vsel %vm317_vm4, %v5378_v2, %v5383_v22 }
0x51f3   :  { %7236 = vtanh.f32 %v5385_v45  ;;  %v6357_v52 = vmul.f32 -1.442695, %v5385_v45 }
0x51f5   :  { %7238 = vpow2.f32 %v6357_v52 }
0x51fd   :  { %v7237_v36 = vpop.eup %7236 }
0x51fe   :  { %5395 = vrot.lane.b32.xlu1 %v7237_v36, %s7284_s28 }
0x51ff   :  { %v7239_v23 = vpop.eup %7238 }
0x5200   :  { %v5389_v55 = vadd.f32 1.0, %v7239_v23 }
0x5202   :  { %7240 = vrcp.f32 %v5389_v55 }
0x520c   :  { %v7241_v46 = vpop.eup %7240 }
0x520d   :  { %v5393_v20 = vmul.f32 %v7241_v46, %v5270_v53 }
0x5270   :  { %v5396_v47 = vpop.permute.xlu1 %5395 }
0x5271   :  { %v5398_v6 = vmul.f32 %v7241_v46, %v5396_v47 }
0x5273   :  { %5400 = vrot.lane.b32.xlu0 %v5398_v6, %s7285_s12 }
0x52e5   :  { %v5401_v26 = vpop.permute.xlu0 %5400 }
0x52e6   :  { %v5403_v29 = vadd.f32 %v5401_v26, %v5393_v20 }
0x52e8   :  { %7242 = vtanh.f32 %v5403_v29 }
0x52f2   :  { %v7243_v12 = vpop.eup %7242 }
0x52f3   :  { %5406 = vrot.lane.b32.xlu1 %v7243_v12, %s7284_s28 }
0x5365   :  { %v5407_v24 = vpop.permute.xlu1 %5406 }
0x5366   :  { %v5409_v31 = vmul.f32 %v7241_v46, %v5407_v24 }
0x5368   :  { %v5414_v3 = vrot.slane %v5409_v31, 2  ;;  %5411 = vrot.lane.b32.xlu0 %v5409_v31, %s7285_s12 }
0x536a   :  { %5415 = vrot.lane.b32.xlu1 %v5414_v3, %s7284_s28 }
0x53da   :  { %v9063_v33 = vpop.permute.xlu0 %5411 }
0x53dc   :  { %v9065_v54 = vpop.permute.xlu1 %5415 }
0x53dd   :  { %v5418_v0 = vsel %vm351_vm5, %v9063_v33, %v9065_v54 }
0x53de   :  { %6358 = vmatmul.mubr.msk.f32.vlgmr.msra.gmra.mrb[36].mxu1 %vm216_vm6, %v5418_v0 }
0x54b1   :  { %v5488_v44 = vpop.f32.mrb[36].mxu1 }
0x54b2   :  { %v5494_v39 = vrot.slane %v5488_v44, 2  ;;  %v5495_v41 = vrot.slane %v5488_v44, 3  ;;  %v5490_v13 = vpop.f32.mrb[37].mxu1 }
0x54b3   :  { %v5501_v42 = vrot.slane %v5490_v13, 7  ;;  %v5505_v27 = vadd.f32 %v5490_v13, %v8907_v43 }
0x54b4   :  { %v5498_v19 = vadd.f32 %v5494_v39, %v8902_v38  ;;  %v5499_v53 = vadd.f32 %v5495_v41, %v8904_v28 }
0x54b5   :  { %v5504_v8 = vadd.f32 %v5501_v42, %v8900_v10  ;;  %v5515_v35 = vrot.slane %v5505_v27, 6 }
0x54b6   :  { %v5508_v49 = vrot.slane %v5498_v19, 6  ;;  %v5509_v25 = vrot.slane %v5499_v53, 5 }
0x54b7   :  { %v5514_v63 = vrot.slane %v5504_v8, 7 }
0x54b8   :  { %v5510_v61 = vsel %vm307_vm2, %v5509_v25, %v5508_v49 }
0x54b9   :  { %v5516_v57 = vsel %vm314_vm3, %v5515_v35, %v5514_v63  ;;  %v5964_v63 = vld [vmem:[%s9274_s15] sm:$0xff]  ;;  %v5965_v35 = vld [vmem:[%s9274_s15 + $0x8] sm:$0xff] }
0x54ba   :  { %v5518_v16 = vsel %vm317_vm4, %v5510_v61, %v5516_v57  ;;  %v5966_v61 = vld [vmem:[%s9274_s15 + $0x10] sm:$0xff]  ;;  %v6990_v57 = vpack.c.bf16 %v5965_v35, %v5964_v63 }
0x54bb   :  { %7244 = vtanh.f32 %v5518_v16  ;;  %v6359_v18 = vmul.f32 -1.442695, %v5518_v16  ;;  %v5967_v16 = vld [vmem:[%s9274_s15 + $0x18] sm:$0xff] }
0x54bc   :  { %6991 = vmatprep.subr.bf16.mxu1 %v6990_v57 }
0x54bd   :  { %7246 = vpow2.f32 %v6359_v18  ;;  %v6994_v18 = vpack.c.bf16 %v5967_v16, %v5966_v61  ;;  %6993 = vmatpush3.bf16.msra.mxu1 %v6990_v57 }
0x54bf   :  { %6995 = vmatprep.subr.bf16.mxu1 %v6994_v18 }
0x54c1   :  { %6997 = vmatpush3.bf16.msra.mxu1 %v6994_v18 }
0x54c2   :  { %6392 = vmatprep.subr.mxu1 %v7283_v7 }
0x54c5   :  { %v7245_v5 = vpop.eup %7244 }
0x54c6   :  { %5528 = vrot.lane.b32.xlu0 %v7245_v5, %s7284_s28  ;;  %v5962_v5 = vld [vmem:[%s9273_s14] sm:$0xff] }
0x54c7   :  { %v7247_v34 = vpop.eup %7246  ;;  %6389 = vmatprep.mubr.msk.f32.mxu1 %vm351_vm5, %v5962_v5 }
0x54c8   :  { %v5522_v58 = vadd.f32 1.0, %v7247_v34 }
0x54ca   :  { %7248 = vrcp.f32 %v5522_v58  ;;  %v5963_v58 = vld [vmem:[%s9273_s14 + $0x8] sm:$0xf]  ;;  %s9154_s14 = sld [smem:[#allocation3]] }
0x54cb   :  { %6390 = vmatmul.mubr.msk.f32.vlgmr.msra.gmra.mrb[38].mxu1 %vm351_vm5, %v5963_v58 }
0x54cc   :  { %6394 = vmatprep.mubr.msk.f32.mxu1 %vm7287_vm14, %v7283_v7 }
0x54d4   :  { %v7249_v11 = vpop.eup %7248 }
0x54d5   :  { %v5526_v17 = vmul.f32 %v7249_v11, %v5403_v29 }
0x5538   :  { %v5529_v59 = vpop.permute.xlu0 %5528 }
0x5539   :  { %v5531_v50 = vmul.f32 %v7249_v11, %v5529_v59 }
0x553b   :  { %5533 = vrot.lane.b32.xlu1 %v5531_v50, %s7285_s12 }
0x55ad   :  { %v5534_v60 = vpop.permute.xlu1 %5533 }
0x55ae   :  { %v5536_v48 = vadd.f32 %v5534_v60, %v5526_v17  ;;  %v6362_v17 = vld [vmem:[%s9275_s16] ss:$0 sm:$0xff]  ;;  %v6391_v60 = vpop.f32.mrb[38].mxu1  ;;  %s9165_s16 = sld [smem:[#allocation3 + $0x1]] }
0x55b0   :  { %7250 = vtanh.f32 %v5536_v48 }
0x55ba   :  { %v7251_v2 = vpop.eup %7250 }
0x55bb   :  { %5539 = vrot.lane.b32.xlu0 %v7251_v2, %s7284_s28  ;;  %v6047_v2 = vpop.f32.mrb[39].mxu1 }
0x562d   :  { %v5540_v22 = vpop.permute.xlu0 %5539 }
0x562e   :  { %v5542_v45 = vmul.f32 %v7249_v11, %v5540_v22  ;;  %v9129_v22 = vadd.f32 %v6362_v17, %v6047_v2 }
0x5630   :  { %v5547_v36 = vrot.slane %v5542_v45, 2  ;;  %5544 = vrot.lane.b32.xlu1 %v5542_v45, %s7285_s12  ;;  %v6056_v45 = vmax.f32 %v9129_v22, 0.0 }
0x5632   :  { %5548 = vrot.lane.b32.xlu0 %v5547_v36, %s7284_s28  ;;  %v5685_v36 = vsel %vm351_vm5, %v9035_v15, %v9009_v30  ;;  %6393 = vmatpush3.xpose.msra.mxu1 %v6056_v45 }
0x5633   :  { %6397 = vmatprep.subr.mxu1 %v7283_v7 }
0x56a2   :  { %v9083_v52 = vpop.permute.xlu1 %5544 }
0x56a4   :  { %v9085_v23 = vpop.permute.xlu0 %5548 }
0x56a5   :  { %v5551_v55 = vsel %vm351_vm5, %v9083_v52, %v9085_v23  ;;  %v5682_v30 = vsel %vm351_vm5, %v8949_v32, %v9085_v23  ;;  %v5687_v32 = vsel %vm351_vm5, %v9083_v52, %v8951_v62 }
0x56a6   :  { %6360 = vmatmul.mubr.msk.f32.vlgmr.msra.gmra.mrb[40].mxu0 %vm216_vm6, %v5551_v55  ;;  %v5684_v55 = vsel %vm351_vm5, %v9007_v51, %v9037_v4  ;;  %v5683_v51 = vsel %vm351_vm5, %v8978_v56, %v9065_v54  ;;  %v5724_v4 = vrot.slane %v5682_v30, %v7941_v37 }
0x5779   :  { %v5621_v46 = vpop.f32.mrb[40].mxu0 }
0x577a   :  { %v5627_v47 = vrot.slane %v5621_v46, 1  ;;  %v5628_v6 = vrot.slane %v5621_v46, 2  ;;  %v5623_v20 = vpop.f32.mrb[41].mxu0  ;;  %v5793_v46 = vrot.slane %v5685_v36, %v7941_v37 }
0x577b   :  { %v5634_v26 = vrot.slane %v5623_v20, 1  ;;  %v5637_v29 = vadd.f32 %v5623_v20, %v8900_v10 }
0x577c   :  { %v5631_v12 = vadd.f32 %v5627_v47, %v8902_v38  ;;  %v5632_v24 = vadd.f32 %v5628_v6, %v8904_v28  ;;  %v5686_v47 = vsel %vm351_vm5, %v9063_v33, %v8980_v21  ;;  %v5770_v6 = vrot.slane %v5684_v55, %v7941_v37 }
0x577d   :  { %v5638_v31 = vadd.f32 %v5634_v26, %v8907_v43  ;;  %v5647_v44 = vrot.slane %v5637_v29, 6  ;;  %v5816_v15 = vrot.slane %v5686_v47, %v7941_v37  ;;  %v5794_v20 = vcombine.high %v5793_v46, %v5793_v46 }
0x577e   :  { %v5641_v3 = vrot.slane %v5631_v12, 7  ;;  %v5642_v0 = vrot.slane %v5632_v24, 6  ;;  %v5771_v26 = vcombine.high %v5770_v6, %v5770_v6  ;;  %v5747_v21 = vrot.slane %v5683_v51, %v7941_v37 }
0x577f   :  { %v5648_v39 = vrot.slane %v5638_v31, 5  ;;  %v5817_v29 = vcombine.high %v5816_v15, %v5816_v15  ;;  %v5801_v33 = vrot.slane %v5793_v46, %v7941_v37  ;;  %v5808_v12 = vrot.slane %v5794_v20, %v7941_v37 }
0x5780   :  { %v5643_v41 = vsel %vm307_vm2, %v5642_v0, %v5641_v3  ;;  %v5778_v23 = vrot.slane %v5770_v6, %v7941_v37  ;;  %v5725_v24 = vcombine.high %v5724_v4, %v5724_v4  ;;  %v5785_v56 = vrot.slane %v5771_v26, %v7941_v37 }
0x5781   :  { %v5649_v13 = vsel %vm314_vm3, %v5648_v39, %v5647_v44  ;;  %v5824_v54 = vrot.slane %v5816_v15, %v7941_v37  ;;  %v5831_v3 = vrot.slane %v5817_v29, %v7941_v37  ;;  %v5748_v0 = vcombine.high %v5747_v21, %v5747_v21 }
0x5782   :  { %v5651_v42 = vsel %vm317_vm4, %v5643_v41, %v5649_v13  ;;  %v5839_v44 = vrot.slane %v5687_v32, %v7941_v37  ;;  %v5911_v62 = vrot.slane %v5801_v33, %v7594_v14  ;;  %v5915_v52 = vrot.slane %v5808_v12, %v7594_v14 }
0x5783   :  { %7252 = vtanh.f32 %v5651_v42  ;;  %v6361_v10 = vmul.f32 -1.442695, %v5651_v42  ;;  %v5732_v41 = vrot.slane %v5724_v4, %v7941_v37 }
0x5784   :  { %v5847_v63 = vrot.slane %v5839_v44, %v7941_v37 }
0x5785   :  { %7254 = vpow2.f32 %v6361_v10  ;;  %v5755_v10 = vrot.slane %v5747_v21, %v7941_v37  ;;  %v5881_v35 = vrot.slane %v5732_v41, %v7594_v14 }
0x5787   :  { %v5891_v16 = vrot.slane %v5755_v10, %v7594_v14 }
0x578d   :  { %v7253_v27 = vpop.eup %7252 }
0x578e   :  { %5661 = vrot.lane.b32.xlu1 %v7253_v27, %s7284_s28  ;;  %v5901_v27 = vrot.slane %v5778_v23, %v7594_v14 }
0x578f   :  { %v7255_v38 = vpop.eup %7254 }
0x5790   :  { %v5655_v28 = vadd.f32 1.0, %v7255_v38  ;;  %v5739_v38 = vrot.slane %v5725_v24, %v7941_v37 }
0x5792   :  { %7256 = vrcp.f32 %v5655_v28  ;;  %v5885_v5 = vrot.slane %v5739_v38, %v7594_v14 }
0x579c   :  { %v7257_v43 = vpop.eup %7256 }
0x579d   :  { %v5659_v8 = vmul.f32 %v7257_v43, %v5536_v48  ;;  %v9127_v48 = vadd.f32 %v6391_v60, %v6362_v17  ;;  %v5931_v60 = vrot.slane %v5847_v63, %v7594_v14 }
0x579f   :  { %v6057_v18 = vmax.f32 %v9127_v48, 0.0 }
0x57a1   :  { %v6198_v30 = vrot.slane %v6057_v18, 6 }
0x5800   :  { %v5662_v19 = vpop.permute.xlu1 %5661 }
0x5801   :  { %v5664_v53 = vmul.f32 %v7257_v43, %v5662_v19 }
0x5803   :  { %5666 = vrot.lane.b32.xlu0 %v5664_v53, %s7285_s12  ;;  %v6061_v53 = vstv %s9154_s14 }
0x5804   :  { %vm6062_vm12 = vcmp.eq.s32.totalorder %v7585_v9, %v6061_v53 }
0x5805   :  { %v6365_v46 = vsel %vm6062_vm12, 1.0, %v7283_v7 }
0x5875   :  { %v5667_v49 = vpop.permute.xlu0 %5666 }
0x5876   :  { %v5669_v25 = vadd.f32 %v5667_v49, %v5659_v8  ;;  %v5925_v8 = vrot.slane %v5831_v3, %v7594_v14  ;;  %v5762_v49 = vrot.slane %v5748_v0, %v7941_v37 }
0x5878   :  { %7258 = vtanh.f32 %v5669_v25  ;;  %v5840_v25 = vcombine.high %v5839_v44, %v5839_v44 }
0x587a   :  { %v5854_v17 = vrot.slane %v5840_v25, %v7941_v37 }
0x587c   :  { %v5935_v4 = vrot.slane %v5854_v17, %v7594_v14 }
0x5882   :  { %v7259_v34 = vpop.eup %7258 }
0x5883   :  { %5672 = vrot.lane.b32.xlu1 %v7259_v34, %s7284_s28 }
0x58f5   :  { %v5673_v11 = vpop.permute.xlu1 %5672 }
0x58f6   :  { %v5675_v59 = vmul.f32 %v7257_v43, %v5673_v11  ;;  %v5921_v43 = vrot.slane %v5824_v54, %v7594_v14 }
0x58f8   :  { %v5677_v50 = vrot.slane %v5675_v59, 2  ;;  %5688 = vrot.lane.b32.xlu1 %v5675_v59, %s7285_s12  ;;  %v6170_v59 = vstv %s9165_s16 }
0x58f9   :  { %vm6171_vm13 = vcmp.eq.s32.totalorder %v7585_v9, %v6170_v59 }
0x58fa   :  { %5678 = vrot.lane.b32.xlu0 %v5677_v50, %s7284_s28  ;;  %v5895_v50 = vrot.slane %v5762_v49, %v7594_v14  ;;  %v6368_v12 = vsel %vm6171_vm13, 1.0, %v7283_v7  ;;  %v6370_v49 = vld [vmem:[%s9276_s17 + $0x1] ss:$0 sm:$0xff] }
0x596a   :  { %v5689_v31 = vpop.permute.xlu1 %5688 }
0x596b   :  { %v5691_v39 = vsel %vm351_vm5, %v5689_v31, %v8922_v1  ;;  %v5905_v1 = vrot.slane %v5785_v56, %v7594_v14 }
0x596c   :  { %v5862_v13 = vrot.slane %v5691_v39, %v7941_v37  ;;  %v5679_v42 = vpop.permute.xlu0 %5678 }
0x596d   :  { %v5681_v28 = vsel %vm351_vm5, %v8920_v40, %v5679_v42 }
0x596e   :  { %v5699_v19 = vrot.slane %v5681_v28, %v7941_v37  ;;  %v5863_v61 = vcombine.high %v5862_v13, %v5862_v13  ;;  %v5870_v34 = vrot.slane %v5862_v13, %v7941_v37 }
0x5970   :  { %v5700_v57 = vcombine.high %v5699_v19, %v5699_v19  ;;  %v5707_v40 = vrot.slane %v5699_v19, %v7941_v37  ;;  %v5877_v36 = vrot.slane %v5863_v61, %v7941_v37  ;;  %v5941_v15 = vrot.slane %v5870_v34, %v7594_v14 }
0x5972   :  { %v5714_v58 = vrot.slane %v5700_v57, %v7941_v37  ;;  %v5948_v11 = vsel %vm132_vm0, %v5707_v40, %v5881_v35  ;;  %v6197_v37 = vrot.slane %v6056_v45, 6  ;;  %v5945_v21 = vrot.slane %v5877_v36, %v7594_v14 }
0x5973   :  { %v5950_v2 = vsel %vm317_vm4, %v5948_v11, %v5891_v16 }
0x5974   :  { %v5949_v55 = vsel %vm132_vm0, %v5714_v58, %v5885_v5  ;;  %v5952_v48 = vsel %vm1552_vm7, %v5950_v2, %v5901_v27  ;;  %v6199_v45 = vsel %vm317_vm4, %v6197_v37, %v6198_v30 }
0x5975   :  { %v5951_v47 = vsel %vm317_vm4, %v5949_v55, %v5895_v50  ;;  %v5954_v6 = vsel %vm1555_vm8, %v5952_v48, %v5911_v62 }
0x5976   :  { %v5953_v20 = vsel %vm1552_vm7, %v5951_v47, %v5905_v1  ;;  %v5956_v51 = vsel %vm1558_vm9, %v5954_v6, %v5921_v43  ;;  %v6366_v43 = vld [vmem:[%s9276_s17] ss:$0 sm:$0xff] }
0x5977   :  { %v5955_v26 = vsel %vm1555_vm8, %v5953_v20, %v5915_v52  ;;  %v5958_v29 = vsel %vm1561_vm10, %v5956_v51, %v5931_v60 }
0x5978   :  { %v5960_v9 = vsel %vm1564_vm11, %v5958_v29, %v5941_v15  ;;  %v5957_v33 = vsel %vm1558_vm9, %v5955_v26, %v5925_v8 }
0x5979   :  { %v6065_v32 = vmul.f32 %v6365_v46, %v5960_v9  ;;  %v5959_v23 = vsel %vm1561_vm10, %v5957_v33, %v5935_v4 }
0x597a   :  { %v5961_v22 = vsel %vm1564_vm11, %v5959_v23, %v5945_v21 }
0x597b   :  { %v6066_v24 = vsel %vm216_vm6, %v6065_v32, 0.0  ;;  %v6174_v56 = vmul.f32 %v6368_v12, %v5961_v22 }
0x597c   :  { %v6067_v14 = vrot.slane %v6066_v24, 4 }
0x597d   :  { %v6175_v54 = vsel %vm216_vm6, %v6174_v56, 0.0 }
0x597e   :  { %v6068_v31 = vadd.f32 %v6067_v14, %v6066_v24  ;;  %v6176_v3 = vrot.slane %v6175_v54, 4 }
0x5980   :  { %v6069_v0 = vrot.slane %v6068_v31, 2  ;;  %v6177_v44 = vadd.f32 %v6176_v3, %v6175_v54 }
0x5982   :  { %v6070_v39 = vadd.f32 %v6069_v0, %v6068_v31  ;;  %v6178_v62 = vrot.slane %v6177_v44, 2 }
0x5984   :  { %v6071_v52 = vrot.slane %v6070_v39, 1  ;;  %v6179_v41 = vadd.f32 %v6178_v62, %v6177_v44 }
0x5986   :  { %v6072_v13 = vadd.f32 %v6071_v52, %v6070_v39  ;;  %v6180_v42 = vrot.slane %v6179_v41, 1 }
0x5988   :  { %6074 = vrot.lane.b32.xlu0 %v6072_v13, %s7284_s28  ;;  %v6181_v27 = vadd.f32 %v6180_v42, %v6179_v41 }
0x598a   :  { %6183 = vrot.lane.b32.xlu1 %v6181_v27, %s7284_s28 }
0x59fa   :  { %v6075_v10 = vpop.permute.xlu0 %6074 }
0x59fb   :  { %v6077_v38 = vsel %vm216_vm6, %v5960_v9, %v6075_v10 }
0x59fc   :  { %6395 = vmatmul.mubr.f32.vlgmr.msra.gmra.mrb[40].mxu1 %v6077_v38  ;;  %v6184_v28 = vpop.permute.xlu1 %6183 }
0x59fd   :  { %6398 = vmatpush3.xpose.msra.mxu1 %v6199_v45  ;;  %6399 = vmatprep.mubr.msk.f32.mxu1 %vm7287_vm14, %v7283_v7  ;;  %v6186_v1 = vsel %vm216_vm6, %v5961_v22, %v6184_v28 }
0x5a00   :  { %6400 = vmatmul.mubr.f32.vlgmr.msra.gmra.mrb[42].mxu1 %v6186_v1 }
0x5acf   :  { %v6151_v19 = vpop.f32.mrb[40].mxu1 }
0x5ad0   :  { %v6152_v53 = vadd.f32 %v6366_v43, %v6151_v19  ;;  %v6396_v8 = vpop.f32.mrb[41].mxu1 }
0x5ad2   :  { %6156 = vst.msk [vmem:[%s9277_s18] sm:$0xff] %vm6155_vm15, %v6152_v53  ;;  %v6157_v7 = vsel %vm6155_vm15, %v6152_v53, -inf }
0x5ad3   :  { %6158 = vmax.xlane.f32.xlu0 %v6157_v7  ;;  %v6267_v25 = vpop.f32.mrb[42].mxu1 }
0x5ad4   :  { %v6268_v63 = vadd.f32 %v6370_v49, %v6267_v25  ;;  %v6401_v35 = vpop.f32.mrb[43].mxu1 }
0x5ad6   :  { %6271 = vst.msk [vmem:[%s9277_s18 + $0x8] sm:$0xff] %vm6155_vm15, %v6268_v63  ;;  %v6272_v61 = vsel %vm6155_vm15, %v6268_v63, -inf }
0x5ad7   :  { %6273 = vmax.xlane.f32.xlu1 %v6272_v61 }
0x5b60   :  { %v6159_v57 = vpop.xlane.xlu0 %6158 }
0x5b61   :  { %v6160_v40 = vsub.f32 %v6152_v53, %v6159_v57 }
0x5b63   :  { %v6161_v16 = vmul.f32 1.442695, %v6160_v40 }
0x5b64   :  { %v6274_v5 = vpop.xlane.xlu1 %6273 }
0x5b65   :  { %7260 = vpow2.f32 %v6161_v16  ;;  %v6275_v18 = vsub.f32 %v6268_v63, %v6274_v5 }
0x5b67   :  { %v6276_v34 = vmul.f32 1.442695, %v6275_v18 }
0x5b69   :  { %7262 = vpow2.f32 %v6276_v34 }
0x5b6f   :  { %v7261_v58 = vpop.eup %7260 }
0x5b70   :  { %v6163_v11 = vsel %vm6155_vm15, %v7261_v58, 0.0 }
0x5b71   :  { %6164 = vadd.xlane.f32.xlu0 %v6163_v11 }
0x5b73   :  { %v7263_v59 = vpop.eup %7262 }
0x5b74   :  { %v6278_v50 = vsel %vm6155_vm15, %v7263_v59, 0.0 }
0x5b75   :  { %6279 = vadd.xlane.f32.xlu0 %v6278_v50 }
0x5bfe   :  { %v6165_v17 = vpop.xlane.xlu0 %6164 }
0x5bff   :  { %7264 = vrcp.f32 %v6165_v17 }
0x5c02   :  { %v6280_v60 = vpop.xlane.xlu0 %6279 }
0x5c03   :  { %7266 = vrcp.f32 %v6280_v60 }
0x5c09   :  { %v7265_v2 = vpop.eup %7264 }
0x5c0a   :  { %v6167_v36 = vmul.f32 %v7265_v2, %v7261_v58 }
0x5c0c   :  { %6168 = vst.msk [vmem:[%s9278_s19] sm:$0xff] %vm6155_vm15, %v6167_v36 }
0x5c0d   :  { %v7267_v55 = vpop.eup %7266 }
0x5c0e   :  { %v6282_v48 = vmul.f32 %v7267_v55, %v7263_v59 }
0x5c10   :  { %6283 = vst.msk [vmem:[%s9278_s19 + $0x8] sm:$0xff] %vm6155_vm15, %v6282_v48 }

</bundles_post_ra>
